<compile_context>
chip_gen: v7x
topology: tpu7x:2x2x1
jax: 0.10.0
libtpu: 0.0.40
codegen_flags: <defaults>
</compile_context>

<pallas_src>
import functools

import jax
import jax.numpy as jnp
from jax.experimental import pallas as pl
from jax.experimental.pallas import tpu as pltpu

_BN_EPS = 1e-5


def _bn_train(y, gamma, beta):
    """Training-mode BatchNorm2d on a flattened (N*H*W, C) activation.

    Single-pass statistics: var = E[x^2] - mean^2 (biased, as PyTorch uses in
    the normalization itself)."""
    m = jnp.mean(y, axis=0, keepdims=True)
    m2 = jnp.mean(y * y, axis=0, keepdims=True)
    var = m2 - m * m
    return (y - m) * jax.lax.rsqrt(var + _BN_EPS) * gamma + beta


def _conv3x3_im2col(pad_ref, x, w_flat, n, h, w, cin, cout):
    """3x3 same-conv (stride 1, no bias) as ONE im2col MXU matmul.

    pad_ref: zero-bordered VMEM scratch (n, h+2, w+2, Cmax); only the first
    `cin` channels are touched.  The 1-px border was zeroed once at kernel
    start and is never written again, so it stays zero for every conv."""
    pad_ref[:, 1:h + 1, 1:w + 1, :cin] = x
    taps = [pad_ref[:, dy:dy + h, dx:dx + w, :cin]
            for dy in range(3) for dx in range(3)]
    cols = jnp.concatenate(taps, axis=-1).reshape(n * h * w, 9 * cin)
    return jnp.dot(cols, w_flat, preferred_element_type=jnp.float32)


def _fused_resnet_kernel(*refs, chain, has_ds, n, h, w):
    nblk = len(chain) - 1

    # ---- unpack positional refs (layout fixed at build time) ----
    idx = 0
    x_ref = refs[idx]; idx += 1
    blocks = []
    for i in range(nblk):
        cnt = 9 if has_ds[i] else 6
        blocks.append(refs[idx:idx + cnt]); idx += cnt
    wfc_ref = refs[idx]; idx += 1          # (C_last, 1)
    bfc_ref = refs[idx]; idx += 1          # (1, 1)
    o_ref = refs[idx]; idx += 1            # (n, 1)
    pad_ref = refs[idx]; idx += 1          # scratch (n, h+2, w+2, Cmax)

    # Zero the padded scratch once; border stays zero for all 6 convs.
    pad_ref[...] = jnp.zeros(pad_ref.shape, jnp.float32)

    xact = x_ref[...].astype(jnp.float32)  # (n, h, w, c0)
    for i in range(nblk):
        cin, cout = chain[i], chain[i + 1]
        if has_ds[i]:
            w1, g1, b1, w2, g2, b2, wd, gd, bd = blocks[i]
        else:
            w1, g1, b1, w2, g2, b2 = blocks[i]

        # conv1 -> bn1 -> relu
        a1 = _conv3x3_im2col(pad_ref, xact, w1[...], n, h, w, cin, cout)
        a1 = jnp.maximum(_bn_train(a1, g1[...], b1[...]), 0.0)

        # conv2 -> bn2
        a2 = _conv3x3_im2col(pad_ref, a1.reshape(n, h, w, cout), w2[...],
                             n, h, w, cout, cout)
        a2 = _bn_train(a2, g2[...], b2[...])

        # residual branch: identity or 1x1 conv + bn
        xflat = xact.reshape(n * h * w, cin)
        if has_ds[i]:
            res = jnp.dot(xflat, wd[...], preferred_element_type=jnp.float32)
            res = _bn_train(res, gd[...], bd[...])
        else:
            res = xflat  # only valid when cin == cout (checked in wrapper)

        xact = jnp.maximum(a2 + res, 0.0).reshape(n, h, w, cout)

    # ---- head: AdaptiveAvgPool2d((1,1)) -> Linear(C,1) -> ReLU ----
    c_last = chain[-1]
    pooled = jnp.mean(xact.reshape(n, h * w, c_last), axis=1)          # (n, C)
    y = jnp.dot(pooled, wfc_ref[...], preferred_element_type=jnp.float32)
    o_ref[...] = jnp.maximum(y + bfc_ref[...], 0.0)                    # (n, 1)


def _full_spec(shape):
    nd = len(shape)
    return pl.BlockSpec(shape, lambda i, _nd=nd: (0,) * _nd)


def resnet_forward(x_nhwc, blocks, wfc_t, bfc, chain):
    """Fused forward pass of the whole ResNet on an NHWC input."""
    n, h, w, c0 = x_nhwc.shape
    assert c0 == chain[0]
    nblk = len(chain) - 1
    has_ds = tuple(chain[i] != chain[i + 1] for i in range(nblk))
    for i in range(nblk):
        if not has_ds[i]:
            assert chain[i] == chain[i + 1], "identity block needs cin == cout"

    # Build the flat argument list; skip downsample weights for identity blocks.
    args = [x_nhwc]
    flops = 0
    for i, p in enumerate(blocks):
        cin, cout = chain[i], chain[i + 1]
        args += [p["w1"].reshape(9 * cin, cout), p["g1"], p["b1"],
                 p["w2"].reshape(9 * cout, cout), p["g2"], p["b2"]]
        flops += 2 * n * h * w * 9 * cin * cout
        flops += 2 * n * h * w * 9 * cout * cout
        if has_ds[i]:
            args += [p["wd"], p["gd"], p["bd"]]
            flops += 2 * n * h * w * cin * cout
    args += [wfc_t, bfc]
    flops += 2 * n * chain[-1]

    cmax = max(chain)
    bytes_accessed = sum(int(a.size) * a.dtype.itemsize for a in args) + n * 4
    cost = pl.CostEstimate(flops=int(flops), transcendentals=8 * cmax,
                           bytes_accessed=int(bytes_accessed))

    kernel = functools.partial(_fused_resnet_kernel, chain=tuple(chain),
                               has_ds=has_ds, n=n, h=h, w=w)
    return pl.pallas_call(
        kernel,
        out_shape=jax.ShapeDtypeStruct((n, 1), jnp.float32),
        grid=(1,),
        in_specs=[_full_spec(a.shape) for a in args],
        out_specs=_full_spec((n, 1)),
        scratch_shapes=[pltpu.VMEM((n, h + 2, w + 2, cmax), jnp.float32)],
        compiler_params=pltpu.CompilerParams(
            dimension_semantics=("arbitrary",)),
        cost_estimate=cost,
    )(*args)


def init_block_params(key, cin, cout):
    ks = jax.random.split(key, 9)
    f32 = jnp.float32
    return {
        "w1": jax.random.normal(ks[0], (3, 3, cin, cout), f32) * (2.0 / (9 * cin)) ** 0.5,
        "g1": 1.0 + 0.1 * jax.random.normal(ks[1], (1, cout), f32),
        "b1": 0.1 * jax.random.normal(ks[2], (1, cout), f32),
        "w2": jax.random.normal(ks[3], (3, 3, cout, cout), f32) * (2.0 / (9 * cout)) ** 0.5,
        "g2": 1.0 + 0.1 * jax.random.normal(ks[4], (1, cout), f32),
        "b2": 0.1 * jax.random.normal(ks[5], (1, cout), f32),
        "wd": jax.random.normal(ks[6], (cin, cout), f32) * (1.0 / cin) ** 0.5,
        "gd": 1.0 + 0.1 * jax.random.normal(ks[7], (1, cout), f32),
        "bd": 0.1 * jax.random.normal(ks[8], (1, cout), f32),
    }


if __name__ == "__main__":
    # Small config: slice_num=2, time_frame=4, channels=[16,32,64], depth=3.
    B, S, T, H, W = 2, 2, 4, 8, 8
    channels = [16, 32, 64]
    chain = [S * T] + channels

    key = jax.random.PRNGKey(0)
    kx, kfc, kb, *kblk = jax.random.split(key, 3 + len(channels))

    x5d = jax.random.normal(kx, (B, S, T, H, W), jnp.float32)
    blocks = [init_block_params(kblk[i], chain[i], chain[i + 1])
              for i in range(len(channels))]
    # fc weight stored pre-transposed as (C, 1) for the in-kernel MXU dot.
    wfc_t = jax.random.normal(kfc, (channels[-1], 1), jnp.float32) * (1.0 / channels[-1]) ** 0.5
    bfc = 0.1 * jax.random.normal(kb, (1, 1), jnp.float32)

    @jax.jit
    def forward(x5d, blocks, wfc_t, bfc):
        # torch: x.view(B, -1, H, W)  (NCHW)  -> NHWC for the kernel
        x = x5d.reshape(B, S * T, H, W)
        x = jnp.transpose(x, (0, 2, 3, 1))
        y = resnet_forward(x, blocks, wfc_t, bfc, chain)   # (B, 1)
        return y[:, :, None]                               # (B, 1, 1) == .unsqueeze(-1)

    out = forward(x5d, blocks, wfc_t, bfc)
    jax.block_until_ready(out)
    assert out.shape == (B, 1, 1) and out.dtype == jnp.float32
    print("KERNEL_OK")
</pallas_src>

<mosaic_0001>
module attributes {stable_mosaic.version = 11 : i64} {
  func.func @_fused_resnet_kernel(%arg0: i32, %arg1: memref<2x8x8x8xf32, #tpu.memory_space<vmem>>, %arg2: memref<72x16xf32, #tpu.memory_space<vmem>>, %arg3: memref<1x16xf32, #tpu.memory_space<vmem>>, %arg4: memref<1x16xf32, #tpu.memory_space<vmem>>, %arg5: memref<144x16xf32, #tpu.memory_space<vmem>>, %arg6: memref<1x16xf32, #tpu.memory_space<vmem>>, %arg7: memref<1x16xf32, #tpu.memory_space<vmem>>, %arg8: memref<8x16xf32, #tpu.memory_space<vmem>>, %arg9: memref<1x16xf32, #tpu.memory_space<vmem>>, %arg10: memref<1x16xf32, #tpu.memory_space<vmem>>, %arg11: memref<144x32xf32, #tpu.memory_space<vmem>>, %arg12: memref<1x32xf32, #tpu.memory_space<vmem>>, %arg13: memref<1x32xf32, #tpu.memory_space<vmem>>, %arg14: memref<288x32xf32, #tpu.memory_space<vmem>>, %arg15: memref<1x32xf32, #tpu.memory_space<vmem>>, %arg16: memref<1x32xf32, #tpu.memory_space<vmem>>, %arg17: memref<16x32xf32, #tpu.memory_space<vmem>>, %arg18: memref<1x32xf32, #tpu.memory_space<vmem>>, %arg19: memref<1x32xf32, #tpu.memory_space<vmem>>, %arg20: memref<288x64xf32, #tpu.memory_space<vmem>>, %arg21: memref<1x64xf32, #tpu.memory_space<vmem>>, %arg22: memref<1x64xf32, #tpu.memory_space<vmem>>, %arg23: memref<576x64xf32, #tpu.memory_space<vmem>>, %arg24: memref<1x64xf32, #tpu.memory_space<vmem>>, %arg25: memref<1x64xf32, #tpu.memory_space<vmem>>, %arg26: memref<32x64xf32, #tpu.memory_space<vmem>>, %arg27: memref<1x64xf32, #tpu.memory_space<vmem>>, %arg28: memref<1x64xf32, #tpu.memory_space<vmem>>, %arg29: memref<64x1xf32, #tpu.memory_space<vmem>>, %arg30: memref<1x1xf32, #tpu.memory_space<vmem>>, %arg31: memref<2x1xf32, #tpu.memory_space<vmem>>, %arg32: memref<2x10x10x64xf32, #tpu.memory_space<vmem>>) attributes {dimension_semantics = [#tpu.dimension_semantics<arbitrary>], iteration_bounds = array<i64: 1>, scalar_prefetch = 0 : i64, scratch_operands = 1 : i64, tpu.core_type = #tpu.core_type<tc>, window_params = [{pipeline_mode = #tpu.pipeline_mode<synchronous>, transform_indices = @transform_0, window_bounds = array<i64: 2, 8, 8, 8>}, {pipeline_mode = #tpu.pipeline_mode<synchronous>, transform_indices = @transform_1, window_bounds = array<i64: 72, 16>}, {pipeline_mode = #tpu.pipeline_mode<synchronous>, transform_indices = @transform_2, window_bounds = array<i64: 1, 16>}, {pipeline_mode = #tpu.pipeline_mode<synchronous>, transform_indices = @transform_3, window_bounds = array<i64: 1, 16>}, {pipeline_mode = #tpu.pipeline_mode<synchronous>, transform_indices = @transform_4, window_bounds = array<i64: 144, 16>}, {pipeline_mode = #tpu.pipeline_mode<synchronous>, transform_indices = @transform_5, window_bounds = array<i64: 1, 16>}, {pipeline_mode = #tpu.pipeline_mode<synchronous>, transform_indices = @transform_6, window_bounds = array<i64: 1, 16>}, {pipeline_mode = #tpu.pipeline_mode<synchronous>, transform_indices = @transform_7, window_bounds = array<i64: 8, 16>}, {pipeline_mode = #tpu.pipeline_mode<synchronous>, transform_indices = @transform_8, window_bounds = array<i64: 1, 16>}, {pipeline_mode = #tpu.pipeline_mode<synchronous>, transform_indices = @transform_9, window_bounds = array<i64: 1, 16>}, {pipeline_mode = #tpu.pipeline_mode<synchronous>, transform_indices = @transform_10, window_bounds = array<i64: 144, 32>}, {pipeline_mode = #tpu.pipeline_mode<synchronous>, transform_indices = @transform_11, window_bounds = array<i64: 1, 32>}, {pipeline_mode = #tpu.pipeline_mode<synchronous>, transform_indices = @transform_12, window_bounds = array<i64: 1, 32>}, {pipeline_mode = #tpu.pipeline_mode<synchronous>, transform_indices = @transform_13, window_bounds = array<i64: 288, 32>}, {pipeline_mode = #tpu.pipeline_mode<synchronous>, transform_indices = @transform_14, window_bounds = array<i64: 1, 32>}, {pipeline_mode = #tpu.pipeline_mode<synchronous>, transform_indices = @transform_15, window_bounds = array<i64: 1, 32>}, {pipeline_mode = #tpu.pipeline_mode<synchronous>, transform_indices = @transform_16, window_bounds = array<i64: 16, 32>}, {pipeline_mode = #tpu.pipeline_mode<synchronous>, transform_indices = @transform_17, window_bounds = array<i64: 1, 32>}, {pipeline_mode = #tpu.pipeline_mode<synchronous>, transform_indices = @transform_18, window_bounds = array<i64: 1, 32>}, {pipeline_mode = #tpu.pipeline_mode<synchronous>, transform_indices = @transform_19, window_bounds = array<i64: 288, 64>}, {pipeline_mode = #tpu.pipeline_mode<synchronous>, transform_indices = @transform_20, window_bounds = array<i64: 1, 64>}, {pipeline_mode = #tpu.pipeline_mode<synchronous>, transform_indices = @transform_21, window_bounds = array<i64: 1, 64>}, {pipeline_mode = #tpu.pipeline_mode<synchronous>, transform_indices = @transform_22, window_bounds = array<i64: 576, 64>}, {pipeline_mode = #tpu.pipeline_mode<synchronous>, transform_indices = @transform_23, window_bounds = array<i64: 1, 64>}, {pipeline_mode = #tpu.pipeline_mode<synchronous>, transform_indices = @transform_24, window_bounds = array<i64: 1, 64>}, {pipeline_mode = #tpu.pipeline_mode<synchronous>, transform_indices = @transform_25, window_bounds = array<i64: 32, 64>}, {pipeline_mode = #tpu.pipeline_mode<synchronous>, transform_indices = @transform_26, window_bounds = array<i64: 1, 64>}, {pipeline_mode = #tpu.pipeline_mode<synchronous>, transform_indices = @transform_27, window_bounds = array<i64: 1, 64>}, {pipeline_mode = #tpu.pipeline_mode<synchronous>, transform_indices = @transform_28, window_bounds = array<i64: 64, 1>}, {pipeline_mode = #tpu.pipeline_mode<synchronous>, transform_indices = @transform_29, window_bounds = array<i64: 1, 1>}, {pipeline_mode = #tpu.pipeline_mode<synchronous>, transform_indices = @transform_30, window_bounds = array<i64: 2, 1>}]} {
    %cst = arith.constant 0.000000e+00 : f32
    %0 = vector.broadcast %cst : f32 to vector<2x10x10x64xf32>
    %c0 = arith.constant 0 : index
    %c0_0 = arith.constant 0 : index
    %c0_1 = arith.constant 0 : index
    %c0_2 = arith.constant 0 : index
    %1 = vector.load %arg32[%c0, %c0_0, %c0_1, %c0_2] : memref<2x10x10x64xf32, #tpu.memory_space<vmem>>, vector<2x10x10x64xf32>
    tpu.vector_store %arg32[%c0, %c0_0, %c0_1, %c0_2], %0 {strides = array<i32>} : memref<2x10x10x64xf32, #tpu.memory_space<vmem>>, vector<2x10x10x64xf32>,
    %c0_3 = arith.constant 0 : index
    %c0_4 = arith.constant 0 : index
    %c0_5 = arith.constant 0 : index
    %c0_6 = arith.constant 0 : index
    %2 = vector.load %arg1[%c0_3, %c0_4, %c0_5, %c0_6] : memref<2x8x8x8xf32, #tpu.memory_space<vmem>>, vector<2x8x8x8xf32>
    %c0_7 = arith.constant 0 : index
    %c0_8 = arith.constant 0 : index
    %3 = vector.load %arg2[%c0_7, %c0_8] : memref<72x16xf32, #tpu.memory_space<vmem>>, vector<72x16xf32>
    %c0_9 = arith.constant 0 : index
    %c1 = arith.constant 1 : index
    %c1_10 = arith.constant 1 : index
    %c0_11 = arith.constant 0 : index
    %4 = vector.load %arg32[%c0_9, %c1, %c1_10, %c0_11] : memref<2x10x10x64xf32, #tpu.memory_space<vmem>>, vector<2x8x8x8xf32>
    tpu.vector_store %arg32[%c0_9, %c1, %c1_10, %c0_11], %2 {strides = array<i32>} : memref<2x10x10x64xf32, #tpu.memory_space<vmem>>, vector<2x8x8x8xf32>,
    %c0_12 = arith.constant 0 : index
    %c0_13 = arith.constant 0 : index
    %c0_14 = arith.constant 0 : index
    %c0_15 = arith.constant 0 : index
    %5 = vector.load %arg32[%c0_12, %c0_13, %c0_14, %c0_15] : memref<2x10x10x64xf32, #tpu.memory_space<vmem>>, vector<2x8x8x8xf32>
    %c0_16 = arith.constant 0 : index
    %c0_17 = arith.constant 0 : index
    %c1_18 = arith.constant 1 : index
    %c0_19 = arith.constant 0 : index
    %6 = vector.load %arg32[%c0_16, %c0_17, %c1_18, %c0_19] : memref<2x10x10x64xf32, #tpu.memory_space<vmem>>, vector<2x8x8x8xf32>
    %c0_20 = arith.constant 0 : index
    %c0_21 = arith.constant 0 : index
    %c2 = arith.constant 2 : index
    %c0_22 = arith.constant 0 : index
    %7 = vector.load %arg32[%c0_20, %c0_21, %c2, %c0_22] : memref<2x10x10x64xf32, #tpu.memory_space<vmem>>, vector<2x8x8x8xf32>
    %c0_23 = arith.constant 0 : index
    %c1_24 = arith.constant 1 : index
    %c0_25 = arith.constant 0 : index
    %c0_26 = arith.constant 0 : index
    %8 = vector.load %arg32[%c0_23, %c1_24, %c0_25, %c0_26] : memref<2x10x10x64xf32, #tpu.memory_space<vmem>>, vector<2x8x8x8xf32>
    %c0_27 = arith.constant 0 : index
    %c1_28 = arith.constant 1 : index
    %c1_29 = arith.constant 1 : index
    %c0_30 = arith.constant 0 : index
    %9 = vector.load %arg32[%c0_27, %c1_28, %c1_29, %c0_30] : memref<2x10x10x64xf32, #tpu.memory_space<vmem>>, vector<2x8x8x8xf32>
    %c0_31 = arith.constant 0 : index
    %c1_32 = arith.constant 1 : index
    %c2_33 = arith.constant 2 : index
    %c0_34 = arith.constant 0 : index
    %10 = vector.load %arg32[%c0_31, %c1_32, %c2_33, %c0_34] : memref<2x10x10x64xf32, #tpu.memory_space<vmem>>, vector<2x8x8x8xf32>
    %c0_35 = arith.constant 0 : index
    %c2_36 = arith.constant 2 : index
    %c0_37 = arith.constant 0 : index
    %c0_38 = arith.constant 0 : index
    %11 = vector.load %arg32[%c0_35, %c2_36, %c0_37, %c0_38] : memref<2x10x10x64xf32, #tpu.memory_space<vmem>>, vector<2x8x8x8xf32>
    %c0_39 = arith.constant 0 : index
    %c2_40 = arith.constant 2 : index
    %c1_41 = arith.constant 1 : index
    %c0_42 = arith.constant 0 : index
    %12 = vector.load %arg32[%c0_39, %c2_40, %c1_41, %c0_42] : memref<2x10x10x64xf32, #tpu.memory_space<vmem>>, vector<2x8x8x8xf32>
    %c0_43 = arith.constant 0 : index
    %c2_44 = arith.constant 2 : index
    %c2_45 = arith.constant 2 : index
    %c0_46 = arith.constant 0 : index
    %13 = vector.load %arg32[%c0_43, %c2_44, %c2_45, %c0_46] : memref<2x10x10x64xf32, #tpu.memory_space<vmem>>, vector<2x8x8x8xf32>
    %14 = tpu.concatenate %5, %6, %7, %8, %9, %10, %11, %12, %13 in 3 : vector<2x8x8x8xf32>, vector<2x8x8x8xf32>, vector<2x8x8x8xf32>, vector<2x8x8x8xf32>, vector<2x8x8x8xf32>, vector<2x8x8x8xf32>, vector<2x8x8x8xf32>, vector<2x8x8x8xf32>, vector<2x8x8x8xf32> -> vector<2x8x8x72xf32>
    %15 = vector.shape_cast %14 : vector<2x8x8x72xf32> to vector<128x72xf32>
    %cst_47 = arith.constant dense<0.000000e+00> : vector<128x16xf32>
    %16 = tpu.matmul %15, %3, %cst_47 {dimension_numbers = #tpu.dot_dimension_numbers<[1], [0], [0], [1], [0, 0, 1, 1], [], []>} : vector<128x72xf32>, vector<72x16xf32>, vector<128x16xf32> -> vector<128x16xf32>
    %c0_48 = arith.constant 0 : index
    %c0_49 = arith.constant 0 : index
    %17 = vector.load %arg3[%c0_48, %c0_49] : memref<1x16xf32, #tpu.memory_space<vmem>>, vector<1x16xf32>
    %c0_50 = arith.constant 0 : index
    %c0_51 = arith.constant 0 : index
    %18 = vector.load %arg4[%c0_50, %c0_51] : memref<1x16xf32, #tpu.memory_space<vmem>>, vector<1x16xf32>
    %cst_52 = arith.constant dense<0.000000e+00> : vector<16xf32>
    %19 = vector.multi_reduction <add>, %16, %cst_52 [0] : vector<128x16xf32> to vector<16xf32>
    %20 = vector.shape_cast %19 : vector<16xf32> to vector<1x16xf32>
    %cst_53 = arith.constant 1.280000e+02 : f32
    %21 = vector.broadcast %cst_53 : f32 to vector<1x16xf32>
    %22 = arith.divf %20, %21 : vector<1x16xf32>
    %23 = arith.mulf %16, %16 : vector<128x16xf32>
    %cst_54 = arith.constant dense<0.000000e+00> : vector<16xf32>
    %24 = vector.multi_reduction <add>, %23, %cst_54 [0] : vector<128x16xf32> to vector<16xf32>
    %25 = vector.shape_cast %24 : vector<16xf32> to vector<1x16xf32>
    %cst_55 = arith.constant 1.280000e+02 : f32
    %26 = vector.broadcast %cst_55 : f32 to vector<1x16xf32>
    %27 = arith.divf %25, %26 : vector<1x16xf32>
    %28 = arith.mulf %22, %22 : vector<1x16xf32>
    %29 = arith.subf %27, %28 : vector<1x16xf32>
    %30 = vector.broadcast %22 : vector<1x16xf32> to vector<128x16xf32>
    %31 = arith.subf %16, %30 : vector<128x16xf32>
    %cst_56 = arith.constant 9.99999974E-6 : f32
    %32 = vector.broadcast %cst_56 : f32 to vector<1x16xf32>
    %33 = arith.addf %29, %32 : vector<1x16xf32>
    %34 = math.rsqrt %33 : vector<1x16xf32>
    %35 = vector.broadcast %34 : vector<1x16xf32> to vector<128x16xf32>
    %36 = arith.mulf %31, %35 : vector<128x16xf32>
    %37 = vector.broadcast %17 : vector<1x16xf32> to vector<128x16xf32>
    %38 = arith.mulf %36, %37 : vector<128x16xf32>
    %39 = vector.broadcast %18 : vector<1x16xf32> to vector<128x16xf32>
    %40 = arith.addf %38, %39 : vector<128x16xf32>
    %cst_57 = arith.constant 0.000000e+00 : f32
    %41 = vector.broadcast %cst_57 : f32 to vector<128x16xf32>
    %42 = arith.maximumf %40, %41 : vector<128x16xf32>
    %43 = vector.shape_cast %42 : vector<128x16xf32> to vector<2x8x8x16xf32>
    %c0_58 = arith.constant 0 : index
    %c0_59 = arith.constant 0 : index
    %44 = vector.load %arg5[%c0_58, %c0_59] : memref<144x16xf32, #tpu.memory_space<vmem>>, vector<144x16xf32>
    %c0_60 = arith.constant 0 : index
    %c1_61 = arith.constant 1 : index
    %c1_62 = arith.constant 1 : index
    %c0_63 = arith.constant 0 : index
    %45 = vector.load %arg32[%c0_60, %c1_61, %c1_62, %c0_63] : memref<2x10x10x64xf32, #tpu.memory_space<vmem>>, vector<2x8x8x16xf32>
    tpu.vector_store %arg32[%c0_60, %c1_61, %c1_62, %c0_63], %43 {strides = array<i32>} : memref<2x10x10x64xf32, #tpu.memory_space<vmem>>, vector<2x8x8x16xf32>,
    %c0_64 = arith.constant 0 : index
    %c0_65 = arith.constant 0 : index
    %c0_66 = arith.constant 0 : index
    %c0_67 = arith.constant 0 : index
    %46 = vector.load %arg32[%c0_64, %c0_65, %c0_66, %c0_67] : memref<2x10x10x64xf32, #tpu.memory_space<vmem>>, vector<2x8x8x16xf32>
    %c0_68 = arith.constant 0 : index
    %c0_69 = arith.constant 0 : index
    %c1_70 = arith.constant 1 : index
    %c0_71 = arith.constant 0 : index
    %47 = vector.load %arg32[%c0_68, %c0_69, %c1_70, %c0_71] : memref<2x10x10x64xf32, #tpu.memory_space<vmem>>, vector<2x8x8x16xf32>
    %c0_72 = arith.constant 0 : index
    %c0_73 = arith.constant 0 : index
    %c2_74 = arith.constant 2 : index
    %c0_75 = arith.constant 0 : index
    %48 = vector.load %arg32[%c0_72, %c0_73, %c2_74, %c0_75] : memref<2x10x10x64xf32, #tpu.memory_space<vmem>>, vector<2x8x8x16xf32>
    %c0_76 = arith.constant 0 : index
    %c1_77 = arith.constant 1 : index
    %c0_78 = arith.constant 0 : index
    %c0_79 = arith.constant 0 : index
    %49 = vector.load %arg32[%c0_76, %c1_77, %c0_78, %c0_79] : memref<2x10x10x64xf32, #tpu.memory_space<vmem>>, vector<2x8x8x16xf32>
    %c0_80 = arith.constant 0 : index
    %c1_81 = arith.constant 1 : index
    %c1_82 = arith.constant 1 : index
    %c0_83 = arith.constant 0 : index
    %50 = vector.load %arg32[%c0_80, %c1_81, %c1_82, %c0_83] : memref<2x10x10x64xf32, #tpu.memory_space<vmem>>, vector<2x8x8x16xf32>
    %c0_84 = arith.constant 0 : index
    %c1_85 = arith.constant 1 : index
    %c2_86 = arith.constant 2 : index
    %c0_87 = arith.constant 0 : index
    %51 = vector.load %arg32[%c0_84, %c1_85, %c2_86, %c0_87] : memref<2x10x10x64xf32, #tpu.memory_space<vmem>>, vector<2x8x8x16xf32>
    %c0_88 = arith.constant 0 : index
    %c2_89 = arith.constant 2 : index
    %c0_90 = arith.constant 0 : index
    %c0_91 = arith.constant 0 : index
    %52 = vector.load %arg32[%c0_88, %c2_89, %c0_90, %c0_91] : memref<2x10x10x64xf32, #tpu.memory_space<vmem>>, vector<2x8x8x16xf32>
    %c0_92 = arith.constant 0 : index
    %c2_93 = arith.constant 2 : index
    %c1_94 = arith.constant 1 : index
    %c0_95 = arith.constant 0 : index
    %53 = vector.load %arg32[%c0_92, %c2_93, %c1_94, %c0_95] : memref<2x10x10x64xf32, #tpu.memory_space<vmem>>, vector<2x8x8x16xf32>
    %c0_96 = arith.constant 0 : index
    %c2_97 = arith.constant 2 : index
    %c2_98 = arith.constant 2 : index
    %c0_99 = arith.constant 0 : index
    %54 = vector.load %arg32[%c0_96, %c2_97, %c2_98, %c0_99] : memref<2x10x10x64xf32, #tpu.memory_space<vmem>>, vector<2x8x8x16xf32>
    %55 = tpu.concatenate %46, %47, %48, %49, %50, %51, %52, %53, %54 in 3 : vector<2x8x8x16xf32>, vector<2x8x8x16xf32>, vector<2x8x8x16xf32>, vector<2x8x8x16xf32>, vector<2x8x8x16xf32>, vector<2x8x8x16xf32>, vector<2x8x8x16xf32>, vector<2x8x8x16xf32>, vector<2x8x8x16xf32> -> vector<2x8x8x144xf32>
    %56 = vector.shape_cast %55 : vector<2x8x8x144xf32> to vector<128x144xf32>
    %cst_100 = arith.constant dense<0.000000e+00> : vector<128x16xf32>
    %57 = tpu.matmul %56, %44, %cst_100 {dimension_numbers = #tpu.dot_dimension_numbers<[1], [0], [0], [1], [0, 0, 1, 1], [], []>} : vector<128x144xf32>, vector<144x16xf32>, vector<128x16xf32> -> vector<128x16xf32>
    %c0_101 = arith.constant 0 : index
    %c0_102 = arith.constant 0 : index
    %58 = vector.load %arg6[%c0_101, %c0_102] : memref<1x16xf32, #tpu.memory_space<vmem>>, vector<1x16xf32>
    %c0_103 = arith.constant 0 : index
    %c0_104 = arith.constant 0 : index
    %59 = vector.load %arg7[%c0_103, %c0_104] : memref<1x16xf32, #tpu.memory_space<vmem>>, vector<1x16xf32>
    %cst_105 = arith.constant dense<0.000000e+00> : vector<16xf32>
    %60 = vector.multi_reduction <add>, %57, %cst_105 [0] : vector<128x16xf32> to vector<16xf32>
    %61 = vector.shape_cast %60 : vector<16xf32> to vector<1x16xf32>
    %cst_106 = arith.constant 1.280000e+02 : f32
    %62 = vector.broadcast %cst_106 : f32 to vector<1x16xf32>
    %63 = arith.divf %61, %62 : vector<1x16xf32>
    %64 = arith.mulf %57, %57 : vector<128x16xf32>
    %cst_107 = arith.constant dense<0.000000e+00> : vector<16xf32>
    %65 = vector.multi_reduction <add>, %64, %cst_107 [0] : vector<128x16xf32> to vector<16xf32>
    %66 = vector.shape_cast %65 : vector<16xf32> to vector<1x16xf32>
    %cst_108 = arith.constant 1.280000e+02 : f32
    %67 = vector.broadcast %cst_108 : f32 to vector<1x16xf32>
    %68 = arith.divf %66, %67 : vector<1x16xf32>
    %69 = arith.mulf %63, %63 : vector<1x16xf32>
    %70 = arith.subf %68, %69 : vector<1x16xf32>
    %71 = vector.broadcast %63 : vector<1x16xf32> to vector<128x16xf32>
    %72 = arith.subf %57, %71 : vector<128x16xf32>
    %cst_109 = arith.constant 9.99999974E-6 : f32
    %73 = vector.broadcast %cst_109 : f32 to vector<1x16xf32>
    %74 = arith.addf %70, %73 : vector<1x16xf32>
    %75 = math.rsqrt %74 : vector<1x16xf32>
    %76 = vector.broadcast %75 : vector<1x16xf32> to vector<128x16xf32>
    %77 = arith.mulf %72, %76 : vector<128x16xf32>
    %78 = vector.broadcast %58 : vector<1x16xf32> to vector<128x16xf32>
    %79 = arith.mulf %77, %78 : vector<128x16xf32>
    %80 = vector.broadcast %59 : vector<1x16xf32> to vector<128x16xf32>
    %81 = arith.addf %79, %80 : vector<128x16xf32>
    %82 = vector.shape_cast %2 : vector<2x8x8x8xf32> to vector<128x8xf32>
    %c0_110 = arith.constant 0 : index
    %c0_111 = arith.constant 0 : index
    %83 = vector.load %arg8[%c0_110, %c0_111] : memref<8x16xf32, #tpu.memory_space<vmem>>, vector<8x16xf32>
    %cst_112 = arith.constant dense<0.000000e+00> : vector<128x16xf32>
    %84 = tpu.matmul %82, %83, %cst_112 {dimension_numbers = #tpu.dot_dimension_numbers<[1], [0], [0], [1], [0, 0, 1, 1], [], []>} : vector<128x8xf32>, vector<8x16xf32>, vector<128x16xf32> -> vector<128x16xf32>
    %c0_113 = arith.constant 0 : index
    %c0_114 = arith.constant 0 : index
    %85 = vector.load %arg9[%c0_113, %c0_114] : memref<1x16xf32, #tpu.memory_space<vmem>>, vector<1x16xf32>
    %c0_115 = arith.constant 0 : index
    %c0_116 = arith.constant 0 : index
    %86 = vector.load %arg10[%c0_115, %c0_116] : memref<1x16xf32, #tpu.memory_space<vmem>>, vector<1x16xf32>
    %cst_117 = arith.constant dense<0.000000e+00> : vector<16xf32>
    %87 = vector.multi_reduction <add>, %84, %cst_117 [0] : vector<128x16xf32> to vector<16xf32>
    %88 = vector.shape_cast %87 : vector<16xf32> to vector<1x16xf32>
    %cst_118 = arith.constant 1.280000e+02 : f32
    %89 = vector.broadcast %cst_118 : f32 to vector<1x16xf32>
    %90 = arith.divf %88, %89 : vector<1x16xf32>
    %91 = arith.mulf %84, %84 : vector<128x16xf32>
    %cst_119 = arith.constant dense<0.000000e+00> : vector<16xf32>
    %92 = vector.multi_reduction <add>, %91, %cst_119 [0] : vector<128x16xf32> to vector<16xf32>
    %93 = vector.shape_cast %92 : vector<16xf32> to vector<1x16xf32>
    %cst_120 = arith.constant 1.280000e+02 : f32
    %94 = vector.broadcast %cst_120 : f32 to vector<1x16xf32>
    %95 = arith.divf %93, %94 : vector<1x16xf32>
    %96 = arith.mulf %90, %90 : vector<1x16xf32>
    %97 = arith.subf %95, %96 : vector<1x16xf32>
    %98 = vector.broadcast %90 : vector<1x16xf32> to vector<128x16xf32>
    %99 = arith.subf %84, %98 : vector<128x16xf32>
    %cst_121 = arith.constant 9.99999974E-6 : f32
    %100 = vector.broadcast %cst_121 : f32 to vector<1x16xf32>
    %101 = arith.addf %97, %100 : vector<1x16xf32>
    %102 = math.rsqrt %101 : vector<1x16xf32>
    %103 = vector.broadcast %102 : vector<1x16xf32> to vector<128x16xf32>
    %104 = arith.mulf %99, %103 : vector<128x16xf32>
    %105 = vector.broadcast %85 : vector<1x16xf32> to vector<128x16xf32>
    %106 = arith.mulf %104, %105 : vector<128x16xf32>
    %107 = vector.broadcast %86 : vector<1x16xf32> to vector<128x16xf32>
    %108 = arith.addf %106, %107 : vector<128x16xf32>
    %109 = arith.addf %81, %108 : vector<128x16xf32>
    %cst_122 = arith.constant 0.000000e+00 : f32
    %110 = vector.broadcast %cst_122 : f32 to vector<128x16xf32>
    %111 = arith.maximumf %109, %110 : vector<128x16xf32>
    %112 = vector.shape_cast %111 : vector<128x16xf32> to vector<2x8x8x16xf32>
    %c0_123 = arith.constant 0 : index
    %c0_124 = arith.constant 0 : index
    %113 = vector.load %arg11[%c0_123, %c0_124] : memref<144x32xf32, #tpu.memory_space<vmem>>, vector<144x32xf32>
    %c0_125 = arith.constant 0 : index
    %c1_126 = arith.constant 1 : index
    %c1_127 = arith.constant 1 : index
    %c0_128 = arith.constant 0 : index
    %114 = vector.load %arg32[%c0_125, %c1_126, %c1_127, %c0_128] : memref<2x10x10x64xf32, #tpu.memory_space<vmem>>, vector<2x8x8x16xf32>
    tpu.vector_store %arg32[%c0_125, %c1_126, %c1_127, %c0_128], %112 {strides = array<i32>} : memref<2x10x10x64xf32, #tpu.memory_space<vmem>>, vector<2x8x8x16xf32>,
    %c0_129 = arith.constant 0 : index
    %c0_130 = arith.constant 0 : index
    %c0_131 = arith.constant 0 : index
    %c0_132 = arith.constant 0 : index
    %115 = vector.load %arg32[%c0_129, %c0_130, %c0_131, %c0_132] : memref<2x10x10x64xf32, #tpu.memory_space<vmem>>, vector<2x8x8x16xf32>
    %c0_133 = arith.constant 0 : index
    %c0_134 = arith.constant 0 : index
    %c1_135 = arith.constant 1 : index
    %c0_136 = arith.constant 0 : index
    %116 = vector.load %arg32[%c0_133, %c0_134, %c1_135, %c0_136] : memref<2x10x10x64xf32, #tpu.memory_space<vmem>>, vector<2x8x8x16xf32>
    %c0_137 = arith.constant 0 : index
    %c0_138 = arith.constant 0 : index
    %c2_139 = arith.constant 2 : index
    %c0_140 = arith.constant 0 : index
    %117 = vector.load %arg32[%c0_137, %c0_138, %c2_139, %c0_140] : memref<2x10x10x64xf32, #tpu.memory_space<vmem>>, vector<2x8x8x16xf32>
    %c0_141 = arith.constant 0 : index
    %c1_142 = arith.constant 1 : index
    %c0_143 = arith.constant 0 : index
    %c0_144 = arith.constant 0 : index
    %118 = vector.load %arg32[%c0_141, %c1_142, %c0_143, %c0_144] : memref<2x10x10x64xf32, #tpu.memory_space<vmem>>, vector<2x8x8x16xf32>
    %c0_145 = arith.constant 0 : index
    %c1_146 = arith.constant 1 : index
    %c1_147 = arith.constant 1 : index
    %c0_148 = arith.constant 0 : index
    %119 = vector.load %arg32[%c0_145, %c1_146, %c1_147, %c0_148] : memref<2x10x10x64xf32, #tpu.memory_space<vmem>>, vector<2x8x8x16xf32>
    %c0_149 = arith.constant 0 : index
    %c1_150 = arith.constant 1 : index
    %c2_151 = arith.constant 2 : index
    %c0_152 = arith.constant 0 : index
    %120 = vector.load %arg32[%c0_149, %c1_150, %c2_151, %c0_152] : memref<2x10x10x64xf32, #tpu.memory_space<vmem>>, vector<2x8x8x16xf32>
    %c0_153 = arith.constant 0 : index
    %c2_154 = arith.constant 2 : index
    %c0_155 = arith.constant 0 : index
    %c0_156 = arith.constant 0 : index
    %121 = vector.load %arg32[%c0_153, %c2_154, %c0_155, %c0_156] : memref<2x10x10x64xf32, #tpu.memory_space<vmem>>, vector<2x8x8x16xf32>
    %c0_157 = arith.constant 0 : index
    %c2_158 = arith.constant 2 : index
    %c1_159 = arith.constant 1 : index
    %c0_160 = arith.constant 0 : index
    %122 = vector.load %arg32[%c0_157, %c2_158, %c1_159, %c0_160] : memref<2x10x10x64xf32, #tpu.memory_space<vmem>>, vector<2x8x8x16xf32>
    %c0_161 = arith.constant 0 : index
    %c2_162 = arith.constant 2 : index
    %c2_163 = arith.constant 2 : index
    %c0_164 = arith.constant 0 : index
    %123 = vector.load %arg32[%c0_161, %c2_162, %c2_163, %c0_164] : memref<2x10x10x64xf32, #tpu.memory_space<vmem>>, vector<2x8x8x16xf32>
    %124 = tpu.concatenate %115, %116, %117, %118, %119, %120, %121, %122, %123 in 3 : vector<2x8x8x16xf32>, vector<2x8x8x16xf32>, vector<2x8x8x16xf32>, vector<2x8x8x16xf32>, vector<2x8x8x16xf32>, vector<2x8x8x16xf32>, vector<2x8x8x16xf32>, vector<2x8x8x16xf32>, vector<2x8x8x16xf32> -> vector<2x8x8x144xf32>
    %125 = vector.shape_cast %124 : vector<2x8x8x144xf32> to vector<128x144xf32>
    %cst_165 = arith.constant dense<0.000000e+00> : vector<128x32xf32>
    %126 = tpu.matmul %125, %113, %cst_165 {dimension_numbers = #tpu.dot_dimension_numbers<[1], [0], [0], [1], [0, 0, 1, 1], [], []>} : vector<128x144xf32>, vector<144x32xf32>, vector<128x32xf32> -> vector<128x32xf32>
    %c0_166 = arith.constant 0 : index
    %c0_167 = arith.constant 0 : index
    %127 = vector.load %arg12[%c0_166, %c0_167] : memref<1x32xf32, #tpu.memory_space<vmem>>, vector<1x32xf32>
    %c0_168 = arith.constant 0 : index
    %c0_169 = arith.constant 0 : index
    %128 = vector.load %arg13[%c0_168, %c0_169] : memref<1x32xf32, #tpu.memory_space<vmem>>, vector<1x32xf32>
    %cst_170 = arith.constant dense<0.000000e+00> : vector<32xf32>
    %129 = vector.multi_reduction <add>, %126, %cst_170 [0] : vector<128x32xf32> to vector<32xf32>
    %130 = vector.shape_cast %129 : vector<32xf32> to vector<1x32xf32>
    %cst_171 = arith.constant 1.280000e+02 : f32
    %131 = vector.broadcast %cst_171 : f32 to vector<1x32xf32>
    %132 = arith.divf %130, %131 : vector<1x32xf32>
    %133 = arith.mulf %126, %126 : vector<128x32xf32>
    %cst_172 = arith.constant dense<0.000000e+00> : vector<32xf32>
    %134 = vector.multi_reduction <add>, %133, %cst_172 [0] : vector<128x32xf32> to vector<32xf32>
    %135 = vector.shape_cast %134 : vector<32xf32> to vector<1x32xf32>
    %cst_173 = arith.constant 1.280000e+02 : f32
    %136 = vector.broadcast %cst_173 : f32 to vector<1x32xf32>
    %137 = arith.divf %135, %136 : vector<1x32xf32>
    %138 = arith.mulf %132, %132 : vector<1x32xf32>
    %139 = arith.subf %137, %138 : vector<1x32xf32>
    %140 = vector.broadcast %132 : vector<1x32xf32> to vector<128x32xf32>
    %141 = arith.subf %126, %140 : vector<128x32xf32>
    %cst_174 = arith.constant 9.99999974E-6 : f32
    %142 = vector.broadcast %cst_174 : f32 to vector<1x32xf32>
    %143 = arith.addf %139, %142 : vector<1x32xf32>
    %144 = math.rsqrt %143 : vector<1x32xf32>
    %145 = vector.broadcast %144 : vector<1x32xf32> to vector<128x32xf32>
    %146 = arith.mulf %141, %145 : vector<128x32xf32>
    %147 = vector.broadcast %127 : vector<1x32xf32> to vector<128x32xf32>
    %148 = arith.mulf %146, %147 : vector<128x32xf32>
    %149 = vector.broadcast %128 : vector<1x32xf32> to vector<128x32xf32>
    %150 = arith.addf %148, %149 : vector<128x32xf32>
    %cst_175 = arith.constant 0.000000e+00 : f32
    %151 = vector.broadcast %cst_175 : f32 to vector<128x32xf32>
    %152 = arith.maximumf %150, %151 : vector<128x32xf32>
    %153 = vector.shape_cast %152 : vector<128x32xf32> to vector<2x8x8x32xf32>
    %c0_176 = arith.constant 0 : index
    %c0_177 = arith.constant 0 : index
    %154 = vector.load %arg14[%c0_176, %c0_177] : memref<288x32xf32, #tpu.memory_space<vmem>>, vector<288x32xf32>
    %c0_178 = arith.constant 0 : index
    %c1_179 = arith.constant 1 : index
    %c1_180 = arith.constant 1 : index
    %c0_181 = arith.constant 0 : index
    %155 = vector.load %arg32[%c0_178, %c1_179, %c1_180, %c0_181] : memref<2x10x10x64xf32, #tpu.memory_space<vmem>>, vector<2x8x8x32xf32>
    tpu.vector_store %arg32[%c0_178, %c1_179, %c1_180, %c0_181], %153 {strides = array<i32>} : memref<2x10x10x64xf32, #tpu.memory_space<vmem>>, vector<2x8x8x32xf32>,
    %c0_182 = arith.constant 0 : index
    %c0_183 = arith.constant 0 : index
    %c0_184 = arith.constant 0 : index
    %c0_185 = arith.constant 0 : index
    %156 = vector.load %arg32[%c0_182, %c0_183, %c0_184, %c0_185] : memref<2x10x10x64xf32, #tpu.memory_space<vmem>>, vector<2x8x8x32xf32>
    %c0_186 = arith.constant 0 : index
    %c0_187 = arith.constant 0 : index
    %c1_188 = arith.constant 1 : index
    %c0_189 = arith.constant 0 : index
    %157 = vector.load %arg32[%c0_186, %c0_187, %c1_188, %c0_189] : memref<2x10x10x64xf32, #tpu.memory_space<vmem>>, vector<2x8x8x32xf32>
    %c0_190 = arith.constant 0 : index
    %c0_191 = arith.constant 0 : index
    %c2_192 = arith.constant 2 : index
    %c0_193 = arith.constant 0 : index
    %158 = vector.load %arg32[%c0_190, %c0_191, %c2_192, %c0_193] : memref<2x10x10x64xf32, #tpu.memory_space<vmem>>, vector<2x8x8x32xf32>
    %c0_194 = arith.constant 0 : index
    %c1_195 = arith.constant 1 : index
    %c0_196 = arith.constant 0 : index
    %c0_197 = arith.constant 0 : index
    %159 = vector.load %arg32[%c0_194, %c1_195, %c0_196, %c0_197] : memref<2x10x10x64xf32, #tpu.memory_space<vmem>>, vector<2x8x8x32xf32>
    %c0_198 = arith.constant 0 : index
    %c1_199 = arith.constant 1 : index
    %c1_200 = arith.constant 1 : index
    %c0_201 = arith.constant 0 : index
    %160 = vector.load %arg32[%c0_198, %c1_199, %c1_200, %c0_201] : memref<2x10x10x64xf32, #tpu.memory_space<vmem>>, vector<2x8x8x32xf32>
    %c0_202 = arith.constant 0 : index
    %c1_203 = arith.constant 1 : index
    %c2_204 = arith.constant 2 : index
    %c0_205 = arith.constant 0 : index
    %161 = vector.load %arg32[%c0_202, %c1_203, %c2_204, %c0_205] : memref<2x10x10x64xf32, #tpu.memory_space<vmem>>, vector<2x8x8x32xf32>
    %c0_206 = arith.constant 0 : index
    %c2_207 = arith.constant 2 : index
    %c0_208 = arith.constant 0 : index
    %c0_209 = arith.constant 0 : index
    %162 = vector.load %arg32[%c0_206, %c2_207, %c0_208, %c0_209] : memref<2x10x10x64xf32, #tpu.memory_space<vmem>>, vector<2x8x8x32xf32>
    %c0_210 = arith.constant 0 : index
    %c2_211 = arith.constant 2 : index
    %c1_212 = arith.constant 1 : index
    %c0_213 = arith.constant 0 : index
    %163 = vector.load %arg32[%c0_210, %c2_211, %c1_212, %c0_213] : memref<2x10x10x64xf32, #tpu.memory_space<vmem>>, vector<2x8x8x32xf32>
    %c0_214 = arith.constant 0 : index
    %c2_215 = arith.constant 2 : index
    %c2_216 = arith.constant 2 : index
    %c0_217 = arith.constant 0 : index
    %164 = vector.load %arg32[%c0_214, %c2_215, %c2_216, %c0_217] : memref<2x10x10x64xf32, #tpu.memory_space<vmem>>, vector<2x8x8x32xf32>
    %165 = tpu.concatenate %156, %157, %158, %159, %160, %161, %162, %163, %164 in 3 : vector<2x8x8x32xf32>, vector<2x8x8x32xf32>, vector<2x8x8x32xf32>, vector<2x8x8x32xf32>, vector<2x8x8x32xf32>, vector<2x8x8x32xf32>, vector<2x8x8x32xf32>, vector<2x8x8x32xf32>, vector<2x8x8x32xf32> -> vector<2x8x8x288xf32>
    %166 = vector.shape_cast %165 : vector<2x8x8x288xf32> to vector<128x288xf32>
    %cst_218 = arith.constant dense<0.000000e+00> : vector<128x32xf32>
    %167 = tpu.matmul %166, %154, %cst_218 {dimension_numbers = #tpu.dot_dimension_numbers<[1], [0], [0], [1], [0, 0, 1, 1], [], []>} : vector<128x288xf32>, vector<288x32xf32>, vector<128x32xf32> -> vector<128x32xf32>
    %c0_219 = arith.constant 0 : index
    %c0_220 = arith.constant 0 : index
    %168 = vector.load %arg15[%c0_219, %c0_220] : memref<1x32xf32, #tpu.memory_space<vmem>>, vector<1x32xf32>
    %c0_221 = arith.constant 0 : index
    %c0_222 = arith.constant 0 : index
    %169 = vector.load %arg16[%c0_221, %c0_222] : memref<1x32xf32, #tpu.memory_space<vmem>>, vector<1x32xf32>
    %cst_223 = arith.constant dense<0.000000e+00> : vector<32xf32>
    %170 = vector.multi_reduction <add>, %167, %cst_223 [0] : vector<128x32xf32> to vector<32xf32>
    %171 = vector.shape_cast %170 : vector<32xf32> to vector<1x32xf32>
    %cst_224 = arith.constant 1.280000e+02 : f32
    %172 = vector.broadcast %cst_224 : f32 to vector<1x32xf32>
    %173 = arith.divf %171, %172 : vector<1x32xf32>
    %174 = arith.mulf %167, %167 : vector<128x32xf32>
    %cst_225 = arith.constant dense<0.000000e+00> : vector<32xf32>
    %175 = vector.multi_reduction <add>, %174, %cst_225 [0] : vector<128x32xf32> to vector<32xf32>
    %176 = vector.shape_cast %175 : vector<32xf32> to vector<1x32xf32>
    %cst_226 = arith.constant 1.280000e+02 : f32
    %177 = vector.broadcast %cst_226 : f32 to vector<1x32xf32>
    %178 = arith.divf %176, %177 : vector<1x32xf32>
    %179 = arith.mulf %173, %173 : vector<1x32xf32>
    %180 = arith.subf %178, %179 : vector<1x32xf32>
    %181 = vector.broadcast %173 : vector<1x32xf32> to vector<128x32xf32>
    %182 = arith.subf %167, %181 : vector<128x32xf32>
    %cst_227 = arith.constant 9.99999974E-6 : f32
    %183 = vector.broadcast %cst_227 : f32 to vector<1x32xf32>
    %184 = arith.addf %180, %183 : vector<1x32xf32>
    %185 = math.rsqrt %184 : vector<1x32xf32>
    %186 = vector.broadcast %185 : vector<1x32xf32> to vector<128x32xf32>
    %187 = arith.mulf %182, %186 : vector<128x32xf32>
    %188 = vector.broadcast %168 : vector<1x32xf32> to vector<128x32xf32>
    %189 = arith.mulf %187, %188 : vector<128x32xf32>
    %190 = vector.broadcast %169 : vector<1x32xf32> to vector<128x32xf32>
    %191 = arith.addf %189, %190 : vector<128x32xf32>
    %192 = vector.shape_cast %112 : vector<2x8x8x16xf32> to vector<128x16xf32>
    %c0_228 = arith.constant 0 : index
    %c0_229 = arith.constant 0 : index
    %193 = vector.load %arg17[%c0_228, %c0_229] : memref<16x32xf32, #tpu.memory_space<vmem>>, vector<16x32xf32>
    %cst_230 = arith.constant dense<0.000000e+00> : vector<128x32xf32>
    %194 = tpu.matmul %192, %193, %cst_230 {dimension_numbers = #tpu.dot_dimension_numbers<[1], [0], [0], [1], [0, 0, 1, 1], [], []>} : vector<128x16xf32>, vector<16x32xf32>, vector<128x32xf32> -> vector<128x32xf32>
    %c0_231 = arith.constant 0 : index
    %c0_232 = arith.constant 0 : index
    %195 = vector.load %arg18[%c0_231, %c0_232] : memref<1x32xf32, #tpu.memory_space<vmem>>, vector<1x32xf32>
    %c0_233 = arith.constant 0 : index
    %c0_234 = arith.constant 0 : index
    %196 = vector.load %arg19[%c0_233, %c0_234] : memref<1x32xf32, #tpu.memory_space<vmem>>, vector<1x32xf32>
    %cst_235 = arith.constant dense<0.000000e+00> : vector<32xf32>
    %197 = vector.multi_reduction <add>, %194, %cst_235 [0] : vector<128x32xf32> to vector<32xf32>
    %198 = vector.shape_cast %197 : vector<32xf32> to vector<1x32xf32>
    %cst_236 = arith.constant 1.280000e+02 : f32
    %199 = vector.broadcast %cst_236 : f32 to vector<1x32xf32>
    %200 = arith.divf %198, %199 : vector<1x32xf32>
    %201 = arith.mulf %194, %194 : vector<128x32xf32>
    %cst_237 = arith.constant dense<0.000000e+00> : vector<32xf32>
    %202 = vector.multi_reduction <add>, %201, %cst_237 [0] : vector<128x32xf32> to vector<32xf32>
    %203 = vector.shape_cast %202 : vector<32xf32> to vector<1x32xf32>
    %cst_238 = arith.constant 1.280000e+02 : f32
    %204 = vector.broadcast %cst_238 : f32 to vector<1x32xf32>
    %205 = arith.divf %203, %204 : vector<1x32xf32>
    %206 = arith.mulf %200, %200 : vector<1x32xf32>
    %207 = arith.subf %205, %206 : vector<1x32xf32>
    %208 = vector.broadcast %200 : vector<1x32xf32> to vector<128x32xf32>
    %209 = arith.subf %194, %208 : vector<128x32xf32>
    %cst_239 = arith.constant 9.99999974E-6 : f32
    %210 = vector.broadcast %cst_239 : f32 to vector<1x32xf32>
    %211 = arith.addf %207, %210 : vector<1x32xf32>
    %212 = math.rsqrt %211 : vector<1x32xf32>
    %213 = vector.broadcast %212 : vector<1x32xf32> to vector<128x32xf32>
    %214 = arith.mulf %209, %213 : vector<128x32xf32>
    %215 = vector.broadcast %195 : vector<1x32xf32> to vector<128x32xf32>
    %216 = arith.mulf %214, %215 : vector<128x32xf32>
    %217 = vector.broadcast %196 : vector<1x32xf32> to vector<128x32xf32>
    %218 = arith.addf %216, %217 : vector<128x32xf32>
    %219 = arith.addf %191, %218 : vector<128x32xf32>
    %cst_240 = arith.constant 0.000000e+00 : f32
    %220 = vector.broadcast %cst_240 : f32 to vector<128x32xf32>
    %221 = arith.maximumf %219, %220 : vector<128x32xf32>
    %222 = vector.shape_cast %221 : vector<128x32xf32> to vector<2x8x8x32xf32>
    %c0_241 = arith.constant 0 : index
    %c0_242 = arith.constant 0 : index
    %223 = vector.load %arg20[%c0_241, %c0_242] : memref<288x64xf32, #tpu.memory_space<vmem>>, vector<288x64xf32>
    %c0_243 = arith.constant 0 : index
    %c1_244 = arith.constant 1 : index
    %c1_245 = arith.constant 1 : index
    %c0_246 = arith.constant 0 : index
    %224 = vector.load %arg32[%c0_243, %c1_244, %c1_245, %c0_246] : memref<2x10x10x64xf32, #tpu.memory_space<vmem>>, vector<2x8x8x32xf32>
    tpu.vector_store %arg32[%c0_243, %c1_244, %c1_245, %c0_246], %222 {strides = array<i32>} : memref<2x10x10x64xf32, #tpu.memory_space<vmem>>, vector<2x8x8x32xf32>,
    %c0_247 = arith.constant 0 : index
    %c0_248 = arith.constant 0 : index
    %c0_249 = arith.constant 0 : index
    %c0_250 = arith.constant 0 : index
    %225 = vector.load %arg32[%c0_247, %c0_248, %c0_249, %c0_250] : memref<2x10x10x64xf32, #tpu.memory_space<vmem>>, vector<2x8x8x32xf32>
    %c0_251 = arith.constant 0 : index
    %c0_252 = arith.constant 0 : index
    %c1_253 = arith.constant 1 : index
    %c0_254 = arith.constant 0 : index
    %226 = vector.load %arg32[%c0_251, %c0_252, %c1_253, %c0_254] : memref<2x10x10x64xf32, #tpu.memory_space<vmem>>, vector<2x8x8x32xf32>
    %c0_255 = arith.constant 0 : index
    %c0_256 = arith.constant 0 : index
    %c2_257 = arith.constant 2 : index
    %c0_258 = arith.constant 0 : index
    %227 = vector.load %arg32[%c0_255, %c0_256, %c2_257, %c0_258] : memref<2x10x10x64xf32, #tpu.memory_space<vmem>>, vector<2x8x8x32xf32>
    %c0_259 = arith.constant 0 : index
    %c1_260 = arith.constant 1 : index
    %c0_261 = arith.constant 0 : index
    %c0_262 = arith.constant 0 : index
    %228 = vector.load %arg32[%c0_259, %c1_260, %c0_261, %c0_262] : memref<2x10x10x64xf32, #tpu.memory_space<vmem>>, vector<2x8x8x32xf32>
    %c0_263 = arith.constant 0 : index
    %c1_264 = arith.constant 1 : index
    %c1_265 = arith.constant 1 : index
    %c0_266 = arith.constant 0 : index
    %229 = vector.load %arg32[%c0_263, %c1_264, %c1_265, %c0_266] : memref<2x10x10x64xf32, #tpu.memory_space<vmem>>, vector<2x8x8x32xf32>
    %c0_267 = arith.constant 0 : index
    %c1_268 = arith.constant 1 : index
    %c2_269 = arith.constant 2 : index
    %c0_270 = arith.constant 0 : index
    %230 = vector.load %arg32[%c0_267, %c1_268, %c2_269, %c0_270] : memref<2x10x10x64xf32, #tpu.memory_space<vmem>>, vector<2x8x8x32xf32>
    %c0_271 = arith.constant 0 : index
    %c2_272 = arith.constant 2 : index
    %c0_273 = arith.constant 0 : index
    %c0_274 = arith.constant 0 : index
    %231 = vector.load %arg32[%c0_271, %c2_272, %c0_273, %c0_274] : memref<2x10x10x64xf32, #tpu.memory_space<vmem>>, vector<2x8x8x32xf32>
    %c0_275 = arith.constant 0 : index
    %c2_276 = arith.constant 2 : index
    %c1_277 = arith.constant 1 : index
    %c0_278 = arith.constant 0 : index
    %232 = vector.load %arg32[%c0_275, %c2_276, %c1_277, %c0_278] : memref<2x10x10x64xf32, #tpu.memory_space<vmem>>, vector<2x8x8x32xf32>
    %c0_279 = arith.constant 0 : index
    %c2_280 = arith.constant 2 : index
    %c2_281 = arith.constant 2 : index
    %c0_282 = arith.constant 0 : index
    %233 = vector.load %arg32[%c0_279, %c2_280, %c2_281, %c0_282] : memref<2x10x10x64xf32, #tpu.memory_space<vmem>>, vector<2x8x8x32xf32>
    %234 = tpu.concatenate %225, %226, %227, %228, %229, %230, %231, %232, %233 in 3 : vector<2x8x8x32xf32>, vector<2x8x8x32xf32>, vector<2x8x8x32xf32>, vector<2x8x8x32xf32>, vector<2x8x8x32xf32>, vector<2x8x8x32xf32>, vector<2x8x8x32xf32>, vector<2x8x8x32xf32>, vector<2x8x8x32xf32> -> vector<2x8x8x288xf32>
    %235 = vector.shape_cast %234 : vector<2x8x8x288xf32> to vector<128x288xf32>
    %cst_283 = arith.constant dense<0.000000e+00> : vector<128x64xf32>
    %236 = tpu.matmul %235, %223, %cst_283 {dimension_numbers = #tpu.dot_dimension_numbers<[1], [0], [0], [1], [0, 0, 1, 1], [], []>} : vector<128x288xf32>, vector<288x64xf32>, vector<128x64xf32> -> vector<128x64xf32>
    %c0_284 = arith.constant 0 : index
    %c0_285 = arith.constant 0 : index
    %237 = vector.load %arg21[%c0_284, %c0_285] : memref<1x64xf32, #tpu.memory_space<vmem>>, vector<1x64xf32>
    %c0_286 = arith.constant 0 : index
    %c0_287 = arith.constant 0 : index
    %238 = vector.load %arg22[%c0_286, %c0_287] : memref<1x64xf32, #tpu.memory_space<vmem>>, vector<1x64xf32>
    %cst_288 = arith.constant dense<0.000000e+00> : vector<64xf32>
    %239 = vector.multi_reduction <add>, %236, %cst_288 [0] : vector<128x64xf32> to vector<64xf32>
    %240 = vector.shape_cast %239 : vector<64xf32> to vector<1x64xf32>
    %cst_289 = arith.constant 1.280000e+02 : f32
    %241 = vector.broadcast %cst_289 : f32 to vector<1x64xf32>
    %242 = arith.divf %240, %241 : vector<1x64xf32>
    %243 = arith.mulf %236, %236 : vector<128x64xf32>
    %cst_290 = arith.constant dense<0.000000e+00> : vector<64xf32>
    %244 = vector.multi_reduction <add>, %243, %cst_290 [0] : vector<128x64xf32> to vector<64xf32>
    %245 = vector.shape_cast %244 : vector<64xf32> to vector<1x64xf32>
    %cst_291 = arith.constant 1.280000e+02 : f32
    %246 = vector.broadcast %cst_291 : f32 to vector<1x64xf32>
    %247 = arith.divf %245, %246 : vector<1x64xf32>
    %248 = arith.mulf %242, %242 : vector<1x64xf32>
    %249 = arith.subf %247, %248 : vector<1x64xf32>
    %250 = vector.broadcast %242 : vector<1x64xf32> to vector<128x64xf32>
    %251 = arith.subf %236, %250 : vector<128x64xf32>
    %cst_292 = arith.constant 9.99999974E-6 : f32
    %252 = vector.broadcast %cst_292 : f32 to vector<1x64xf32>
    %253 = arith.addf %249, %252 : vector<1x64xf32>
    %254 = math.rsqrt %253 : vector<1x64xf32>
    %255 = vector.broadcast %254 : vector<1x64xf32> to vector<128x64xf32>
    %256 = arith.mulf %251, %255 : vector<128x64xf32>
    %257 = vector.broadcast %237 : vector<1x64xf32> to vector<128x64xf32>
    %258 = arith.mulf %256, %257 : vector<128x64xf32>
    %259 = vector.broadcast %238 : vector<1x64xf32> to vector<128x64xf32>
    %260 = arith.addf %258, %259 : vector<128x64xf32>
    %cst_293 = arith.constant 0.000000e+00 : f32
    %261 = vector.broadcast %cst_293 : f32 to vector<128x64xf32>
    %262 = arith.maximumf %260, %261 : vector<128x64xf32>
    %263 = vector.shape_cast %262 : vector<128x64xf32> to vector<2x8x8x64xf32>
    %c0_294 = arith.constant 0 : index
    %c0_295 = arith.constant 0 : index
    %264 = vector.load %arg23[%c0_294, %c0_295] : memref<576x64xf32, #tpu.memory_space<vmem>>, vector<576x64xf32>
    %c0_296 = arith.constant 0 : index
    %c1_297 = arith.constant 1 : index
    %c1_298 = arith.constant 1 : index
    %c0_299 = arith.constant 0 : index
    %265 = vector.load %arg32[%c0_296, %c1_297, %c1_298, %c0_299] : memref<2x10x10x64xf32, #tpu.memory_space<vmem>>, vector<2x8x8x64xf32>
    tpu.vector_store %arg32[%c0_296, %c1_297, %c1_298, %c0_299], %263 {strides = array<i32>} : memref<2x10x10x64xf32, #tpu.memory_space<vmem>>, vector<2x8x8x64xf32>,
    %c0_300 = arith.constant 0 : index
    %c0_301 = arith.constant 0 : index
    %c0_302 = arith.constant 0 : index
    %c0_303 = arith.constant 0 : index
    %266 = vector.load %arg32[%c0_300, %c0_301, %c0_302, %c0_303] : memref<2x10x10x64xf32, #tpu.memory_space<vmem>>, vector<2x8x8x64xf32>
    %c0_304 = arith.constant 0 : index
    %c0_305 = arith.constant 0 : index
    %c1_306 = arith.constant 1 : index
    %c0_307 = arith.constant 0 : index
    %267 = vector.load %arg32[%c0_304, %c0_305, %c1_306, %c0_307] : memref<2x10x10x64xf32, #tpu.memory_space<vmem>>, vector<2x8x8x64xf32>
    %c0_308 = arith.constant 0 : index
    %c0_309 = arith.constant 0 : index
    %c2_310 = arith.constant 2 : index
    %c0_311 = arith.constant 0 : index
    %268 = vector.load %arg32[%c0_308, %c0_309, %c2_310, %c0_311] : memref<2x10x10x64xf32, #tpu.memory_space<vmem>>, vector<2x8x8x64xf32>
    %c0_312 = arith.constant 0 : index
    %c1_313 = arith.constant 1 : index
    %c0_314 = arith.constant 0 : index
    %c0_315 = arith.constant 0 : index
    %269 = vector.load %arg32[%c0_312, %c1_313, %c0_314, %c0_315] : memref<2x10x10x64xf32, #tpu.memory_space<vmem>>, vector<2x8x8x64xf32>
    %c0_316 = arith.constant 0 : index
    %c1_317 = arith.constant 1 : index
    %c1_318 = arith.constant 1 : index
    %c0_319 = arith.constant 0 : index
    %270 = vector.load %arg32[%c0_316, %c1_317, %c1_318, %c0_319] : memref<2x10x10x64xf32, #tpu.memory_space<vmem>>, vector<2x8x8x64xf32>
    %c0_320 = arith.constant 0 : index
    %c1_321 = arith.constant 1 : index
    %c2_322 = arith.constant 2 : index
    %c0_323 = arith.constant 0 : index
    %271 = vector.load %arg32[%c0_320, %c1_321, %c2_322, %c0_323] : memref<2x10x10x64xf32, #tpu.memory_space<vmem>>, vector<2x8x8x64xf32>
    %c0_324 = arith.constant 0 : index
    %c2_325 = arith.constant 2 : index
    %c0_326 = arith.constant 0 : index
    %c0_327 = arith.constant 0 : index
    %272 = vector.load %arg32[%c0_324, %c2_325, %c0_326, %c0_327] : memref<2x10x10x64xf32, #tpu.memory_space<vmem>>, vector<2x8x8x64xf32>
    %c0_328 = arith.constant 0 : index
    %c2_329 = arith.constant 2 : index
    %c1_330 = arith.constant 1 : index
    %c0_331 = arith.constant 0 : index
    %273 = vector.load %arg32[%c0_328, %c2_329, %c1_330, %c0_331] : memref<2x10x10x64xf32, #tpu.memory_space<vmem>>, vector<2x8x8x64xf32>
    %c0_332 = arith.constant 0 : index
    %c2_333 = arith.constant 2 : index
    %c2_334 = arith.constant 2 : index
    %c0_335 = arith.constant 0 : index
    %274 = vector.load %arg32[%c0_332, %c2_333, %c2_334, %c0_335] : memref<2x10x10x64xf32, #tpu.memory_space<vmem>>, vector<2x8x8x64xf32>
    %275 = tpu.concatenate %266, %267, %268, %269, %270, %271, %272, %273, %274 in 3 : vector<2x8x8x64xf32>, vector<2x8x8x64xf32>, vector<2x8x8x64xf32>, vector<2x8x8x64xf32>, vector<2x8x8x64xf32>, vector<2x8x8x64xf32>, vector<2x8x8x64xf32>, vector<2x8x8x64xf32>, vector<2x8x8x64xf32> -> vector<2x8x8x576xf32>
    %276 = vector.shape_cast %275 : vector<2x8x8x576xf32> to vector<128x576xf32>
    %cst_336 = arith.constant dense<0.000000e+00> : vector<128x64xf32>
    %277 = tpu.matmul %276, %264, %cst_336 {dimension_numbers = #tpu.dot_dimension_numbers<[1], [0], [0], [1], [0, 0, 1, 1], [], []>} : vector<128x576xf32>, vector<576x64xf32>, vector<128x64xf32> -> vector<128x64xf32>
    %c0_337 = arith.constant 0 : index
    %c0_338 = arith.constant 0 : index
    %278 = vector.load %arg24[%c0_337, %c0_338] : memref<1x64xf32, #tpu.memory_space<vmem>>, vector<1x64xf32>
    %c0_339 = arith.constant 0 : index
    %c0_340 = arith.constant 0 : index
    %279 = vector.load %arg25[%c0_339, %c0_340] : memref<1x64xf32, #tpu.memory_space<vmem>>, vector<1x64xf32>
    %cst_341 = arith.constant dense<0.000000e+00> : vector<64xf32>
    %280 = vector.multi_reduction <add>, %277, %cst_341 [0] : vector<128x64xf32> to vector<64xf32>
    %281 = vector.shape_cast %280 : vector<64xf32> to vector<1x64xf32>
    %cst_342 = arith.constant 1.280000e+02 : f32
    %282 = vector.broadcast %cst_342 : f32 to vector<1x64xf32>
    %283 = arith.divf %281, %282 : vector<1x64xf32>
    %284 = arith.mulf %277, %277 : vector<128x64xf32>
    %cst_343 = arith.constant dense<0.000000e+00> : vector<64xf32>
    %285 = vector.multi_reduction <add>, %284, %cst_343 [0] : vector<128x64xf32> to vector<64xf32>
    %286 = vector.shape_cast %285 : vector<64xf32> to vector<1x64xf32>
    %cst_344 = arith.constant 1.280000e+02 : f32
    %287 = vector.broadcast %cst_344 : f32 to vector<1x64xf32>
    %288 = arith.divf %286, %287 : vector<1x64xf32>
    %289 = arith.mulf %283, %283 : vector<1x64xf32>
    %290 = arith.subf %288, %289 : vector<1x64xf32>
    %291 = vector.broadcast %283 : vector<1x64xf32> to vector<128x64xf32>
    %292 = arith.subf %277, %291 : vector<128x64xf32>
    %cst_345 = arith.constant 9.99999974E-6 : f32
    %293 = vector.broadcast %cst_345 : f32 to vector<1x64xf32>
    %294 = arith.addf %290, %293 : vector<1x64xf32>
    %295 = math.rsqrt %294 : vector<1x64xf32>
    %296 = vector.broadcast %295 : vector<1x64xf32> to vector<128x64xf32>
    %297 = arith.mulf %292, %296 : vector<128x64xf32>
    %298 = vector.broadcast %278 : vector<1x64xf32> to vector<128x64xf32>
    %299 = arith.mulf %297, %298 : vector<128x64xf32>
    %300 = vector.broadcast %279 : vector<1x64xf32> to vector<128x64xf32>
    %301 = arith.addf %299, %300 : vector<128x64xf32>
    %302 = vector.shape_cast %222 : vector<2x8x8x32xf32> to vector<128x32xf32>
    %c0_346 = arith.constant 0 : index
    %c0_347 = arith.constant 0 : index
    %303 = vector.load %arg26[%c0_346, %c0_347] : memref<32x64xf32, #tpu.memory_space<vmem>>, vector<32x64xf32>
    %cst_348 = arith.constant dense<0.000000e+00> : vector<128x64xf32>
    %304 = tpu.matmul %302, %303, %cst_348 {dimension_numbers = #tpu.dot_dimension_numbers<[1], [0], [0], [1], [0, 0, 1, 1], [], []>} : vector<128x32xf32>, vector<32x64xf32>, vector<128x64xf32> -> vector<128x64xf32>
    %c0_349 = arith.constant 0 : index
    %c0_350 = arith.constant 0 : index
    %305 = vector.load %arg27[%c0_349, %c0_350] : memref<1x64xf32, #tpu.memory_space<vmem>>, vector<1x64xf32>
    %c0_351 = arith.constant 0 : index
    %c0_352 = arith.constant 0 : index
    %306 = vector.load %arg28[%c0_351, %c0_352] : memref<1x64xf32, #tpu.memory_space<vmem>>, vector<1x64xf32>
    %cst_353 = arith.constant dense<0.000000e+00> : vector<64xf32>
    %307 = vector.multi_reduction <add>, %304, %cst_353 [0] : vector<128x64xf32> to vector<64xf32>
    %308 = vector.shape_cast %307 : vector<64xf32> to vector<1x64xf32>
    %cst_354 = arith.constant 1.280000e+02 : f32
    %309 = vector.broadcast %cst_354 : f32 to vector<1x64xf32>
    %310 = arith.divf %308, %309 : vector<1x64xf32>
    %311 = arith.mulf %304, %304 : vector<128x64xf32>
    %cst_355 = arith.constant dense<0.000000e+00> : vector<64xf32>
    %312 = vector.multi_reduction <add>, %311, %cst_355 [0] : vector<128x64xf32> to vector<64xf32>
    %313 = vector.shape_cast %312 : vector<64xf32> to vector<1x64xf32>
    %cst_356 = arith.constant 1.280000e+02 : f32
    %314 = vector.broadcast %cst_356 : f32 to vector<1x64xf32>
    %315 = arith.divf %313, %314 : vector<1x64xf32>
    %316 = arith.mulf %310, %310 : vector<1x64xf32>
    %317 = arith.subf %315, %316 : vector<1x64xf32>
    %318 = vector.broadcast %310 : vector<1x64xf32> to vector<128x64xf32>
    %319 = arith.subf %304, %318 : vector<128x64xf32>
    %cst_357 = arith.constant 9.99999974E-6 : f32
    %320 = vector.broadcast %cst_357 : f32 to vector<1x64xf32>
    %321 = arith.addf %317, %320 : vector<1x64xf32>
    %322 = math.rsqrt %321 : vector<1x64xf32>
    %323 = vector.broadcast %322 : vector<1x64xf32> to vector<128x64xf32>
    %324 = arith.mulf %319, %323 : vector<128x64xf32>
    %325 = vector.broadcast %305 : vector<1x64xf32> to vector<128x64xf32>
    %326 = arith.mulf %324, %325 : vector<128x64xf32>
    %327 = vector.broadcast %306 : vector<1x64xf32> to vector<128x64xf32>
    %328 = arith.addf %326, %327 : vector<128x64xf32>
    %329 = arith.addf %301, %328 : vector<128x64xf32>
    %cst_358 = arith.constant 0.000000e+00 : f32
    %330 = vector.broadcast %cst_358 : f32 to vector<128x64xf32>
    %331 = arith.maximumf %329, %330 : vector<128x64xf32>
    %332 = vector.shape_cast %331 : vector<128x64xf32> to vector<2x8x8x64xf32>
    %333 = vector.shape_cast %332 : vector<2x8x8x64xf32> to vector<2x64x64xf32>
    %cst_359 = arith.constant dense<0.000000e+00> : vector<2x64xf32>
    %334 = vector.multi_reduction <add>, %333, %cst_359 [1] : vector<2x64x64xf32> to vector<2x64xf32>
    %cst_360 = arith.constant 6.400000e+01 : f32
    %335 = vector.broadcast %cst_360 : f32 to vector<2x64xf32>
    %336 = arith.divf %334, %335 : vector<2x64xf32>
    %c0_361 = arith.constant 0 : index
    %c0_362 = arith.constant 0 : index
    %337 = vector.load %arg29[%c0_361, %c0_362] : memref<64x1xf32, #tpu.memory_space<vmem>>, vector<64x1xf32>
    %cst_363 = arith.constant dense<0.000000e+00> : vector<2x1xf32>
    %338 = tpu.matmul %336, %337, %cst_363 {dimension_numbers = #tpu.dot_dimension_numbers<[1], [0], [0], [1], [0, 0, 1, 1], [], []>} : vector<2x64xf32>, vector<64x1xf32>, vector<2x1xf32> -> vector<2x1xf32>
    %c0_364 = arith.constant 0 : index
    %c0_365 = arith.constant 0 : index
    %339 = vector.load %arg30[%c0_364, %c0_365] : memref<1x1xf32, #tpu.memory_space<vmem>>, vector<1x1xf32>
    %340 = vector.broadcast %339 : vector<1x1xf32> to vector<2x1xf32>
    %341 = arith.addf %338, %340 : vector<2x1xf32>
    %cst_366 = arith.constant 0.000000e+00 : f32
    %342 = vector.broadcast %cst_366 : f32 to vector<2x1xf32>
    %343 = arith.maximumf %341, %342 : vector<2x1xf32>
    %c0_367 = arith.constant 0 : index
    %c0_368 = arith.constant 0 : index
    %344 = vector.load %arg31[%c0_367, %c0_368] : memref<2x1xf32, #tpu.memory_space<vmem>>, vector<2x1xf32>
    tpu.vector_store %arg31[%c0_367, %c0_368], %343 {strides = array<i32>} : memref<2x1xf32, #tpu.memory_space<vmem>>, vector<2x1xf32>,
    return
  }
  func.func @transform_0(%arg0: i32) -> (i32, i32, i32, i32) {
    %c0_i32 = arith.constant 0 : i32
    %c0_i32_0 = arith.constant 0 : i32
    %c0_i32_1 = arith.constant 0 : i32
    %c0_i32_2 = arith.constant 0 : i32
    %c0_i32_3 = arith.constant 0 : i32
    return %c0_i32, %c0_i32_0, %c0_i32_1, %c0_i32_2 : i32, i32, i32, i32
  }
  func.func @transform_1(%arg0: i32) -> (i32, i32) {
    %c0_i32 = arith.constant 0 : i32
    %c0_i32_0 = arith.constant 0 : i32
    %c0_i32_1 = arith.constant 0 : i32
    return %c0_i32, %c0_i32_0 : i32, i32
  }
  func.func @transform_2(%arg0: i32) -> (i32, i32) {
    %c0_i32 = arith.constant 0 : i32
    %c0_i32_0 = arith.constant 0 : i32
    %c0_i32_1 = arith.constant 0 : i32
    return %c0_i32, %c0_i32_0 : i32, i32
  }
  func.func @transform_3(%arg0: i32) -> (i32, i32) {
    %c0_i32 = arith.constant 0 : i32
    %c0_i32_0 = arith.constant 0 : i32
    %c0_i32_1 = arith.constant 0 : i32
    return %c0_i32, %c0_i32_0 : i32, i32
  }
  func.func @transform_4(%arg0: i32) -> (i32, i32) {
    %c0_i32 = arith.constant 0 : i32
    %c0_i32_0 = arith.constant 0 : i32
    %c0_i32_1 = arith.constant 0 : i32
    return %c0_i32, %c0_i32_0 : i32, i32
  }
  func.func @transform_5(%arg0: i32) -> (i32, i32) {
    %c0_i32 = arith.constant 0 : i32
    %c0_i32_0 = arith.constant 0 : i32
    %c0_i32_1 = arith.constant 0 : i32
    return %c0_i32, %c0_i32_0 : i32, i32
  }
  func.func @transform_6(%arg0: i32) -> (i32, i32) {
    %c0_i32 = arith.constant 0 : i32
    %c0_i32_0 = arith.constant 0 : i32
    %c0_i32_1 = arith.constant 0 : i32
    return %c0_i32, %c0_i32_0 : i32, i32
  }
  func.func @transform_7(%arg0: i32) -> (i32, i32) {
    %c0_i32 = arith.constant 0 : i32
    %c0_i32_0 = arith.constant 0 : i32
    %c0_i32_1 = arith.constant 0 : i32
    return %c0_i32, %c0_i32_0 : i32, i32
  }
  func.func @transform_8(%arg0: i32) -> (i32, i32) {
    %c0_i32 = arith.constant 0 : i32
    %c0_i32_0 = arith.constant 0 : i32
    %c0_i32_1 = arith.constant 0 : i32
    return %c0_i32, %c0_i32_0 : i32, i32
  }
  func.func @transform_9(%arg0: i32) -> (i32, i32) {
    %c0_i32 = arith.constant 0 : i32
    %c0_i32_0 = arith.constant 0 : i32
    %c0_i32_1 = arith.constant 0 : i32
    return %c0_i32, %c0_i32_0 : i32, i32
  }
  func.func @transform_10(%arg0: i32) -> (i32, i32) {
    %c0_i32 = arith.constant 0 : i32
    %c0_i32_0 = arith.constant 0 : i32
    %c0_i32_1 = arith.constant 0 : i32
    return %c0_i32, %c0_i32_0 : i32, i32
  }
  func.func @transform_11(%arg0: i32) -> (i32, i32) {
    %c0_i32 = arith.constant 0 : i32
    %c0_i32_0 = arith.constant 0 : i32
    %c0_i32_1 = arith.constant 0 : i32
    return %c0_i32, %c0_i32_0 : i32, i32
  }
  func.func @transform_12(%arg0: i32) -> (i32, i32) {
    %c0_i32 = arith.constant 0 : i32
    %c0_i32_0 = arith.constant 0 : i32
    %c0_i32_1 = arith.constant 0 : i32
    return %c0_i32, %c0_i32_0 : i32, i32
  }
  func.func @transform_13(%arg0: i32) -> (i32, i32) {
    %c0_i32 = arith.constant 0 : i32
    %c0_i32_0 = arith.constant 0 : i32
    %c0_i32_1 = arith.constant 0 : i32
    return %c0_i32, %c0_i32_0 : i32, i32
  }
  func.func @transform_14(%arg0: i32) -> (i32, i32) {
    %c0_i32 = arith.constant 0 : i32
    %c0_i32_0 = arith.constant 0 : i32
    %c0_i32_1 = arith.constant 0 : i32
    return %c0_i32, %c0_i32_0 : i32, i32
  }
  func.func @transform_15(%arg0: i32) -> (i32, i32) {
    %c0_i32 = arith.constant 0 : i32
    %c0_i32_0 = arith.constant 0 : i32
    %c0_i32_1 = arith.constant 0 : i32
    return %c0_i32, %c0_i32_0 : i32, i32
  }
  func.func @transform_16(%arg0: i32) -> (i32, i32) {
    %c0_i32 = arith.constant 0 : i32
    %c0_i32_0 = arith.constant 0 : i32
    %c0_i32_1 = arith.constant 0 : i32
    return %c0_i32, %c0_i32_0 : i32, i32
  }
  func.func @transform_17(%arg0: i32) -> (i32, i32) {
    %c0_i32 = arith.constant 0 : i32
    %c0_i32_0 = arith.constant 0 : i32
    %c0_i32_1 = arith.constant 0 : i32
    return %c0_i32, %c0_i32_0 : i32, i32
  }
  func.func @transform_18(%arg0: i32) -> (i32, i32) {
    %c0_i32 = arith.constant 0 : i32
    %c0_i32_0 = arith.constant 0 : i32
    %c0_i32_1 = arith.constant 0 : i32
    return %c0_i32, %c0_i32_0 : i32, i32
  }
  func.func @transform_19(%arg0: i32) -> (i32, i32) {
    %c0_i32 = arith.constant 0 : i32
    %c0_i32_0 = arith.constant 0 : i32
    %c0_i32_1 = arith.constant 0 : i32
    return %c0_i32, %c0_i32_0 : i32, i32
  }
  func.func @transform_20(%arg0: i32) -> (i32, i32) {
    %c0_i32 = arith.constant 0 : i32
    %c0_i32_0 = arith.constant 0 : i32
    %c0_i32_1 = arith.constant 0 : i32
    return %c0_i32, %c0_i32_0 : i32, i32
  }
  func.func @transform_21(%arg0: i32) -> (i32, i32) {
    %c0_i32 = arith.constant 0 : i32
    %c0_i32_0 = arith.constant 0 : i32
    %c0_i32_1 = arith.constant 0 : i32
    return %c0_i32, %c0_i32_0 : i32, i32
  }
  func.func @transform_22(%arg0: i32) -> (i32, i32) {
    %c0_i32 = arith.constant 0 : i32
    %c0_i32_0 = arith.constant 0 : i32
    %c0_i32_1 = arith.constant 0 : i32
    return %c0_i32, %c0_i32_0 : i32, i32
  }
  func.func @transform_23(%arg0: i32) -> (i32, i32) {
    %c0_i32 = arith.constant 0 : i32
    %c0_i32_0 = arith.constant 0 : i32
    %c0_i32_1 = arith.constant 0 : i32
    return %c0_i32, %c0_i32_0 : i32, i32
  }
  func.func @transform_24(%arg0: i32) -> (i32, i32) {
    %c0_i32 = arith.constant 0 : i32
    %c0_i32_0 = arith.constant 0 : i32
    %c0_i32_1 = arith.constant 0 : i32
    return %c0_i32, %c0_i32_0 : i32, i32
  }
  func.func @transform_25(%arg0: i32) -> (i32, i32) {
    %c0_i32 = arith.constant 0 : i32
    %c0_i32_0 = arith.constant 0 : i32
    %c0_i32_1 = arith.constant 0 : i32
    return %c0_i32, %c0_i32_0 : i32, i32
  }
  func.func @transform_26(%arg0: i32) -> (i32, i32) {
    %c0_i32 = arith.constant 0 : i32
    %c0_i32_0 = arith.constant 0 : i32
    %c0_i32_1 = arith.constant 0 : i32
    return %c0_i32, %c0_i32_0 : i32, i32
  }
  func.func @transform_27(%arg0: i32) -> (i32, i32) {
    %c0_i32 = arith.constant 0 : i32
    %c0_i32_0 = arith.constant 0 : i32
    %c0_i32_1 = arith.constant 0 : i32
    return %c0_i32, %c0_i32_0 : i32, i32
  }
  func.func @transform_28(%arg0: i32) -> (i32, i32) {
    %c0_i32 = arith.constant 0 : i32
    %c0_i32_0 = arith.constant 0 : i32
    %c0_i32_1 = arith.constant 0 : i32
    return %c0_i32, %c0_i32_0 : i32, i32
  }
  func.func @transform_29(%arg0: i32) -> (i32, i32) {
    %c0_i32 = arith.constant 0 : i32
    %c0_i32_0 = arith.constant 0 : i32
    %c0_i32_1 = arith.constant 0 : i32
    return %c0_i32, %c0_i32_0 : i32, i32
  }
  func.func @transform_30(%arg0: i32) -> (i32, i32) {
    %c0_i32 = arith.constant 0 : i32
    %c0_i32_0 = arith.constant 0 : i32
    %c0_i32_1 = arith.constant 0 : i32
    return %c0_i32, %c0_i32_0 : i32, i32
  }
}

</mosaic_0001>

<bundles_post_ra>
// kernel: forward.1
= control target key start
LH: loop header
LB: loop body
LE: loop exit
PB: predicated region body
PF: predicated region fallthrough
CT: control target
= control target key end

     0   :  { %s11449_s6 = smov 1   ;;  %s11450_s10 = smov 2   ;;  %s16372_s0 = inlined_call_operand.smem [shape: u32[31], index: -1, kind: input, shape index: {}] }
   0x1   :  { %s11515_s5 = sld [smem:[%s16372_s0]]   ;;  %s11451_s14 = smov 3  }
   0x2   :  { %s11520_s9 = sld [smem:[%s16372_s0 + %s11449_s6]]   ;;  %s11452_s18 = smov 4  }
   0x3   :  { %s11525_s13 = sld [smem:[%s16372_s0 + %s11450_s10]]   ;;  %s11453_s22 = smov 5  }
   0x4   :  { %s11530_s17 = sld [smem:[%s16372_s0 + %s11451_s14]]   ;;  %s11454_s26 = smov 6  }
   0x5   :  { %s11535_s21 = sld [smem:[%s16372_s0 + %s11452_s18]]   ;;  %s11455_s30 = smov 7  }
   0x6   :  { %s11540_s25 = sld [smem:[%s16372_s0 + %s11453_s22]]   ;;  %s11456_s4 = smov 8  }
   0x7   :  { %s11545_s29 = sld [smem:[%s16372_s0 + %s11454_s26]]   ;;  %s11457_s10 = smov 9  }
   0x8   :  { %16438 = sst [smem:[#allocation31_spill]] %s11520_s9  ;;  %s11458_s15 = smov 10  }
   0x9   :  { %16439 = sst [smem:[#allocation32_spill]] %s11525_s13  ;;  %s11459_s20 = smov 11  }
   0xa   :  { %16440 = sst [smem:[#allocation33_spill]] %s11530_s17  ;;  %s11460_s26 = smov 12  }
   0xb   :  { %s11550_s3 = sld [smem:[%s16372_s0 + %s11455_s30]]   ;;  %s11461_s1 = smov 13  }
   0xc   :  { %16441 = sst [smem:[#allocation34_spill]] %s11540_s25  ;;  %s11462_s7 = smov 14  }
   0xd   :  { %s11555_s8 = sld [smem:[%s16372_s0 + %s11456_s4]]   ;;  %s11464_s22 = smov 16  }
   0xe   :  { %s11560_s14 = sld [smem:[%s16372_s0 + %s11457_s10]]   ;;  %s11465_s28 = smov 17  }
   0xf   :  { %s11565_s19 = sld [smem:[%s16372_s0 + %s11458_s15]]   ;;  %s11463_s15 = smov 15  }
  0x10   :  { %s11570_s24 = sld [smem:[%s16372_s0 + %s11459_s20]]   ;;  %s11478_s10 = smov 30  }
  0x11   :  { %16442 = sst [smem:[#allocation35_spill]] %s11550_s3 }
  0x12   :  { %s11575_s30 = sld [smem:[%s16372_s0 + %s11460_s26]]  }
  0x13   :  { %s11580_s6 = sld [smem:[%s16372_s0 + %s11461_s1]]  }
  0x14   :  { %s11585_s12 = sld [smem:[%s16372_s0 + %s11462_s7]]   ;;  %s11466_s7 = smov 18  }
  0x15   :  { %s11590_s20 = sld [smem:[%s16372_s0 + %s11463_s15]]   ;;  %s11467_s15 = smov 19  }
  0x16   :  { %s11595_s27 = sld [smem:[%s16372_s0 + %s11464_s22]]   ;;  %s11468_s22 = smov 20  }
  0x17   :  { %s11600_s4 = sld [smem:[%s16372_s0 + %s11465_s28]]   ;;  %s11469_s28 = smov 21  }
  0x18   :  { %s11610_s25 = sld [smem:[%s16372_s0 + %s11467_s15]]   ;;  %s11471_s15 = smov 23  }
  0x19   :  { %16443 = sst [smem:[#allocation36_spill]] %s11580_s6 }
  0x1a   :  { %s11605_s6 = sld [smem:[%s16372_s0 + %s11466_s7]]   ;;  %s11470_s7 = smov 22  }
  0x1b   :  { %s11620_s3 = sld [smem:[%s16372_s0 + %s11469_s28]]   ;;  %s11473_s28 = smov 25  }
  0x1c   :  { %16444 = sst [smem:[#allocation37_spill]] %s11595_s27 }
  0x1d   :  { %s11615_s27 = sld [smem:[%s16372_s0 + %s11468_s22]]   ;;  %s11472_s22 = smov 24  }
  0x1e   :  { %s11625_s17 = sld [smem:[%s16372_s0 + %s11470_s7]]   ;;  %s11474_s7 = smov 26  }
  0x1f   :  { %s11630_s13 = sld [smem:[%s16372_s0 + %s11471_s15]]   ;;  %s11475_s15 = smov 27  }
  0x20   :  { %s11645_s9 = sld [smem:[%s16372_s0 + %s11474_s7]]  }
  0x21   :  { %16446 = sst [smem:[#allocation39_spill]] %s11620_s3 }
  0x22   :  { %s11640_s3 = sld [smem:[%s16372_s0 + %s11473_s28]]   ;;  %s11477_s28 = smov 29  }
  0x23   :  { %16445 = sst [smem:[#allocation38_spill]] %s11615_s27 }
  0x24   :  { %s11635_s27 = sld [smem:[%s16372_s0 + %s11472_s22]]   ;;  %s11476_s22 = smov 28  }
  0x25   :  { %16447 = sst [smem:[#allocation40_spill]] %s11630_s13 }
  0x26   :  { %16450 = sst [smem:[#allocation43_spill]] %s11645_s9 }
  0x27   :  { %s11650_s13 = sld [smem:[%s16372_s0 + %s11475_s15]]  }
  0x28   :  { %16449 = sst [smem:[#allocation42_spill]] %s11640_s3 }
  0x29   :  { %s8759_s3 = sld [smem:[%s16372_s0 + %s11477_s28]]  }
  0x2a   :  { %16448 = sst [smem:[#allocation41_spill]] %s11635_s27 }
  0x2b   :  { %s11655_s27 = sld [smem:[%s16372_s0 + %s11476_s22]]  }
  0x2c   :  { %s11663_s9 = sld [smem:[%s16372_s0 + %s11478_s10]]  }
  0x2f   :  { %v66_v0 = vstv %s8759_s3 }
  0x30   :  { %67 = vst [vmem:[#allocation3] sm:$0x1] %v66_v0 }
  0x31   :  { %68 = vsyncpa [#allocation5], 0 }
  0x32   :  { %69 = vsyncpa [#allocation7], 0 }
  0x33   :  { %70 = vsyncpa [#allocation10], 0 }
  0x34   :  { %71 = vsyncpa [#allocation13], 0 }
  0x35   :  { %72 = vsyncpa [#allocation16], 0 }
  0x36   :  { %73 = vsyncpa [#allocation19], 0 }
  0x37   :  { %74 = vsyncpa [#allocation22], 0  ;;  %s11479_s15 = smov [#allocation6]   ;;  %s11480_s18 = smov [#allocation9]  }
  0x38   :  { %s103_s16 = sshll.u32 %s11479_s15, 4  ;;  %s125_s22 = sshll.u32 %s11480_s18, 4  ;;  %s104_s16 = int_to_ptr.vmem [resolvable:$true] %s103_s16  ;;  %s126_s22 = int_to_ptr.vmem [resolvable:$true] %s125_s22 }
  0x39   :  { %s11149_s0 = scalar_lea.hbm %s11545_s29, 16 }
  0x3a   :  { %p11150_p0 = scmp.ne.s32.totalorder %s11545_s29, %s11149_s0  ;;  %p11153_p1 = scmp.lt.u32.totalorder %s11149_s0, %s11545_s29 }
  0x3c   :  { %p11155_p2 = pnand %p11153_p1, %p11150_p0 }
  0x3e   :  { %11158 = shalt.err (!%p11155_p2)
}
  0x3f   :  { %s11159_s3 = scalar_lea.vmem %s104_s16, 16  ;;  %s11163_s23 = scalar_lea.vmem %s104_s16, 32 }
  0x40   :  { %p11160_p3 = scmp.ne.s32.totalorder %s104_s16, %s11159_s3  ;;  %p11164_p4 = scmp.lt.s32.totalorder %s104_s16, %s104_s16 }
  0x41   :  { %p11165_p5 = scmp.lt.s32.totalorder %s11163_s23, %s11159_s3 }
  0x43   :  { %p11166_p6 = por %p11165_p5, %p11164_p4 }
  0x45   :  { %p11167_p7 = pnand %p11166_p6, %p11160_p3 }
  0x47   :  { %11170 = shalt.err (!%p11167_p7)
}
  0x48   :  { %106 = dma.hbm_to_vmem [thread:$0]  %s11545_s29, 16, %s104_s16, [#allocation7]  }
  0x49   :  { %s11171_s26 = scalar_lea.hbm %s11560_s14, 16 }
  0x4a   :  { %p11172_p8 = scmp.ne.s32.totalorder %s11560_s14, %s11171_s26  ;;  %p11175_p9 = scmp.lt.u32.totalorder %s11171_s26, %s11560_s14 }
  0x4c   :  { %p11177_p10 = pnand %p11175_p9, %p11172_p8 }
  0x4e   :  { %11180 = shalt.err (!%p11177_p10)
}
  0x4f   :  { %s11181_s28 = scalar_lea.vmem %s126_s22, 16  ;;  %s11185_s1 = scalar_lea.vmem %s126_s22, 32 }
  0x50   :  { %p11182_p11 = scmp.ne.s32.totalorder %s126_s22, %s11181_s28  ;;  %p11186_p12 = scmp.lt.s32.totalorder %s126_s22, %s126_s22 }
  0x51   :  { %p11187_p13 = scmp.lt.s32.totalorder %s11185_s1, %s11181_s28 }
  0x53   :  { %p11188_p0 = por %p11187_p13, %p11186_p12 }
  0x55   :  { %p11189_p1 = pnand %p11188_p0, %p11182_p11 }
  0x57   :  { %11192 = shalt.err (!%p11189_p1)
}
  0x58   :  { %128 = dma.hbm_to_vmem [thread:$0]  %s11560_s14, 16, %s126_s22, [#allocation10]  }
  0x59   :  { %s11481_s2 = smov [#allocation12]   ;;  %s11482_s10 = smov [#allocation15]  }
  0x5a   :  { %s147_s29 = sshll.u32 %s11481_s2, 4  ;;  %s169_s7 = sshll.u32 %s11482_s10, 4  ;;  %s148_s29 = int_to_ptr.vmem [resolvable:$true] %s147_s29  ;;  %s170_s7 = int_to_ptr.vmem [resolvable:$true] %s169_s7 }
  0x5b   :  { %s11193_s11 = scalar_lea.hbm %s11570_s24, 16 }
  0x5c   :  { %p11194_p2 = scmp.ne.s32.totalorder %s11570_s24, %s11193_s11  ;;  %p11197_p3 = scmp.lt.u32.totalorder %s11193_s11, %s11570_s24 }
  0x5e   :  { %p11199_p4 = pnand %p11197_p3, %p11194_p2 }
  0x60   :  { %11202 = shalt.err (!%p11199_p4)
}
  0x61   :  { %s11203_s15 = scalar_lea.vmem %s148_s29, 16  ;;  %s11207_s16 = scalar_lea.vmem %s148_s29, 32 }
  0x62   :  { %p11204_p5 = scmp.ne.s32.totalorder %s148_s29, %s11203_s15  ;;  %p11208_p6 = scmp.lt.s32.totalorder %s148_s29, %s148_s29 }
  0x63   :  { %p11209_p7 = scmp.lt.s32.totalorder %s11207_s16, %s11203_s15 }
  0x65   :  { %p11210_p8 = por %p11209_p7, %p11208_p6 }
  0x67   :  { %p11211_p9 = pnand %p11210_p8, %p11204_p5 }
  0x69   :  { %11214 = shalt.err (!%p11211_p9)
}
  0x6a   :  { %150 = dma.hbm_to_vmem [thread:$0]  %s11570_s24, 16, %s148_s29, [#allocation13]  }
  0x6b   :  { %s11215_s14 = scalar_lea.hbm %s11585_s12, 16 }
  0x6c   :  { %p11216_p10 = scmp.ne.s32.totalorder %s11585_s12, %s11215_s14  ;;  %p11219_p11 = scmp.lt.u32.totalorder %s11215_s14, %s11585_s12 }
  0x6e   :  { %p11221_p12 = pnand %p11219_p11, %p11216_p10 }
  0x70   :  { %11224 = shalt.err (!%p11221_p12)
}
  0x71   :  { %s11225_s18 = scalar_lea.vmem %s170_s7, 16  ;;  %s11229_s22 = scalar_lea.vmem %s170_s7, 32 }
  0x72   :  { %p11226_p13 = scmp.ne.s32.totalorder %s170_s7, %s11225_s18  ;;  %p11230_p0 = scmp.lt.s32.totalorder %s170_s7, %s170_s7 }
  0x73   :  { %p11231_p1 = scmp.lt.s32.totalorder %s11229_s22, %s11225_s18 }
  0x75   :  { %p11232_p2 = por %p11231_p1, %p11230_p0 }
  0x77   :  { %p11233_p3 = pnand %p11232_p2, %p11226_p13 }
  0x79   :  { %11236 = shalt.err (!%p11233_p3)
}
  0x7a   :  { %172 = dma.hbm_to_vmem [thread:$0]  %s11585_s12, 16, %s170_s7, [#allocation16]  }
  0x7b   :  { %s11483_s0 = smov [#allocation18]   ;;  %s11237_s3 = scalar_lea.hbm %s11600_s4, 16 }
  0x7c   :  { %s191_s24 = sshll.u32 %s11483_s0, 4  ;;  %p11238_p4 = scmp.ne.s32.totalorder %s11600_s4, %s11237_s3  ;;  %s192_s24 = int_to_ptr.vmem [resolvable:$true] %s191_s24 }
  0x7d   :  { %p11241_p5 = scmp.lt.u32.totalorder %s11237_s3, %s11600_s4 }
  0x7f   :  { %p11243_p6 = pnand %p11241_p5, %p11238_p4 }
  0x81   :  { %11246 = shalt.err (!%p11243_p6)
}
  0x82   :  { %s11247_s23 = scalar_lea.vmem %s192_s24, 16  ;;  %s11251_s26 = scalar_lea.vmem %s192_s24, 32 }
  0x83   :  { %p11248_p7 = scmp.ne.s32.totalorder %s192_s24, %s11247_s23  ;;  %p11252_p8 = scmp.lt.s32.totalorder %s192_s24, %s192_s24 }
  0x84   :  { %p11253_p9 = scmp.lt.s32.totalorder %s11251_s26, %s11247_s23 }
  0x86   :  { %p11254_p10 = por %p11253_p9, %p11252_p8 }
  0x88   :  { %p11255_p11 = pnand %p11254_p10, %p11248_p7 }
  0x8a   :  { %11258 = shalt.err (!%p11255_p11)
}
  0x8b   :  { %194 = dma.hbm_to_vmem [thread:$0]  %s11600_s4, 16, %s192_s24, [#allocation19]  }
  0x8c   :  { %s11484_s12 = smov [#allocation21]   ;;  %s11485_s1 = smov [#allocation4]  }
  0x8d   :  { %s210_s28 = sshll.u32 %s11484_s12, 4  ;;  %s88_s2 = sshll.u32 %s11485_s1, 4  ;;  %s211_s28 = int_to_ptr.vmem [resolvable:$true] %s210_s28  ;;  %s89_s2 = int_to_ptr.vmem [resolvable:$true] %s88_s2 }
  0x8e   :  { %s11259_s29 = scalar_lea.hbm %s11610_s25, 4608 }
  0x8f   :  { %p11260_p12 = scmp.ne.s32.totalorder %s11610_s25, %s11259_s29  ;;  %p11263_p13 = scmp.lt.u32.totalorder %s11259_s29, %s11610_s25 }
  0x91   :  { %p11265_p0 = pnand %p11263_p13, %p11260_p12 }
  0x93   :  { %11268 = shalt.err (!%p11265_p0)
}
  0x94   :  { %s11269_s10 = scalar_lea.vmem %s211_s28, 4608  ;;  %p11274_p2 = scmp.lt.s32.totalorder %s211_s28, %s211_s28 }
  0x95   :  { %p11270_p1 = scmp.ne.s32.totalorder %s211_s28, %s11269_s10  ;;  %p11275_p3 = scmp.lt.s32.totalorder %s11269_s10, %s11269_s10 }
  0x97   :  { %p11276_p4 = por %p11275_p3, %p11274_p2 }
  0x99   :  { %p11277_p5 = pnand %p11276_p4, %p11270_p1 }
  0x9b   :  { %11280 = shalt.err (!%p11277_p5)
}
  0x9c   :  { %s11486_s7 = smov 128   ;;  %s11487_s4 = smov 8  }
  0x9d   :  { %216 = dma.hbm_to_vmem [thread:$0]  %s11610_s25, 4608, %s211_s28, [#allocation22], %s11486_s7, %s11486_s7, %s11487_s4  }
  0x9e   :  { %s11281_s11 = scalar_lea.hbm %s11535_s21, 2304 }
  0x9f   :  { %p11282_p6 = scmp.ne.s32.totalorder %s11535_s21, %s11281_s11  ;;  %p11285_p7 = scmp.lt.u32.totalorder %s11281_s11, %s11535_s21 }
  0xa1   :  { %p11287_p8 = pnand %p11285_p7, %p11282_p6 }
  0xa3   :  { %11290 = shalt.err (!%p11287_p8)
}
  0xa4   :  { %s11291_s15 = scalar_lea.vmem %s89_s2, 2304  ;;  %p11296_p10 = scmp.lt.s32.totalorder %s89_s2, %s89_s2 }
  0xa5   :  { %p11292_p9 = scmp.ne.s32.totalorder %s89_s2, %s11291_s15  ;;  %p11297_p11 = scmp.lt.s32.totalorder %s11291_s15, %s11291_s15 }
  0xa7   :  { %p11298_p12 = por %p11297_p11, %p11296_p10 }
  0xa9   :  { %p11299_p13 = pnand %p11298_p12, %p11292_p9 }
  0xab   :  { %11302 = shalt.err (!%p11299_p13)
}
  0xac   :  { %94 = dma.hbm_to_vmem [thread:$0]  %s11535_s21, 2304, %s89_s2, [#allocation5], %s11486_s7, %s11486_s7, %s11487_s4  }
  0xad   :  { %s11488_s25 = smov [#allocation8]   ;;  %s11489_s14 = smov [#allocation11]  }
  0xae   :  { %s115_s16 = sshll.u32 %s11488_s25, 4  ;;  %s134_s18 = sshll.u32 %s11489_s14, 4  ;;  %s116_s16 = int_to_ptr.vmem [resolvable:$true] %s115_s16  ;;  %s135_s18 = int_to_ptr.vmem [resolvable:$true] %s134_s18 }
  0xaf   :  { %s11303_s22 = scalar_lea.hbm %s11555_s8, 16 }
  0xb0   :  { %p11304_p0 = scmp.ne.s32.totalorder %s11555_s8, %s11303_s22  ;;  %p11307_p1 = scmp.lt.u32.totalorder %s11303_s22, %s11555_s8 }
  0xb2   :  { %p11309_p2 = pnand %p11307_p1, %p11304_p0 }
  0xb4   :  { %11312 = shalt.err (!%p11309_p2)
}
  0xb5   :  { %s11313_s0 = scalar_lea.vmem %s116_s16, 16  ;;  %s11317_s24 = scalar_lea.vmem %s116_s16, 32 }
  0xb6   :  { %p11314_p3 = scmp.ne.s32.totalorder %s116_s16, %s11313_s0  ;;  %p11318_p4 = scmp.lt.s32.totalorder %s116_s16, %s116_s16 }
  0xb7   :  { %p11319_p5 = scmp.lt.s32.totalorder %s11317_s24, %s11313_s0 }
  0xb9   :  { %p11320_p6 = por %p11319_p5, %p11318_p4 }
  0xbb   :  { %p11321_p7 = pnand %p11320_p6, %p11314_p3 }
  0xbd   :  { %11324 = shalt.err (!%p11321_p7)
}
  0xbe   :  { %118 = dma.hbm_to_vmem [thread:$0]  %s11555_s8, 16, %s116_s16, [#allocation7]  }
  0xbf   :  { %s11325_s21 = scalar_lea.hbm %s11565_s19, 2304 }
  0xc0   :  { %p11326_p8 = scmp.ne.s32.totalorder %s11565_s19, %s11325_s21  ;;  %p11329_p9 = scmp.lt.u32.totalorder %s11325_s21, %s11565_s19 }
  0xc2   :  { %p11331_p10 = pnand %p11329_p9, %p11326_p8 }
  0xc4   :  { %11334 = shalt.err (!%p11331_p10)
}
  0xc5   :  { %s11335_s3 = scalar_lea.vmem %s135_s18, 2304  ;;  %p11340_p12 = scmp.lt.s32.totalorder %s135_s18, %s135_s18 }
  0xc6   :  { %p11336_p11 = scmp.ne.s32.totalorder %s135_s18, %s11335_s3  ;;  %p11341_p13 = scmp.lt.s32.totalorder %s11335_s3, %s11335_s3 }
  0xc8   :  { %p11342_p0 = por %p11341_p13, %p11340_p12 }
  0xca   :  { %p11343_p1 = pnand %p11342_p0, %p11336_p11 }
  0xcc   :  { %11346 = shalt.err (!%p11343_p1)
}
  0xcd   :  { %140 = dma.hbm_to_vmem [thread:$0]  %s11565_s19, 2304, %s135_s18, [#allocation10], %s11486_s7, %s11486_s7, %s11487_s4  }
  0xce   :  { %s11490_s8 = smov [#allocation14]   ;;  %s11491_s26 = smov [#allocation17]  }
  0xcf   :  { %s157_s23 = sshll.u32 %s11490_s8, 4  ;;  %s179_s12 = sshll.u32 %s11491_s26, 4  ;;  %s158_s23 = int_to_ptr.vmem [resolvable:$true] %s157_s23  ;;  %s180_s12 = int_to_ptr.vmem [resolvable:$true] %s179_s12 }
  0xd0   :  { %s11347_s28 = scalar_lea.hbm %s11575_s30, 16 }
  0xd1   :  { %p11348_p2 = scmp.ne.s32.totalorder %s11575_s30, %s11347_s28  ;;  %p11351_p3 = scmp.lt.u32.totalorder %s11347_s28, %s11575_s30 }
  0xd3   :  { %p11353_p4 = pnand %p11351_p3, %p11348_p2 }
  0xd5   :  { %11356 = shalt.err (!%p11353_p4)
}
  0xd6   :  { %s11357_s1 = scalar_lea.vmem %s158_s23, 16  ;;  %s11361_s2 = scalar_lea.vmem %s158_s23, 32 }
  0xd7   :  { %p11358_p5 = scmp.ne.s32.totalorder %s158_s23, %s11357_s1  ;;  %p11362_p6 = scmp.lt.s32.totalorder %s158_s23, %s158_s23 }
  0xd8   :  { %p11363_p7 = scmp.lt.s32.totalorder %s11361_s2, %s11357_s1 }
  0xda   :  { %p11364_p8 = por %p11363_p7, %p11362_p6 }
  0xdc   :  { %p11365_p9 = pnand %p11364_p8, %p11358_p5 }
  0xde   :  { %11368 = shalt.err (!%p11365_p9)
}
  0xdf   :  { %160 = dma.hbm_to_vmem [thread:$0]  %s11575_s30, 16, %s158_s23, [#allocation13]  }
  0xe0   :  { %s11369_s19 = scalar_lea.hbm %s11590_s20, 16 }
  0xe1   :  { %p11370_p10 = scmp.ne.s32.totalorder %s11590_s20, %s11369_s19  ;;  %p11373_p11 = scmp.lt.u32.totalorder %s11369_s19, %s11590_s20 }
  0xe3   :  { %p11375_p12 = pnand %p11373_p11, %p11370_p10 }
  0xe5   :  { %11378 = shalt.err (!%p11375_p12)
}
  0xe6   :  { %s11379_s29 = scalar_lea.vmem %s180_s12, 16  ;;  %s11383_s10 = scalar_lea.vmem %s180_s12, 32 }
  0xe7   :  { %p11380_p13 = scmp.ne.s32.totalorder %s180_s12, %s11379_s29  ;;  %p11384_p0 = scmp.lt.s32.totalorder %s180_s12, %s180_s12 }
  0xe8   :  { %p11385_p1 = scmp.lt.s32.totalorder %s11383_s10, %s11379_s29 }
  0xea   :  { %p11386_p2 = por %p11385_p1, %p11384_p0 }
  0xec   :  { %p11387_p3 = pnand %p11386_p2, %p11380_p13 }
  0xee   :  { %11390 = shalt.err (!%p11387_p3)
}
  0xef   :  { %182 = dma.hbm_to_vmem [thread:$0]  %s11590_s20, 16, %s180_s12, [#allocation16]  }
  0xf0   :  { %s11492_s30 = smov [#allocation20]   ;;  %s11493_s15 = smov [#allocation23]  }
  0xf1   :  { %s201_s11 = sshll.u32 %s11492_s30, 4  ;;  %s226_s25 = sshll.u32 %s11493_s15, 4  ;;  %s202_s11 = int_to_ptr.vmem [resolvable:$true] %s201_s11  ;;  %s227_s25 = int_to_ptr.vmem [resolvable:$true] %s226_s25 }
  0xf2   :  { %s11391_s16 = scalar_lea.hbm %s11605_s6, 16 }
  0xf3   :  { %p11392_p4 = scmp.ne.s32.totalorder %s11605_s6, %s11391_s16  ;;  %p11395_p5 = scmp.lt.u32.totalorder %s11391_s16, %s11605_s6 }
  0xf5   :  { %p11397_p6 = pnand %p11395_p5, %p11392_p4 }
  0xf7   :  { %11400 = shalt.err (!%p11397_p6)
}
  0xf8   :  { %s11401_s14 = scalar_lea.vmem %s202_s11, 16  ;;  %s11405_s18 = scalar_lea.vmem %s202_s11, 32 }
  0xf9   :  { %p11402_p7 = scmp.ne.s32.totalorder %s202_s11, %s11401_s14  ;;  %p11406_p8 = scmp.lt.s32.totalorder %s202_s11, %s202_s11 }
  0xfa   :  { %p11407_p9 = scmp.lt.s32.totalorder %s11405_s18, %s11401_s14 }
  0xfc   :  { %p11408_p10 = por %p11407_p9, %p11406_p8 }
  0xfe   :  { %p11409_p11 = pnand %p11408_p10, %p11402_p7 }
 0x100   :  { %11412 = shalt.err (!%p11409_p11)
}
 0x101   :  { %204 = dma.hbm_to_vmem [thread:$0]  %s11605_s6, 16, %s202_s11, [#allocation19]  }
 0x102   :  { %s11413_s20 = scalar_lea.hbm %s11625_s17, 9216 }
 0x103   :  { %p11414_p12 = scmp.ne.s32.totalorder %s11625_s17, %s11413_s20  ;;  %p11417_p13 = scmp.lt.u32.totalorder %s11413_s20, %s11625_s17 }
 0x105   :  { %p11419_p0 = pnand %p11417_p13, %p11414_p12 }
 0x107   :  { %11422 = shalt.err (!%p11419_p0)
}
 0x108   :  { %s11423_s22 = scalar_lea.vmem %s227_s25, 9216  ;;  %p11428_p2 = scmp.lt.s32.totalorder %s227_s25, %s227_s25 }
 0x109   :  { %p11424_p1 = scmp.ne.s32.totalorder %s227_s25, %s11423_s22  ;;  %p11429_p3 = scmp.lt.s32.totalorder %s11423_s22, %s11423_s22 }
 0x10b   :  { %p11430_p4 = por %p11429_p3, %p11428_p2 }
 0x10d   :  { %p11431_p5 = pnand %p11430_p4, %p11424_p1 }
 0x10f   :  { %11434 = shalt.err (!%p11431_p5)
}
 0x110   :  { %232 = dma.hbm_to_vmem [thread:$0]  %s11625_s17, 9216, %s227_s25, [#allocation22], %s11486_s7, %s11486_s7, %s11487_s4  }
 0x111   :  { %11435 = dma.done.wait [#allocation5], 2304  }
 0x112   :  { %11436 = vsyncadd [#allocation5], 4294964992 }
 0x113   :  { %11437 = dma.done.wait [#allocation7], 32  }
 0x114   :  { %11438 = vsyncadd [#allocation7], 4294967264 }
 0x115   :  { %11439 = dma.done.wait [#allocation10], 2320  }
 0x116   :  { %11440 = vsyncadd [#allocation10], 4294964976 }
 0x117   :  { %11441 = dma.done.wait [#allocation13], 32  }
 0x118   :  { %11442 = vsyncadd [#allocation13], 4294967264 }
 0x119   :  { %11443 = dma.done.wait [#allocation16], 32  }
 0x11a   :  { %11444 = vsyncadd [#allocation16], 4294967264 }
 0x11b   :  { %11445 = dma.done.wait [#allocation19], 32  }
 0x11c   :  { %11446 = vsyncadd [#allocation19], 4294967264 }
 0x11d   :  { %11447 = dma.done.wait [#allocation22], 13824  }
 0x11e   :  { %11448 = vsyncadd [#allocation22], 4294953472  ;;  %vm286_vm0 = vcmask 523264   ;;  %vm288_vm1 = vcmask 517120   ;;  %v16377_v1 = vmov 0.0   ;;  %vm354_vm2 = vcmask 64512  }
 0x11f   :  { %287 = vst.msk [vmem:[#allocation2] sm:$0xff] %vm286_vm0, %v16377_v1  ;;  %290 = vst.msk [vmem:[#allocation2 + $0x10] sm:$0xff] %vm286_vm0, %v16377_v1  ;;  %v11810_v2 = vld [vmem:[%s11515_s5] sm:$0xff]  ;;  %v11813_v3 = vld [vmem:[%s11515_s5 + $0x8] sm:$0xff]  ;;  %s11495_s17 = smov 16   ;;  %s16451_s6 = sld [smem:[#allocation31_spill]] }
 0x120   :  { %289 = vst.msk [vmem:[#allocation2 + $0x8] sm:$0x3] %vm288_vm1, %v16377_v1  ;;  %291 = vst.msk [vmem:[#allocation2 + $0x18] sm:$0x3] %vm288_vm1, %v16377_v1  ;;  %v11816_v4 = vld [vmem:[%s11515_s5 + $0x10] sm:$0xff]  ;;  %v11825_v7 = vld [vmem:[%s11515_s5 + $0x18] sm:$0xff] }
 0x121   :  { %292 = vst.msk [vmem:[#allocation2 + $0x20] sm:$0xff] %vm286_vm0, %v16377_v1  ;;  %294 = vst.msk [vmem:[#allocation2 + $0x30] sm:$0xff] %vm286_vm0, %v16377_v1  ;;  %v11832_v8 = vld [vmem:[%s11515_s5 + $0x20] sm:$0xff]  ;;  %v11835_v9 = vld [vmem:[%s11515_s5 + $0x28] sm:$0xff]  ;;  %s11496_s7 = smov 24   ;;  %s11497_s0 = smov 32  }
 0x122   :  { %293 = vst.msk [vmem:[#allocation2 + $0x28] sm:$0x3] %vm288_vm1, %v16377_v1  ;;  %295 = vst.msk [vmem:[#allocation2 + $0x38] sm:$0x3] %vm288_vm1, %v16377_v1  ;;  %v11842_v10 = vld [vmem:[%s11515_s5 + $0x30] sm:$0xff]  ;;  %v11845_v11 = vld [vmem:[%s11515_s5 + $0x38] sm:$0xff] }
 0x123   :  { %296 = vst.msk [vmem:[#allocation2 + $0x40] sm:$0xff] %vm286_vm0, %v16377_v1  ;;  %298 = vst.msk [vmem:[#allocation2 + $0x50] sm:$0xff] %vm286_vm0, %v16377_v1  ;;  %v11852_v12 = vld [vmem:[%s11515_s5 + $0x40] sm:$0xff]  ;;  %v11857_v13 = vld [vmem:[%s11515_s5 + $0x48] sm:$0xff]  ;;  %s11498_s24 = smov 40   ;;  %s11499_s21 = smov 48  }
 0x124   :  { %297 = vst.msk [vmem:[#allocation2 + $0x48] sm:$0x3] %vm288_vm1, %v16377_v1  ;;  %299 = vst.msk [vmem:[#allocation2 + $0x58] sm:$0x3] %vm288_vm1, %v16377_v1  ;;  %v11874_v19 = vld [vmem:[%s11515_s5 + $0x50] sm:$0xff]  ;;  %v11899_v36 = vld [vmem:[%s11515_s5 + $0x58] sm:$0xff] }
 0x125   :  { %300 = vst.msk [vmem:[#allocation2 + $0x60] sm:$0xff] %vm286_vm0, %v16377_v1  ;;  %302 = vst.msk [vmem:[#allocation2 + $0x70] sm:$0xff] %vm286_vm0, %v16377_v1  ;;  %v344_v20 = vld [vmem:[%s16451_s6] sm:$0xff]  ;;  %v345_v21 = vld [vmem:[%s16451_s6 + $0x8] sm:$0xff]  ;;  %s11500_s3 = smov 56   ;;  %s11501_s8 = smov 64  }
 0x126   :  { %301 = vst.msk [vmem:[#allocation2 + $0x68] sm:$0x3] %vm288_vm1, %v16377_v1  ;;  %303 = vst.msk [vmem:[#allocation2 + $0x78] sm:$0x3] %vm288_vm1, %v16377_v1  ;;  %v9649_v22 = vpack.c.bf16 %v345_v21, %v344_v20  ;;  %v346_v25 = vld [vmem:[%s16451_s6 + $0x10] sm:$0xff]  ;;  %v347_v26 = vld [vmem:[%s16451_s6 + $0x18] sm:$0xff] }
 0x127   :  { %304 = vst.msk [vmem:[#allocation2 + $0x80] sm:$0xff] %vm286_vm0, %v16377_v1  ;;  %306 = vst.msk [vmem:[#allocation2 + $0x90] sm:$0xff] %vm286_vm0, %v16377_v1  ;;  %v403_v5 = vld [vmem:[#allocation2 + $0x2] sm:$0xff]  ;;  %v9653_v27 = vpack.c.bf16 %v347_v26, %v346_v25  ;;  %v350_v33 = vld [vmem:[%s16451_s6 + $0x30] sm:$0xff]  ;;  %vm1044_vm3 = vcmask 130048   ;;  %vm1061_vm4 = vcmask 195584  }
 0x128   :  { %305 = vst.msk [vmem:[#allocation2 + $0x88] sm:$0x3] %vm288_vm1, %v16377_v1  ;;  %307 = vst.msk [vmem:[#allocation2 + $0x98] sm:$0x3] %vm288_vm1, %v16377_v1  ;;  %v387_v6 = vld [vmem:[#allocation2 + $0x1] sm:$0xff]  ;;  %596 = vrot.lane.b32.xlu1 %v403_v5, %s11495_s17  ;;  %9650 = vmatprep.subr.bf16.mxu0 %v9649_v22  ;;  %v351_v34 = vld [vmem:[%s16451_s6 + $0x38] sm:$0xff] }
 0x129   :  { %308 = vst.msk [vmem:[#allocation2 + $0xa0] sm:$0xff] %vm286_vm0, %v16377_v1  ;;  %310 = vst.msk [vmem:[#allocation2 + $0xb0] sm:$0xff] %vm286_vm0, %v16377_v1  ;;  %532 = vrot.lane.b32.xlu0 %v387_v6, %s11487_s4  ;;  %9652 = vmatpush3.bf16.msra.mxu0 %v9649_v22  ;;  %v348_v28 = vld [vmem:[%s16451_s6 + $0x20] sm:$0xff]  ;;  %v349_v29 = vld [vmem:[%s16451_s6 + $0x28] sm:$0xff]  ;;  %v9661_v35 = vpack.c.bf16 %v351_v34, %v350_v33  ;;  %vm1078_vm5 = vcmask 261120   ;;  %vm1095_vm6 = vcmask 326656  }
 0x12a   :  { %309 = vst.msk [vmem:[#allocation2 + $0xa8] sm:$0x3] %vm288_vm1, %v16377_v1  ;;  %311 = vst.msk [vmem:[#allocation2 + $0xb8] sm:$0x3] %vm288_vm1, %v16377_v1  ;;  %9654 = vmatprep.subr.bf16.mxu0 %v9653_v27  ;;  %v9657_v30 = vpack.c.bf16 %v349_v29, %v348_v28  ;;  %v352_v37 = vld [vmem:[%s16451_s6 + $0x40] sm:$0xff]  ;;  %v11934_v45 = vld [vmem:[%s11515_s5 + $0x68] sm:$0xff] }
 0x12b   :  { %312 = vst.msk [vmem:[#allocation2 + $0xc0] sm:$0xff] %vm286_vm0, %v16377_v1  ;;  %314 = vst.msk [vmem:[#allocation2 + $0xd0] sm:$0xff] %vm286_vm0, %v16377_v1  ;;  %v11917_v40 = vld [vmem:[%s11515_s5 + $0x60] sm:$0xff]  ;;  %v11951_v48 = vld [vmem:[%s11515_s5 + $0x70] sm:$0xff]  ;;  %vm1112_vm7 = vcmask 392192   ;;  %vm1129_vm8 = vcmask 457728  }
 0x12c   :  { %313 = vst.msk [vmem:[#allocation2 + $0xc8] sm:$0x3] %vm288_vm1, %v16377_v1  ;;  %315 = vst.msk [vmem:[#allocation2 + $0xd8] sm:$0x3] %vm288_vm1, %v16377_v1  ;;  %v11968_v53 = vld [vmem:[%s11515_s5 + $0x78] sm:$0xff]  ;;  %v371_v34 = vld [vmem:[#allocation2] sm:$0xff] }
 0x12d   :  { %316 = vst.msk [vmem:[#allocation2 + $0xe0] sm:$0xff] %vm286_vm0, %v16377_v1  ;;  %318 = vst.msk [vmem:[#allocation2 + $0xf0] sm:$0xff] %vm286_vm0, %v16377_v1  ;;  %9656 = vmatpush3.bf16.msra.mxu0 %v9653_v27  ;;  %vm1162_vm9 = vcmask 588800   ;;  %s16452_s5 = sld [smem:[#allocation32_spill]]  ;;  %s16454_s23 = sld [smem:[#allocation35_spill]]  ;;  %vm2237_vm10 = vcmask 654336  }
 0x12e   :  { %317 = vst.msk [vmem:[#allocation2 + $0xe8] sm:$0x3] %vm288_vm1, %v16377_v1  ;;  %319 = vst.msk [vmem:[#allocation2 + $0xf8] sm:$0x3] %vm288_vm1, %v16377_v1  ;;  %9658 = vmatprep.subr.bf16.mxu0 %v9657_v30  ;;  %s11503_s26 = smov 96   ;;  %s11504_s12 = smov 80  }
 0x12f   :  { %320 = vst.msk [vmem:[#allocation2 + $0x100] sm:$0xff] %vm286_vm0, %v16377_v1  ;;  %322 = vst.msk [vmem:[#allocation2 + $0x110] sm:$0xff] %vm286_vm0, %v16377_v1  ;;  %s11505_s28 = smov 112   ;;  %vm2254_vm11 = vcmask 785408   ;;  %vm2271_vm12 = vcmask 916480   ;;  %s16455_s1 = sld [smem:[#allocation34_spill]] }
 0x130   :  { %321 = vst.msk [vmem:[#allocation2 + $0x108] sm:$0x3] %vm288_vm1, %v16377_v1  ;;  %323 = vst.msk [vmem:[#allocation2 + $0x118] sm:$0x3] %vm288_vm1, %v16377_v1  ;;  %s16459_s2 = sld [smem:[#allocation36_spill]]  ;;  %s16460_s19 = sld [smem:[#allocation37_spill]] }
 0x131   :  { %324 = vst.msk [vmem:[#allocation2 + $0x120] sm:$0xff] %vm286_vm0, %v16377_v1  ;;  %326 = vst.msk [vmem:[#allocation2 + $0x130] sm:$0xff] %vm286_vm0, %v16377_v1  ;;  %9660 = vmatpush3.bf16.msra.mxu0 %v9657_v30  ;;  %v395_v56 = vld [vmem:[#allocation2 + $0xa1] sm:$0xff]  ;;  %v507_v30 = vld [vmem:[#allocation2 + $0x92] sm:$0xff]  ;;  %s16504_s29 = sld [smem:[#allocation38_spill]]  ;;  %s16505_s10 = sld [smem:[#allocation39_spill]] }
 0x132   :  { %325 = vst.msk [vmem:[#allocation2 + $0x128] sm:$0x3] %vm288_vm1, %v16377_v1  ;;  %327 = vst.msk [vmem:[#allocation2 + $0x138] sm:$0x3] %vm288_vm1, %v16377_v1  ;;  %9662 = vmatprep.subr.bf16.mxu0 %v9661_v35  ;;  %v411_v59 = vld [vmem:[#allocation2 + $0xa2] sm:$0xff]  ;;  %s16506_s30 = sld [smem:[#allocation42_spill]] }
 0x133   :  { %355 = vst.msk [vmem:[#allocation2 + $0x11] sm:$0xff] %vm354_vm2, %v11810_v2  ;;  %356 = vst.msk [vmem:[#allocation2 + $0x21] sm:$0xff] %vm354_vm2, %v11813_v3  ;;  %vm11506_vm13 = vmmov 0   ;;  %s16554_s11 = sld [smem:[#allocation41_spill]]  ;;  %s16555_s15 = sld [smem:[#allocation43_spill]]  ;;  %vm8643_vm14 = vcmask 1041409  }
 0x134   :  { %357 = vst.msk [vmem:[#allocation2 + $0x31] sm:$0xff] %vm354_vm2, %v11816_v4  ;;  %358 = vst.msk [vmem:[#allocation2 + $0x41] sm:$0xff] %vm354_vm2, %v11825_v7  ;;  %vm8718_vm15 = vcmask 1024  }
 0x135   :  { %359 = vst.msk [vmem:[#allocation2 + $0x51] sm:$0xff] %vm354_vm2, %v11832_v8  ;;  %360 = vst.msk [vmem:[#allocation2 + $0x61] sm:$0xff] %vm354_vm2, %v11835_v9  ;;  %9664 = vmatpush3.bf16.msra.mxu0 %v9661_v35 }
 0x136   :  { %361 = vst.msk [vmem:[#allocation2 + $0x71] sm:$0xff] %vm354_vm2, %v11842_v10  ;;  %362 = vst.msk [vmem:[#allocation2 + $0x81] sm:$0xff] %vm354_vm2, %v11845_v11  ;;  %9414 = vmatprep.subr.mxu0 %v352_v37 }
 0x137   :  { %363 = vst.msk [vmem:[#allocation2 + $0xb1] sm:$0xff] %vm354_vm2, %v11852_v12  ;;  %364 = vst.msk [vmem:[#allocation2 + $0xc1] sm:$0xff] %vm354_vm2, %v11857_v13 }
 0x138   :  { %365 = vst.msk [vmem:[#allocation2 + $0xd1] sm:$0xff] %vm354_vm2, %v11874_v19  ;;  %366 = vst.msk [vmem:[#allocation2 + $0xe1] sm:$0xff] %vm354_vm2, %v11899_v36 }
 0x139   :  { %9415 = vmatpush3.msra.mxu0 %v352_v37  ;;  %367 = vst.msk [vmem:[#allocation2 + $0xf1] sm:$0xff] %vm354_vm2, %v11917_v40  ;;  %368 = vst.msk [vmem:[#allocation2 + $0x101] sm:$0xff] %vm354_vm2, %v11934_v45 }
 0x13a   :  { %v404_v14 = vld [vmem:[#allocation2 + $0x12] sm:$0xff]  ;;  %v11863_v16 = vld [vmem:[#allocation2 + $0x20] sm:$0xff]  ;;  %369 = vst.msk [vmem:[#allocation2 + $0x111] sm:$0xff] %vm354_vm2, %v11951_v48  ;;  %370 = vst.msk [vmem:[#allocation2 + $0x121] sm:$0xff] %vm354_vm2, %v11968_v53 }
 0x13b   :  { %v388_v15 = vld [vmem:[#allocation2 + $0x11] sm:$0xff]  ;;  %598 = vrot.lane.b32.xlu1 %v404_v14, %s11495_s17  ;;  %v389_v18 = vld [vmem:[#allocation2 + $0x21] sm:$0xff] }
 0x13c   :  { %534 = vrot.lane.b32.xlu0 %v388_v15, %s11487_s4  ;;  %v11865_v17 = vld [vmem:[#allocation2 + $0x10] sm:$0xff]  ;;  %v405_v23 = vld [vmem:[#allocation2 + $0x22] sm:$0xff] }
 0x13d   :  { %v390_v24 = vld [vmem:[#allocation2 + $0x31] sm:$0xff]  ;;  %v11907_v38 = vld [vmem:[#allocation2 + $0x40] sm:$0xff] }
 0x13e   :  { %v11891_v31 = vld [vmem:[#allocation2 + $0x30] sm:$0xff]  ;;  %v438_v39 = vld [vmem:[#allocation2 + $0x41] sm:$0xff] }
 0x13f   :  { %662 = vrot.lane.b32.xlu1 %v11863_v16, %s11496_s7  ;;  %v406_v32 = vld [vmem:[#allocation2 + $0x32] sm:$0xff]  ;;  %v407_v41 = vld [vmem:[#allocation2 + $0x42] sm:$0xff] }
 0x140   :  { %660 = vrot.lane.b32.xlu0 %v11865_v17, %s11496_s7  ;;  %v392_v42 = vld [vmem:[#allocation2 + $0x51] sm:$0xff]  ;;  %v11941_v46 = vld [vmem:[#allocation2 + $0x60] sm:$0xff] }
 0x141   :  { %v11928_v43 = vld [vmem:[#allocation2 + $0x50] sm:$0xff]  ;;  %v440_v47 = vld [vmem:[#allocation2 + $0x61] sm:$0xff] }
 0x142   :  { %v408_v44 = vld [vmem:[#allocation2 + $0x52] sm:$0xff]  ;;  %v409_v49 = vld [vmem:[#allocation2 + $0x62] sm:$0xff] }
 0x143   :  { %536 = vrot.lane.b32.xlu1 %v389_v18, %s11487_s4  ;;  %v394_v50 = vld [vmem:[#allocation2 + $0x71] sm:$0xff]  ;;  %v426_v54 = vld [vmem:[#allocation2 + $0x80] sm:$0xff] }
 0x144   :  { %724 = vrot.lane.b32.xlu0 %v388_v15, %s11497_s0  ;;  %v11962_v51 = vld [vmem:[#allocation2 + $0x70] sm:$0xff]  ;;  %v442_v55 = vld [vmem:[#allocation2 + $0x81] sm:$0xff] }
 0x145   :  { %v410_v52 = vld [vmem:[#allocation2 + $0x72] sm:$0xff]  ;;  %v458_v61 = vld [vmem:[#allocation2 + $0x82] sm:$0xff] }
 0x146   :  { %v396_v60 = vld [vmem:[#allocation2 + $0xb1] sm:$0xff]  ;;  %v12000_v21 = vld [vmem:[#allocation2 + $0xc0] sm:$0xff] }
 0x147   :  { %788 = vrot.lane.b32.xlu1 %v404_v14, %s11498_s24  ;;  %v11989_v0 = vld [vmem:[#allocation2 + $0xb0] sm:$0xff]  ;;  %v444_v27 = vld [vmem:[#allocation2 + $0xc1] sm:$0xff] }
 0x148   :  { %726 = vrot.lane.b32.xlu0 %v389_v18, %s11497_s0  ;;  %v412_v5 = vld [vmem:[#allocation2 + $0xb2] sm:$0xff]  ;;  %v413_v35 = vld [vmem:[#allocation2 + $0xc2] sm:$0xff] }
 0x149   :  { %v475_v15 = vld [vmem:[#allocation2 + $0x90] sm:$0xff] }
 0x14a   :  { %v398_v37 = vld [vmem:[#allocation2 + $0xd1] sm:$0xff] }
 0x14b   :  { %600 = vrot.lane.b32.xlu1 %v405_v23, %s11495_s17 }
 0x14c   :  { %538 = vrot.lane.b32.xlu0 %v390_v24, %s11487_s4 }
 0x14f   :  { %852 = vrot.lane.b32.xlu1 %v11863_v16, %s11499_s21 }
 0x150   :  { %790 = vrot.lane.b32.xlu0 %v405_v23, %s11498_s24 }
 0x153   :  { %664 = vrot.lane.b32.xlu1 %v11891_v31, %s11496_s7 }
 0x154   :  { %602 = vrot.lane.b32.xlu0 %v406_v32, %s11495_s17 }
 0x157   :  { %916 = vrot.lane.b32.xlu1 %v389_v18, %s11500_s3 }
 0x158   :  { %854 = vrot.lane.b32.xlu0 %v11891_v31, %s11499_s21 }
 0x15b   :  { %728 = vrot.lane.b32.xlu1 %v390_v24, %s11497_s0 }
 0x15c   :  { %666 = vrot.lane.b32.xlu0 %v11907_v38, %s11496_s7 }
 0x15f   :  { %980 = vrot.lane.b32.xlu1 %v405_v23, %s11501_s8 }
 0x160   :  { %918 = vrot.lane.b32.xlu0 %v390_v24, %s11500_s3  ;;  %v491_v24 = vld [vmem:[#allocation2 + $0x91] sm:$0xff] }
 0x163   :  { %730 = vrot.lane.b32.xlu1 %v438_v39, %s11497_s0 }
 0x164   :  { %540 = vrot.lane.b32.xlu0 %v438_v39, %s11487_s4 }
 0x167   :  { %982 = vrot.lane.b32.xlu1 %v406_v32, %s11501_s8 }
 0x168   :  { %792 = vrot.lane.b32.xlu0 %v406_v32, %s11498_s24 }
 0x16b   :  { %604 = vrot.lane.b32.xlu1 %v407_v41, %s11495_s17 }
 0x16c   :  { %542 = vrot.lane.b32.xlu0 %v392_v42, %s11487_s4 }
 0x16f   :  { %856 = vrot.lane.b32.xlu1 %v11907_v38, %s11499_s21 }
 0x170   :  { %794 = vrot.lane.b32.xlu0 %v407_v41, %s11498_s24 }
 0x173   :  { %668 = vrot.lane.b32.xlu1 %v11928_v43, %s11496_s7 }
 0x174   :  { %606 = vrot.lane.b32.xlu0 %v408_v44, %s11495_s17 }
 0x177   :  { %920 = vrot.lane.b32.xlu1 %v438_v39, %s11500_s3 }
 0x178   :  { %858 = vrot.lane.b32.xlu0 %v11928_v43, %s11499_s21 }
 0x17b   :  { %732 = vrot.lane.b32.xlu1 %v392_v42, %s11497_s0 }
 0x17c   :  { %670 = vrot.lane.b32.xlu0 %v11941_v46, %s11496_s7 }
 0x17f   :  { %984 = vrot.lane.b32.xlu1 %v407_v41, %s11501_s8 }
 0x180   :  { %922 = vrot.lane.b32.xlu0 %v392_v42, %s11500_s3 }
 0x183   :  { %734 = vrot.lane.b32.xlu1 %v440_v47, %s11497_s0 }
 0x184   :  { %544 = vrot.lane.b32.xlu0 %v440_v47, %s11487_s4 }
 0x187   :  { %986 = vrot.lane.b32.xlu1 %v408_v44, %s11501_s8 }
 0x188   :  { %796 = vrot.lane.b32.xlu0 %v408_v44, %s11498_s24 }
 0x18b   :  { %608 = vrot.lane.b32.xlu1 %v409_v49, %s11495_s17 }
 0x18c   :  { %546 = vrot.lane.b32.xlu0 %v394_v50, %s11487_s4 }
 0x18f   :  { %860 = vrot.lane.b32.xlu1 %v11941_v46, %s11499_s21 }
 0x190   :  { %798 = vrot.lane.b32.xlu0 %v409_v49, %s11498_s24 }
 0x193   :  { %672 = vrot.lane.b32.xlu1 %v11962_v51, %s11496_s7 }
 0x194   :  { %610 = vrot.lane.b32.xlu0 %v410_v52, %s11495_s17 }
 0x197   :  { %924 = vrot.lane.b32.xlu1 %v440_v47, %s11500_s3 }
 0x198   :  { %862 = vrot.lane.b32.xlu0 %v11962_v51, %s11499_s21 }
 0x19a   :  { %v597_v57 = vpop.permute.xlu1 %596 }
 0x19b   :  { %736 = vrot.lane.b32.xlu1 %v394_v50, %s11497_s0  ;;  %v533_v58 = vpop.permute.xlu0 %532 }
 0x19c   :  { %674 = vrot.lane.b32.xlu0 %v426_v54, %s11496_s7  ;;  %v1028_v39 = vsel %vm354_vm2, %v371_v34, %v533_v58 }
 0x19d   :  { %v1045_v44 = vsel %vm1044_vm3, %v1028_v39, %v597_v57  ;;  %v414_v57 = vld [vmem:[#allocation2 + $0xd2] sm:$0xff] }
 0x19f   :  { %988 = vrot.lane.b32.xlu1 %v409_v49, %s11501_s8 }
 0x1a0   :  { %926 = vrot.lane.b32.xlu0 %v394_v50, %s11500_s3 }
 0x1a3   :  { %738 = vrot.lane.b32.xlu1 %v442_v55, %s11497_s0 }
 0x1a4   :  { %548 = vrot.lane.b32.xlu0 %v395_v56, %s11487_s4  ;;  %v12032_v56 = vld [vmem:[#allocation2 + $0xd0] sm:$0xff] }
 0x1a7   :  { %990 = vrot.lane.b32.xlu1 %v410_v52, %s11501_s8 }
 0x1a8   :  { %800 = vrot.lane.b32.xlu0 %v410_v52, %s11498_s24 }
 0x1ab   :  { %612 = vrot.lane.b32.xlu1 %v411_v59, %s11495_s17 }
 0x1ac   :  { %550 = vrot.lane.b32.xlu0 %v396_v60, %s11487_s4 }
 0x1ad   :  { %v11985_v62 = vpop.permute.xlu1 %598 }
 0x1ae   :  { %v535_v63 = vpop.permute.xlu0 %534 }
 0x1af   :  { %864 = vrot.lane.b32.xlu1 %v426_v54, %s11499_s21  ;;  %v1029_v58 = vsel %vm354_vm2, %v11865_v17, %v535_v63 }
 0x1b0   :  { %802 = vrot.lane.b32.xlu0 %v458_v61, %s11498_s24 }
 0x1b1   :  { %v11991_v6 = vpop.permute.xlu1 %662 }
 0x1b2   :  { %v661_v14 = vpop.permute.xlu0 %660 }
 0x1b3   :  { %676 = vrot.lane.b32.xlu1 %v11989_v0, %s11496_s7  ;;  %v1062_v47 = vsel %vm1061_vm4, %v1045_v44, %v661_v14  ;;  %v1046_v14 = vsel %vm1044_vm3, %v1029_v58, %v11985_v62  ;;  %v12054_v62 = vld [vmem:[#allocation2 + $0xe0] sm:$0xff] }
 0x1b4   :  { %614 = vrot.lane.b32.xlu0 %v412_v5, %s11495_s17  ;;  %v1063_v17 = vsel %vm1061_vm4, %v1046_v14, %v11991_v6 }
 0x1b5   :  { %v11996_v18 = vpop.permute.xlu1 %536 }
 0x1b6   :  { %v725_v20 = vpop.permute.xlu0 %724 }
 0x1b7   :  { %928 = vrot.lane.b32.xlu1 %v442_v55, %s11500_s3  ;;  %v1079_v52 = vsel %vm1078_vm5, %v1062_v47, %v725_v20  ;;  %v415_v47 = vld [vmem:[#allocation2 + $0xe2] sm:$0xff] }
 0x1b8   :  { %866 = vrot.lane.b32.xlu0 %v475_v15, %s11499_s21 }
 0x1b9   :  { %v789_v22 = vpop.permute.xlu1 %788 }
 0x1ba   :  { %v727_v23 = vpop.permute.xlu0 %726  ;;  %v1096_v54 = vsel %vm1095_vm6, %v1079_v52, %v789_v22  ;;  %v400_v52 = vld [vmem:[#allocation2 + $0xf1] sm:$0xff] }
 0x1bb   :  { %740 = vrot.lane.b32.xlu1 %v396_v60, %s11497_s0  ;;  %v1080_v20 = vsel %vm1078_vm5, %v1063_v17, %v727_v23 }
 0x1bc   :  { %678 = vrot.lane.b32.xlu0 %v12000_v21, %s11496_s7 }
 0x1bd   :  { %v12005_v25 = vpop.permute.xlu1 %600 }
 0x1be   :  { %v12007_v26 = vpop.permute.xlu0 %538 }
 0x1bf   :  { %992 = vrot.lane.b32.xlu1 %v458_v61, %s11501_s8 }
 0x1c0   :  { %930 = vrot.lane.b32.xlu0 %v491_v24, %s11500_s3 }
 0x1c1   :  { %v853_v28 = vpop.permute.xlu1 %852 }
 0x1c2   :  { %v791_v29 = vpop.permute.xlu0 %790  ;;  %v1113_v55 = vsel %vm1112_vm7, %v1096_v54, %v853_v28 }
 0x1c3   :  { %742 = vrot.lane.b32.xlu1 %v444_v27, %s11497_s0  ;;  %v1097_v22 = vsel %vm1095_vm6, %v1080_v20, %v791_v29  ;;  %v446_v29 = vld [vmem:[#allocation2 + $0xe1] sm:$0xff] }
 0x1c4   :  { %552 = vrot.lane.b32.xlu0 %v444_v27, %s11487_s4 }
 0x1c5   :  { %v12013_v32 = vpop.permute.xlu1 %664 }
 0x1c6   :  { %v12015_v33 = vpop.permute.xlu0 %602 }
 0x1c7   :  { %994 = vrot.lane.b32.xlu1 %v507_v30, %s11501_s8 }
 0x1c8   :  { %804 = vrot.lane.b32.xlu0 %v412_v5, %s11498_s24 }
 0x1c9   :  { %v917_v41 = vpop.permute.xlu1 %916 }
 0x1ca   :  { %v855_v42 = vpop.permute.xlu0 %854  ;;  %v1130_v59 = vsel %vm1129_vm8, %v1113_v55, %v917_v41 }
 0x1cb   :  { %616 = vrot.lane.b32.xlu1 %v413_v35, %s11495_s17  ;;  %v1114_v24 = vsel %vm1112_vm7, %v1097_v22, %v855_v42 }
 0x1cc   :  { %554 = vrot.lane.b32.xlu0 %v398_v37, %s11487_s4 }
 0x1cd   :  { %v729_v49 = vpop.permute.xlu1 %728 }
 0x1ce   :  { %v12024_v50 = vpop.permute.xlu0 %666 }
 0x1cf   :  { %868 = vrot.lane.b32.xlu1 %v12000_v21, %s11499_s21 }
 0x1d0   :  { %806 = vrot.lane.b32.xlu0 %v413_v35, %s11498_s24 }
 0x1d1   :  { %v981_v60 = vpop.permute.xlu1 %980 }
 0x1d2   :  { %v919_v61 = vpop.permute.xlu0 %918  ;;  %v1146_v5 = vsel %vm286_vm0, %v1130_v59, %v981_v60 }
 0x1d3   :  { %680 = vrot.lane.b32.xlu1 %v12032_v56, %s11496_s7  ;;  %9416 = vmatprep.mubr.msk.f32.mxu0 %vm1162_vm9, %v1146_v5  ;;  %v1131_v28 = vsel %vm1129_vm8, %v1114_v24, %v919_v61 }
 0x1d4   :  { %618 = vrot.lane.b32.xlu0 %v414_v57, %s11495_s17 }
 0x1d5   :  { %v731_v63 = vpop.permute.xlu1 %730 }
 0x1d6   :  { %v12046_v15 = vpop.permute.xlu0 %540 }
 0x1d7   :  { %932 = vrot.lane.b32.xlu1 %v444_v27, %s11500_s3 }
 0x1d8   :  { %870 = vrot.lane.b32.xlu0 %v12032_v56, %s11499_s21 }
 0x1d9   :  { %v983_v30 = vpop.permute.xlu1 %982 }
 0x1da   :  { %v793_v6 = vpop.permute.xlu0 %792  ;;  %v1147_v34 = vsel %vm286_vm0, %v1131_v28, %v983_v30 }
 0x1db   :  { %744 = vrot.lane.b32.xlu1 %v398_v37, %s11497_s0  ;;  %9417 = vmatmul.mubr.msk.f32.vlgmr.msra.gmra.mrb[0].mxu0 %vm1162_vm9, %v1147_v34 }
 0x1dc   :  { %682 = vrot.lane.b32.xlu0 %v12054_v62, %s11496_s7 }
 0x1dd   :  { %v12062_v23 = vpop.permute.xlu1 %604 }
 0x1de   :  { %v12064_v27 = vpop.permute.xlu0 %542 }
 0x1df   :  { %996 = vrot.lane.b32.xlu1 %v413_v35, %s11501_s8 }
 0x1e0   :  { %934 = vrot.lane.b32.xlu0 %v398_v37, %s11500_s3  ;;  %v1030_v37 = vsel %vm354_vm2, %v11863_v16, %v11996_v18  ;;  %v12093_v18 = vld [vmem:[#allocation2 + $0xf0] sm:$0xff] }
 0x1e1   :  { %v857_v39 = vpop.permute.xlu1 %856  ;;  %v1047_v55 = vsel %vm1044_vm3, %v1030_v37, %v12005_v25  ;;  %v416_v25 = vld [vmem:[#allocation2 + $0xf2] sm:$0xff] }
 0x1e2   :  { %v795_v41 = vpop.permute.xlu0 %794  ;;  %v1064_v58 = vsel %vm1061_vm4, %v1047_v55, %v12013_v32 }
 0x1e3   :  { %746 = vrot.lane.b32.xlu1 %v446_v29, %s11497_s0  ;;  %v1081_v60 = vsel %vm1078_vm5, %v1064_v58, %v729_v49  ;;  %v1031_v49 = vsel %vm354_vm2, %v11891_v31, %v12007_v26  ;;  %v417_v58 = vld [vmem:[#allocation2 + $0x102] sm:$0xff] }
 0x1e4   :  { %556 = vrot.lane.b32.xlu0 %v446_v29, %s11487_s4  ;;  %v1098_v61 = vsel %vm1095_vm6, %v1081_v60, %v793_v6  ;;  %v1048_v20 = vsel %vm1044_vm3, %v1031_v49, %v12015_v33  ;;  %v12116_v33 = vld [vmem:[#allocation2 + $0x100] sm:$0xff]  ;;  %v402_v60 = vld [vmem:[#allocation2 + $0x111] sm:$0xff] }
 0x1e5   :  { %v12070_v42 = vpop.permute.xlu1 %668  ;;  %v1115_v16 = vsel %vm1112_vm7, %v1098_v61, %v857_v39  ;;  %v1065_v22 = vsel %vm1061_vm4, %v1048_v20, %v12024_v50 }
 0x1e6   :  { %v12072_v44 = vpop.permute.xlu0 %606  ;;  %v1082_v30 = vsel %vm1078_vm5, %v1065_v22, %v731_v63 }
 0x1e7   :  { %998 = vrot.lane.b32.xlu1 %v414_v57, %s11501_s8  ;;  %v1099_v31 = vsel %vm1095_vm6, %v1082_v30, %v795_v41  ;;  %v448_v41 = vld [vmem:[#allocation2 + $0x101] sm:$0xff] }
 0x1e8   :  { %808 = vrot.lane.b32.xlu0 %v414_v57, %s11498_s24 }
 0x1e9   :  { %v921_v35 = vpop.permute.xlu1 %920 }
 0x1ea   :  { %v859_v54 = vpop.permute.xlu0 %858  ;;  %v1132_v5 = vsel %vm1129_vm8, %v1115_v16, %v921_v35 }
 0x1eb   :  { %620 = vrot.lane.b32.xlu1 %v415_v47, %s11495_s17  ;;  %v1116_v26 = vsel %vm1112_vm7, %v1099_v31, %v859_v54 }
 0x1ec   :  { %558 = vrot.lane.b32.xlu0 %v400_v52, %s11487_s4 }
 0x1ed   :  { %v733_v59 = vpop.permute.xlu1 %732 }
 0x1ee   :  { %v12085_v57 = vpop.permute.xlu0 %670 }
 0x1ef   :  { %872 = vrot.lane.b32.xlu1 %v12054_v62, %s11499_s21 }
 0x1f0   :  { %810 = vrot.lane.b32.xlu0 %v415_v47, %s11498_s24 }
 0x1f1   :  { %v985_v32 = vpop.permute.xlu1 %984 }
 0x1f2   :  { %v923_v14 = vpop.permute.xlu0 %922  ;;  %v1148_v17 = vsel %vm286_vm0, %v1132_v5, %v985_v32 }
 0x1f3   :  { %684 = vrot.lane.b32.xlu1 %v12093_v18, %s11496_s7  ;;  %9419 = vmatprep.mubr.msk.f32.mxu0 %vm1162_vm9, %v1148_v17  ;;  %v1133_v6 = vsel %vm1129_vm8, %v1116_v26, %v923_v14 }
 0x1f4   :  { %622 = vrot.lane.b32.xlu0 %v416_v25, %s11495_s17 }
 0x1f5   :  { %v735_v24 = vpop.permute.xlu1 %734 }
 0x1f6   :  { %v12108_v28 = vpop.permute.xlu0 %544 }
 0x1f7   :  { %936 = vrot.lane.b32.xlu1 %v446_v29, %s11500_s3 }
 0x1f8   :  { %874 = vrot.lane.b32.xlu0 %v12093_v18, %s11499_s21 }
 0x1f9   :  { %v987_v34 = vpop.permute.xlu1 %986 }
 0x1fa   :  { %v797_v50 = vpop.permute.xlu0 %796  ;;  %v1149_v39 = vsel %vm286_vm0, %v1133_v6, %v987_v34 }
 0x1fb   :  { %748 = vrot.lane.b32.xlu1 %v400_v52, %s11497_s0  ;;  %9420 = vmatmul.mubr.msk.f32.gmra.mrb[2].mxu0 %vm1162_vm9, %v1149_v39 }
 0x1fc   :  { %686 = vrot.lane.b32.xlu0 %v12116_v33, %s11496_s7 }
 0x1fd   :  { %v12124_v63 = vpop.permute.xlu1 %608 }
 0x1fe   :  { %v12126_v29 = vpop.permute.xlu0 %546 }
 0x1ff   :  { %1000 = vrot.lane.b32.xlu1 %v415_v47, %s11501_s8 }
 0x200   :  { %938 = vrot.lane.b32.xlu0 %v400_v52, %s11500_s3  ;;  %v1032_v52 = vsel %vm354_vm2, %v11907_v38, %v12046_v15  ;;  %v12155_v15 = vld [vmem:[#allocation2 + $0x110] sm:$0xff] }
 0x201   :  { %v861_v35 = vpop.permute.xlu1 %860  ;;  %v1049_v16 = vsel %vm1044_vm3, %v1032_v52, %v12062_v23  ;;  %v418_v23 = vld [vmem:[#allocation2 + $0x112] sm:$0xff]  ;;  %v466_v52 = vld [vmem:[#allocation2 + $0x122] sm:$0xff] }
 0x202   :  { %v799_v54 = vpop.permute.xlu0 %798  ;;  %v1066_v5 = vsel %vm1061_vm4, %v1049_v16, %v12070_v42 }
 0x203   :  { %750 = vrot.lane.b32.xlu1 %v448_v41, %s11497_s0  ;;  %v1083_v14 = vsel %vm1078_vm5, %v1066_v5, %v733_v59  ;;  %v1033_v59 = vsel %vm354_vm2, %v11928_v43, %v12064_v27 }
 0x204   :  { %560 = vrot.lane.b32.xlu0 %v448_v41, %s11487_s4  ;;  %v1100_v17 = vsel %vm1095_vm6, %v1083_v14, %v797_v50  ;;  %v1050_v30 = vsel %vm1044_vm3, %v1033_v59, %v12072_v44  ;;  %v434_v44 = vld [vmem:[#allocation2 + $0x120] sm:$0xff]  ;;  %v483_v14 = vld [vmem:[#allocation2 + $0x130] sm:$0xff] }
 0x205   :  { %v12132_v37 = vpop.permute.xlu1 %672  ;;  %v1117_v38 = vsel %vm1112_vm7, %v1100_v17, %v861_v35  ;;  %v1067_v31 = vsel %vm1061_vm4, %v1050_v30, %v12085_v57 }
 0x206   :  { %v12134_v55 = vpop.permute.xlu0 %610  ;;  %v1084_v34 = vsel %vm1078_vm5, %v1067_v31, %v735_v24 }
 0x207   :  { %1002 = vrot.lane.b32.xlu1 %v416_v25, %s11501_s8  ;;  %v1101_v43 = vsel %vm1095_vm6, %v1084_v34, %v799_v54  ;;  %v450_v54 = vld [vmem:[#allocation2 + $0x121] sm:$0xff] }
 0x208   :  { %812 = vrot.lane.b32.xlu0 %v416_v25, %s11498_s24 }
 0x209   :  { %v925_v47 = vpop.permute.xlu1 %924 }
 0x20a   :  { %v863_v61 = vpop.permute.xlu0 %862  ;;  %v1134_v49 = vsel %vm1129_vm8, %v1117_v38, %v925_v47 }
 0x20b   :  { %624 = vrot.lane.b32.xlu1 %v417_v58, %s11495_s17  ;;  %v1118_v27 = vsel %vm1112_vm7, %v1101_v43, %v863_v61 }
 0x20c   :  { %562 = vrot.lane.b32.xlu0 %v402_v60, %s11487_s4  ;;  %s16453_s4 = sld [smem:[#allocation33_spill]] }
 0x20d   :  { %v737_v32 = vpop.permute.xlu1 %736 }
 0x20e   :  { %v12147_v25 = vpop.permute.xlu0 %674 }
 0x20f   :  { %876 = vrot.lane.b32.xlu1 %v12116_v33, %s11499_s21 }
 0x210   :  { %814 = vrot.lane.b32.xlu0 %v417_v58, %s11498_s24 }
 0x211   :  { %v989_v42 = vpop.permute.xlu1 %988 }
 0x212   :  { %v927_v20 = vpop.permute.xlu0 %926  ;;  %v1150_v22 = vsel %vm286_vm0, %v1134_v49, %v989_v42  ;;  %v499_v49 = vld [vmem:[#allocation2 + $0x131] sm:$0xff] }
 0x213   :  { %688 = vrot.lane.b32.xlu1 %v12155_v15, %s11496_s7  ;;  %9422 = vmatprep.mubr.msk.f32.mxu0 %vm1162_vm9, %v1150_v22  ;;  %v1135_v50 = vsel %vm1129_vm8, %v1118_v27, %v927_v20 }
 0x214   :  { %626 = vrot.lane.b32.xlu0 %v418_v23, %s11495_s17 }
 0x215   :  { %v739_v26 = vpop.permute.xlu1 %738 }
 0x216   :  { %v12170_v6 = vpop.permute.xlu0 %548 }
 0x217   :  { %940 = vrot.lane.b32.xlu1 %v448_v41, %s11500_s3 }
 0x218   :  { %878 = vrot.lane.b32.xlu0 %v12155_v15, %s11499_s21 }
 0x219   :  { %v991_v39 = vpop.permute.xlu1 %990 }
 0x21a   :  { %v801_v35 = vpop.permute.xlu0 %800  ;;  %v1151_v57 = vsel %vm286_vm0, %v1135_v50, %v991_v39 }
 0x21b   :  { %752 = vrot.lane.b32.xlu1 %v402_v60, %s11497_s0  ;;  %9423 = vmatmul.mubr.msk.f32.gmra.mrb[4].mxu0 %vm1162_vm9, %v1151_v57 }
 0x21c   :  { %690 = vrot.lane.b32.xlu0 %v434_v44, %s11496_s7 }
 0x21d   :  { %v613_v24 = vpop.permute.xlu1 %612 }
 0x21e   :  { %v12183_v41 = vpop.permute.xlu0 %550 }
 0x21f   :  { %1004 = vrot.lane.b32.xlu1 %v417_v58, %s11501_s8 }
 0x220   :  { %942 = vrot.lane.b32.xlu0 %v402_v60, %s11500_s3  ;;  %v1034_v60 = vsel %vm354_vm2, %v11941_v46, %v12108_v28  ;;  %v515_v28 = vld [vmem:[#allocation2 + $0x132] sm:$0xff] }
 0x221   :  { %v865_v47 = vpop.permute.xlu1 %864  ;;  %v1051_v38 = vsel %vm1044_vm3, %v1034_v60, %v12124_v63  ;;  %v379_v60 = vld [vmem:[#allocation2 + $0xa0] sm:$0xff] }
 0x222   :  { %v803_v61 = vpop.permute.xlu0 %802  ;;  %v1068_v42 = vsel %vm1061_vm4, %v1051_v38, %v12132_v37  ;;  %v1035_v37 = vsel %vm354_vm2, %v11962_v51, %v12126_v29 }
 0x223   :  { %816 = vrot.lane.b32.xlu1 %v418_v23, %s11498_s24  ;;  %v1085_v22 = vsel %vm1078_vm5, %v1068_v42, %v737_v32  ;;  %v1052_v32 = vsel %vm1044_vm3, %v1035_v37, %v12134_v55 }
 0x224   :  { %754 = vrot.lane.b32.xlu0 %v450_v54, %s11497_s0  ;;  %v1102_v59 = vsel %vm1095_vm6, %v1085_v22, %v801_v35  ;;  %v1069_v43 = vsel %vm1061_vm4, %v1052_v32, %v12147_v25 }
 0x225   :  { %v677_v16 = vpop.permute.xlu1 %676  ;;  %v1119_v46 = vsel %vm1112_vm7, %v1102_v59, %v865_v47  ;;  %v1086_v50 = vsel %vm1078_vm5, %v1069_v43, %v739_v26 }
 0x226   :  { %v12189_v5 = vpop.permute.xlu0 %614  ;;  %v1103_v39 = vsel %vm1095_vm6, %v1086_v50, %v803_v61  ;;  %v1036_v61 = vsel %vm354_vm2, %v379_v60, %v12170_v6  ;;  %v1037_v6 = vsel %vm354_vm2, %v11989_v0, %v12183_v41 }
 0x227   :  { %818 = vrot.lane.b32.xlu1 %v466_v52, %s11498_s24 }
 0x228   :  { %1006 = vrot.lane.b32.xlu0 %v418_v23, %s11501_s8 }
 0x229   :  { %v929_v17 = vpop.permute.xlu1 %928 }
 0x22a   :  { %v867_v58 = vpop.permute.xlu0 %866  ;;  %v1136_v30 = vsel %vm1129_vm8, %v1119_v46, %v929_v17 }
 0x22b   :  { %882 = vrot.lane.b32.xlu1 %v483_v14, %s11499_s21  ;;  %v1120_v51 = vsel %vm1112_vm7, %v1103_v39, %v867_v58  ;;  %v1053_v58 = vsel %vm1044_vm3, %v1036_v61, %v613_v24  ;;  %v1054_v24 = vsel %vm1044_vm3, %v1037_v6, %v12189_v5 }
 0x22c   :  { %880 = vrot.lane.b32.xlu0 %v434_v44, %s11499_s21 }
 0x22d   :  { %v741_v20 = vpop.permute.xlu1 %740 }
 0x22e   :  { %v679_v23 = vpop.permute.xlu0 %678 }
 0x22f   :  { %946 = vrot.lane.b32.xlu1 %v499_v49, %s11500_s3  ;;  %v1070_v49 = vsel %vm1061_vm4, %v1053_v58, %v677_v16  ;;  %v1071_v16 = vsel %vm1061_vm4, %v1054_v24, %v679_v23 }
 0x230   :  { %944 = vrot.lane.b32.xlu0 %v450_v54, %s11500_s3  ;;  %v1087_v59 = vsel %vm1078_vm5, %v1070_v49, %v741_v20 }
 0x231   :  { %v993_v63 = vpop.permute.xlu1 %992 }
 0x232   :  { %v931_v31 = vpop.permute.xlu0 %930  ;;  %v1152_v34 = vsel %vm286_vm0, %v1136_v30, %v993_v63 }
 0x233   :  { %1010 = vrot.lane.b32.xlu1 %v515_v28, %s11501_s8  ;;  %9425 = vmatprep.mubr.msk.f32.mxu0 %vm1162_vm9, %v1152_v34  ;;  %v1137_v29 = vsel %vm1129_vm8, %v1120_v51, %v931_v31 }
 0x234   :  { %1008 = vrot.lane.b32.xlu0 %v466_v52, %s11501_s8 }
 0x235   :  { %v743_v27 = vpop.permute.xlu1 %742 }
 0x236   :  { %v553_v44 = vpop.permute.xlu0 %552  ;;  %v1088_v32 = vsel %vm1078_vm5, %v1071_v16, %v743_v27 }
 0x239   :  { %v995_v35 = vpop.permute.xlu1 %994 }
 0x23a   :  { %v805_v57 = vpop.permute.xlu0 %804  ;;  %v1153_v54 = vsel %vm286_vm0, %v1137_v29, %v995_v35 }
 0x23b   :  { %9426 = vmatmul.mubr.msk.f32.gmra.mrb[6].mxu0 %vm1162_vm9, %v1153_v54  ;;  %v1104_v46 = vsel %vm1095_vm6, %v1087_v59, %v805_v57 }
 0x23d   :  { %v617_v55 = vpop.permute.xlu1 %616 }
 0x23e   :  { %v555_v47 = vpop.permute.xlu0 %554 }
 0x241   :  { %v869_v52 = vpop.permute.xlu1 %868 }
 0x242   :  { %v807_v25 = vpop.permute.xlu0 %806  ;;  %v1121_v28 = vsel %vm1112_vm7, %v1104_v46, %v869_v52 }
 0x243   :  { %v1105_v43 = vsel %vm1095_vm6, %v1088_v32, %v807_v25  ;;  %v1038_v25 = vsel %vm354_vm2, %v12000_v21, %v553_v44  ;;  %v1039_v21 = vsel %vm354_vm2, %v12032_v56, %v555_v47 }
 0x244   :  { %v1055_v60 = vsel %vm1044_vm3, %v1038_v25, %v617_v55 }
 0x245   :  { %v681_v14 = vpop.permute.xlu1 %680 }
 0x246   :  { %v619_v17 = vpop.permute.xlu0 %618 }
 0x247   :  { %v1056_v44 = vsel %vm1044_vm3, %v1039_v21, %v619_v17 }
 0x249   :  { %v933_v26 = vpop.permute.xlu1 %932 }
 0x24a   :  { %v871_v38 = vpop.permute.xlu0 %870  ;;  %v1138_v30 = vsel %vm1129_vm8, %v1121_v28, %v933_v26  ;;  %v1072_v26 = vsel %vm1061_vm4, %v1055_v60, %v681_v14 }
 0x24b   :  { %v1122_v50 = vsel %vm1112_vm7, %v1105_v43, %v871_v38 }
 0x24d   :  { %v745_v42 = vpop.permute.xlu1 %744 }
 0x24e   :  { %v683_v22 = vpop.permute.xlu0 %682  ;;  %v1089_v58 = vsel %vm1078_vm5, %v1072_v26, %v745_v42 }
 0x24f   :  { %v1073_v55 = vsel %vm1061_vm4, %v1056_v44, %v683_v22 }
 0x251   :  { %v997_v63 = vpop.permute.xlu1 %996 }
 0x252   :  { %v935_v31 = vpop.permute.xlu0 %934  ;;  %v1154_v34 = vsel %vm286_vm0, %v1138_v30, %v997_v63 }
 0x253   :  { %9428 = vmatprep.mubr.msk.f32.mxu0 %vm1162_vm9, %v1154_v34  ;;  %v1139_v39 = vsel %vm1129_vm8, %v1122_v50, %v935_v31 }
 0x255   :  { %v747_v20 = vpop.permute.xlu1 %746 }
 0x256   :  { %v557_v37 = vpop.permute.xlu0 %556  ;;  %v1090_v31 = vsel %vm1078_vm5, %v1073_v55, %v747_v20 }
 0x259   :  { %v999_v51 = vpop.permute.xlu1 %998 }
 0x25a   :  { %v809_v29 = vpop.permute.xlu0 %808  ;;  %v1155_v0 = vsel %vm286_vm0, %v1139_v39, %v999_v51 }
 0x25b   :  { %9429 = vmatmul.mubr.msk.f32.gmra.mrb[8].mxu0 %vm1162_vm9, %v1155_v0  ;;  %v1106_v49 = vsel %vm1095_vm6, %v1089_v58, %v809_v29  ;;  %v1040_v29 = vsel %vm354_vm2, %v12054_v62, %v557_v37 }
 0x25d   :  { %v621_v41 = vpop.permute.xlu1 %620 }
 0x25e   :  { %v559_v5 = vpop.permute.xlu0 %558  ;;  %v1057_v0 = vsel %vm1044_vm3, %v1040_v29, %v621_v41 }
 0x25f   :  { %v1041_v62 = vsel %vm354_vm2, %v12093_v18, %v559_v5 }
 0x261   :  { %v873_v35 = vpop.permute.xlu1 %872 }
 0x262   :  { %v811_v23 = vpop.permute.xlu0 %810  ;;  %v1123_v59 = vsel %vm1112_vm7, %v1106_v49, %v873_v35 }
 0x263   :  { %v1107_v34 = vsel %vm1095_vm6, %v1090_v31, %v811_v23 }
 0x265   :  { %v685_v57 = vpop.permute.xlu1 %684 }
 0x266   :  { %v623_v54 = vpop.permute.xlu0 %622  ;;  %v1074_v35 = vsel %vm1061_vm4, %v1057_v0, %v685_v57 }
 0x267   :  { %v1058_v37 = vsel %vm1044_vm3, %v1041_v62, %v623_v54 }
 0x269   :  { %v937_v52 = vpop.permute.xlu1 %936 }
 0x26a   :  { %v875_v27 = vpop.permute.xlu0 %874  ;;  %v1140_v46 = vsel %vm1129_vm8, %v1123_v59, %v937_v52 }
 0x26b   :  { %v1124_v6 = vsel %vm1112_vm7, %v1107_v34, %v875_v27 }
 0x26d   :  { %v749_v38 = vpop.permute.xlu1 %748 }
 0x26e   :  { %v687_v61 = vpop.permute.xlu0 %686  ;;  %v1091_v27 = vsel %vm1078_vm5, %v1074_v35, %v749_v38 }
 0x26f   :  { %v1075_v41 = vsel %vm1061_vm4, %v1058_v37, %v687_v61 }
 0x271   :  { %v1001_v28 = vpop.permute.xlu1 %1000 }
 0x272   :  { %v939_v30 = vpop.permute.xlu0 %938  ;;  %v1156_v63 = vsel %vm286_vm0, %v1140_v46, %v1001_v28 }
 0x273   :  { %9431 = vmatprep.mubr.msk.f32.mxu0 %vm1162_vm9, %v1156_v63  ;;  %v1141_v24 = vsel %vm1129_vm8, %v1124_v6, %v939_v30 }
 0x275   :  { %v751_v14 = vpop.permute.xlu1 %750 }
 0x276   :  { %v561_v42 = vpop.permute.xlu0 %560  ;;  %v1092_v46 = vsel %vm1078_vm5, %v1075_v41, %v751_v14 }
 0x277   :  { %v1042_v61 = vsel %vm354_vm2, %v12116_v33, %v561_v42 }
 0x279   :  { %v1003_v16 = vpop.permute.xlu1 %1002 }
 0x27a   :  { %v813_v32 = vpop.permute.xlu0 %812  ;;  %v1157_v56 = vsel %vm286_vm0, %v1141_v24, %v1003_v16 }
 0x27b   :  { %9432 = vmatmul.mubr.msk.f32.gmra.mrb[10].mxu0 %vm1162_vm9, %v1157_v56  ;;  %v1108_v25 = vsel %vm1095_vm6, %v1091_v27, %v813_v32 }
 0x27d   :  { %v625_v47 = vpop.permute.xlu1 %624 }
 0x27e   :  { %v563_v17 = vpop.permute.xlu0 %562  ;;  %v1059_v14 = vsel %vm1044_vm3, %v1042_v61, %v625_v47 }
 0x27f   :  { %v1043_v55 = vsel %vm354_vm2, %v12155_v15, %v563_v17 }
 0x281   :  { %v877_v43 = vpop.permute.xlu1 %876 }
 0x282   :  { %v815_v22 = vpop.permute.xlu0 %814  ;;  %v1125_v60 = vsel %vm1112_vm7, %v1108_v25, %v877_v43 }
 0x283   :  { %v1109_v28 = vsel %vm1095_vm6, %v1092_v46, %v815_v22 }
 0x285   :  { %v689_v50 = vpop.permute.xlu1 %688 }
 0x286   :  { %v627_v39 = vpop.permute.xlu0 %626  ;;  %v1076_v34 = vsel %vm1061_vm4, %v1059_v14, %v689_v50 }
 0x287   :  { %v1060_v31 = vsel %vm1044_vm3, %v1043_v55, %v627_v39 }
 0x289   :  { %v941_v51 = vpop.permute.xlu1 %940 }
 0x28a   :  { %v879_v20 = vpop.permute.xlu0 %878  ;;  %v1142_v26 = vsel %vm1129_vm8, %v1125_v60, %v941_v51 }
 0x28b   :  { %v1126_v30 = vsel %vm1112_vm7, %v1109_v28, %v879_v20 }
 0x28d   :  { %v753_v23 = vpop.permute.xlu1 %752 }
 0x28e   :  { %v691_v52 = vpop.permute.xlu0 %690  ;;  %v1093_v32 = vsel %vm1078_vm5, %v1076_v34, %v753_v23 }
 0x28f   :  { %v1077_v6 = vsel %vm1061_vm4, %v1060_v31, %v691_v52 }
 0x291   :  { %v1005_v58 = vpop.permute.xlu1 %1004 }
 0x292   :  { %v943_v49 = vpop.permute.xlu0 %942  ;;  %v1158_v59 = vsel %vm286_vm0, %v1142_v26, %v1005_v58 }
 0x293   :  { %9434 = vmatprep.mubr.msk.f32.mxu0 %vm1162_vm9, %v1158_v59  ;;  %v1143_v63 = vsel %vm1129_vm8, %v1126_v30, %v943_v49 }
 0x295   :  { %v817_v57 = vpop.permute.xlu1 %816 }
 0x296   :  { %v755_v38 = vpop.permute.xlu0 %754  ;;  %v1110_v43 = vsel %vm1095_vm6, %v1093_v32, %v817_v57 }
 0x297   :  { %v1094_v56 = vsel %vm1078_vm5, %v1077_v6, %v755_v38 }
 0x299   :  { %v819_v21 = vpop.permute.xlu1 %818 }
 0x29a   :  { %v1007_v44 = vpop.permute.xlu0 %1006  ;;  %v1111_v33 = vsel %vm1095_vm6, %v1094_v56, %v819_v21 }
 0x29b   :  { %v1159_v18 = vsel %vm286_vm0, %v1143_v63, %v1007_v44 }
 0x29c   :  { %9435 = vmatmul.mubr.msk.f32.gmra.mrb[12].mxu0 %vm1162_vm9, %v1159_v18 }
 0x29d   :  { %v883_v5 = vpop.permute.xlu1 %882 }
 0x29e   :  { %v881_v54 = vpop.permute.xlu0 %880  ;;  %v1128_v15 = vsel %vm1112_vm7, %v1111_v33, %v883_v5 }
 0x29f   :  { %v1127_v42 = vsel %vm1112_vm7, %v1110_v43, %v881_v54 }
 0x2a1   :  { %v947_v24 = vpop.permute.xlu1 %946 }
 0x2a2   :  { %v945_v16 = vpop.permute.xlu0 %944  ;;  %v1145_v47 = vsel %vm1129_vm8, %v1128_v15, %v947_v24 }
 0x2a3   :  { %v1144_v17 = vsel %vm1129_vm8, %v1127_v42, %v945_v16 }
 0x2a5   :  { %v1011_v22 = vpop.permute.xlu1 %1010 }
 0x2a6   :  { %v1009_v50 = vpop.permute.xlu0 %1008  ;;  %v1161_v39 = vsel %vm286_vm0, %v1145_v47, %v1011_v22 }
 0x2a7   :  { %v1160_v51 = vsel %vm286_vm0, %v1144_v17, %v1009_v50 }
 0x2a8   :  { %9437 = vmatprep.mubr.msk.f32.mxu0 %vm1162_vm9, %v1160_v51 }
 0x2a9   :  { %9438 = vmatmul.mubr.msk.f32.gmra.mrb[14].mxu0 %vm1162_vm9, %v1161_v39 }
 0x2aa   :  { %9442 = vmatprep.mubr.msk.f32.mxu0 %vm354_vm2, %v11810_v2 }
 0x2ae   :  { %v12309_v20 = vpop.f32.mrb[0].mxu0 }
 0x2af   :  { %v1359_v29 = vsel %vm1044_vm3, %v12309_v20, 0.0  ;;  %v1398_v0 = vmul.f32 %v12309_v20, %v12309_v20  ;;  %v12315_v35 = vpop.f32.mrb[1].mxu0 }
 0x2b0   :  { %v1358_v23 = vsel %vm1044_vm3, %v12315_v35, 0.0  ;;  %v1397_v52 = vmul.f32 %v12315_v35, %v12315_v35 }
 0x2b1   :  { %v1414_v27 = vsel %vm1044_vm3, %v1398_v0, 0.0  ;;  %v1360_v25 = vadd.f32 %v1359_v29, %v1358_v23 }
 0x2b2   :  { %v1413_v2 = vsel %vm1044_vm3, %v1397_v52, 0.0 }
 0x2b3   :  { %v1415_v60 = vadd.f32 %v1414_v27, %v1413_v2 }
 0x2ce   :  { %v12323_v26 = vpop.f32.mrb[2].mxu0 }
 0x2cf   :  { %v12325_v58 = vpop.f32.mrb[3].mxu0  ;;  %v1400_v49 = vmul.f32 %v12323_v26, %v12323_v26  ;;  %v1363_v41 = vsel %vm1044_vm3, %v12323_v26, 0.0 }
 0x2d0   :  { %v1361_v59 = vsel %vm1044_vm3, %v12325_v58, 0.0  ;;  %v1399_v62 = vmul.f32 %v12325_v58, %v12325_v58 }
 0x2d1   :  { %v1362_v37 = vadd.f32 %v1361_v59, %v1360_v25  ;;  %v1418_v28 = vsel %vm1044_vm3, %v1400_v49, 0.0 }
 0x2d2   :  { %v1416_v57 = vsel %vm1044_vm3, %v1399_v62, 0.0 }
 0x2d3   :  { %v1417_v38 = vadd.f32 %v1416_v57, %v1415_v60  ;;  %v1364_v46 = vadd.f32 %v1363_v41, %v1362_v37 }
 0x2d5   :  { %v1419_v30 = vadd.f32 %v1418_v28, %v1417_v38 }
 0x2ee   :  { %v12337_v63 = vpop.f32.mrb[4].mxu0 }
 0x2ef   :  { %v12339_v21 = vpop.f32.mrb[5].mxu0  ;;  %v1402_v44 = vmul.f32 %v12337_v63, %v12337_v63  ;;  %v1367_v61 = vsel %vm1044_vm3, %v12337_v63, 0.0 }
 0x2f0   :  { %v1365_v18 = vsel %vm1044_vm3, %v12339_v21, 0.0  ;;  %v1401_v5 = vmul.f32 %v12339_v21, %v12339_v21 }
 0x2f1   :  { %v1366_v54 = vadd.f32 %v1365_v18, %v1364_v46  ;;  %v1422_v34 = vsel %vm1044_vm3, %v1402_v44, 0.0 }
 0x2f2   :  { %v1420_v55 = vsel %vm1044_vm3, %v1401_v5, 0.0 }
 0x2f3   :  { %v1421_v14 = vadd.f32 %v1420_v55, %v1419_v30  ;;  %v1368_v31 = vadd.f32 %v1367_v61, %v1366_v54 }
 0x2f5   :  { %v1423_v6 = vadd.f32 %v1422_v34, %v1421_v14 }
 0x30e   :  { %v12351_v24 = vpop.f32.mrb[6].mxu0 }
 0x30f   :  { %v12353_v16 = vpop.f32.mrb[7].mxu0  ;;  %v1404_v32 = vmul.f32 %v12351_v24, %v12351_v24  ;;  %v1371_v15 = vsel %vm1044_vm3, %v12351_v24, 0.0 }
 0x310   :  { %v1369_v56 = vsel %vm1044_vm3, %v12353_v16, 0.0  ;;  %v1403_v43 = vmul.f32 %v12353_v16, %v12353_v16 }
 0x311   :  { %v1370_v33 = vadd.f32 %v1369_v56, %v1368_v31  ;;  %v1426_v22 = vsel %vm1044_vm3, %v1404_v32, 0.0 }
 0x312   :  { %v1424_v42 = vsel %vm1044_vm3, %v1403_v43, 0.0 }
 0x313   :  { %v1425_v47 = vadd.f32 %v1424_v42, %v1423_v6  ;;  %v1372_v17 = vadd.f32 %v1371_v15, %v1370_v33 }
 0x315   :  { %v1427_v50 = vadd.f32 %v1426_v22, %v1425_v47 }
 0x32e   :  { %v12365_v39 = vpop.f32.mrb[8].mxu0 }
 0x32f   :  { %v12367_v51 = vpop.f32.mrb[9].mxu0  ;;  %v1406_v29 = vmul.f32 %v12365_v39, %v12365_v39  ;;  %v1375_v27 = vsel %vm1044_vm3, %v12365_v39, 0.0 }
 0x330   :  { %v1373_v0 = vsel %vm1044_vm3, %v12367_v51, 0.0  ;;  %v1405_v23 = vmul.f32 %v12367_v51, %v12367_v51 }
 0x331   :  { %v1374_v52 = vadd.f32 %v1373_v0, %v1372_v17  ;;  %v1430_v49 = vsel %vm1044_vm3, %v1406_v29, 0.0 }
 0x332   :  { %v1428_v25 = vsel %vm1044_vm3, %v1405_v23, 0.0 }
 0x333   :  { %v1429_v2 = vadd.f32 %v1428_v25, %v1427_v50  ;;  %v1376_v60 = vadd.f32 %v1375_v27, %v1374_v52 }
 0x335   :  { %v1431_v59 = vadd.f32 %v1430_v49, %v1429_v2 }
 0x34e   :  { %v12379_v62 = vpop.f32.mrb[10].mxu0 }
 0x34f   :  { %v12381_v37 = vpop.f32.mrb[11].mxu0  ;;  %v1408_v41 = vmul.f32 %v12379_v62, %v12379_v62  ;;  %v1379_v28 = vsel %vm1044_vm3, %v12379_v62, 0.0 }
 0x350   :  { %v1377_v57 = vsel %vm1044_vm3, %v12381_v37, 0.0  ;;  %v1407_v38 = vmul.f32 %v12381_v37, %v12381_v37 }
 0x351   :  { %v1378_v46 = vadd.f32 %v1377_v57, %v1376_v60  ;;  %v1434_v5 = vsel %vm1044_vm3, %v1408_v41, 0.0 }
 0x352   :  { %v1432_v30 = vsel %vm1044_vm3, %v1407_v38, 0.0 }
 0x353   :  { %v1433_v44 = vadd.f32 %v1432_v30, %v1431_v59  ;;  %v1380_v18 = vadd.f32 %v1379_v28, %v1378_v46 }
 0x355   :  { %v1435_v54 = vadd.f32 %v1434_v5, %v1433_v44 }
 0x36f   :  { %v12393_v61 = vpop.f32.mrb[12].mxu0 }
 0x370   :  { %v12395_v55 = vpop.f32.mrb[13].mxu0  ;;  %v1410_v14 = vmul.f32 %v12393_v61, %v12393_v61  ;;  %v1383_v32 = vsel %vm1044_vm3, %v12393_v61, 0.0 }
 0x371   :  { %v1381_v31 = vsel %vm1044_vm3, %v12395_v55, 0.0  ;;  %v1409_v34 = vmul.f32 %v12395_v55, %v12395_v55 }
 0x372   :  { %v1382_v6 = vadd.f32 %v1381_v31, %v1380_v18  ;;  %v1438_v15 = vsel %vm1044_vm3, %v1410_v14, 0.0 }
 0x373   :  { %v1436_v56 = vsel %vm1044_vm3, %v1409_v34, 0.0 }
 0x374   :  { %v1437_v43 = vadd.f32 %v1436_v56, %v1435_v54  ;;  %v1384_v33 = vadd.f32 %v1383_v32, %v1382_v6  ;;  %v16378_v56 = vmov 0.0|0.0  }
 0x375   :  { %9665 = vmatprep.subr.bf16.mxu1 %v16378_v56 }
 0x376   :  { %v1439_v42 = vadd.f32 %v1438_v15, %v1437_v43 }
 0x37c   :  { %v12407_v47 = vpop.f32.mrb[14].mxu0 }
 0x37d   :  { %v12409_v17 = vpop.f32.mrb[15].mxu0  ;;  %v1412_v22 = vmul.f32 %v12407_v47, %v12407_v47  ;;  %v1387_v23 = vsel %vm1044_vm3, %v12407_v47, 0.0 }
 0x37e   :  { %v1385_v50 = vsel %vm1044_vm3, %v12409_v17, 0.0  ;;  %v1411_v29 = vmul.f32 %v12409_v17, %v12409_v17 }
 0x37f   :  { %v1386_v0 = vadd.f32 %v1385_v50, %v1384_v33  ;;  %v1442_v2 = vsel %vm1044_vm3, %v1412_v22, 0.0  ;;  %v1547_v22 = vld [vmem:[#allocation4] sm:$0xff] }
 0x380   :  { %v1440_v52 = vsel %vm1044_vm3, %v1411_v29, 0.0 }
 0x381   :  { %v1388_v27 = vadd.f32 %v1387_v23, %v1386_v0  ;;  %v1441_v25 = vadd.f32 %v1440_v52, %v1439_v42  ;;  %v1549_v23 = vld [vmem:[#allocation4 + $0x10] sm:$0xff] }
 0x383   :  { %v1389_v60 = vrot.slane %v1388_v27, 4  ;;  %v1443_v49 = vadd.f32 %v1442_v2, %v1441_v25 }
 0x385   :  { %v1390_v59 = vadd.f32 %v1389_v60, %v1388_v27  ;;  %v1444_v41 = vrot.slane %v1443_v49, 4 }
 0x387   :  { %v1391_v57 = vrot.slane %v1390_v59, 2  ;;  %v1445_v38 = vadd.f32 %v1444_v41, %v1443_v49  ;;  %v1551_v49 = vld [vmem:[#allocation4 + $0x20] sm:$0xff] }
 0x389   :  { %v1392_v46 = vadd.f32 %v1391_v57, %v1390_v59  ;;  %v1446_v28 = vrot.slane %v1445_v38, 2  ;;  %v1552_v59 = vld [vmem:[#allocation4 + $0x28] sm:$0xff]  ;;  %v1553_v57 = vld [vmem:[#allocation4 + $0x30] sm:$0xff] }
 0x38a   :  { %v9672_v41 = vpack.c.bf16 %v1552_v59, %v1551_v49 }
 0x38b   :  { %v1393_v30 = vrot.slane %v1392_v46, 1  ;;  %v1447_v44 = vadd.f32 %v1446_v28, %v1445_v38  ;;  %v1554_v38 = vld [vmem:[#allocation4 + $0x38] sm:$0xff]  ;;  %v1555_v28 = vld [vmem:[#allocation4 + $0x40] sm:$0xff] }
 0x38d   :  { %v1394_v18 = vadd.f32 %v1393_v30, %v1392_v46  ;;  %v1448_v5 = vrot.slane %v1447_v44, 1  ;;  %v9675_v46 = vpack.c.bf16 %v1554_v38, %v1553_v57  ;;  %v1556_v30 = vld [vmem:[#allocation4 + $0x48] sm:$0xff] }
 0x38f   :  { %v12421_v54 = vmul.f32 0.0078125, %v1394_v18  ;;  %v1449_v14 = vadd.f32 %v1448_v5, %v1447_v44  ;;  %v8777_v18 = vld [vmem:[%s16452_s5] ss:$0 sm:$0xff]  ;;  %v9678_v5 = vpack.c.bf16 %v1556_v30, %v1555_v28 }
 0x391   :  { %v1450_v31 = vmul.f32 0.0078125, %v1449_v14  ;;  %v1451_v34 = vmul.f32 %v12421_v54, %v12421_v54  ;;  %v1467_v6 = vsub.f32 %v12409_v17, %v12421_v54  ;;  %v1454_v32 = vsub.f32 %v12309_v20, %v12421_v54  ;;  %v1548_v17 = vld [vmem:[#allocation4 + $0x8] sm:$0xff] }
 0x392   :  { %v1453_v43 = vsub.f32 %v12315_v35, %v12421_v54  ;;  %v1455_v33 = vsub.f32 %v12325_v58, %v12421_v54  ;;  %v1456_v15 = vsub.f32 %v12323_v26, %v12421_v54  ;;  %v1457_v42 = vsub.f32 %v12339_v21, %v12421_v54 }
 0x393   :  { %v1452_v50 = vsub.f32 %v1450_v31, %v1451_v34  ;;  %v1458_v20 = vsub.f32 %v12337_v63, %v12421_v54  ;;  %v1459_v29 = vsub.f32 %v12353_v16, %v12421_v54  ;;  %v1460_v35 = vsub.f32 %v12351_v24, %v12421_v54  ;;  %v1550_v63 = vld [vmem:[#allocation4 + $0x18] sm:$0xff] }
 0x394   :  { %v1461_v58 = vsub.f32 %v12367_v51, %v12421_v54  ;;  %v1462_v26 = vsub.f32 %v12365_v39, %v12421_v54  ;;  %v1463_v21 = vsub.f32 %v12381_v37, %v12421_v54  ;;  %v1464_v0 = vsub.f32 %v12379_v62, %v12421_v54 }
 0x395   :  { %v1469_v52 = vadd.f32 1e-05, %v1452_v50  ;;  %v1465_v16 = vsub.f32 %v12395_v55, %v12421_v54  ;;  %v1466_v27 = vsub.f32 %v12393_v61, %v12421_v54  ;;  %v9666_v25 = vpack.c.bf16 %v1548_v17, %v1547_v22  ;;  %v12463_v17 = vld [vmem:[%s16453_s4] ss:$0 sm:$0xff] }
 0x396   :  { %v1468_v2 = vsub.f32 %v12407_v47, %v12421_v54  ;;  %v9669_v60 = vpack.c.bf16 %v1550_v63, %v1549_v23  ;;  %v1613_v47 = vld [vmem:[#allocation2 + $0x2] sm:$0xff] }
 0x397   :  { %11131 = vrsqrt.f32 %v1469_v52  ;;  %9667 = vmatpush1.bf16.msra.mxu1 %v9666_v25  ;;  %v1597_v54 = vld [vmem:[#allocation2 + $0x1] sm:$0xff] }
 0x398   :  { %9668 = vmatprep.subr.bf16.mxu1 %v16378_v56 }
 0x39b   :  { %9670 = vmatpush1.bf16.msra.mxu1 %v9669_v60 }
 0x39c   :  { %9671 = vmatprep.subr.bf16.mxu1 %v16378_v56 }
 0x39f   :  { %9673 = vmatpush1.bf16.msra.mxu1 %v9672_v41 }
 0x3a0   :  { %9674 = vmatprep.subr.bf16.mxu1 %v16378_v56 }
 0x3a1   :  { %v11132_v44 = vpop.eup %11131 }
 0x3a2   :  { %v1485_v14 = vmul.f32 %v11132_v44, %v1467_v6  ;;  %v1472_v31 = vmul.f32 %v11132_v44, %v1454_v32  ;;  %v1471_v34 = vmul.f32 %v11132_v44, %v1453_v43  ;;  %v1473_v22 = vmul.f32 %v11132_v44, %v1455_v33 }
 0x3a3   :  { %v1474_v50 = vmul.f32 %v11132_v44, %v1456_v15  ;;  %v1475_v23 = vmul.f32 %v11132_v44, %v1457_v42  ;;  %v1476_v63 = vmul.f32 %v11132_v44, %v1458_v20  ;;  %v1477_v52 = vmul.f32 %v11132_v44, %v1459_v29  ;;  %9676 = vmatpush1.bf16.msra.mxu1 %v9675_v46 }
 0x3a4   :  { %v1507_v25 = vmul.f32 %v8777_v18, %v1485_v14  ;;  %v1494_v60 = vmul.f32 %v8777_v18, %v1472_v31  ;;  %v1493_v49 = vmul.f32 %v8777_v18, %v1471_v34  ;;  %v1495_v59 = vmul.f32 %v8777_v18, %v1473_v22  ;;  %9677 = vmatprep.subr.bf16.mxu1 %v16378_v56 }
 0x3a5   :  { %v1496_v41 = vmul.f32 %v8777_v18, %v1474_v50  ;;  %v1497_v57 = vmul.f32 %v8777_v18, %v1475_v23  ;;  %v1498_v38 = vmul.f32 %v8777_v18, %v1476_v63  ;;  %v1499_v6 = vmul.f32 %v8777_v18, %v1477_v52 }
 0x3a6   :  { %v1529_v32 = vadd.f32 %v12463_v17, %v1507_v25  ;;  %v1516_v43 = vadd.f32 %v12463_v17, %v1494_v60  ;;  %v1515_v33 = vadd.f32 %v12463_v17, %v1493_v49  ;;  %v1517_v15 = vadd.f32 %v12463_v17, %v1495_v59 }
 0x3a7   :  { %v1518_v42 = vadd.f32 %v12463_v17, %v1496_v41  ;;  %v1519_v20 = vadd.f32 %v12463_v17, %v1497_v57  ;;  %v1520_v29 = vadd.f32 %v12463_v17, %v1498_v38  ;;  %v1521_v46 = vadd.f32 %v12463_v17, %v1499_v6  ;;  %9679 = vmatpush1.bf16.msra.mxu1 %v9678_v5  ;;  %v1558_v41 = vld [vmem:[#allocation4 + $0x58] sm:$0xff] }
 0x3a8   :  { %v1545_v28 = vmax.f32 %v1529_v32, 0.0  ;;  %v1532_v30 = vmax.f32 %v1516_v43, 0.0  ;;  %v1531_v14 = vmax.f32 %v1515_v33, 0.0  ;;  %v1533_v31 = vmax.f32 %v1517_v15, 0.0  ;;  %9680 = vmatprep.subr.bf16.mxu1 %v16378_v56  ;;  %v1559_v33 = vld [vmem:[#allocation4 + $0x60] sm:$0xff]  ;;  %v1560_v15 = vld [vmem:[#allocation4 + $0x68] sm:$0xff] }
 0x3a9   :  { %v1534_v34 = vmax.f32 %v1518_v42, 0.0  ;;  %v1535_v22 = vmax.f32 %v1519_v20, 0.0  ;;  %v1536_v50 = vmax.f32 %v1520_v29, 0.0  ;;  %v1537_v23 = vmax.f32 %v1521_v46, 0.0 }
 0x3aa   :  { %1579 = vst.msk [vmem:[#allocation2 + $0x111] sm:$0xff] %vm1044_vm3, %v1545_v28  ;;  %1566 = vst.msk [vmem:[#allocation2 + $0x21] sm:$0xff] %vm1044_vm3, %v1532_v30  ;;  %v1478_v5 = vmul.f32 %v11132_v44, %v1460_v35  ;;  %v1479_v63 = vmul.f32 %v11132_v44, %v1461_v58  ;;  %v1480_v52 = vmul.f32 %v11132_v44, %v1462_v26 }
 0x3ab   :  { %1565 = vst.msk [vmem:[#allocation2 + $0x11] sm:$0xff] %vm1044_vm3, %v1531_v14  ;;  %1567 = vst.msk [vmem:[#allocation2 + $0x31] sm:$0xff] %vm1044_vm3, %v1533_v31  ;;  %v1481_v25 = vmul.f32 %v11132_v44, %v1463_v21  ;;  %v1482_v24 = vmul.f32 %v11132_v44, %v1464_v0  ;;  %v1483_v39 = vmul.f32 %v11132_v44, %v1465_v16 }
 0x3ac   :  { %1568 = vst.msk [vmem:[#allocation2 + $0x41] sm:$0xff] %vm1044_vm3, %v1534_v34  ;;  %1569 = vst.msk [vmem:[#allocation2 + $0x51] sm:$0xff] %vm1044_vm3, %v1535_v22  ;;  %v1484_v51 = vmul.f32 %v11132_v44, %v1466_v27  ;;  %v1486_v37 = vmul.f32 %v11132_v44, %v1468_v2  ;;  %v1500_v35 = vmul.f32 %v8777_v18, %v1478_v5  ;;  %v1557_v27 = vld [vmem:[#allocation4 + $0x50] sm:$0xff] }
 0x3ad   :  { %1570 = vst.msk [vmem:[#allocation2 + $0x61] sm:$0xff] %vm1044_vm3, %v1536_v50  ;;  %1571 = vst.msk [vmem:[#allocation2 + $0x71] sm:$0xff] %vm1044_vm3, %v1537_v23  ;;  %v1501_v58 = vmul.f32 %v8777_v18, %v1479_v63  ;;  %v1502_v26 = vmul.f32 %v8777_v18, %v1480_v52  ;;  %v1503_v21 = vmul.f32 %v8777_v18, %v1481_v25  ;;  %v1561_v63 = vld [vmem:[#allocation4 + $0x70] sm:$0xff]  ;;  %v1562_v52 = vld [vmem:[#allocation4 + $0x78] sm:$0xff] }
 0x3ae   :  { %v1504_v60 = vmul.f32 %v8777_v18, %v1482_v24  ;;  %v1505_v49 = vmul.f32 %v8777_v18, %v1483_v39  ;;  %v1506_v62 = vmul.f32 %v8777_v18, %v1484_v51  ;;  %v1508_v0 = vmul.f32 %v8777_v18, %v1486_v37 }
 0x3af   :  { %v1522_v59 = vadd.f32 %v12463_v17, %v1500_v35  ;;  %v1523_v55 = vadd.f32 %v12463_v17, %v1501_v58  ;;  %v1524_v16 = vadd.f32 %v12463_v17, %v1502_v26  ;;  %v1525_v61 = vadd.f32 %v12463_v17, %v1503_v21 }
 0x3b0   :  { %v1526_v2 = vadd.f32 %v12463_v17, %v1504_v60  ;;  %v1527_v44 = vadd.f32 %v12463_v17, %v1505_v49  ;;  %v1528_v57 = vadd.f32 %v12463_v17, %v1506_v62  ;;  %v1530_v18 = vadd.f32 %v12463_v17, %v1508_v0  ;;  %v1563_v49 = vld [vmem:[#allocation4 + $0x80] sm:$0xff]  ;;  %v1564_v62 = vld [vmem:[#allocation4 + $0x88] sm:$0xff] }
 0x3b1   :  { %v1538_v38 = vmax.f32 %v1522_v59, 0.0  ;;  %v1539_v6 = vmax.f32 %v1523_v55, 0.0  ;;  %v1540_v32 = vmax.f32 %v1524_v16, 0.0  ;;  %v1541_v43 = vmax.f32 %v1525_v61, 0.0  ;;  %v12515_v42 = vld [vmem:[#allocation2 + $0x22] sm:$0xff] }
 0x3b2   :  { %v1614_v20 = vld [vmem:[#allocation2 + $0x12] sm:$0xff]  ;;  %v1542_v46 = vmax.f32 %v1526_v2, 0.0  ;;  %v1543_v28 = vmax.f32 %v1527_v44, 0.0  ;;  %v1544_v30 = vmax.f32 %v1528_v57, 0.0  ;;  %v9681_v14 = vpack.c.bf16 %v1558_v41, %v1557_v27  ;;  %8779 = vmatprep.mubr.msk.f32.mxu1 %vm1044_vm3, %v12515_v42  ;;  %v1646_v22 = vld [vmem:[#allocation2 + $0x21] sm:$0xff] }
 0x3b3   :  { %v1598_v29 = vld [vmem:[#allocation2 + $0x11] sm:$0xff]  ;;  %v9966_v31 = vpack.i.bf16 %v1614_v20, %v1613_v47  ;;  %1572 = vst.msk [vmem:[#allocation2 + $0x81] sm:$0xff] %vm1044_vm3, %v1538_v38  ;;  %1573 = vst.msk [vmem:[#allocation2 + $0xb1] sm:$0xff] %vm1044_vm3, %v1539_v6  ;;  %v1546_v17 = vmax.f32 %v1530_v18, 0.0  ;;  %v12525_v23 = vld [vmem:[#allocation2 + $0x20] sm:$0xff]  ;;  %v9684_v5 = vpack.c.bf16 %v1560_v15, %v1559_v33  ;;  %v9687_v51 = vpack.c.bf16 %v1562_v52, %v1561_v63 }
 0x3b4   :  { %v9961_v34 = vpack.i.bf16 %v1598_v29, %v1597_v54  ;;  %1574 = vst.msk [vmem:[#allocation2 + $0xc1] sm:$0xff] %vm1044_vm3, %v1540_v32  ;;  %1575 = vst.msk [vmem:[#allocation2 + $0xd1] sm:$0xff] %vm1044_vm3, %v1541_v43  ;;  %v12523_v50 = vld [vmem:[#allocation2 + $0x10] sm:$0xff]  ;;  %9682 = vmatpush1.bf16.msra.mxu1 %v9681_v14  ;;  %v9976_v25 = vpack.i.bf16 %v1646_v22, %v1598_v29  ;;  %v9981_v35 = vpack.i.bf16 %v12515_v42, %v1614_v20  ;;  %v12547_v21 = vld [vmem:[#allocation2 + $0x40] sm:$0xff] }
 0x3b5   :  { %1576 = vst.msk [vmem:[#allocation2 + $0xe1] sm:$0xff] %vm1044_vm3, %v1542_v46  ;;  %1577 = vst.msk [vmem:[#allocation2 + $0xf1] sm:$0xff] %vm1044_vm3, %v1543_v28  ;;  %9967 = vrot.lane.b32.xlu1 %v9966_v31, %s11497_s0  ;;  %9683 = vmatprep.subr.bf16.mxu1 %v16378_v56  ;;  %v9971_v24 = vpack.i.bf16 %v12525_v23, %v12523_v50  ;;  %v12536_v39 = vld [vmem:[#allocation2 + $0x30] sm:$0xff]  ;;  %v2655_v0 = vld [vmem:[%s16454_s23] sm:$0xff]  ;;  %v9690_v16 = vpack.c.bf16 %v1564_v62, %v1563_v49 }
 0x3b6   :  { %1578 = vst.msk [vmem:[#allocation2 + $0x101] sm:$0xff] %vm1044_vm3, %v1544_v30  ;;  %9962 = vrot.lane.b32.xlu0 %v9961_v34, %s11495_s17  ;;  %1580 = vst.msk [vmem:[#allocation2 + $0x121] sm:$0xff] %vm1044_vm3, %v1546_v17  ;;  %v9986_v37 = vpack.i.bf16 %v12536_v39, %v12525_v23  ;;  %v1600_v58 = vld [vmem:[#allocation2 + $0x31] sm:$0xff]  ;;  %v10006_v59 = vpack.i.bf16 %v12547_v21, %v12536_v39  ;;  %9440 = vmatprep.subr.mxu0 %v2655_v0  ;;  %v12558_v61 = vld [vmem:[#allocation2 + $0x42] sm:$0xff] }
 0x3b7   :  { %v9996_v26 = vpack.i.bf16 %v1600_v58, %v1646_v22  ;;  %v12549_v60 = vld [vmem:[#allocation2 + $0x32] sm:$0xff]  ;;  %v1648_v27 = vld [vmem:[#allocation2 + $0x41] sm:$0xff]  ;;  %9441 = vmatpush3.msra.mxu0 %v2655_v0 }
 0x3b8   :  { %9685 = vmatpush1.bf16.msra.mxu1 %v9684_v5  ;;  %v10001_v55 = vpack.i.bf16 %v12549_v60, %v12515_v42  ;;  %9443 = vmatmul.mubr.msk.f32.vlgmr.msra.gmra.mrb[16].mxu0 %vm354_vm2, %v11813_v3  ;;  %v10016_v41 = vpack.i.bf16 %v12558_v61, %v12549_v60  ;;  %v10011_v47 = vpack.i.bf16 %v1648_v27, %v1600_v58  ;;  %v1696_v54 = vld [vmem:[#allocation2 + $0x51] sm:$0xff]  ;;  %v12589_v18 = vld [vmem:[#allocation2 + $0x60] sm:$0xff] }
 0x3b9   :  { %9977 = vrot.lane.b32.xlu1 %v9976_v25, %s11501_s8  ;;  %9686 = vmatprep.subr.bf16.mxu1 %v16378_v56  ;;  %v12569_v2 = vld [vmem:[#allocation2 + $0x50] sm:$0xff]  ;;  %v10026_v3 = vpack.i.bf16 %v1696_v54, %v1648_v27  ;;  %v1621_v46 = vld [vmem:[#allocation2 + $0xa2] sm:$0xff] }
 0x3ba   :  { %9972 = vrot.lane.b32.xlu0 %v9971_v24, %s11499_s21  ;;  %9445 = vmatprep.mubr.msk.f32.mxu0 %vm354_vm2, %v11816_v4  ;;  %v10021_v44 = vpack.i.bf16 %v12569_v2, %v12547_v21  ;;  %v12579_v4 = vld [vmem:[#allocation2 + $0x52] sm:$0xff]  ;;  %v1605_v30 = vld [vmem:[#allocation2 + $0xa1] sm:$0xff] }
 0x3bb   :  { %9692 = vmatprep.subr.bf16.mxu0 %v16378_v56  ;;  %v10036_v57 = vpack.i.bf16 %v12579_v4, %v12558_v61  ;;  %v12599_v38 = vld [vmem:[#allocation2 + $0x70] sm:$0xff]  ;;  %v1654_v34 = vld [vmem:[#allocation2 + $0xc1] sm:$0xff] }
 0x3bc   :  { %9688 = vmatpush1.bf16.msra.mxu1 %v9687_v51  ;;  %9446 = vmatmul.mubr.msk.f32.gmra.mrb[18].mxu0 %vm354_vm2, %v11825_v7  ;;  %v1650_v7 = vld [vmem:[#allocation2 + $0x61] sm:$0xff]  ;;  %v12619_v43 = vld [vmem:[#allocation2 + $0x72] sm:$0xff] }
 0x3bd   :  { %9987 = vrot.lane.b32.xlu1 %v9986_v37, %s11503_s26  ;;  %9689 = vmatprep.subr.bf16.mxu1 %v16378_v56  ;;  %v1700_v42 = vld [vmem:[#allocation2 + $0x91] sm:$0xff]  ;;  %v12644_v22 = vld [vmem:[#allocation2 + $0xc0] sm:$0xff] }
 0x3be   :  { %9982 = vrot.lane.b32.xlu0 %v9981_v35, %s11504_s12  ;;  %9448 = vmatprep.mubr.msk.f32.mxu0 %vm354_vm2, %v11832_v8  ;;  %v10046_v8 = vpack.i.bf16 %v1650_v7, %v1696_v54  ;;  %v1684_v20 = vld [vmem:[#allocation2 + $0x90] sm:$0xff]  ;;  %v12652_v25 = vld [vmem:[#allocation2 + $0xc2] sm:$0xff] }
 0x3bf   :  { %v1622_v28 = vld [vmem:[#allocation2 + $0xb2] sm:$0xff]  ;;  %v12661_v58 = vld [vmem:[#allocation2 + $0xe0] sm:$0xff] }
 0x3c0   :  { %9691 = vmatpush1.bf16.msra.mxu1 %v9690_v16  ;;  %9449 = vmatmul.mubr.msk.f32.gmra.mrb[20].mxu0 %vm354_vm2, %v11835_v9  ;;  %v10041_v9 = vpack.i.bf16 %v12589_v18, %v12569_v2  ;;  %v1606_v14 = vld [vmem:[#allocation2 + $0xb1] sm:$0xff]  ;;  %v10121_v51 = vpack.i.bf16 %v12652_v25, %v1622_v28  ;;  %v12671_v0 = vld [vmem:[#allocation2 + $0xe2] sm:$0xff] }
 0x3c1   :  { %9997 = vrot.lane.b32.xlu1 %v9996_v26, %s11495_s17  ;;  %9451 = vmatprep.mubr.msk.f32.mxu0 %vm354_vm2, %v11842_v10  ;;  %v12601_v10 = vld [vmem:[#allocation2 + $0x62] sm:$0xff]  ;;  %v10101_v31 = vpack.i.bf16 %v1606_v14, %v1605_v30  ;;  %v12642_v17 = vld [vmem:[#allocation2 + $0xb0] sm:$0xff]  ;;  %v10116_v5 = vpack.i.bf16 %v1654_v34, %v1606_v14 }
 0x3c2   :  { %9992 = vrot.lane.b32.xlu0 %v9996_v26, %s11505_s28  ;;  %v10051_v6 = vpack.i.bf16 %v12601_v10, %v12579_v4  ;;  %v10071_v33 = vpack.i.bf16 %v12619_v43, %v12601_v10  ;;  %v10111_v63 = vpack.i.bf16 %v12644_v22, %v12642_v17  ;;  %v12650_v52 = vld [vmem:[#allocation2 + $0xd0] sm:$0xff]  ;;  %v1581_v30 = vld [vmem:[#allocation2] sm:$0xff] }
 0x3c3   :  { %v10126_v24 = vpack.i.bf16 %v12650_v52, %v12644_v22  ;;  %v1608_v37 = vld [vmem:[#allocation2 + $0xd1] sm:$0xff]  ;;  %v10146_v49 = vpack.i.bf16 %v12661_v58, %v12650_v52 }
 0x3c4   :  { %9452 = vmatmul.mubr.msk.f32.gmra.mrb[22].mxu0 %vm354_vm2, %v11845_v11  ;;  %v10056_v11 = vpack.i.bf16 %v12599_v38, %v12589_v18  ;;  %v10136_v35 = vpack.i.bf16 %v1608_v37, %v1654_v34  ;;  %v12663_v26 = vld [vmem:[#allocation2 + $0xd2] sm:$0xff] }
 0x3c5   :  { %10007 = vrot.lane.b32.xlu1 %v10006_v59, %s11499_s21  ;;  %9454 = vmatprep.mubr.msk.f32.mxu0 %vm354_vm2, %v11852_v12  ;;  %v1604_v12 = vld [vmem:[#allocation2 + $0x71] sm:$0xff]  ;;  %v10141_v62 = vpack.i.bf16 %v12663_v26, %v12652_v25  ;;  %v1656_v59 = vld [vmem:[#allocation2 + $0xe1] sm:$0xff] }
 0x3c6   :  { %10002 = vrot.lane.b32.xlu0 %v10001_v55, %s11497_s0  ;;  %v10066_v32 = vpack.i.bf16 %v1604_v12, %v1650_v7  ;;  %v10156_v55 = vpack.i.bf16 %v12671_v0, %v12663_v26  ;;  %v10151_v16 = vpack.i.bf16 %v1656_v59, %v1608_v37  ;;  %v1704_v27 = vld [vmem:[#allocation2 + $0xf1] sm:$0xff]  ;;  %v12689_v7 = vld [vmem:[#allocation2 + $0x100] sm:$0xff] }
 0x3c8   :  { %9455 = vmatmul.mubr.msk.f32.gmra.mrb[24].mxu0 %vm354_vm2, %v11857_v13  ;;  %v1636_v13 = vld [vmem:[#allocation2 + $0x80] sm:$0xff] }
 0x3c9   :  { %10017 = vrot.lane.b32.xlu1 %v10016_v41, %s11504_s12  ;;  %9457 = vmatprep.mubr.msk.f32.mxu0 %vm354_vm2, %v11874_v19  ;;  %v10076_v19 = vpack.i.bf16 %v1636_v13, %v12599_v38  ;;  %v10091_v29 = vpack.i.bf16 %v1684_v20, %v1636_v13  ;;  %v12677_v41 = vld [vmem:[#allocation2 + $0xf0] sm:$0xff] }
 0x3ca   :  { %10012 = vrot.lane.b32.xlu0 %v10011_v47, %s11501_s8  ;;  %v10166_v47 = vpack.i.bf16 %v1704_v27, %v1656_v59  ;;  %v10161_v54 = vpack.i.bf16 %v12677_v41, %v12661_v58  ;;  %v1612_v13 = vld [vmem:[#allocation2 + $0x111] sm:$0xff] }
 0x3cc   :  { %9458 = vmatmul.mubr.msk.f32.gmra.mrb[26].mxu0 %vm354_vm2, %v11899_v36  ;;  %v12630_v36 = vld [vmem:[#allocation2 + $0x82] sm:$0xff] }
 0x3cd   :  { %10027 = vrot.lane.b32.xlu1 %v10026_v3, %s11505_s28  ;;  %9460 = vmatprep.mubr.msk.f32.mxu0 %vm354_vm2, %v11917_v40  ;;  %v1652_v40 = vld [vmem:[#allocation2 + $0x81] sm:$0xff] }
 0x3ce   :  { %10022 = vrot.lane.b32.xlu0 %v10021_v44, %s11503_s26  ;;  %v10081_v15 = vpack.i.bf16 %v1652_v40, %v1604_v12 }
 0x3d0   :  { %9461 = vmatmul.mubr.msk.f32.gmra.mrb[28].mxu0 %vm354_vm2, %v11934_v45  ;;  %v10086_v45 = vpack.i.bf16 %v12630_v36, %v12619_v43 }
 0x3d1   :  { %10037 = vrot.lane.b32.xlu1 %v10036_v57, %s11497_s0  ;;  %9463 = vmatprep.mubr.msk.f32.mxu0 %vm354_vm2, %v11951_v48  ;;  %v10096_v48 = vpack.i.bf16 %v1700_v42, %v1652_v40  ;;  %v1658_v57 = vld [vmem:[#allocation2 + $0x101] sm:$0xff]  ;;  %v12707_v40 = vld [vmem:[#allocation2 + $0x112] sm:$0xff] }
 0x3d2   :  { %10032 = vrot.lane.b32.xlu0 %v10026_v3, %s11495_s17  ;;  %v12683_v3 = vld [vmem:[#allocation2 + $0xf2] sm:$0xff]  ;;  %v1660_v42 = vld [vmem:[#allocation2 + $0x121] sm:$0xff] }
 0x3d3   :  { %v10176_v44 = vpack.i.bf16 %v12683_v3, %v12671_v0  ;;  %v10221_v20 = vpack.i.bf16 %v1660_v42, %v1612_v13 }
 0x3d4   :  { %9464 = vmatmul.mubr.msk.f32.gmra.mrb[30].mxu0 %vm354_vm2, %v11968_v53  ;;  %v10106_v53 = vpack.i.bf16 %v1622_v28, %v1621_v46  ;;  %v1708_v46 = vld [vmem:[#allocation2 + $0x131] sm:$0xff] }
 0x3d5   :  { %10047 = vrot.lane.b32.xlu1 %v10046_v8, %s11501_s8  ;;  %v10186_v8 = vpack.i.bf16 %v1658_v57, %v1704_v27 }
 0x3d6   :  { %10042 = vrot.lane.b32.xlu0 %v10041_v9, %s11499_s21  ;;  %v10181_v9 = vpack.i.bf16 %v12689_v7, %v12677_v41 }
 0x3d9   :  { %10057 = vrot.lane.b32.xlu1 %v10056_v11, %s11503_s26  ;;  %v12695_v11 = vld [vmem:[#allocation2 + $0x110] sm:$0xff] }
 0x3da   :  { %10052 = vrot.lane.b32.xlu0 %v10051_v6, %s11504_s12  ;;  %v12697_v6 = vld [vmem:[#allocation2 + $0x102] sm:$0xff]  ;;  %v10196_v12 = vpack.i.bf16 %v12695_v11, %v12689_v7 }
 0x3dd   :  { %10067 = vrot.lane.b32.xlu1 %v10066_v32, %s11495_s17 }
 0x3de   :  { %10062 = vrot.lane.b32.xlu0 %v10066_v32, %s11505_s28  ;;  %v10191_v32 = vpack.i.bf16 %v12697_v6, %v12683_v3 }
 0x3e1   :  { %10077 = vrot.lane.b32.xlu1 %v10076_v19, %s11499_s21  ;;  %v10206_v19 = vpack.i.bf16 %v1612_v13, %v1658_v57 }
 0x3e2   :  { %10072 = vrot.lane.b32.xlu0 %v10071_v33, %s11497_s0  ;;  %v1644_v33 = vld [vmem:[#allocation2 + $0x120] sm:$0xff] }
 0x3e5   :  { %10087 = vrot.lane.b32.xlu1 %v10086_v45, %s11504_s12  ;;  %v10216_v45 = vpack.i.bf16 %v1644_v33, %v12695_v11 }
 0x3e6   :  { %10082 = vrot.lane.b32.xlu0 %v10081_v15, %s11501_s8  ;;  %v10211_v15 = vpack.i.bf16 %v12707_v40, %v12697_v6 }
 0x3e9   :  { %10097 = vrot.lane.b32.xlu1 %v10096_v48, %s11505_s28  ;;  %v1692_v48 = vld [vmem:[#allocation2 + $0x130] sm:$0xff] }
 0x3ea   :  { %10092 = vrot.lane.b32.xlu0 %v10091_v29, %s11503_s26  ;;  %v12721_v29 = vld [vmem:[#allocation2 + $0x122] sm:$0xff] }
 0x3ed   :  { %10107 = vrot.lane.b32.xlu1 %v10106_v53, %s11497_s0 }
 0x3ee   :  { %10102 = vrot.lane.b32.xlu0 %v10101_v31, %s11495_s17 }
 0x3f1   :  { %10117 = vrot.lane.b32.xlu1 %v10116_v5, %s11501_s8 }
 0x3f2   :  { %10112 = vrot.lane.b32.xlu0 %v10111_v63, %s11499_s21 }
 0x3f5   :  { %10127 = vrot.lane.b32.xlu1 %v10126_v24, %s11503_s26 }
 0x3f6   :  { %10122 = vrot.lane.b32.xlu0 %v10121_v51, %s11504_s12 }
 0x3f9   :  { %10137 = vrot.lane.b32.xlu1 %v10136_v35, %s11495_s17 }
 0x3fa   :  { %10132 = vrot.lane.b32.xlu0 %v10136_v35, %s11505_s28 }
 0x3fd   :  { %10147 = vrot.lane.b32.xlu1 %v10146_v49, %s11499_s21 }
 0x3fe   :  { %10142 = vrot.lane.b32.xlu0 %v10141_v62, %s11497_s0 }
 0x401   :  { %10157 = vrot.lane.b32.xlu1 %v10156_v55, %s11504_s12 }
 0x402   :  { %10152 = vrot.lane.b32.xlu0 %v10151_v16, %s11501_s8 }
 0x405   :  { %10167 = vrot.lane.b32.xlu1 %v10166_v47, %s11505_s28 }
 0x406   :  { %10162 = vrot.lane.b32.xlu0 %v10161_v54, %s11503_s26 }
 0x409   :  { %10177 = vrot.lane.b32.xlu1 %v10176_v44, %s11497_s0 }
 0x40a   :  { %10172 = vrot.lane.b32.xlu0 %v10166_v47, %s11495_s17 }
 0x40d   :  { %10187 = vrot.lane.b32.xlu1 %v10186_v8, %s11501_s8 }
 0x40e   :  { %10182 = vrot.lane.b32.xlu0 %v10181_v9, %s11499_s21 }
 0x411   :  { %10197 = vrot.lane.b32.xlu1 %v10196_v12, %s11503_s26 }
 0x412   :  { %10192 = vrot.lane.b32.xlu0 %v10191_v32, %s11504_s12 }
 0x415   :  { %10207 = vrot.lane.b32.xlu1 %v10206_v19, %s11495_s17 }
 0x416   :  { %10202 = vrot.lane.b32.xlu0 %v10206_v19, %s11505_s28 }
 0x419   :  { %10217 = vrot.lane.b32.xlu1 %v10216_v45, %s11499_s21 }
 0x41a   :  { %10212 = vrot.lane.b32.xlu0 %v10211_v15, %s11497_s0 }
 0x41d   :  { %2025 = vrot.lane.b32.xlu1 %v12707_v40, %s11504_s12 }
 0x41e   :  { %10222 = vrot.lane.b32.xlu0 %v10221_v20, %s11501_s8 }
 0x421   :  { %2153 = vrot.lane.b32.xlu1 %v1660_v42, %s11505_s28 }
 0x422   :  { %2089 = vrot.lane.b32.xlu0 %v1644_v33, %s11503_s26 }
 0x425   :  { %2091 = vrot.lane.b32.xlu1 %v1692_v48, %s11503_s26 }
 0x426   :  { %2027 = vrot.lane.b32.xlu0 %v12721_v29, %s11504_s12 }
 0x427   :  { %v9968_v28 = vpop.permute.xlu1 %9967 }
 0x428   :  { %v9963_v14 = vpop.permute.xlu0 %9962  ;;  %v9969_v31 = vunpack.i.l.bf16 %v9968_v28  ;;  %v9970_v37 = vunpack.i.h.bf16 %v9968_v28 }
 0x429   :  { %v9964_v53 = vunpack.i.l.bf16 %v9963_v14  ;;  %v9965_v34 = vunpack.i.h.bf16 %v9963_v14 }
 0x42a   :  { %2155 = vrot.lane.b32.xlu0 %v1708_v46, %s11505_s28 }
 0x42b   :  { %v2173_v5 = vsel %vm1044_vm3, %v1581_v30, %v9964_v53  ;;  %v9978_v63 = vpop.permute.xlu1 %9977  ;;  %v2174_v62 = vsel %vm1044_vm3, %v12523_v50, %v9965_v34 }
 0x42c   :  { %v9973_v24 = vpop.permute.xlu0 %9972  ;;  %v9979_v35 = vunpack.i.l.bf16 %v9978_v63  ;;  %v2189_v49 = vsel %vm1078_vm5, %v2173_v5, %v9969_v31  ;;  %v9980_v54 = vunpack.i.h.bf16 %v9978_v63  ;;  %v2190_v44 = vsel %vm1078_vm5, %v2174_v62, %v9970_v37 }
 0x42d   :  { %v9974_v51 = vunpack.i.l.bf16 %v9973_v24  ;;  %v9975_v59 = vunpack.i.h.bf16 %v9973_v24 }
 0x42f   :  { %v2205_v55 = vsel %vm1112_vm7, %v2189_v49, %v9974_v51  ;;  %v9988_v16 = vpop.permute.xlu1 %9987  ;;  %v2206_v9 = vsel %vm1112_vm7, %v2190_v44, %v9975_v59 }
 0x430   :  { %v9983_v27 = vpop.permute.xlu0 %9982  ;;  %v9989_v57 = vunpack.i.l.bf16 %v9988_v16  ;;  %v2221_v8 = vsel %vm286_vm0, %v2205_v55, %v9979_v35  ;;  %v9990_v33 = vunpack.i.h.bf16 %v9988_v16  ;;  %v2222_v42 = vsel %vm286_vm0, %v2206_v9, %v9980_v54 }
 0x431   :  { %v9984_v47 = vunpack.i.l.bf16 %v9983_v27  ;;  %v9985_v12 = vunpack.i.h.bf16 %v9983_v27 }
 0x433   :  { %v2238_v32 = vsel %vm2237_vm10, %v2221_v8, %v9984_v47  ;;  %v9998_v50 = vpop.permute.xlu1 %9997  ;;  %v2239_v46 = vsel %vm2237_vm10, %v2222_v42, %v9985_v12 }
 0x434   :  { %v9993_v13 = vpop.permute.xlu0 %9992  ;;  %v9999_v45 = vunpack.i.l.bf16 %v9998_v50  ;;  %v2255_v15 = vsel %vm2254_vm11, %v2238_v32, %v9989_v57  ;;  %v10000_v28 = vunpack.i.h.bf16 %v9998_v50  ;;  %v2256_v63 = vsel %vm2254_vm11, %v2239_v46, %v9990_v33 }
 0x435   :  { %v9994_v19 = vunpack.i.l.bf16 %v9993_v13  ;;  %v9995_v20 = vunpack.i.h.bf16 %v9993_v13 }
 0x436   :  { %v2175_v34 = vsel %vm1044_vm3, %v12525_v23, %v9999_v45  ;;  %v2176_v37 = vsel %vm1044_vm3, %v12536_v39, %v10000_v28 }
 0x437   :  { %v2272_v48 = vsel %vm2271_vm12, %v2255_v15, %v9994_v19  ;;  %v10008_v30 = vpop.permute.xlu1 %10007  ;;  %v2273_v51 = vsel %vm2271_vm12, %v2256_v63, %v9995_v20 }
 0x438   :  { %v10003_v14 = vpop.permute.xlu0 %10002  ;;  %2401 = vmatmul.mubr.f32.vlgmr.msra.gmra.mrb[0].mxu1 %v2272_v48  ;;  %v10009_v5 = vunpack.i.l.bf16 %v10008_v30  ;;  %v10010_v35 = vunpack.i.h.bf16 %v10008_v30 }
 0x439   :  { %v10005_v53 = vunpack.i.h.bf16 %v10003_v14  ;;  %v10004_v31 = vunpack.i.l.bf16 %v10003_v14  ;;  %8780 = vmatprep.mubr.msk.f32.mxu1 %vm1044_vm3, %v12549_v60 }
 0x43b   :  { %v2191_v24 = vsel %vm1078_vm5, %v2175_v34, %v10004_v31  ;;  %v10018_v49 = vpop.permute.xlu1 %10017  ;;  %v2192_v59 = vsel %vm1078_vm5, %v2176_v37, %v10005_v53 }
 0x43c   :  { %v10013_v62 = vpop.permute.xlu0 %10012  ;;  %2406 = vmatmul.mubr.f32.gmra.mrb[2].mxu1 %v2273_v51  ;;  %v10019_v23 = vunpack.i.l.bf16 %v10018_v49  ;;  %v2207_v16 = vsel %vm1112_vm7, %v2191_v24, %v10009_v5  ;;  %v10020_v47 = vunpack.i.h.bf16 %v10018_v49  ;;  %v2208_v54 = vsel %vm1112_vm7, %v2192_v59, %v10010_v35 }
 0x43d   :  { %v10015_v60 = vunpack.i.h.bf16 %v10013_v62  ;;  %v10014_v55 = vunpack.i.l.bf16 %v10013_v62  ;;  %8781 = vmatprep.mubr.msk.f32.mxu1 %vm1044_vm3, %v12558_v61 }
 0x43f   :  { %v2223_v27 = vsel %vm286_vm0, %v2207_v16, %v10014_v55  ;;  %v10028_v39 = vpop.permute.xlu1 %10027  ;;  %v2224_v57 = vsel %vm286_vm0, %v2208_v54, %v10015_v60 }
 0x440   :  { %v10023_v44 = vpop.permute.xlu0 %10022  ;;  %v10029_v8 = vunpack.i.l.bf16 %v10028_v39  ;;  %v2240_v32 = vsel %vm2237_vm10, %v2223_v27, %v10019_v23  ;;  %v10030_v61 = vunpack.i.h.bf16 %v10028_v39  ;;  %v2241_v45 = vsel %vm2237_vm10, %v2224_v57, %v10020_v47 }
 0x441   :  { %v10025_v9 = vunpack.i.h.bf16 %v10023_v44  ;;  %v10024_v12 = vunpack.i.l.bf16 %v10023_v44 }
 0x443   :  { %v2257_v50 = vsel %vm2254_vm11, %v2240_v32, %v10024_v12  ;;  %v10038_v13 = vpop.permute.xlu1 %10037  ;;  %v2258_v42 = vsel %vm2254_vm11, %v2241_v45, %v10025_v9 }
 0x444   :  { %v10033_v19 = vpop.permute.xlu0 %10032  ;;  %v2274_v33 = vsel %vm2271_vm12, %v2257_v50, %v10029_v8  ;;  %v10039_v20 = vunpack.i.l.bf16 %v10038_v13  ;;  %v2275_v14 = vsel %vm2271_vm12, %v2258_v42, %v10030_v61  ;;  %v10040_v31 = vunpack.i.h.bf16 %v10038_v13 }
 0x445   :  { %v10034_v15 = vunpack.i.l.bf16 %v10033_v19  ;;  %2411 = vmatmul.mubr.f32.gmra.mrb[4].mxu1 %v2274_v33  ;;  %v10035_v48 = vunpack.i.h.bf16 %v10033_v19 }
 0x446   :  { %8782 = vmatprep.mubr.msk.f32.mxu1 %vm1044_vm3, %v12579_v4 }
 0x447   :  { %v2177_v46 = vsel %vm1044_vm3, %v12547_v21, %v10034_v15  ;;  %v10048_v28 = vpop.permute.xlu1 %10047  ;;  %v2178_v4 = vsel %vm1044_vm3, %v12569_v2, %v10035_v48 }
 0x448   :  { %v10043_v30 = vpop.permute.xlu0 %10042  ;;  %v10049_v34 = vunpack.i.l.bf16 %v10048_v28  ;;  %v2193_v5 = vsel %vm1078_vm5, %v2177_v46, %v10039_v20  ;;  %v10050_v35 = vunpack.i.h.bf16 %v10048_v28  ;;  %v2194_v49 = vsel %vm1078_vm5, %v2178_v4, %v10040_v31 }
 0x449   :  { %v10044_v53 = vunpack.i.l.bf16 %v10043_v30  ;;  %2416 = vmatmul.mubr.f32.gmra.mrb[6].mxu1 %v2275_v14  ;;  %v10045_v63 = vunpack.i.h.bf16 %v10043_v30 }
 0x44a   :  { %8783 = vmatprep.mubr.msk.f32.mxu1 %vm1044_vm3, %v12601_v10 }
 0x44b   :  { %v2209_v24 = vsel %vm1112_vm7, %v2193_v5, %v10044_v53  ;;  %v10058_v21 = vpop.permute.xlu1 %10057  ;;  %v2210_v60 = vsel %vm1112_vm7, %v2194_v49, %v10045_v63 }
 0x44c   :  { %v10053_v51 = vpop.permute.xlu0 %10052  ;;  %v10059_v62 = vunpack.i.l.bf16 %v10058_v21  ;;  %v2225_v59 = vsel %vm286_vm0, %v2209_v24, %v10049_v34  ;;  %v10060_v27 = vunpack.i.h.bf16 %v10058_v21  ;;  %v2226_v39 = vsel %vm286_vm0, %v2210_v60, %v10050_v35 }
 0x44d   :  { %v10054_v37 = vunpack.i.l.bf16 %v10053_v51  ;;  %v10055_v55 = vunpack.i.h.bf16 %v10053_v51 }
 0x44f   :  { %v2242_v10 = vsel %vm2237_vm10, %v2225_v59, %v10054_v37  ;;  %v10068_v23 = vpop.permute.xlu1 %10067  ;;  %v2243_v8 = vsel %vm2237_vm10, %v2226_v39, %v10055_v55 }
 0x450   :  { %v10063_v16 = vpop.permute.xlu0 %10062  ;;  %v10069_v47 = vunpack.i.l.bf16 %v10068_v23  ;;  %v2259_v54 = vsel %vm2254_vm11, %v2242_v10, %v10059_v62  ;;  %v10070_v9 = vunpack.i.h.bf16 %v10068_v23  ;;  %v2260_v33 = vsel %vm2254_vm11, %v2243_v8, %v10060_v27  ;;  %v1589_v62 = vld [vmem:[#allocation2 + $0xa0] sm:$0xff] }
 0x451   :  { %v10064_v2 = vunpack.i.l.bf16 %v10063_v16  ;;  %v10065_v44 = vunpack.i.h.bf16 %v10063_v16 }
 0x452   :  { %v2179_v13 = vsel %vm1044_vm3, %v12589_v18, %v10069_v47  ;;  %v2180_v42 = vsel %vm1044_vm3, %v12599_v38, %v10070_v9 }
 0x453   :  { %v2276_v57 = vsel %vm2271_vm12, %v2259_v54, %v10064_v2  ;;  %v10078_v12 = vpop.permute.xlu1 %10077  ;;  %v2277_v15 = vsel %vm2271_vm12, %v2260_v33, %v10065_v44 }
 0x454   :  { %v10073_v32 = vpop.permute.xlu0 %10072  ;;  %2421 = vmatmul.mubr.f32.gmra.mrb[8].mxu1 %v2276_v57  ;;  %v10079_v19 = vunpack.i.l.bf16 %v10078_v12  ;;  %v10080_v20 = vunpack.i.h.bf16 %v10078_v12 }
 0x455   :  { %v10075_v50 = vunpack.i.h.bf16 %v10073_v32  ;;  %v10074_v61 = vunpack.i.l.bf16 %v10073_v32  ;;  %8784 = vmatprep.mubr.msk.f32.mxu1 %vm1044_vm3, %v12619_v43 }
 0x457   :  { %v2195_v45 = vsel %vm1078_vm5, %v2179_v13, %v10074_v61  ;;  %v10088_v48 = vpop.permute.xlu1 %10087  ;;  %v2196_v28 = vsel %vm1078_vm5, %v2180_v42, %v10075_v50 }
 0x458   :  { %v10083_v46 = vpop.permute.xlu0 %10082  ;;  %2426 = vmatmul.mubr.f32.gmra.mrb[10].mxu1 %v2277_v15  ;;  %v10089_v18 = vunpack.i.l.bf16 %v10088_v48  ;;  %v2211_v14 = vsel %vm1112_vm7, %v2195_v45, %v10079_v19  ;;  %v10090_v31 = vunpack.i.h.bf16 %v10088_v48  ;;  %v2212_v34 = vsel %vm1112_vm7, %v2196_v28, %v10080_v20 }
 0x459   :  { %v10085_v43 = vunpack.i.h.bf16 %v10083_v46  ;;  %v10084_v30 = vunpack.i.l.bf16 %v10083_v46  ;;  %8785 = vmatprep.mubr.msk.f32.mxu1 %vm1044_vm3, %v12630_v36  ;;  %v1716_v36 = vld [vmem:[#allocation2 + $0x92] sm:$0xff] }
 0x45b   :  { %v2227_v53 = vsel %vm286_vm0, %v2211_v14, %v10084_v30  ;;  %v10098_v38 = vpop.permute.xlu1 %10097  ;;  %v2228_v4 = vsel %vm286_vm0, %v2212_v34, %v10085_v43 }
 0x45c   :  { %v10093_v5 = vpop.permute.xlu0 %10092  ;;  %v10099_v63 = vunpack.i.l.bf16 %v10098_v38  ;;  %v2244_v51 = vsel %vm2237_vm10, %v2227_v53, %v10089_v18  ;;  %v10100_v35 = vunpack.i.h.bf16 %v10098_v38  ;;  %v2245_v55 = vsel %vm2237_vm10, %v2228_v4, %v10090_v31 }
 0x45d   :  { %v10095_v24 = vunpack.i.h.bf16 %v10093_v5  ;;  %v10094_v21 = vunpack.i.l.bf16 %v10093_v5 }
 0x45f   :  { %v2261_v37 = vsel %vm2254_vm11, %v2244_v51, %v10094_v21  ;;  %v10108_v49 = vpop.permute.xlu1 %10107  ;;  %v2262_v23 = vsel %vm2254_vm11, %v2245_v55, %v10095_v24 }
 0x460   :  { %v10103_v59 = vpop.permute.xlu0 %10102  ;;  %v2278_v60 = vsel %vm2271_vm12, %v2261_v37, %v10099_v63  ;;  %v10109_v16 = vunpack.i.l.bf16 %v10108_v49  ;;  %v2279_v39 = vsel %vm2271_vm12, %v2262_v23, %v10100_v35  ;;  %v10110_v57 = vunpack.i.h.bf16 %v10108_v49 }
 0x461   :  { %v10104_v10 = vunpack.i.l.bf16 %v10103_v59  ;;  %2431 = vmatmul.mubr.f32.gmra.mrb[12].mxu1 %v2278_v60  ;;  %v10105_v2 = vunpack.i.h.bf16 %v10103_v59 }
 0x462   :  { %8786 = vmatprep.mubr.msk.f32.mxu1 %vm1044_vm3, %v1716_v36 }
 0x463   :  { %v2181_v27 = vsel %vm1044_vm3, %v1589_v62, %v10104_v10  ;;  %v10118_v47 = vpop.permute.xlu1 %10117  ;;  %v2182_v12 = vsel %vm1044_vm3, %v12642_v17, %v10105_v2 }
 0x464   :  { %v10113_v54 = vpop.permute.xlu0 %10112  ;;  %v10119_v8 = vunpack.i.l.bf16 %v10118_v47  ;;  %v2197_v9 = vsel %vm1078_vm5, %v2181_v27, %v10109_v16  ;;  %v10120_v33 = vunpack.i.h.bf16 %v10118_v47  ;;  %v2198_v45 = vsel %vm1078_vm5, %v2182_v12, %v10110_v57 }
 0x465   :  { %v10114_v44 = vunpack.i.l.bf16 %v10113_v54  ;;  %2436 = vmatmul.mubr.f32.gmra.mrb[14].mxu1 %v2279_v39  ;;  %v10115_v32 = vunpack.i.h.bf16 %v10113_v54 }
 0x466   :  { %8787 = vmatprep.mubr.msk.f32.mxu1 %vm1044_vm3, %v12652_v25 }
 0x467   :  { %v2213_v50 = vsel %vm1112_vm7, %v2197_v9, %v10114_v44  ;;  %v10128_v61 = vpop.permute.xlu1 %10127  ;;  %v2214_v20 = vsel %vm1112_vm7, %v2198_v45, %v10115_v32 }
 0x468   :  { %v10123_v13 = vpop.permute.xlu0 %10122  ;;  %v10129_v15 = vunpack.i.l.bf16 %v10128_v61  ;;  %v2229_v42 = vsel %vm286_vm0, %v2213_v50, %v10119_v8  ;;  %v10130_v43 = vunpack.i.h.bf16 %v10128_v61  ;;  %v2230_v14 = vsel %vm286_vm0, %v2214_v20, %v10120_v33 }
 0x469   :  { %v10124_v19 = vunpack.i.l.bf16 %v10123_v13  ;;  %v10125_v48 = vunpack.i.h.bf16 %v10123_v13 }
 0x46b   :  { %v2246_v25 = vsel %vm2237_vm10, %v2229_v42, %v10124_v19  ;;  %v10138_v46 = vpop.permute.xlu1 %10137  ;;  %v2247_v34 = vsel %vm2237_vm10, %v2230_v14, %v10125_v48 }
 0x46c   :  { %v10133_v28 = vpop.permute.xlu0 %10132  ;;  %v10139_v30 = vunpack.i.l.bf16 %v10138_v46  ;;  %v2263_v18 = vsel %vm2254_vm11, %v2246_v25, %v10129_v15  ;;  %v10140_v38 = vunpack.i.h.bf16 %v10138_v46  ;;  %v2264_v37 = vsel %vm2254_vm11, %v2247_v34, %v10130_v43 }
 0x46d   :  { %v10134_v17 = vunpack.i.l.bf16 %v10133_v28  ;;  %v10135_v53 = vunpack.i.h.bf16 %v10133_v28 }
 0x46e   :  { %v2183_v21 = vsel %vm1044_vm3, %v12644_v22, %v10139_v30  ;;  %v2184_v49 = vsel %vm1044_vm3, %v12650_v52, %v10140_v38 }
 0x46f   :  { %v2280_v31 = vsel %vm2271_vm12, %v2263_v18, %v10134_v17  ;;  %v10148_v5 = vpop.permute.xlu1 %10147  ;;  %v2281_v35 = vsel %vm2271_vm12, %v2264_v37, %v10135_v53 }
 0x470   :  { %v10143_v4 = vpop.permute.xlu0 %10142  ;;  %2441 = vmatmul.mubr.f32.gmra.mrb[16].mxu1 %v2280_v31  ;;  %v10149_v51 = vunpack.i.l.bf16 %v10148_v5  ;;  %v10150_v62 = vunpack.i.h.bf16 %v10148_v5 }
 0x471   :  { %v10145_v63 = vunpack.i.h.bf16 %v10143_v4  ;;  %v10144_v24 = vunpack.i.l.bf16 %v10143_v4  ;;  %8788 = vmatprep.mubr.msk.f32.mxu1 %vm1044_vm3, %v12663_v26 }
 0x473   :  { %v2199_v36 = vsel %vm1078_vm5, %v2183_v21, %v10144_v24  ;;  %v10158_v59 = vpop.permute.xlu1 %10157  ;;  %v2200_v55 = vsel %vm1078_vm5, %v2184_v49, %v10145_v63 }
 0x474   :  { %v10153_v60 = vpop.permute.xlu0 %10152  ;;  %2446 = vmatmul.mubr.f32.gmra.mrb[18].mxu1 %v2281_v35  ;;  %v10159_v22 = vunpack.i.l.bf16 %v10158_v59  ;;  %v2215_v23 = vsel %vm1112_vm7, %v2199_v36, %v10149_v51  ;;  %v10160_v2 = vunpack.i.h.bf16 %v10158_v59  ;;  %v2216_v27 = vsel %vm1112_vm7, %v2200_v55, %v10150_v62 }
 0x475   :  { %v10155_v26 = vunpack.i.h.bf16 %v10153_v60  ;;  %v10154_v10 = vunpack.i.l.bf16 %v10153_v60  ;;  %8789 = vmatprep.mubr.msk.f32.mxu1 %vm1044_vm3, %v12671_v0 }
 0x477   :  { %v2231_v16 = vsel %vm286_vm0, %v2215_v23, %v10154_v10  ;;  %v10168_v52 = vpop.permute.xlu1 %10167  ;;  %v2232_v54 = vsel %vm286_vm0, %v2216_v27, %v10155_v26 }
 0x478   :  { %v10163_v47 = vpop.permute.xlu0 %10162  ;;  %v10169_v39 = vunpack.i.l.bf16 %v10168_v52  ;;  %v2248_v8 = vsel %vm2237_vm10, %v2231_v16, %v10159_v22  ;;  %v10170_v0 = vunpack.i.h.bf16 %v10168_v52  ;;  %v2249_v61 = vsel %vm2237_vm10, %v2232_v54, %v10160_v2 }
 0x479   :  { %v10165_v44 = vunpack.i.h.bf16 %v10163_v47  ;;  %v10164_v57 = vunpack.i.l.bf16 %v10163_v47 }
 0x47b   :  { %v2265_v9 = vsel %vm2254_vm11, %v2248_v8, %v10164_v57  ;;  %v10178_v12 = vpop.permute.xlu1 %10177  ;;  %v2266_v19 = vsel %vm2254_vm11, %v2249_v61, %v10165_v44 }
 0x47c   :  { %v10173_v32 = vpop.permute.xlu0 %10172  ;;  %v2282_v50 = vsel %vm2271_vm12, %v2265_v9, %v10169_v39  ;;  %v10179_v33 = vunpack.i.l.bf16 %v10178_v12  ;;  %v2283_v48 = vsel %vm2271_vm12, %v2266_v19, %v10170_v0  ;;  %v10180_v46 = vunpack.i.h.bf16 %v10178_v12 }
 0x47d   :  { %v10174_v13 = vunpack.i.l.bf16 %v10173_v32  ;;  %2451 = vmatmul.mubr.f32.gmra.mrb[20].mxu1 %v2282_v50  ;;  %v10175_v45 = vunpack.i.h.bf16 %v10173_v32  ;;  %v1724_v50 = vld [vmem:[#allocation2 + $0x132] sm:$0xff] }
 0x47e   :  { %8790 = vmatprep.mubr.msk.f32.mxu1 %vm1044_vm3, %v12683_v3 }
 0x47f   :  { %v2185_v15 = vsel %vm1044_vm3, %v12661_v58, %v10174_v13  ;;  %v10188_v42 = vpop.permute.xlu1 %10187  ;;  %v2186_v3 = vsel %vm1044_vm3, %v12677_v41, %v10175_v45 }
 0x480   :  { %v10183_v20 = vpop.permute.xlu0 %10182  ;;  %v10189_v28 = vunpack.i.l.bf16 %v10188_v42  ;;  %v2201_v17 = vsel %vm1078_vm5, %v2185_v15, %v10179_v33  ;;  %v10190_v53 = vunpack.i.h.bf16 %v10188_v42  ;;  %v2202_v31 = vsel %vm1078_vm5, %v2186_v3, %v10180_v46 }
 0x481   :  { %v10184_v25 = vunpack.i.l.bf16 %v10183_v20  ;;  %2456 = vmatmul.mubr.f32.gmra.mrb[22].mxu1 %v2283_v48  ;;  %v10185_v43 = vunpack.i.h.bf16 %v10183_v20 }
 0x482   :  { %8791 = vmatprep.mubr.msk.f32.mxu1 %vm1044_vm3, %v12697_v6 }
 0x483   :  { %v2217_v30 = vsel %vm1112_vm7, %v2201_v17, %v10184_v25  ;;  %v10198_v58 = vpop.permute.xlu1 %10197  ;;  %v2218_v5 = vsel %vm1112_vm7, %v2202_v31, %v10185_v43 }
 0x484   :  { %v10193_v18 = vpop.permute.xlu0 %10192  ;;  %v10199_v34 = vunpack.i.l.bf16 %v10198_v58  ;;  %v2233_v38 = vsel %vm286_vm0, %v2217_v30, %v10189_v28  ;;  %v10200_v21 = vunpack.i.h.bf16 %v10198_v58  ;;  %v2234_v36 = vsel %vm286_vm0, %v2218_v5, %v10190_v53 }
 0x485   :  { %v10194_v14 = vunpack.i.l.bf16 %v10193_v18  ;;  %v10195_v4 = vunpack.i.h.bf16 %v10193_v18 }
 0x487   :  { %v2250_v6 = vsel %vm2237_vm10, %v2233_v38, %v10194_v14  ;;  %v10208_v63 = vpop.permute.xlu1 %10207  ;;  %v2251_v62 = vsel %vm2237_vm10, %v2234_v36, %v10195_v4 }
 0x488   :  { %v10203_v24 = vpop.permute.xlu0 %10202  ;;  %v10209_v51 = vunpack.i.l.bf16 %v10208_v63  ;;  %v2267_v37 = vsel %vm2254_vm11, %v2250_v6, %v10199_v34  ;;  %v2268_v22 = vsel %vm2254_vm11, %v2251_v62, %v10200_v21  ;;  %v10210_v23 = vunpack.i.h.bf16 %v10208_v63 }
 0x489   :  { %v10204_v41 = vunpack.i.l.bf16 %v10203_v24  ;;  %v10205_v35 = vunpack.i.h.bf16 %v10203_v24 }
 0x48a   :  { %v2187_v26 = vsel %vm1044_vm3, %v12689_v7, %v10209_v51  ;;  %v2188_v7 = vsel %vm1044_vm3, %v12695_v11, %v10210_v23 }
 0x48b   :  { %v2284_v49 = vsel %vm2271_vm12, %v2267_v37, %v10204_v41  ;;  %v10218_v59 = vpop.permute.xlu1 %10217  ;;  %v2285_v2 = vsel %vm2271_vm12, %v2268_v22, %v10205_v35  ;;  %v12879_v45 = vpop.f32.mrb[16].mxu0 }
 0x48c   :  { %v10213_v60 = vpop.permute.xlu0 %10212  ;;  %2461 = vmatmul.mubr.f32.gmra.mrb[24].mxu1 %v2284_v49  ;;  %v10219_v10 = vunpack.i.l.bf16 %v10218_v59  ;;  %v10220_v39 = vunpack.i.h.bf16 %v10218_v59  ;;  %v2852_v15 = vsel %vm1044_vm3, %v12879_v45, 0.0  ;;  %v2890_v42 = vmul.f32 %v12879_v45, %v12879_v45  ;;  %v12885_v20 = vpop.f32.mrb[17].mxu0 }
 0x48d   :  { %v10214_v55 = vunpack.i.l.bf16 %v10213_v60  ;;  %8792 = vmatprep.mubr.msk.f32.mxu1 %vm1044_vm3, %v12707_v40  ;;  %v10215_v27 = vunpack.i.h.bf16 %v10213_v60  ;;  %v2851_v46 = vsel %vm1044_vm3, %v12885_v20, 0.0  ;;  %v2889_v28 = vmul.f32 %v12885_v20, %v12885_v20 }
 0x48e   :  { %v2906_v3 = vsel %vm1044_vm3, %v2890_v42, 0.0  ;;  %v2853_v43 = vadd.f32 %v2852_v15, %v2851_v46 }
 0x48f   :  { %v2203_v16 = vsel %vm1078_vm5, %v2187_v26, %v10214_v55  ;;  %v2026_v52 = vpop.permute.xlu1 %2025  ;;  %v2204_v57 = vsel %vm1078_vm5, %v2188_v7, %v10215_v27  ;;  %v2905_v30 = vsel %vm1044_vm3, %v2889_v28, 0.0  ;;  %v12895_v58 = vpop.f32.mrb[18].mxu0 }
 0x490   :  { %v10223_v47 = vpop.permute.xlu0 %10222  ;;  %2466 = vmatmul.mubr.f32.gmra.mrb[26].mxu1 %v2285_v2  ;;  %v2219_v40 = vsel %vm1112_vm7, %v2203_v16, %v10219_v10  ;;  %v2220_v61 = vsel %vm1112_vm7, %v2204_v57, %v10220_v39  ;;  %v2907_v18 = vadd.f32 %v2906_v3, %v2905_v30  ;;  %v2892_v14 = vmul.f32 %v12895_v58, %v12895_v58  ;;  %v12899_v53 = vpop.f32.mrb[19].mxu0 }
 0x491   :  { %v10224_v54 = vunpack.i.l.bf16 %v10223_v47  ;;  %8793 = vmatprep.mubr.msk.f32.mxu1 %vm1044_vm3, %v12721_v29  ;;  %v10225_v8 = vunpack.i.h.bf16 %v10223_v47  ;;  %v2856_v31 = vsel %vm1044_vm3, %v12895_v58, 0.0  ;;  %v2854_v34 = vsel %vm1044_vm3, %v12899_v53, 0.0 }
 0x492   :  { %v2891_v38 = vmul.f32 %v12899_v53, %v12899_v53  ;;  %v2855_v5 = vadd.f32 %v2854_v34, %v2853_v43  ;;  %v2910_v4 = vsel %vm1044_vm3, %v2892_v14, 0.0 }
 0x493   :  { %v2235_v44 = vsel %vm286_vm0, %v2219_v40, %v10224_v54  ;;  %v2154_v9 = vpop.permute.xlu1 %2153  ;;  %v2236_v11 = vsel %vm286_vm0, %v2220_v61, %v10225_v8  ;;  %v12909_v63 = vpop.f32.mrb[20].mxu0 }
 0x494   :  { %v2090_v0 = vpop.permute.xlu0 %2089  ;;  %v2252_v12 = vsel %vm2237_vm10, %v2235_v44, %v2026_v52  ;;  %v2908_v6 = vsel %vm1044_vm3, %v2891_v38, 0.0  ;;  %v2894_v41 = vmul.f32 %v12909_v63, %v12909_v63  ;;  %v12913_v21 = vpop.f32.mrb[21].mxu0  ;;  %v2857_v51 = vadd.f32 %v2856_v31, %v2855_v5 }
 0x495   :  { %v2269_v32 = vsel %vm2254_vm11, %v2252_v12, %v2090_v0  ;;  %v2909_v24 = vadd.f32 %v2908_v6, %v2907_v18  ;;  %v2860_v37 = vsel %vm1044_vm3, %v12909_v63, 0.0  ;;  %v2858_v36 = vsel %vm1044_vm3, %v12913_v21, 0.0 }
 0x496   :  { %v2286_v29 = vsel %vm2271_vm12, %v2269_v32, %v2154_v9  ;;  %v2893_v35 = vmul.f32 %v12913_v21, %v12913_v21  ;;  %v2859_v49 = vadd.f32 %v2858_v36, %v2857_v51  ;;  %v2914_v59 = vsel %vm1044_vm3, %v2894_v41, 0.0 }
 0x497   :  { %2471 = vmatmul.mubr.f32.gmra.mrb[28].mxu1 %v2286_v29  ;;  %v2092_v33 = vpop.permute.xlu1 %2091  ;;  %v2911_v62 = vadd.f32 %v2910_v4, %v2909_v24  ;;  %v12923_v55 = vpop.f32.mrb[22].mxu0 }
 0x498   :  { %v2028_v13 = vpop.permute.xlu0 %2027  ;;  %8794 = vmatprep.mubr.msk.f32.mxu1 %vm1044_vm3, %v1724_v50  ;;  %v2912_v60 = vsel %vm1044_vm3, %v2893_v35, 0.0  ;;  %v2896_v10 = vmul.f32 %v12923_v55, %v12923_v55  ;;  %v12927_v22 = vpop.f32.mrb[23].mxu0  ;;  %v2861_v23 = vadd.f32 %v2860_v37, %v2859_v49  ;;  %v2864_v16 = vsel %vm1044_vm3, %v12923_v55, 0.0 }
 0x499   :  { %v2253_v19 = vsel %vm2237_vm10, %v2236_v11, %v2028_v13  ;;  %v2913_v26 = vadd.f32 %v2912_v60, %v2911_v62  ;;  %v2862_v2 = vsel %vm1044_vm3, %v12927_v22, 0.0  ;;  %v2895_v27 = vmul.f32 %v12927_v22, %v12927_v22 }
 0x49a   :  { %v2270_v48 = vsel %vm2254_vm11, %v2253_v19, %v2092_v33  ;;  %v2863_v52 = vadd.f32 %v2862_v2, %v2861_v23  ;;  %v2918_v54 = vsel %vm1044_vm3, %v2896_v10, 0.0 }
 0x49b   :  { %v2915_v47 = vadd.f32 %v2914_v59, %v2913_v26  ;;  %v2916_v40 = vsel %vm1044_vm3, %v2895_v27, 0.0  ;;  %v12937_v7 = vpop.f32.mrb[24].mxu0 }
 0x49c   :  { %v2156_v25 = vpop.permute.xlu0 %2155  ;;  %v2898_v44 = vmul.f32 %v12937_v7, %v12937_v7  ;;  %v12941_v57 = vpop.f32.mrb[25].mxu0  ;;  %v2865_v8 = vadd.f32 %v2864_v16, %v2863_v52  ;;  %v2868_v9 = vsel %vm1044_vm3, %v12937_v7, 0.0 }
 0x49d   :  { %v2287_v17 = vsel %vm2271_vm12, %v2270_v48, %v2156_v25  ;;  %v2917_v39 = vadd.f32 %v2916_v40, %v2915_v47  ;;  %v2866_v0 = vsel %vm1044_vm3, %v12941_v57, 0.0  ;;  %v2897_v12 = vmul.f32 %v12941_v57, %v12941_v57 }
 0x49e   :  { %2476 = vmatmul.mubr.f32.gmra.mrb[30].mxu1 %v2287_v17  ;;  %v2867_v32 = vadd.f32 %v2866_v0, %v2865_v8  ;;  %v2922_v29 = vsel %vm1044_vm3, %v2898_v44, 0.0 }
 0x49f   :  { %v2919_v50 = vadd.f32 %v2918_v54, %v2917_v39  ;;  %v2920_v61 = vsel %vm1044_vm3, %v2897_v12, 0.0  ;;  %v12951_v13 = vpop.f32.mrb[26].mxu0 }
 0x4a0   :  { %v2900_v19 = vmul.f32 %v12951_v13, %v12951_v13  ;;  %v12955_v33 = vpop.f32.mrb[27].mxu0  ;;  %v2869_v15 = vadd.f32 %v2868_v9, %v2867_v32  ;;  %v2872_v42 = vsel %vm1044_vm3, %v12951_v13, 0.0 }
 0x4a1   :  { %v2921_v11 = vadd.f32 %v2920_v61, %v2919_v50  ;;  %v2870_v48 = vsel %vm1044_vm3, %v12955_v33, 0.0  ;;  %v2899_v25 = vmul.f32 %v12955_v33, %v12955_v33 }
 0x4a2   :  { %v2871_v46 = vadd.f32 %v2870_v48, %v2869_v15  ;;  %v2926_v17 = vsel %vm1044_vm3, %v2900_v19, 0.0 }
 0x4a3   :  { %v2923_v28 = vadd.f32 %v2922_v29, %v2921_v11  ;;  %v2924_v3 = vsel %vm1044_vm3, %v2899_v25, 0.0  ;;  %v12965_v43 = vpop.f32.mrb[28].mxu0 }
 0x4a4   :  { %v2902_v18 = vmul.f32 %v12965_v43, %v12965_v43  ;;  %v12969_v14 = vpop.f32.mrb[29].mxu0  ;;  %v2873_v31 = vadd.f32 %v2872_v42, %v2871_v46  ;;  %v2876_v34 = vsel %vm1044_vm3, %v12965_v43, 0.0 }
 0x4a5   :  { %v2925_v30 = vadd.f32 %v2924_v3, %v2923_v28  ;;  %v2874_v38 = vsel %vm1044_vm3, %v12969_v14, 0.0  ;;  %v2901_v5 = vmul.f32 %v12969_v14, %v12969_v14 }
 0x4a6   :  { %v2875_v4 = vadd.f32 %v2874_v38, %v2873_v31  ;;  %v2930_v24 = vsel %vm1044_vm3, %v2902_v18, 0.0 }
 0x4a7   :  { %v2927_v6 = vadd.f32 %v2926_v17, %v2925_v30  ;;  %v2928_v41 = vsel %vm1044_vm3, %v2901_v5, 0.0  ;;  %v12979_v51 = vpop.f32.mrb[30].mxu0 }
 0x4a8   :  { %v2904_v36 = vmul.f32 %v12979_v51, %v12979_v51  ;;  %v2840_v35 = vpop.f32.mrb[31].mxu0  ;;  %v2877_v49 = vadd.f32 %v2876_v34, %v2875_v4  ;;  %v2880_v62 = vsel %vm1044_vm3, %v12979_v51, 0.0 }
 0x4a9   :  { %v2929_v37 = vadd.f32 %v2928_v41, %v2927_v6  ;;  %v2878_v59 = vsel %vm1044_vm3, %v2840_v35, 0.0  ;;  %v2903_v60 = vmul.f32 %v2840_v35, %v2840_v35 }
 0x4aa   :  { %v2879_v26 = vadd.f32 %v2878_v59, %v2877_v49  ;;  %v2934_v23 = vsel %vm1044_vm3, %v2904_v36, 0.0 }
 0x4ab   :  { %v2931_v10 = vadd.f32 %v2930_v24, %v2929_v37  ;;  %v2932_v16 = vsel %vm1044_vm3, %v2903_v60, 0.0 }
 0x4ac   :  { %v2881_v2 = vadd.f32 %v2880_v62, %v2879_v26 }
 0x4ad   :  { %v2933_v27 = vadd.f32 %v2932_v16, %v2931_v10 }
 0x4ae   :  { %v2882_v52 = vrot.slane %v2881_v2, 4 }
 0x4af   :  { %v2935_v47 = vadd.f32 %v2934_v23, %v2933_v27 }
 0x4b0   :  { %v2883_v54 = vadd.f32 %v2882_v52, %v2881_v2 }
 0x4b1   :  { %v2936_v40 = vrot.slane %v2935_v47, 4 }
 0x4b2   :  { %v2884_v39 = vrot.slane %v2883_v54, 2 }
 0x4b3   :  { %v2937_v44 = vadd.f32 %v2936_v40, %v2935_v47 }
 0x4b4   :  { %v2885_v8 = vadd.f32 %v2884_v39, %v2883_v54 }
 0x4b5   :  { %v2938_v9 = vrot.slane %v2937_v44, 2 }
 0x4b6   :  { %v2886_v0 = vrot.slane %v2885_v8, 1 }
 0x4b7   :  { %v2939_v12 = vadd.f32 %v2938_v9, %v2937_v44 }
 0x4b8   :  { %v2887_v32 = vadd.f32 %v2886_v0, %v2885_v8 }
 0x4b9   :  { %v2940_v50 = vrot.slane %v2939_v12, 1 }
 0x4ba   :  { %v2888_v29 = vmul.f32 0.0078125, %v2887_v32 }
 0x4bb   :  { %v2941_v61 = vadd.f32 %v2940_v50, %v2939_v12 }
 0x4bc   :  { %v2943_v19 = vmul.f32 %v2888_v29, %v2888_v29  ;;  %v2945_v15 = vsub.f32 %v12885_v20, %v2888_v29  ;;  %v2946_v42 = vsub.f32 %v12879_v45, %v2888_v29  ;;  %v2947_v48 = vsub.f32 %v12899_v53, %v2888_v29 }
 0x4bd   :  { %v2942_v11 = vmul.f32 0.0078125, %v2941_v61  ;;  %v2948_v25 = vsub.f32 %v12895_v58, %v2888_v29  ;;  %v2949_v46 = vsub.f32 %v12913_v21, %v2888_v29  ;;  %v2950_v28 = vsub.f32 %v12909_v63, %v2888_v29 }
 0x4be   :  { %v2951_v3 = vsub.f32 %v12927_v22, %v2888_v29  ;;  %v2952_v30 = vsub.f32 %v12923_v55, %v2888_v29  ;;  %v2953_v18 = vsub.f32 %v12941_v57, %v2888_v29  ;;  %v2954_v31 = vsub.f32 %v12937_v7, %v2888_v29 }
 0x4bf   :  { %v2944_v17 = vsub.f32 %v2942_v11, %v2943_v19  ;;  %v2955_v20 = vsub.f32 %v12955_v33, %v2888_v29  ;;  %v2956_v45 = vsub.f32 %v12951_v13, %v2888_v29  ;;  %v2957_v53 = vsub.f32 %v12969_v14, %v2888_v29 }
 0x4c0   :  { %v2958_v58 = vsub.f32 %v12965_v43, %v2888_v29  ;;  %v2959_v21 = vsub.f32 %v2840_v35, %v2888_v29  ;;  %v2960_v36 = vsub.f32 %v12979_v51, %v2888_v29 }
 0x4c1   :  { %v2961_v34 = vadd.f32 1e-05, %v2944_v17 }
 0x4c3   :  { %11133 = vrsqrt.f32 %v2961_v34 }
 0x4cd   :  { %v11134_v63 = vpop.eup %11133 }
 0x4ce   :  { %v13002_v38 = vmul.f32 %v11134_v63, %v2945_v15  ;;  %v13004_v22 = vmul.f32 %v11134_v63, %v2946_v42  ;;  %v13006_v55 = vmul.f32 %v11134_v63, %v2947_v48  ;;  %v13008_v57 = vmul.f32 %v11134_v63, %v2948_v25 }
 0x4cf   :  { %v13010_v7 = vmul.f32 %v11134_v63, %v2949_v46  ;;  %v13012_v33 = vmul.f32 %v11134_v63, %v2950_v28  ;;  %v13014_v13 = vmul.f32 %v11134_v63, %v2951_v3  ;;  %v13016_v14 = vmul.f32 %v11134_v63, %v2952_v30 }
 0x4d0   :  { %v13018_v43 = vmul.f32 %v11134_v63, %v2953_v18  ;;  %v13020_v5 = vmul.f32 %v11134_v63, %v2954_v31  ;;  %v13022_v4 = vmul.f32 %v11134_v63, %v2955_v20  ;;  %v13024_v6 = vmul.f32 %v11134_v63, %v2956_v45 }
 0x4d1   :  { %v13026_v24 = vmul.f32 %v11134_v63, %v2957_v53  ;;  %v13028_v41 = vmul.f32 %v11134_v63, %v2958_v58  ;;  %v13030_v37 = vmul.f32 %v11134_v63, %v2959_v21  ;;  %v13033_v35 = vmul.f32 %v11134_v63, %v2960_v36 }
 0x50b   :  { %v13035_v49 = vpop.f32.mrb[0].mxu1 }
 0x50c   :  { %v2404_v62 = vpop.f32.mrb[1].mxu1  ;;  %v2521_v59 = vmul.f32 %v13035_v49, %v13035_v49  ;;  %v2483_v26 = vsel %vm1044_vm3, %v13035_v49, 0.0 }
 0x50e   :  { %v2537_v2 = vsel %vm1044_vm3, %v2521_v59, 0.0 }
 0x50f   :  { %v13039_v60 = vpop.f32.mrb[2].mxu1 }
 0x510   :  { %v2484_v10 = vsel %vm1044_vm3, %v13039_v60, 0.0  ;;  %v2522_v23 = vmul.f32 %v13039_v60, %v13039_v60  ;;  %v2409_v51 = vpop.f32.mrb[3].mxu1 }
 0x511   :  { %v2485_v16 = vadd.f32 %v2484_v10, %v2483_v26 }
 0x512   :  { %v2538_v27 = vsel %vm1044_vm3, %v2522_v23, 0.0 }
 0x513   :  { %v2539_v52 = vadd.f32 %v2538_v27, %v2537_v2 }
 0x518   :  { %v13049_v47 = vpop.f32.mrb[4].mxu1 }
 0x519   :  { %v2486_v54 = vsel %vm1044_vm3, %v13049_v47, 0.0  ;;  %v2523_v40 = vmul.f32 %v13049_v47, %v13049_v47  ;;  %v2414_v39 = vpop.f32.mrb[5].mxu1 }
 0x51a   :  { %v2487_v44 = vadd.f32 %v2486_v54, %v2485_v16 }
 0x51b   :  { %v2540_v8 = vsel %vm1044_vm3, %v2523_v40, 0.0 }
 0x51c   :  { %v2541_v9 = vadd.f32 %v2540_v8, %v2539_v52  ;;  %v13056_v0 = vpop.f32.mrb[6].mxu1 }
 0x51d   :  { %v2488_v12 = vsel %vm1044_vm3, %v13056_v0, 0.0  ;;  %v2524_v32 = vmul.f32 %v13056_v0, %v13056_v0  ;;  %v2419_v50 = vpop.f32.mrb[7].mxu1 }
 0x51e   :  { %v2489_v29 = vadd.f32 %v2488_v12, %v2487_v44 }
 0x51f   :  { %v2542_v61 = vsel %vm1044_vm3, %v2524_v32, 0.0 }
 0x520   :  { %v2543_v11 = vadd.f32 %v2542_v61, %v2541_v9 }
 0x527   :  { %v13063_v19 = vpop.f32.mrb[8].mxu1 }
 0x528   :  { %v2490_v15 = vsel %vm1044_vm3, %v13063_v19, 0.0  ;;  %v2525_v42 = vmul.f32 %v13063_v19, %v13063_v19  ;;  %v2424_v48 = vpop.f32.mrb[9].mxu1 }
 0x529   :  { %v2491_v25 = vadd.f32 %v2490_v15, %v2489_v29 }
 0x52a   :  { %v2544_v46 = vsel %vm1044_vm3, %v2525_v42, 0.0 }
 0x52b   :  { %v2545_v28 = vadd.f32 %v2544_v46, %v2543_v11  ;;  %v13070_v17 = vpop.f32.mrb[10].mxu1 }
 0x52c   :  { %v2492_v3 = vsel %vm1044_vm3, %v13070_v17, 0.0  ;;  %v2526_v30 = vmul.f32 %v13070_v17, %v13070_v17  ;;  %v2429_v18 = vpop.f32.mrb[11].mxu1 }
 0x52d   :  { %v2493_v31 = vadd.f32 %v2492_v3, %v2491_v25 }
 0x52e   :  { %v2546_v20 = vsel %vm1044_vm3, %v2526_v30, 0.0 }
 0x52f   :  { %v2547_v45 = vadd.f32 %v2546_v20, %v2545_v28 }
 0x534   :  { %v13077_v53 = vpop.f32.mrb[12].mxu1 }
 0x535   :  { %v2494_v58 = vsel %vm1044_vm3, %v13077_v53, 0.0  ;;  %v2527_v21 = vmul.f32 %v13077_v53, %v13077_v53  ;;  %v2434_v34 = vpop.f32.mrb[13].mxu1 }
 0x536   :  { %v2495_v63 = vadd.f32 %v2494_v58, %v2493_v31 }
 0x537   :  { %v2548_v36 = vsel %vm1044_vm3, %v2527_v21, 0.0 }
 0x538   :  { %v2549_v62 = vadd.f32 %v2548_v36, %v2547_v45  ;;  %v13084_v59 = vpop.f32.mrb[14].mxu1 }
 0x539   :  { %v2496_v26 = vsel %vm1044_vm3, %v13084_v59, 0.0  ;;  %v2528_v10 = vmul.f32 %v13084_v59, %v13084_v59  ;;  %v2439_v23 = vpop.f32.mrb[15].mxu1 }
 0x53a   :  { %v2497_v51 = vadd.f32 %v2496_v26, %v2495_v63 }
 0x53b   :  { %v2550_v16 = vsel %vm1044_vm3, %v2528_v10, 0.0 }
 0x53c   :  { %v2551_v2 = vadd.f32 %v2550_v16, %v2549_v62 }
 0x543   :  { %v13091_v27 = vpop.f32.mrb[16].mxu1 }
 0x544   :  { %v2498_v52 = vsel %vm1044_vm3, %v13091_v27, 0.0  ;;  %v2529_v54 = vmul.f32 %v13091_v27, %v13091_v27  ;;  %v2444_v40 = vpop.f32.mrb[17].mxu1 }
 0x545   :  { %v2499_v39 = vadd.f32 %v2498_v52, %v2497_v51 }
 0x546   :  { %v2552_v44 = vsel %vm1044_vm3, %v2529_v54, 0.0 }
 0x547   :  { %v2553_v8 = vadd.f32 %v2552_v44, %v2551_v2  ;;  %v13098_v9 = vpop.f32.mrb[18].mxu1 }
 0x548   :  { %v2500_v12 = vsel %vm1044_vm3, %v13098_v9, 0.0  ;;  %v2530_v32 = vmul.f32 %v13098_v9, %v13098_v9  ;;  %v2449_v50 = vpop.f32.mrb[19].mxu1 }
 0x549   :  { %v2501_v29 = vadd.f32 %v2500_v12, %v2499_v39 }
 0x54a   :  { %v2554_v61 = vsel %vm1044_vm3, %v2530_v32, 0.0 }
 0x54b   :  { %v2555_v11 = vadd.f32 %v2554_v61, %v2553_v8 }
 0x550   :  { %v13105_v15 = vpop.f32.mrb[20].mxu1 }
 0x551   :  { %v2502_v42 = vsel %vm1044_vm3, %v13105_v15, 0.0  ;;  %v2531_v48 = vmul.f32 %v13105_v15, %v13105_v15  ;;  %v2454_v25 = vpop.f32.mrb[21].mxu1 }
 0x552   :  { %v2503_v46 = vadd.f32 %v2502_v42, %v2501_v29 }
 0x553   :  { %v2556_v28 = vsel %vm1044_vm3, %v2531_v48, 0.0 }
 0x554   :  { %v2557_v3 = vadd.f32 %v2556_v28, %v2555_v11  ;;  %v13112_v30 = vpop.f32.mrb[22].mxu1 }
 0x555   :  { %v2504_v18 = vsel %vm1044_vm3, %v13112_v30, 0.0  ;;  %v2532_v31 = vmul.f32 %v13112_v30, %v13112_v30  ;;  %v2459_v20 = vpop.f32.mrb[23].mxu1 }
 0x556   :  { %v2505_v45 = vadd.f32 %v2504_v18, %v2503_v46 }
 0x557   :  { %v2558_v58 = vsel %vm1044_vm3, %v2532_v31, 0.0 }
 0x558   :  { %v2559_v21 = vadd.f32 %v2558_v58, %v2557_v3 }
 0x55f   :  { %v13119_v34 = vpop.f32.mrb[24].mxu1 }
 0x560   :  { %v2506_v63 = vsel %vm1044_vm3, %v13119_v34, 0.0  ;;  %v2533_v36 = vmul.f32 %v13119_v34, %v13119_v34  ;;  %v2464_v62 = vpop.f32.mrb[25].mxu1 }
 0x561   :  { %v2507_v26 = vadd.f32 %v2506_v63, %v2505_v45 }
 0x562   :  { %v2560_v10 = vsel %vm1044_vm3, %v2533_v36, 0.0 }
 0x563   :  { %v2561_v23 = vadd.f32 %v2560_v10, %v2559_v21  ;;  %v13126_v51 = vpop.f32.mrb[26].mxu1 }
 0x564   :  { %v2508_v16 = vsel %vm1044_vm3, %v13126_v51, 0.0  ;;  %v2534_v2 = vmul.f32 %v13126_v51, %v13126_v51  ;;  %v2469_v52 = vpop.f32.mrb[27].mxu1 }
 0x565   :  { %v2509_v54 = vadd.f32 %v2508_v16, %v2507_v26 }
 0x566   :  { %v2562_v40 = vsel %vm1044_vm3, %v2534_v2, 0.0 }
 0x567   :  { %v2563_v39 = vadd.f32 %v2562_v40, %v2561_v23 }
 0x56a   :  { %v13133_v44 = vpop.f32.mrb[28].mxu1 }
 0x56b   :  { %v2510_v8 = vsel %vm1044_vm3, %v13133_v44, 0.0  ;;  %v2535_v12 = vmul.f32 %v13133_v44, %v13133_v44  ;;  %v2474_v32 = vpop.f32.mrb[29].mxu1 }
 0x56c   :  { %v2511_v50 = vadd.f32 %v2510_v8, %v2509_v54 }
 0x56d   :  { %v2564_v29 = vsel %vm1044_vm3, %v2535_v12, 0.0 }
 0x56e   :  { %v2565_v61 = vadd.f32 %v2564_v29, %v2563_v39 }
 0x571   :  { %v13140_v11 = vpop.f32.mrb[30].mxu1 }
 0x572   :  { %v2512_v42 = vsel %vm1044_vm3, %v13140_v11, 0.0  ;;  %v2536_v48 = vmul.f32 %v13140_v11, %v13140_v11  ;;  %v2479_v25 = vpop.f32.mrb[31].mxu1 }
 0x573   :  { %v2513_v46 = vadd.f32 %v2512_v42, %v2511_v50 }
 0x574   :  { %v2566_v28 = vsel %vm1044_vm3, %v2536_v48, 0.0 }
 0x575   :  { %v2514_v3 = vrot.slane %v2513_v46, 4  ;;  %v2567_v18 = vadd.f32 %v2566_v28, %v2565_v61 }
 0x577   :  { %v2515_v31 = vadd.f32 %v2514_v3, %v2513_v46  ;;  %v2568_v20 = vrot.slane %v2567_v18, 4 }
 0x579   :  { %v2516_v45 = vrot.slane %v2515_v31, 2  ;;  %v2569_v58 = vadd.f32 %v2568_v20, %v2567_v18 }
 0x57b   :  { %v2517_v21 = vadd.f32 %v2516_v45, %v2515_v31  ;;  %v2570_v63 = vrot.slane %v2569_v58, 2  ;;  %v8813_v45 = vld [vmem:[#allocation8] ss:$0 sm:$0xff] }
 0x57c   :  { %v2995_v1 = vmul.f32 %v8813_v45, %v13022_v4 }
 0x57d   :  { %v2518_v36 = vrot.slane %v2517_v21, 1  ;;  %v2571_v62 = vadd.f32 %v2570_v63, %v2569_v58  ;;  %v2985_v58 = vmul.f32 %v8813_v45, %v13002_v38  ;;  %v8814_v63 = vld [vmem:[#allocation9] ss:$0 sm:$0xff] }
 0x57f   :  { %v2519_v26 = vadd.f32 %v2518_v36, %v2517_v21  ;;  %v2572_v10 = vrot.slane %v2571_v62, 1  ;;  %v2986_v21 = vmul.f32 %v8813_v45, %v13004_v22  ;;  %v2987_v36 = vmul.f32 %v8813_v45, %v13006_v55 }
 0x580   :  { %v2994_v22 = vmul.f32 %v8813_v45, %v13020_v5  ;;  %v2996_v55 = vmul.f32 %v8813_v45, %v13024_v6  ;;  %v13198_v31 = vadd.f32 %v8814_v63, %v2985_v58  ;;  %v3057_v6 = vld [vmem:[#allocation11 + $0x10] sm:$0xff] }
 0x581   :  { %v13147_v23 = vmul.f32 0.0078125, %v2519_v26  ;;  %v2573_v16 = vadd.f32 %v2572_v10, %v2571_v62  ;;  %v2988_v62 = vmul.f32 %v8813_v45, %v13008_v57  ;;  %v2989_v26 = vmul.f32 %v8813_v45, %v13010_v7 }
 0x582   :  { %v2990_v10 = vmul.f32 %v8813_v45, %v13012_v33  ;;  %v2997_v57 = vmul.f32 %v8813_v45, %v13026_v24  ;;  %v2998_v7 = vmul.f32 %v8813_v45, %v13028_v41  ;;  %v2999_v33 = vmul.f32 %v8813_v45, %v13030_v37  ;;  %v3058_v24 = vld [vmem:[#allocation11 + $0x18] sm:$0xff] }
 0x583   :  { %v2574_v2 = vmul.f32 0.0078125, %v2573_v16  ;;  %v2575_v52 = vmul.f32 %v13147_v23, %v13147_v23  ;;  %v2577_v54 = vsub.f32 %v13035_v49, %v13147_v23  ;;  %v2578_v40 = vsub.f32 %v13039_v60, %v13147_v23  ;;  %v3055_v16 = vld [vmem:[#allocation11] sm:$0xff] }
 0x584   :  { %v2579_v39 = vsub.f32 %v13049_v47, %v13147_v23  ;;  %v2580_v8 = vsub.f32 %v13056_v0, %v13147_v23  ;;  %v2581_v12 = vsub.f32 %v13063_v19, %v13147_v23  ;;  %v2582_v32 = vsub.f32 %v13070_v17, %v13147_v23 }
 0x585   :  { %v2576_v50 = vsub.f32 %v2574_v2, %v2575_v52  ;;  %v2583_v29 = vsub.f32 %v13077_v53, %v13147_v23  ;;  %v2584_v61 = vsub.f32 %v13084_v59, %v13147_v23  ;;  %v2585_v42 = vsub.f32 %v13091_v27, %v13147_v23  ;;  %v3056_v2 = vld [vmem:[#allocation11 + $0x8] sm:$0xff] }
 0x586   :  { %v2586_v48 = vsub.f32 %v13098_v9, %v13147_v23  ;;  %v2587_v25 = vsub.f32 %v13105_v15, %v13147_v23  ;;  %v2588_v46 = vsub.f32 %v13112_v30, %v13147_v23  ;;  %v2589_v28 = vsub.f32 %v13119_v34, %v13147_v23 }
 0x587   :  { %v2590_v3 = vsub.f32 %v13126_v51, %v13147_v23  ;;  %v2591_v18 = vsub.f32 %v13133_v44, %v13147_v23  ;;  %v2593_v20 = vadd.f32 1e-05, %v2576_v50  ;;  %v2991_v52 = vmul.f32 %v8813_v45, %v13014_v13 }
 0x588   :  { %v2992_v50 = vmul.f32 %v8813_v45, %v13016_v14  ;;  %v9693_v38 = vpack.c.bf16 %v3056_v2, %v3055_v16  ;;  %v3000_v13 = vmul.f32 %v8813_v45, %v13033_v35  ;;  %v13201_v14 = vadd.f32 %v8814_v63, %v2986_v21 }
 0x589   :  { %11135 = vrsqrt.f32 %v2593_v20  ;;  %v2993_v20 = vmul.f32 %v8813_v45, %v13018_v43  ;;  %v13203_v43 = vadd.f32 %v8814_v63, %v2987_v36  ;;  %v13205_v5 = vadd.f32 %v8814_v63, %v2988_v62 }
 0x58a   :  { %9694 = vmatpush1.bf16.msra.mxu0 %v9693_v38  ;;  %v13207_v4 = vadd.f32 %v8814_v63, %v2989_v26  ;;  %v13210_v41 = vadd.f32 %v8814_v63, %v2990_v10  ;;  %v13212_v37 = vadd.f32 %v8814_v63, %v2991_v52  ;;  %v13214_v58 = vadd.f32 %v8814_v63, %v2992_v50 }
 0x58b   :  { %9695 = vmatprep.subr.bf16.mxu0 %v16378_v56  ;;  %v9696_v35 = vpack.c.bf16 %v3058_v24, %v3057_v6  ;;  %v13216_v45 = vadd.f32 %v8814_v63, %v2993_v20  ;;  %v13218_v21 = vadd.f32 %v8814_v63, %v2994_v22  ;;  %v13220_v36 = vadd.f32 %v8814_v63, %v2995_v1 }
 0x58c   :  { %v13222_v62 = vadd.f32 %v8814_v63, %v2996_v55  ;;  %v13224_v16 = vadd.f32 %v8814_v63, %v2997_v57  ;;  %v13226_v2 = vadd.f32 %v8814_v63, %v2998_v7  ;;  %v13228_v10 = vadd.f32 %v8814_v63, %v2999_v33 }
 0x58d   :  { %v13230_v52 = vadd.f32 %v8814_v63, %v3000_v13  ;;  %v8795_v63 = vld [vmem:[%s16455_s1] ss:$0 sm:$0xff]  ;;  %v16456_v15 = vsub.f32 %v13140_v11, %v13147_v23 }
 0x58e   :  { %9697 = vmatpush1.bf16.msra.mxu0 %v9696_v35 }
 0x58f   :  { %9698 = vmatprep.subr.bf16.mxu0 %v16378_v56 }
 0x593   :  { %v11136_v26 = vpop.eup %11135 }
 0x594   :  { %v2595_v50 = vmul.f32 %v11136_v26, %v2577_v54  ;;  %v2596_v1 = vmul.f32 %v11136_v26, %v2578_v40  ;;  %v2597_v20 = vmul.f32 %v11136_v26, %v2579_v39  ;;  %v2598_v38 = vmul.f32 %v11136_v26, %v2580_v8 }
 0x595   :  { %v2599_v49 = vmul.f32 %v11136_v26, %v2581_v12  ;;  %v2600_v60 = vmul.f32 %v11136_v26, %v2582_v32  ;;  %v2601_v47 = vmul.f32 %v11136_v26, %v2583_v29  ;;  %v2602_v0 = vmul.f32 %v11136_v26, %v2584_v61  ;;  %v8796_v32 = vld [vmem:[#allocation6] ss:$0 sm:$0xff] }
 0x596   :  { %v2603_v54 = vmul.f32 %v11136_v26, %v2585_v42  ;;  %v2604_v19 = vmul.f32 %v11136_v26, %v2586_v48  ;;  %v2605_v17 = vmul.f32 %v11136_v26, %v2587_v25  ;;  %v2606_v53 = vmul.f32 %v11136_v26, %v2588_v46 }
 0x597   :  { %v2607_v59 = vmul.f32 %v11136_v26, %v2589_v28  ;;  %v2608_v27 = vmul.f32 %v11136_v26, %v2590_v3  ;;  %v2609_v9 = vmul.f32 %v11136_v26, %v2591_v18  ;;  %v2610_v40 = vmul.f32 %v11136_v26, %v16456_v15 }
 0x598   :  { %v2617_v39 = vmul.f32 %v8795_v63, %v2595_v50  ;;  %v2618_v8 = vmul.f32 %v8795_v63, %v2596_v1  ;;  %v2619_v30 = vmul.f32 %v8795_v63, %v2597_v20  ;;  %v2620_v12 = vmul.f32 %v8795_v63, %v2598_v38 }
 0x599   :  { %v2621_v29 = vmul.f32 %v8795_v63, %v2599_v49  ;;  %v2622_v34 = vmul.f32 %v8795_v63, %v2600_v60  ;;  %v2623_v61 = vmul.f32 %v8795_v63, %v2601_v47  ;;  %v2624_v42 = vmul.f32 %v8795_v63, %v2602_v0 }
 0x59a   :  { %v2625_v48 = vmul.f32 %v8795_v63, %v2603_v54  ;;  %v2626_v51 = vmul.f32 %v8795_v63, %v2604_v19  ;;  %v2627_v25 = vmul.f32 %v8795_v63, %v2605_v17  ;;  %v2628_v46 = vmul.f32 %v8795_v63, %v2606_v53 }
 0x59b   :  { %v2629_v28 = vmul.f32 %v8795_v63, %v2607_v59  ;;  %v2630_v44 = vmul.f32 %v8795_v63, %v2608_v27  ;;  %v2631_v3 = vmul.f32 %v8795_v63, %v2609_v9  ;;  %v2632_v18 = vmul.f32 %v8795_v63, %v2610_v40  ;;  %v3059_v59 = vld [vmem:[#allocation11 + $0x20] sm:$0xff]  ;;  %v3060_v27 = vld [vmem:[#allocation11 + $0x28] sm:$0xff] }
 0x59c   :  { %v2639_v22 = vadd.f32 %v8796_v32, %v2617_v39  ;;  %v2640_v11 = vadd.f32 %v8796_v32, %v2618_v8  ;;  %v2641_v23 = vadd.f32 %v8796_v32, %v2619_v30  ;;  %v2642_v55 = vadd.f32 %v8796_v32, %v2620_v12 }
 0x59d   :  { %v2643_v57 = vadd.f32 %v8796_v32, %v2621_v29  ;;  %v2644_v7 = vadd.f32 %v8796_v32, %v2622_v34  ;;  %v2645_v33 = vadd.f32 %v8796_v32, %v2623_v61  ;;  %v2646_v13 = vadd.f32 %v8796_v32, %v2624_v42  ;;  %v3062_v29 = vld [vmem:[#allocation11 + $0x38] sm:$0xff]  ;;  %v3121_v61 = vld [vmem:[#allocation2 + $0x2] sm:$0xff] }
 0x59e   :  { %v2647_v6 = vadd.f32 %v8796_v32, %v2625_v48  ;;  %v2648_v24 = vadd.f32 %v8796_v32, %v2626_v51  ;;  %v2649_v35 = vadd.f32 %v8796_v32, %v2627_v25  ;;  %v2650_v26 = vadd.f32 %v8796_v32, %v2628_v46  ;;  %v3105_v48 = vld [vmem:[#allocation2 + $0x1] sm:$0xff]  ;;  %v3063_v51 = vld [vmem:[#allocation11 + $0x40] sm:$0xff] }
 0x59f   :  { %v2651_v50 = vadd.f32 %v8796_v32, %v2629_v28  ;;  %v2652_v1 = vadd.f32 %v8796_v32, %v2630_v44  ;;  %v2653_v20 = vadd.f32 %v8796_v32, %v2631_v3  ;;  %v2654_v38 = vadd.f32 %v8796_v32, %v2632_v18  ;;  %v3061_v32 = vld [vmem:[#allocation11 + $0x30] sm:$0xff]  ;;  %v3064_v25 = vld [vmem:[#allocation11 + $0x48] sm:$0xff] }
 0x5a0   :  { %v13283_v49 = vadd.f32 %v13198_v31, %v2639_v22  ;;  %v13286_v63 = vadd.f32 %v13201_v14, %v2640_v11  ;;  %v13289_v60 = vadd.f32 %v13203_v43, %v2641_v23  ;;  %v13292_v47 = vadd.f32 %v13205_v5, %v2642_v55  ;;  %v3065_v11 = vld [vmem:[#allocation11 + $0x50] sm:$0xff]  ;;  %v3066_v23 = vld [vmem:[#allocation11 + $0x58] sm:$0xff] }
 0x5a1   :  { %v13295_v0 = vadd.f32 %v13207_v4, %v2643_v57  ;;  %v13298_v54 = vadd.f32 %v13210_v41, %v2644_v7  ;;  %v13301_v19 = vadd.f32 %v13212_v37, %v2645_v33  ;;  %v13304_v31 = vadd.f32 %v13214_v58, %v2646_v13 }
 0x5a2   :  { %v13307_v14 = vadd.f32 %v13216_v45, %v2647_v6  ;;  %v13310_v43 = vadd.f32 %v13218_v21, %v2648_v24  ;;  %v13313_v5 = vadd.f32 %v13220_v36, %v2649_v35  ;;  %v13316_v4 = vadd.f32 %v13222_v62, %v2650_v26  ;;  %v3067_v35 = vld [vmem:[#allocation11 + $0x60] sm:$0xff]  ;;  %v3068_v26 = vld [vmem:[#allocation11 + $0x68] sm:$0xff] }
 0x5a3   :  { %v13319_v41 = vadd.f32 %v13224_v16, %v2651_v50  ;;  %v13322_v37 = vadd.f32 %v13226_v2, %v2652_v1  ;;  %v13325_v58 = vadd.f32 %v13228_v10, %v2653_v20  ;;  %v13328_v45 = vadd.f32 %v13230_v52, %v2654_v38 }
 0x5a4   :  { %v16395_v21 = vmax.f32 %v13283_v49, 0.0  ;;  %v16394_v36 = vmax.f32 %v13286_v63, 0.0  ;;  %v16393_v17 = vmax.f32 %v13289_v60, 0.0  ;;  %v16392_v62 = vmax.f32 %v13292_v47, 0.0 }
 0x5a5   :  { %16457 = vst [vmem:[#allocation44_spill] sm:$0xff] %v13325_v58  ;;  %16458 = vst [vmem:[#allocation45_spill] sm:$0xff] %v13328_v45  ;;  %v16391_v16 = vmax.f32 %v13295_v0, 0.0  ;;  %v16390_v53 = vmax.f32 %v13298_v54, 0.0  ;;  %v16389_v2 = vmax.f32 %v13301_v19, 0.0  ;;  %v16388_v10 = vmax.f32 %v13304_v31, 0.0 }
 0x5a6   :  { %v16387_v52 = vmax.f32 %v13307_v14, 0.0  ;;  %v16386_v9 = vmax.f32 %v13310_v43, 0.0  ;;  %v16385_v15 = vmax.f32 %v13313_v5, 0.0  ;;  %v16384_v40 = vmax.f32 %v13316_v4, 0.0  ;;  %3073 = vst.msk [vmem:[#allocation2 + $0x11] sm:$0xff] %vm1044_vm3, %v16395_v21  ;;  %3074 = vst.msk [vmem:[#allocation2 + $0x21] sm:$0xff] %vm1044_vm3, %v16394_v36 }
 0x5a7   :  { %3075 = vst.msk [vmem:[#allocation2 + $0x31] sm:$0xff] %vm1044_vm3, %v16393_v17  ;;  %3076 = vst.msk [vmem:[#allocation2 + $0x41] sm:$0xff] %vm1044_vm3, %v16392_v62  ;;  %v16383_v39 = vmax.f32 %v13319_v41, 0.0  ;;  %v16382_v8 = vmax.f32 %v13322_v37, 0.0  ;;  %v16381_v30 = vmax.f32 %v13325_v58, 0.0  ;;  %v16380_v12 = vmax.f32 %v13328_v45, 0.0 }
 0x5a8   :  { %3077 = vst.msk [vmem:[#allocation2 + $0x51] sm:$0xff] %vm1044_vm3, %v16391_v16  ;;  %3078 = vst.msk [vmem:[#allocation2 + $0x61] sm:$0xff] %vm1044_vm3, %v16390_v53  ;;  %v9699_v34 = vpack.c.bf16 %v3060_v27, %v3059_v59  ;;  %v9702_v42 = vpack.c.bf16 %v3062_v29, %v3061_v32  ;;  %v9705_v22 = vpack.c.bf16 %v3064_v25, %v3063_v51  ;;  %v3069_v29 = vld [vmem:[#allocation11 + $0x70] sm:$0xff]  ;;  %v3071_v51 = vld [vmem:[#allocation11 + $0x80] sm:$0xff] }
 0x5a9   :  { %3079 = vst.msk [vmem:[#allocation2 + $0x71] sm:$0xff] %vm1044_vm3, %v16389_v2  ;;  %3080 = vst.msk [vmem:[#allocation2 + $0x81] sm:$0xff] %vm1044_vm3, %v16388_v10  ;;  %v9708_v6 = vpack.c.bf16 %v3066_v23, %v3065_v11  ;;  %v9711_v20 = vpack.c.bf16 %v3068_v26, %v3067_v35  ;;  %v3072_v25 = vld [vmem:[#allocation11 + $0x88] sm:$0xff] }
 0x5aa   :  { %3081 = vst.msk [vmem:[#allocation2 + $0xb1] sm:$0xff] %vm1044_vm3, %v16387_v52  ;;  %3082 = vst.msk [vmem:[#allocation2 + $0xc1] sm:$0xff] %vm1044_vm3, %v16386_v9  ;;  %9700 = vmatpush1.bf16.msra.mxu0 %v9699_v34  ;;  %v3070_v34 = vld [vmem:[#allocation11 + $0x78] sm:$0xff] }
 0x5ab   :  { %3083 = vst.msk [vmem:[#allocation2 + $0xd1] sm:$0xff] %vm1044_vm3, %v16385_v15  ;;  %3084 = vst.msk [vmem:[#allocation2 + $0xe1] sm:$0xff] %vm1044_vm3, %v16384_v40  ;;  %9701 = vmatprep.subr.bf16.mxu0 %v16378_v56 }
 0x5ac   :  { %3085 = vst.msk [vmem:[#allocation2 + $0xf1] sm:$0xff] %vm1044_vm3, %v16383_v39  ;;  %3086 = vst.msk [vmem:[#allocation2 + $0x101] sm:$0xff] %vm1044_vm3, %v16382_v8 }
 0x5ad   :  { %3087 = vst.msk [vmem:[#allocation2 + $0x111] sm:$0xff] %vm1044_vm3, %v16381_v30  ;;  %3088 = vst.msk [vmem:[#allocation2 + $0x121] sm:$0xff] %vm1044_vm3, %v16380_v12  ;;  %v3217_v46 = vld [vmem:[#allocation2 + $0x22] sm:$0xff]  ;;  %v3122_v28 = vld [vmem:[#allocation2 + $0x12] sm:$0xff] }
 0x5ae   :  { %v3106_v44 = vld [vmem:[#allocation2 + $0x11] sm:$0xff]  ;;  %8815 = vmatprep.mubr.msk.f32.mxu0 %vm1044_vm3, %v3217_v46  ;;  %v10231_v3 = vpack.i.bf16 %v3122_v28, %v3121_v61  ;;  %9703 = vmatpush1.bf16.msra.mxu0 %v9702_v42  ;;  %v3154_v55 = vld [vmem:[#allocation2 + $0x21] sm:$0xff]  ;;  %v10246_v1 = vpack.i.bf16 %v3217_v46, %v3122_v28 }
 0x5af   :  { %v10226_v18 = vpack.i.bf16 %v3106_v44, %v3105_v48  ;;  %v13396_v57 = vld [vmem:[#allocation2 + $0x10] sm:$0xff]  ;;  %v13398_v7 = vld [vmem:[#allocation2 + $0x20] sm:$0xff]  ;;  %9704 = vmatprep.subr.bf16.mxu0 %v16378_v56  ;;  %v10241_v33 = vpack.i.bf16 %v3154_v55, %v3106_v44  ;;  %v9714_v48 = vpack.c.bf16 %v3070_v34, %v3069_v29 }
 0x5b0   :  { %10232 = vrot.lane.b32.xlu0 %v10231_v3, %s11497_s0  ;;  %v10236_v13 = vpack.i.bf16 %v13398_v7, %v13396_v57  ;;  %v13405_v24 = vld [vmem:[#allocation2 + $0x30] sm:$0xff]  ;;  %v13415_v27 = vld [vmem:[#allocation2 + $0x40] sm:$0xff]  ;;  %v9717_v3 = vpack.c.bf16 %v3072_v25, %v3071_v51 }
 0x5b1   :  { %10227 = vrot.lane.b32.xlu1 %v10226_v18, %s11495_s17  ;;  %v10251_v50 = vpack.i.bf16 %v13405_v24, %v13398_v7  ;;  %v3108_v38 = vld [vmem:[#allocation2 + $0x31] sm:$0xff]  ;;  %v10271_v61 = vpack.i.bf16 %v13415_v27, %v13405_v24  ;;  %v13425_v28 = vld [vmem:[#allocation2 + $0x42] sm:$0xff] }
 0x5b2   :  { %9706 = vmatpush1.bf16.msra.mxu0 %v9705_v22  ;;  %v10261_v59 = vpack.i.bf16 %v3108_v38, %v3154_v55  ;;  %v13417_v32 = vld [vmem:[#allocation2 + $0x32] sm:$0xff]  ;;  %v3156_v44 = vld [vmem:[#allocation2 + $0x41] sm:$0xff] }
 0x5b3   :  { %9707 = vmatprep.subr.bf16.mxu0 %v16378_v56  ;;  %v10266_v42 = vpack.i.bf16 %v13417_v32, %v3217_v46  ;;  %v10281_v18 = vpack.i.bf16 %v13425_v28, %v13417_v32  ;;  %v10276_v22 = vpack.i.bf16 %v3156_v44, %v3108_v38  ;;  %v3204_v11 = vld [vmem:[#allocation2 + $0x51] sm:$0xff]  ;;  %v13444_v35 = vld [vmem:[#allocation2 + $0x60] sm:$0xff] }
 0x5b4   :  { %10242 = vrot.lane.b32.xlu0 %v10241_v33, %s11501_s8  ;;  %v13432_v46 = vld [vmem:[#allocation2 + $0x50] sm:$0xff]  ;;  %v10291_v23 = vpack.i.bf16 %v3204_v11, %v3156_v44  ;;  %v13469_v25 = vld [vmem:[#allocation2 + $0x82] sm:$0xff] }
 0x5b5   :  { %10237 = vrot.lane.b32.xlu1 %v10236_v13, %s11499_s21  ;;  %v10286_v55 = vpack.i.bf16 %v13432_v46, %v13415_v27  ;;  %v13438_v33 = vld [vmem:[#allocation2 + $0x52] sm:$0xff]  ;;  %v3160_v44 = vld [vmem:[#allocation2 + $0x81] sm:$0xff] }
 0x5b6   :  { %9709 = vmatpush1.bf16.msra.mxu0 %v9708_v6  ;;  %v10301_v13 = vpack.i.bf16 %v13438_v33, %v13425_v28  ;;  %v3158_v6 = vld [vmem:[#allocation2 + $0x61] sm:$0xff]  ;;  %v3112_v29 = vld [vmem:[#allocation2 + $0x71] sm:$0xff] }
 0x5b7   :  { %9710 = vmatprep.subr.bf16.mxu0 %v16378_v56  ;;  %v10311_v26 = vpack.i.bf16 %v3158_v6, %v3204_v11  ;;  %v10331_v34 = vpack.i.bf16 %v3112_v29, %v3158_v6  ;;  %v3192_v11 = vld [vmem:[#allocation2 + $0x90] sm:$0xff]  ;;  %v3168_v8 = vld [vmem:[#allocation2 + $0x121] sm:$0xff] }
 0x5b8   :  { %10252 = vrot.lane.b32.xlu0 %v10251_v50, %s11503_s26  ;;  %v10306_v50 = vpack.i.bf16 %v13444_v35, %v13432_v46  ;;  %v3130_v6 = vld [vmem:[#allocation2 + $0xb2] sm:$0xff] }
 0x5b9   :  { %10247 = vrot.lane.b32.xlu1 %v10246_v1, %s11504_s12  ;;  %v13450_v1 = vld [vmem:[#allocation2 + $0x70] sm:$0xff] }
 0x5ba   :  { %9712 = vmatpush1.bf16.msra.mxu0 %v9711_v20  ;;  %v13452_v20 = vld [vmem:[#allocation2 + $0x62] sm:$0xff]  ;;  %v10321_v38 = vpack.i.bf16 %v13450_v1, %v13444_v35  ;;  %v3120_v12 = vld [vmem:[#allocation2 + $0x111] sm:$0xff] }
 0x5bb   :  { %9713 = vmatprep.subr.bf16.mxu0 %v16378_v56  ;;  %v13544_v30 = vld [vmem:[#allocation2 + $0x112] sm:$0xff] }
 0x5bc   :  { %10262 = vrot.lane.b32.xlu0 %v10261_v59, %s11495_s17 }
 0x5bd   :  { %10257 = vrot.lane.b32.xlu1 %v10261_v59, %s11505_s28  ;;  %v10316_v59 = vpack.i.bf16 %v13452_v20, %v13438_v33 }
 0x5be   :  { %9715 = vmatpush1.bf16.msra.mxu0 %v9714_v48 }
 0x5bf   :  { %9716 = vmatprep.subr.bf16.mxu0 %v16378_v56  ;;  %v13534_v56 = vld [vmem:[#allocation2 + $0x102] sm:$0xff] }
 0x5c0   :  { %10272 = vrot.lane.b32.xlu0 %v10271_v61, %s11499_s21  ;;  %v3144_v61 = vld [vmem:[#allocation2 + $0x80] sm:$0xff] }
 0x5c1   :  { %10267 = vrot.lane.b32.xlu1 %v10266_v42, %s11497_s0  ;;  %v13462_v42 = vld [vmem:[#allocation2 + $0x72] sm:$0xff]  ;;  %v10341_v48 = vpack.i.bf16 %v3144_v61, %v13450_v1 }
 0x5c2   :  { %9718 = vmatpush1.bf16.msra.mxu0 %v9717_v3  ;;  %v10336_v51 = vpack.i.bf16 %v13462_v42, %v13452_v20  ;;  %v10351_v3 = vpack.i.bf16 %v13469_v25, %v13462_v42 }
 0x5c4   :  { %10282 = vrot.lane.b32.xlu0 %v10281_v18, %s11504_s12  ;;  %v10346_v18 = vpack.i.bf16 %v3160_v44, %v3112_v29  ;;  %v13479_v29 = vld [vmem:[#allocation2 + $0xb0] sm:$0xff] }
 0x5c5   :  { %10277 = vrot.lane.b32.xlu1 %v10276_v22, %s11501_s8  ;;  %v3208_v22 = vld [vmem:[#allocation2 + $0x91] sm:$0xff] }
 0x5c8   :  { %10292 = vrot.lane.b32.xlu0 %v10291_v23, %s11505_s28 }
 0x5c9   :  { %10287 = vrot.lane.b32.xlu1 %v10286_v55, %s11503_s26  ;;  %v10356_v55 = vpack.i.bf16 %v3192_v11, %v3144_v61  ;;  %v3116_v11 = vld [vmem:[#allocation2 + $0xd1] sm:$0xff] }
 0x5cc   :  { %10302 = vrot.lane.b32.xlu0 %v10301_v13, %s11497_s0  ;;  %v3129_v13 = vld [vmem:[#allocation2 + $0xa2] sm:$0xff] }
 0x5cd   :  { %10297 = vrot.lane.b32.xlu1 %v10291_v23, %s11495_s17  ;;  %v10361_v23 = vpack.i.bf16 %v3208_v22, %v3160_v44  ;;  %v13487_v44 = vld [vmem:[#allocation2 + $0xd0] sm:$0xff] }
 0x5d0   :  { %10312 = vrot.lane.b32.xlu0 %v10311_v26, %s11501_s8  ;;  %v3113_v26 = vld [vmem:[#allocation2 + $0xa1] sm:$0xff] }
 0x5d1   :  { %10307 = vrot.lane.b32.xlu1 %v10306_v50, %s11499_s21  ;;  %v3114_v50 = vld [vmem:[#allocation2 + $0xb1] sm:$0xff] }
 0x5d4   :  { %10322 = vrot.lane.b32.xlu0 %v10321_v38, %s11503_s26  ;;  %v10371_v38 = vpack.i.bf16 %v3130_v6, %v3129_v13  ;;  %v13500_v13 = vld [vmem:[#allocation2 + $0xd2] sm:$0xff] }
 0x5d5   :  { %10317 = vrot.lane.b32.xlu1 %v10316_v59, %s11504_s12  ;;  %v10366_v59 = vpack.i.bf16 %v3114_v50, %v3113_v26 }
 0x5d8   :  { %10332 = vrot.lane.b32.xlu0 %v10331_v34, %s11495_s17 }
 0x5d9   :  { %10327 = vrot.lane.b32.xlu1 %v10331_v34, %s11505_s28  ;;  %v3162_v34 = vld [vmem:[#allocation2 + $0xc1] sm:$0xff] }
 0x5da   :  { %v10381_v61 = vpack.i.bf16 %v3162_v34, %v3114_v50  ;;  %v13508_v50 = vld [vmem:[#allocation2 + $0xe2] sm:$0xff] }
 0x5dc   :  { %10342 = vrot.lane.b32.xlu0 %v10341_v48, %s11499_s21  ;;  %v13481_v48 = vld [vmem:[#allocation2 + $0xc0] sm:$0xff] }
 0x5dd   :  { %10337 = vrot.lane.b32.xlu1 %v10336_v51, %s11497_s0  ;;  %v10376_v51 = vpack.i.bf16 %v13481_v48, %v13479_v29 }
 0x5e0   :  { %10352 = vrot.lane.b32.xlu0 %v10351_v3, %s11504_s12  ;;  %v13489_v3 = vld [vmem:[#allocation2 + $0xc2] sm:$0xff] }
 0x5e1   :  { %10347 = vrot.lane.b32.xlu1 %v10346_v18, %s11501_s8  ;;  %v10391_v18 = vpack.i.bf16 %v13487_v44, %v13481_v48  ;;  %v10386_v22 = vpack.i.bf16 %v13489_v3, %v3130_v6  ;;  %v10406_v6 = vpack.i.bf16 %v13500_v13, %v13489_v3 }
 0x5e4   :  { %10362 = vrot.lane.b32.xlu0 %v10361_v23, %s11505_s28  ;;  %v10401_v23 = vpack.i.bf16 %v3116_v11, %v3162_v34 }
 0x5e5   :  { %10357 = vrot.lane.b32.xlu1 %v10356_v55, %s11503_s26  ;;  %v13498_v55 = vld [vmem:[#allocation2 + $0xe0] sm:$0xff] }
 0x5e6   :  { %v10411_v26 = vpack.i.bf16 %v13498_v55, %v13487_v44 }
 0x5e8   :  { %10372 = vrot.lane.b32.xlu0 %v10371_v38, %s11497_s0  ;;  %v3164_v38 = vld [vmem:[#allocation2 + $0xe1] sm:$0xff] }
 0x5e9   :  { %10367 = vrot.lane.b32.xlu1 %v10366_v59, %s11495_s17  ;;  %v10421_v59 = vpack.i.bf16 %v13508_v50, %v13500_v13  ;;  %v10416_v34 = vpack.i.bf16 %v3164_v38, %v3116_v11 }
 0x5ec   :  { %10382 = vrot.lane.b32.xlu0 %v10381_v61, %s11501_s8  ;;  %v3212_v61 = vld [vmem:[#allocation2 + $0xf1] sm:$0xff] }
 0x5ed   :  { %10377 = vrot.lane.b32.xlu1 %v10376_v51, %s11499_s21  ;;  %v13514_v51 = vld [vmem:[#allocation2 + $0xf0] sm:$0xff] }
 0x5f0   :  { %10392 = vrot.lane.b32.xlu0 %v10391_v18, %s11503_s26  ;;  %v10431_v18 = vpack.i.bf16 %v3212_v61, %v3164_v38 }
 0x5f1   :  { %10387 = vrot.lane.b32.xlu1 %v10386_v22, %s11504_s12  ;;  %v10426_v22 = vpack.i.bf16 %v13514_v51, %v13498_v55 }
 0x5f4   :  { %10402 = vrot.lane.b32.xlu0 %v10401_v23, %s11495_s17 }
 0x5f5   :  { %10397 = vrot.lane.b32.xlu1 %v10401_v23, %s11505_s28  ;;  %v13520_v23 = vld [vmem:[#allocation2 + $0xf2] sm:$0xff] }
 0x5f6   :  { %v10441_v11 = vpack.i.bf16 %v13520_v23, %v13508_v50 }
 0x5f8   :  { %10412 = vrot.lane.b32.xlu0 %v10411_v26, %s11499_s21  ;;  %v3166_v26 = vld [vmem:[#allocation2 + $0x101] sm:$0xff] }
 0x5f9   :  { %10407 = vrot.lane.b32.xlu1 %v10406_v6, %s11497_s0  ;;  %v13526_v6 = vld [vmem:[#allocation2 + $0x100] sm:$0xff]  ;;  %v10451_v38 = vpack.i.bf16 %v3166_v26, %v3212_v61  ;;  %v10471_v61 = vpack.i.bf16 %v3120_v12, %v3166_v26  ;;  %v3200_v26 = vld [vmem:[#allocation2 + $0x130] sm:$0xff] }
 0x5fc   :  { %10422 = vrot.lane.b32.xlu0 %v10421_v59, %s11504_s12  ;;  %v10446_v59 = vpack.i.bf16 %v13526_v6, %v13514_v51 }
 0x5fd   :  { %10417 = vrot.lane.b32.xlu1 %v10416_v34, %s11501_s8  ;;  %v13532_v34 = vld [vmem:[#allocation2 + $0x110] sm:$0xff] }
 0x600   :  { %10432 = vrot.lane.b32.xlu0 %v10431_v18, %s11505_s28 }
 0x601   :  { %10427 = vrot.lane.b32.xlu1 %v10426_v22, %s11503_s26  ;;  %v10461_v22 = vpack.i.bf16 %v13532_v34, %v13526_v6 }
 0x604   :  { %10442 = vrot.lane.b32.xlu0 %v10441_v11, %s11497_s0  ;;  %v10456_v11 = vpack.i.bf16 %v13534_v56, %v13520_v23 }
 0x605   :  { %10437 = vrot.lane.b32.xlu1 %v10431_v18, %s11495_s17  ;;  %v3152_v18 = vld [vmem:[#allocation2 + $0x120] sm:$0xff] }
 0x608   :  { %10452 = vrot.lane.b32.xlu0 %v10451_v38, %s11501_s8  ;;  %v10481_v38 = vpack.i.bf16 %v3152_v18, %v13532_v34 }
 0x609   :  { %10447 = vrot.lane.b32.xlu1 %v10446_v59, %s11499_s21  ;;  %v10476_v59 = vpack.i.bf16 %v13544_v30, %v13534_v56 }
 0x60c   :  { %10462 = vrot.lane.b32.xlu0 %v10461_v22, %s11503_s26  ;;  %v10486_v22 = vpack.i.bf16 %v3168_v8, %v3120_v12  ;;  %v3089_v12 = vld [vmem:[#allocation2] sm:$0xff] }
 0x60d   :  { %10457 = vrot.lane.b32.xlu1 %v10456_v11, %s11504_s12  ;;  %v13558_v11 = vld [vmem:[#allocation2 + $0x122] sm:$0xff] }
 0x610   :  { %10472 = vrot.lane.b32.xlu0 %v10471_v61, %s11495_s17 }
 0x611   :  { %10467 = vrot.lane.b32.xlu1 %v10471_v61, %s11505_s28  ;;  %v3216_v61 = vld [vmem:[#allocation2 + $0x131] sm:$0xff] }
 0x614   :  { %10482 = vrot.lane.b32.xlu0 %v10481_v38, %s11499_s21 }
 0x615   :  { %10477 = vrot.lane.b32.xlu1 %v10476_v59, %s11497_s0 }
 0x618   :  { %3533 = vrot.lane.b32.xlu0 %v13544_v30, %s11504_s12 }
 0x619   :  { %10487 = vrot.lane.b32.xlu1 %v10486_v22, %s11501_s8 }
 0x61c   :  { %3661 = vrot.lane.b32.xlu0 %v3168_v8, %s11505_s28 }
 0x61d   :  { %3597 = vrot.lane.b32.xlu1 %v3152_v18, %s11503_s26 }
 0x620   :  { %3599 = vrot.lane.b32.xlu0 %v3200_v26, %s11503_s26 }
 0x621   :  { %3535 = vrot.lane.b32.xlu1 %v13558_v11, %s11504_s12 }
 0x622   :  { %v10233_v38 = vpop.permute.xlu0 %10232 }
 0x623   :  { %v10228_v59 = vpop.permute.xlu1 %10227  ;;  %v10234_v40 = vunpack.i.l.bf16 %v10233_v38  ;;  %v10235_v52 = vunpack.i.h.bf16 %v10233_v38 }
 0x624   :  { %v10229_v39 = vunpack.i.l.bf16 %v10228_v59  ;;  %v10230_v22 = vunpack.i.h.bf16 %v10228_v59 }
 0x625   :  { %3663 = vrot.lane.b32.xlu1 %v3216_v61, %s11505_s28 }
 0x626   :  { %v3681_v8 = vsel %vm1044_vm3, %v3089_v12, %v10229_v39  ;;  %v10243_v18 = vpop.permute.xlu0 %10242  ;;  %v3682_v26 = vsel %vm1044_vm3, %v13396_v57, %v10230_v22 }
 0x627   :  { %v10238_v15 = vpop.permute.xlu1 %10237  ;;  %v10244_v10 = vunpack.i.l.bf16 %v10243_v18  ;;  %v3697_v2 = vsel %vm1078_vm5, %v3681_v8, %v10234_v40  ;;  %v10245_v61 = vunpack.i.h.bf16 %v10243_v18  ;;  %v3698_v59 = vsel %vm1078_vm5, %v3682_v26, %v10235_v52 }
 0x628   :  { %v10239_v9 = vunpack.i.l.bf16 %v10238_v15  ;;  %v10240_v53 = vunpack.i.h.bf16 %v10238_v15 }
 0x62a   :  { %v3713_v16 = vsel %vm1112_vm7, %v3697_v2, %v10239_v9  ;;  %v10253_v62 = vpop.permute.xlu0 %10252  ;;  %v3714_v38 = vsel %vm1112_vm7, %v3698_v59, %v10240_v53 }
 0x62b   :  { %v10248_v17 = vpop.permute.xlu1 %10247  ;;  %v10254_v39 = vunpack.i.l.bf16 %v10253_v62  ;;  %v3729_v12 = vsel %vm286_vm0, %v3713_v16, %v10244_v10  ;;  %v10255_v15 = vunpack.i.h.bf16 %v10253_v62  ;;  %v3730_v9 = vsel %vm286_vm0, %v3714_v38, %v10245_v61 }
 0x62c   :  { %v10249_v36 = vunpack.i.l.bf16 %v10248_v17  ;;  %v10250_v21 = vunpack.i.h.bf16 %v10248_v17 }
 0x62e   :  { %v3745_v40 = vsel %vm2237_vm10, %v3729_v12, %v10249_v36  ;;  %v10263_v8 = vpop.permute.xlu0 %10262  ;;  %v3746_v26 = vsel %vm2237_vm10, %v3730_v9, %v10250_v21 }
 0x62f   :  { %v10258_v45 = vpop.permute.xlu1 %10257  ;;  %v10264_v22 = vunpack.i.l.bf16 %v10263_v8  ;;  %v3761_v2 = vsel %vm2254_vm11, %v3745_v40, %v10254_v39  ;;  %v10265_v16 = vunpack.i.h.bf16 %v10263_v8  ;;  %v3762_v61 = vsel %vm2254_vm11, %v3746_v26, %v10255_v15 }
 0x630   :  { %v10259_v57 = vunpack.i.l.bf16 %v10258_v45  ;;  %v10260_v18 = vunpack.i.h.bf16 %v10258_v45 }
 0x631   :  { %v3683_v62 = vsel %vm1044_vm3, %v13398_v7, %v10264_v22  ;;  %v3684_v21 = vsel %vm1044_vm3, %v13405_v24, %v10265_v16 }
 0x632   :  { %v3777_v52 = vsel %vm2271_vm12, %v3761_v2, %v10259_v57  ;;  %v10273_v10 = vpop.permute.xlu0 %10272  ;;  %v3778_v39 = vsel %vm2271_vm12, %v3762_v61, %v10260_v18 }
 0x633   :  { %v10268_v53 = vpop.permute.xlu1 %10267  ;;  %3906 = vmatmul.mubr.f32.vlgmr.msra.gmra.mrb[32].mxu0 %v3777_v52  ;;  %v10274_v59 = vunpack.i.l.bf16 %v10273_v10  ;;  %v10275_v12 = vunpack.i.h.bf16 %v10273_v10 }
 0x634   :  { %v10270_v17 = vunpack.i.h.bf16 %v10268_v53  ;;  %v10269_v36 = vunpack.i.l.bf16 %v10268_v53  ;;  %8816 = vmatprep.mubr.msk.f32.mxu0 %vm1044_vm3, %v13417_v32 }
 0x636   :  { %v3699_v45 = vsel %vm1078_vm5, %v3683_v62, %v10269_v36  ;;  %v10283_v38 = vpop.permute.xlu0 %10282  ;;  %v3700_v8 = vsel %vm1078_vm5, %v3684_v21, %v10270_v17 }
 0x637   :  { %v10278_v40 = vpop.permute.xlu1 %10277  ;;  %3911 = vmatmul.mubr.f32.gmra.mrb[34].mxu0 %v3778_v39  ;;  %v10284_v7 = vunpack.i.l.bf16 %v10283_v38  ;;  %v3715_v15 = vsel %vm1112_vm7, %v3699_v45, %v10274_v59  ;;  %v10285_v2 = vunpack.i.h.bf16 %v10283_v38  ;;  %v3716_v9 = vsel %vm1112_vm7, %v3700_v8, %v10275_v12 }
 0x638   :  { %v10280_v32 = vunpack.i.h.bf16 %v10278_v40  ;;  %v10279_v57 = vunpack.i.l.bf16 %v10278_v40  ;;  %8817 = vmatprep.mubr.msk.f32.mxu0 %vm1044_vm3, %v13425_v28 }
 0x63a   :  { %v3731_v22 = vsel %vm286_vm0, %v3715_v15, %v10279_v57  ;;  %v10293_v24 = vpop.permute.xlu0 %10292  ;;  %v3732_v52 = vsel %vm286_vm0, %v3716_v9, %v10280_v32 }
 0x63b   :  { %v10288_v18 = vpop.permute.xlu1 %10287  ;;  %v10294_v26 = vunpack.i.l.bf16 %v10293_v24  ;;  %v3747_v53 = vsel %vm2237_vm10, %v3731_v22, %v10284_v7  ;;  %v10295_v28 = vunpack.i.h.bf16 %v10293_v24  ;;  %v3748_v61 = vsel %vm2237_vm10, %v3732_v52, %v10285_v2 }
 0x63c   :  { %v10290_v16 = vunpack.i.h.bf16 %v10288_v18  ;;  %v10289_v10 = vunpack.i.l.bf16 %v10288_v18 }
 0x63e   :  { %v3763_v17 = vsel %vm2254_vm11, %v3747_v53, %v10289_v10  ;;  %v10303_v36 = vpop.permute.xlu0 %10302  ;;  %v3764_v39 = vsel %vm2254_vm11, %v3748_v61, %v10290_v16 }
 0x63f   :  { %v10298_v62 = vpop.permute.xlu1 %10297  ;;  %v3779_v59 = vsel %vm2271_vm12, %v3763_v17, %v10294_v26  ;;  %v10304_v21 = vunpack.i.l.bf16 %v10303_v36  ;;  %v3780_v32 = vsel %vm2271_vm12, %v3764_v39, %v10295_v28  ;;  %v10305_v7 = vunpack.i.h.bf16 %v10303_v36 }
 0x640   :  { %v10299_v45 = vunpack.i.l.bf16 %v10298_v62  ;;  %3916 = vmatmul.mubr.f32.gmra.mrb[36].mxu0 %v3779_v59  ;;  %v10300_v12 = vunpack.i.h.bf16 %v10298_v62 }
 0x641   :  { %8818 = vmatprep.mubr.msk.f32.mxu0 %vm1044_vm3, %v13438_v33 }
 0x642   :  { %v3685_v38 = vsel %vm1044_vm3, %v13415_v27, %v10299_v45  ;;  %v10313_v40 = vpop.permute.xlu0 %10312  ;;  %v3686_v33 = vsel %vm1044_vm3, %v13432_v46, %v10300_v12 }
 0x643   :  { %v10308_v8 = vpop.permute.xlu1 %10307  ;;  %v10314_v15 = vunpack.i.l.bf16 %v10313_v40  ;;  %v3701_v22 = vsel %vm1078_vm5, %v3685_v38, %v10304_v21  ;;  %v10315_v52 = vunpack.i.h.bf16 %v10313_v40  ;;  %v3702_v26 = vsel %vm1078_vm5, %v3686_v33, %v10305_v7 }
 0x644   :  { %v10309_v57 = vunpack.i.l.bf16 %v10308_v8  ;;  %3921 = vmatmul.mubr.f32.gmra.mrb[38].mxu0 %v3780_v32  ;;  %v10310_v2 = vunpack.i.h.bf16 %v10308_v8 }
 0x645   :  { %8819 = vmatprep.mubr.msk.f32.mxu0 %vm1044_vm3, %v13452_v20 }
 0x646   :  { %v3717_v9 = vsel %vm1112_vm7, %v3701_v22, %v10309_v57  ;;  %v10323_v27 = vpop.permute.xlu0 %10322  ;;  %v3718_v53 = vsel %vm1112_vm7, %v3702_v26, %v10310_v2 }
 0x647   :  { %v10318_v24 = vpop.permute.xlu1 %10317  ;;  %v10324_v16 = vunpack.i.l.bf16 %v10323_v27  ;;  %v3733_v10 = vsel %vm286_vm0, %v3717_v9, %v10314_v15  ;;  %v10325_v62 = vunpack.i.h.bf16 %v10323_v27  ;;  %v3734_v45 = vsel %vm286_vm0, %v3718_v53, %v10315_v52 }
 0x648   :  { %v10319_v18 = vunpack.i.l.bf16 %v10318_v24  ;;  %v10320_v17 = vunpack.i.h.bf16 %v10318_v24 }
 0x64a   :  { %v3749_v20 = vsel %vm2237_vm10, %v3733_v10, %v10319_v18  ;;  %v10333_v28 = vpop.permute.xlu0 %10332  ;;  %v3750_v12 = vsel %vm2237_vm10, %v3734_v45, %v10320_v17 }
 0x64b   :  { %v10328_v36 = vpop.permute.xlu1 %10327  ;;  %v10334_v59 = vunpack.i.l.bf16 %v10333_v28  ;;  %v3765_v61 = vsel %vm2254_vm11, %v3749_v20, %v10324_v16  ;;  %v10335_v38 = vunpack.i.h.bf16 %v10333_v28  ;;  %v3766_v22 = vsel %vm2254_vm11, %v3750_v12, %v10325_v62 }
 0x64c   :  { %v10329_v46 = vunpack.i.l.bf16 %v10328_v36  ;;  %v10330_v39 = vunpack.i.h.bf16 %v10328_v36 }
 0x64d   :  { %v3687_v7 = vsel %vm1044_vm3, %v13444_v35, %v10334_v59  ;;  %v3688_v9 = vsel %vm1044_vm3, %v13450_v1, %v10335_v38 }
 0x64e   :  { %v3781_v21 = vsel %vm2271_vm12, %v3765_v61, %v10329_v46  ;;  %v10343_v40 = vpop.permute.xlu0 %10342  ;;  %v3782_v2 = vsel %vm2271_vm12, %v3766_v22, %v10330_v39 }
 0x64f   :  { %v10338_v8 = vpop.permute.xlu1 %10337  ;;  %3926 = vmatmul.mubr.f32.gmra.mrb[40].mxu0 %v3781_v21  ;;  %v10344_v15 = vunpack.i.l.bf16 %v10343_v40  ;;  %v10345_v27 = vunpack.i.h.bf16 %v10343_v40  ;;  %v3097_v21 = vld [vmem:[#allocation2 + $0xa0] sm:$0xff] }
 0x650   :  { %v10340_v32 = vunpack.i.h.bf16 %v10338_v8  ;;  %v10339_v57 = vunpack.i.l.bf16 %v10338_v8  ;;  %8820 = vmatprep.mubr.msk.f32.mxu0 %vm1044_vm3, %v13462_v42 }
 0x652   :  { %v3703_v33 = vsel %vm1078_vm5, %v3687_v7, %v10339_v57  ;;  %v10353_v24 = vpop.permute.xlu0 %10352  ;;  %v3704_v52 = vsel %vm1078_vm5, %v3688_v9, %v10340_v32 }
 0x653   :  { %v10348_v18 = vpop.permute.xlu1 %10347  ;;  %3931 = vmatmul.mubr.f32.gmra.mrb[42].mxu0 %v3782_v2  ;;  %v10354_v35 = vunpack.i.l.bf16 %v10353_v24  ;;  %v3719_v16 = vsel %vm1112_vm7, %v3703_v33, %v10344_v15  ;;  %v10355_v53 = vunpack.i.h.bf16 %v10353_v24  ;;  %v3720_v17 = vsel %vm1112_vm7, %v3704_v52, %v10345_v27 }
 0x654   :  { %v10350_v42 = vunpack.i.h.bf16 %v10348_v18  ;;  %v10349_v26 = vunpack.i.l.bf16 %v10348_v18  ;;  %8821 = vmatprep.mubr.msk.f32.mxu0 %vm1044_vm3, %v13469_v25  ;;  %v13635_v25 = vld [vmem:[#allocation2 + $0x92] sm:$0xff] }
 0x656   :  { %v3735_v10 = vsel %vm286_vm0, %v3719_v16, %v10349_v26  ;;  %v10363_v1 = vpop.permute.xlu0 %10362  ;;  %v3736_v28 = vsel %vm286_vm0, %v3720_v17, %v10350_v42 }
 0x657   :  { %v10358_v20 = vpop.permute.xlu1 %10357  ;;  %v10364_v36 = vunpack.i.l.bf16 %v10363_v1  ;;  %v3751_v59 = vsel %vm2237_vm10, %v3735_v10, %v10354_v35  ;;  %v10365_v45 = vunpack.i.h.bf16 %v10363_v1  ;;  %v3752_v40 = vsel %vm2237_vm10, %v3736_v28, %v10355_v53 }
 0x658   :  { %v10360_v46 = vunpack.i.h.bf16 %v10358_v20  ;;  %v10359_v62 = vunpack.i.l.bf16 %v10358_v20 }
 0x65a   :  { %v3767_v61 = vsel %vm2254_vm11, %v3751_v59, %v10359_v62  ;;  %v10373_v39 = vpop.permute.xlu0 %10372  ;;  %v3768_v32 = vsel %vm2254_vm11, %v3752_v40, %v10360_v46 }
 0x65b   :  { %v10368_v12 = vpop.permute.xlu1 %10367  ;;  %v3783_v38 = vsel %vm2271_vm12, %v3767_v61, %v10364_v36  ;;  %v10374_v57 = vunpack.i.l.bf16 %v10373_v39  ;;  %v3784_v2 = vsel %vm2271_vm12, %v3768_v32, %v10365_v45  ;;  %v10375_v27 = vunpack.i.h.bf16 %v10373_v39 }
 0x65c   :  { %v10369_v8 = vunpack.i.l.bf16 %v10368_v12  ;;  %3936 = vmatmul.mubr.f32.gmra.mrb[44].mxu0 %v3783_v38  ;;  %v10370_v7 = vunpack.i.h.bf16 %v10368_v12 }
 0x65d   :  { %8822 = vmatprep.mubr.msk.f32.mxu0 %vm1044_vm3, %v13635_v25 }
 0x65e   :  { %v3689_v15 = vsel %vm1044_vm3, %v3097_v21, %v10369_v8  ;;  %v10383_v22 = vpop.permute.xlu0 %10382  ;;  %v3690_v52 = vsel %vm1044_vm3, %v13479_v29, %v10370_v7 }
 0x65f   :  { %v10378_v33 = vpop.permute.xlu1 %10377  ;;  %v10384_v24 = vunpack.i.l.bf16 %v10383_v22  ;;  %v3705_v18 = vsel %vm1078_vm5, %v3689_v15, %v10374_v57  ;;  %v10385_v53 = vunpack.i.h.bf16 %v10383_v22  ;;  %v3706_v17 = vsel %vm1078_vm5, %v3690_v52, %v10375_v27 }
 0x660   :  { %v10379_v9 = vunpack.i.l.bf16 %v10378_v33  ;;  %3941 = vmatmul.mubr.f32.gmra.mrb[46].mxu0 %v3784_v2  ;;  %v10380_v42 = vunpack.i.h.bf16 %v10378_v33 }
 0x661   :  { %8823 = vmatprep.mubr.msk.f32.mxu0 %vm1044_vm3, %v13489_v3 }
 0x662   :  { %v3721_v26 = vsel %vm1112_vm7, %v3705_v18, %v10379_v9  ;;  %v10393_v35 = vpop.permute.xlu0 %10392  ;;  %v3722_v28 = vsel %vm1112_vm7, %v3706_v17, %v10380_v42 }
 0x663   :  { %v10388_v16 = vpop.permute.xlu1 %10387  ;;  %v10394_v1 = vunpack.i.l.bf16 %v10393_v35  ;;  %v3737_v20 = vsel %vm286_vm0, %v3721_v26, %v10384_v24  ;;  %v10395_v59 = vunpack.i.h.bf16 %v10393_v35  ;;  %v3738_v39 = vsel %vm286_vm0, %v3722_v28, %v10385_v53 }
 0x664   :  { %v10389_v10 = vunpack.i.l.bf16 %v10388_v16  ;;  %v10390_v36 = vunpack.i.h.bf16 %v10388_v16 }
 0x666   :  { %v3753_v3 = vsel %vm2237_vm10, %v3737_v20, %v10389_v10  ;;  %v10403_v46 = vpop.permute.xlu0 %10402  ;;  %v3754_v38 = vsel %vm2237_vm10, %v3738_v39, %v10390_v36 }
 0x667   :  { %v10398_v62 = vpop.permute.xlu1 %10397  ;;  %v10404_v61 = vunpack.i.l.bf16 %v10403_v46  ;;  %v3769_v45 = vsel %vm2254_vm11, %v3753_v3, %v10394_v1  ;;  %v10405_v40 = vunpack.i.h.bf16 %v10403_v46  ;;  %v3770_v33 = vsel %vm2254_vm11, %v3754_v38, %v10395_v59 }
 0x668   :  { %v10399_v29 = vunpack.i.l.bf16 %v10398_v62  ;;  %v10400_v21 = vunpack.i.h.bf16 %v10398_v62 }
 0x669   :  { %v3691_v15 = vsel %vm1044_vm3, %v13481_v48, %v10404_v61  ;;  %v3692_v27 = vsel %vm1044_vm3, %v13487_v44, %v10405_v40 }
 0x66a   :  { %v3785_v12 = vsel %vm2271_vm12, %v3769_v45, %v10399_v29  ;;  %v10413_v8 = vpop.permute.xlu0 %10412  ;;  %v3786_v9 = vsel %vm2271_vm12, %v3770_v33, %v10400_v21 }
 0x66b   :  { %v10408_v32 = vpop.permute.xlu1 %10407  ;;  %3946 = vmatmul.mubr.f32.gmra.mrb[48].mxu0 %v3785_v12  ;;  %v10414_v22 = vunpack.i.l.bf16 %v10413_v8  ;;  %v10415_v24 = vunpack.i.h.bf16 %v10413_v8 }
 0x66c   :  { %v10410_v57 = vunpack.i.h.bf16 %v10408_v32  ;;  %v10409_v7 = vunpack.i.l.bf16 %v10408_v32  ;;  %8824 = vmatprep.mubr.msk.f32.mxu0 %vm1044_vm3, %v13500_v13 }
 0x66e   :  { %v3707_v2 = vsel %vm1078_vm5, %v3691_v15, %v10409_v7  ;;  %v10423_v18 = vpop.permute.xlu0 %10422  ;;  %v3708_v42 = vsel %vm1078_vm5, %v3692_v27, %v10410_v57 }
 0x66f   :  { %v10418_v52 = vpop.permute.xlu1 %10417  ;;  %3951 = vmatmul.mubr.f32.gmra.mrb[50].mxu0 %v3786_v9  ;;  %v10424_v48 = vunpack.i.l.bf16 %v10423_v18  ;;  %v3723_v35 = vsel %vm1112_vm7, %v3707_v2, %v10414_v22  ;;  %v10425_v10 = vunpack.i.h.bf16 %v10423_v18  ;;  %v3724_v53 = vsel %vm1112_vm7, %v3708_v42, %v10415_v24 }
 0x670   :  { %v10420_v13 = vunpack.i.h.bf16 %v10418_v52  ;;  %v10419_v26 = vunpack.i.l.bf16 %v10418_v52  ;;  %8825 = vmatprep.mubr.msk.f32.mxu0 %vm1044_vm3, %v13508_v50 }
 0x672   :  { %v3739_v16 = vsel %vm286_vm0, %v3723_v35, %v10419_v26  ;;  %v10433_v44 = vpop.permute.xlu0 %10432  ;;  %v3740_v1 = vsel %vm286_vm0, %v3724_v53, %v10420_v13 }
 0x673   :  { %v10428_v17 = vpop.permute.xlu1 %10427  ;;  %v10434_v20 = vunpack.i.l.bf16 %v10433_v44  ;;  %v3755_v3 = vsel %vm2237_vm10, %v3739_v16, %v10424_v48  ;;  %v10435_v50 = vunpack.i.h.bf16 %v10433_v44  ;;  %v3756_v61 = vsel %vm2237_vm10, %v3740_v1, %v10425_v10 }
 0x674   :  { %v10430_v28 = vunpack.i.h.bf16 %v10428_v17  ;;  %v10429_v36 = vunpack.i.l.bf16 %v10428_v17 }
 0x676   :  { %v3771_v46 = vsel %vm2254_vm11, %v3755_v3, %v10429_v36  ;;  %v10443_v62 = vpop.permute.xlu0 %10442  ;;  %v3772_v39 = vsel %vm2254_vm11, %v3756_v61, %v10430_v28 }
 0x677   :  { %v10438_v29 = vpop.permute.xlu1 %10437  ;;  %v3787_v59 = vsel %vm2271_vm12, %v3771_v46, %v10434_v20  ;;  %v10444_v21 = vunpack.i.l.bf16 %v10443_v62  ;;  %v3788_v32 = vsel %vm2271_vm12, %v3772_v39, %v10435_v50  ;;  %v10445_v7 = vunpack.i.h.bf16 %v10443_v62 }
 0x678   :  { %v10439_v45 = vunpack.i.l.bf16 %v10438_v29  ;;  %3956 = vmatmul.mubr.f32.gmra.mrb[52].mxu0 %v3787_v59  ;;  %v10440_v12 = vunpack.i.h.bf16 %v10438_v29 }
 0x679   :  { %8826 = vmatprep.mubr.msk.f32.mxu0 %vm1044_vm3, %v13520_v23 }
 0x67a   :  { %v3693_v38 = vsel %vm1044_vm3, %v13498_v55, %v10439_v45  ;;  %v10453_v40 = vpop.permute.xlu0 %10452  ;;  %v3694_v23 = vsel %vm1044_vm3, %v13514_v51, %v10440_v12 }
 0x67b   :  { %v10448_v8 = vpop.permute.xlu1 %10447  ;;  %v10454_v15 = vunpack.i.l.bf16 %v10453_v40  ;;  %v3709_v22 = vsel %vm1078_vm5, %v3693_v38, %v10444_v21  ;;  %v10455_v24 = vunpack.i.h.bf16 %v10453_v40  ;;  %v3710_v18 = vsel %vm1078_vm5, %v3694_v23, %v10445_v7  ;;  %v3232_v23 = vld [vmem:[#allocation2 + $0x132] sm:$0xff] }
 0x67c   :  { %v10449_v57 = vunpack.i.l.bf16 %v10448_v8  ;;  %3961 = vmatmul.mubr.f32.gmra.mrb[54].mxu0 %v3788_v32  ;;  %v10450_v33 = vunpack.i.h.bf16 %v10448_v8 }
 0x67d   :  { %8827 = vmatprep.mubr.msk.f32.mxu0 %vm1044_vm3, %v13534_v56 }
 0x67e   :  { %v3725_v2 = vsel %vm1112_vm7, %v3709_v22, %v10449_v57  ;;  %v10463_v55 = vpop.permute.xlu0 %10462  ;;  %v3726_v13 = vsel %vm1112_vm7, %v3710_v18, %v10450_v33 }
 0x67f   :  { %v10458_v9 = vpop.permute.xlu1 %10457  ;;  %v10464_v52 = vunpack.i.l.bf16 %v10463_v55  ;;  %v3741_v42 = vsel %vm286_vm0, %v3725_v2, %v10454_v15  ;;  %v10465_v16 = vunpack.i.h.bf16 %v10463_v55  ;;  %v3742_v44 = vsel %vm286_vm0, %v3726_v13, %v10455_v24 }
 0x680   :  { %v10459_v27 = vunpack.i.l.bf16 %v10458_v9  ;;  %v10460_v26 = vunpack.i.h.bf16 %v10458_v9 }
 0x682   :  { %v3757_v56 = vsel %vm2237_vm10, %v3741_v42, %v10459_v27  ;;  %v10473_v48 = vpop.permute.xlu0 %10472  ;;  %v3758_v20 = vsel %vm2237_vm10, %v3742_v44, %v10460_v26 }
 0x683   :  { %v10468_v35 = vpop.permute.xlu1 %10467  ;;  %v10474_v10 = vunpack.i.l.bf16 %v10473_v48  ;;  %v3773_v53 = vsel %vm2254_vm11, %v3757_v56, %v10464_v52  ;;  %v3774_v62 = vsel %vm2254_vm11, %v3758_v20, %v10465_v16  ;;  %v10475_v29 = vunpack.i.h.bf16 %v10473_v48 }
 0x684   :  { %v10469_v51 = vunpack.i.l.bf16 %v10468_v35  ;;  %v10470_v17 = vunpack.i.h.bf16 %v10468_v35 }
 0x685   :  { %v3695_v46 = vsel %vm1044_vm3, %v13526_v6, %v10474_v10  ;;  %v3696_v6 = vsel %vm1044_vm3, %v13532_v34, %v10475_v29 }
 0x686   :  { %v3789_v1 = vsel %vm2271_vm12, %v3773_v53, %v10469_v51  ;;  %v10483_v28 = vpop.permute.xlu0 %10482  ;;  %v3790_v61 = vsel %vm2271_vm12, %v3774_v62, %v10470_v17 }
 0x687   :  { %v10478_v36 = vpop.permute.xlu1 %10477  ;;  %3966 = vmatmul.mubr.f32.gmra.mrb[56].mxu0 %v3789_v1  ;;  %v10484_v50 = vunpack.i.l.bf16 %v10483_v28  ;;  %v10485_v38 = vunpack.i.h.bf16 %v10483_v28 }
 0x688   :  { %v10479_v3 = vunpack.i.l.bf16 %v10478_v36  ;;  %8828 = vmatprep.mubr.msk.f32.mxu0 %vm1044_vm3, %v13544_v30  ;;  %v10480_v45 = vunpack.i.h.bf16 %v10478_v36 }
 0x68a   :  { %v3711_v59 = vsel %vm1078_vm5, %v3695_v46, %v10479_v3  ;;  %v3534_v39 = vpop.permute.xlu0 %3533  ;;  %v3712_v8 = vsel %vm1078_vm5, %v3696_v6, %v10480_v45 }
 0x68b   :  { %v10488_v21 = vpop.permute.xlu1 %10487  ;;  %3971 = vmatmul.mubr.f32.gmra.mrb[58].mxu0 %v3790_v61  ;;  %v3727_v30 = vsel %vm1112_vm7, %v3711_v59, %v10484_v50  ;;  %v3728_v33 = vsel %vm1112_vm7, %v3712_v8, %v10485_v38  ;;  %v4211_v38 = vld [vmem:[%s16459_s2 + $0x118] sm:$0xff] }
 0x68c   :  { %v10489_v12 = vunpack.i.l.bf16 %v10488_v21  ;;  %8829 = vmatprep.mubr.msk.f32.mxu0 %vm1044_vm3, %v13558_v11  ;;  %v10490_v32 = vunpack.i.h.bf16 %v10488_v21  ;;  %v4208_v21 = vld [vmem:[%s16459_s2 + $0x100] sm:$0xff] }
 0x68e   :  { %v3743_v40 = vsel %vm286_vm0, %v3727_v30, %v10489_v12  ;;  %v3662_v57 = vpop.permute.xlu0 %3661  ;;  %v3744_v34 = vsel %vm286_vm0, %v3728_v33, %v10490_v32  ;;  %v4209_v12 = vld [vmem:[%s16459_s2 + $0x108] sm:$0xff]  ;;  %v4210_v30 = vld [vmem:[%s16459_s2 + $0x110] sm:$0xff] }
 0x68f   :  { %v3598_v7 = vpop.permute.xlu1 %3597  ;;  %v3759_v15 = vsel %vm2237_vm10, %v3743_v40, %v3534_v39  ;;  %v9751_v6 = vpack.c.bf16 %v4209_v12, %v4208_v21  ;;  %v9755_v8 = vpack.c.bf16 %v4211_v38, %v4210_v30 }
 0x690   :  { %v3775_v22 = vsel %vm2254_vm11, %v3759_v15, %v3598_v7 }
 0x691   :  { %v3791_v11 = vsel %vm2271_vm12, %v3775_v22, %v3662_v57  ;;  %9752 = vmatprep.subr.bf16.mxu0 %v9751_v6 }
 0x692   :  { %3976 = vmatmul.mubr.f32.gmra.mrb[60].mxu0 %v3791_v11  ;;  %v3600_v9 = vpop.permute.xlu0 %3599 }
 0x693   :  { %v3536_v2 = vpop.permute.xlu1 %3535  ;;  %8830 = vmatprep.mubr.msk.f32.mxu0 %vm1044_vm3, %v3232_v23  ;;  %9754 = vmatpush3.bf16.msra.mxu0 %v9751_v6 }
 0x694   :  { %v3760_v55 = vsel %vm2237_vm10, %v3744_v34, %v3536_v2  ;;  %9756 = vmatprep.subr.bf16.mxu0 %v9755_v8 }
 0x695   :  { %v3776_v27 = vsel %vm2254_vm11, %v3760_v55, %v3600_v9 }
 0x697   :  { %v3664_v24 = vpop.permute.xlu1 %3663  ;;  %9758 = vmatpush3.bf16.msra.mxu0 %v9755_v8 }
 0x698   :  { %v3792_v18 = vsel %vm2271_vm12, %v3776_v27, %v3664_v24 }
 0x699   :  { %3981 = vmatmul.mubr.f32.gmra.mrb[62].mxu0 %v3792_v18 }
 0x706   :  { %v13721_v52 = vpop.f32.mrb[32].mxu0 }
 0x707   :  { %v3909_v42 = vpop.f32.mrb[33].mxu0  ;;  %v4026_v13 = vmul.f32 %v13721_v52, %v13721_v52  ;;  %v3988_v56 = vsel %vm1078_vm5, %v13721_v52, 0.0 }
 0x709   :  { %v4042_v10 = vsel %vm1078_vm5, %v4026_v13, 0.0 }
 0x70a   :  { %v13725_v26 = vpop.f32.mrb[34].mxu0 }
 0x70b   :  { %v3989_v48 = vsel %vm1078_vm5, %v13725_v26, 0.0  ;;  %v4027_v35 = vmul.f32 %v13725_v26, %v13725_v26  ;;  %v3914_v51 = vpop.f32.mrb[35].mxu0 }
 0x70c   :  { %v3990_v16 = vadd.f32 %v3989_v48, %v3988_v56 }
 0x70d   :  { %v4043_v53 = vsel %vm1078_vm5, %v4027_v35, 0.0 }
 0x70e   :  { %v4044_v44 = vadd.f32 %v4043_v53, %v4042_v10 }
 0x713   :  { %v13735_v17 = vpop.f32.mrb[36].mxu0 }
 0x714   :  { %v3991_v1 = vsel %vm1078_vm5, %v13735_v17, 0.0  ;;  %v4028_v20 = vmul.f32 %v13735_v17, %v13735_v17  ;;  %v3919_v28 = vpop.f32.mrb[37].mxu0 }
 0x715   :  { %v3992_v36 = vadd.f32 %v3991_v1, %v3990_v16 }
 0x716   :  { %v4045_v3 = vsel %vm1078_vm5, %v4028_v20, 0.0 }
 0x717   :  { %v4046_v46 = vadd.f32 %v4045_v3, %v4044_v44  ;;  %v13742_v50 = vpop.f32.mrb[38].mxu0 }
 0x718   :  { %v3993_v62 = vsel %vm1078_vm5, %v13742_v50, 0.0  ;;  %v4029_v29 = vmul.f32 %v13742_v50, %v13742_v50  ;;  %v3924_v59 = vpop.f32.mrb[39].mxu0 }
 0x719   :  { %v3994_v61 = vadd.f32 %v3993_v62, %v3992_v36 }
 0x71a   :  { %v4047_v45 = vsel %vm1078_vm5, %v4029_v29, 0.0 }
 0x71b   :  { %v4048_v39 = vadd.f32 %v4047_v45, %v4046_v46 }
 0x722   :  { %v13753_v40 = vpop.f32.mrb[40].mxu0 }
 0x723   :  { %v3995_v32 = vsel %vm1078_vm5, %v13753_v40, 0.0  ;;  %v4030_v57 = vmul.f32 %v13753_v40, %v13753_v40  ;;  %v3929_v7 = vpop.f32.mrb[41].mxu0 }
 0x724   :  { %v3996_v15 = vadd.f32 %v3995_v32, %v3994_v61 }
 0x725   :  { %v4049_v22 = vsel %vm1078_vm5, %v4030_v57, 0.0 }
 0x726   :  { %v4050_v23 = vadd.f32 %v4049_v22, %v4048_v39  ;;  %v13760_v11 = vpop.f32.mrb[42].mxu0 }
 0x727   :  { %v3997_v33 = vsel %vm1078_vm5, %v13760_v11, 0.0  ;;  %v4031_v2 = vmul.f32 %v13760_v11, %v13760_v11  ;;  %v3934_v34 = vpop.f32.mrb[43].mxu0 }
 0x728   :  { %v3998_v55 = vadd.f32 %v3997_v33, %v3996_v15 }
 0x729   :  { %v4051_v9 = vsel %vm1078_vm5, %v4031_v2, 0.0 }
 0x72a   :  { %v4052_v27 = vadd.f32 %v4051_v9, %v4050_v23 }
 0x72f   :  { %v13767_v24 = vpop.f32.mrb[44].mxu0 }
 0x730   :  { %v3999_v18 = vsel %vm1078_vm5, %v13767_v24, 0.0  ;;  %v4032_v42 = vmul.f32 %v13767_v24, %v13767_v24  ;;  %v3939_v13 = vpop.f32.mrb[45].mxu0 }
 0x731   :  { %v4000_v56 = vadd.f32 %v3999_v18, %v3998_v55 }
 0x732   :  { %v4053_v48 = vsel %vm1078_vm5, %v4032_v42, 0.0 }
 0x733   :  { %v4054_v35 = vadd.f32 %v4053_v48, %v4052_v27  ;;  %v13774_v51 = vpop.f32.mrb[46].mxu0 }
 0x734   :  { %v4001_v16 = vsel %vm1078_vm5, %v13774_v51, 0.0  ;;  %v4033_v10 = vmul.f32 %v13774_v51, %v13774_v51  ;;  %v3944_v53 = vpop.f32.mrb[47].mxu0 }
 0x735   :  { %v4002_v44 = vadd.f32 %v4001_v16, %v4000_v56 }
 0x736   :  { %v4055_v1 = vsel %vm1078_vm5, %v4033_v10, 0.0 }
 0x737   :  { %v4056_v20 = vadd.f32 %v4055_v1, %v4054_v35 }
 0x73e   :  { %v13781_v28 = vpop.f32.mrb[48].mxu0 }
 0x73f   :  { %v4003_v36 = vsel %vm1078_vm5, %v13781_v28, 0.0  ;;  %v4034_v3 = vmul.f32 %v13781_v28, %v13781_v28  ;;  %v3949_v46 = vpop.f32.mrb[49].mxu0 }
 0x740   :  { %v4004_v62 = vadd.f32 %v4003_v36, %v4002_v44 }
 0x741   :  { %v4057_v29 = vsel %vm1078_vm5, %v4034_v3, 0.0 }
 0x742   :  { %v4058_v59 = vadd.f32 %v4057_v29, %v4056_v20  ;;  %v13788_v61 = vpop.f32.mrb[50].mxu0 }
 0x743   :  { %v4005_v45 = vsel %vm1078_vm5, %v13788_v61, 0.0  ;;  %v4035_v39 = vmul.f32 %v13788_v61, %v13788_v61  ;;  %v3954_v21 = vpop.f32.mrb[51].mxu0 }
 0x744   :  { %v4006_v12 = vadd.f32 %v4005_v45, %v4004_v62 }
 0x745   :  { %v4059_v30 = vsel %vm1078_vm5, %v4035_v39, 0.0 }
 0x746   :  { %v4060_v6 = vadd.f32 %v4059_v30, %v4058_v59 }
 0x74b   :  { %v13795_v38 = vpop.f32.mrb[52].mxu0 }
 0x74c   :  { %v4007_v8 = vsel %vm1078_vm5, %v13795_v38, 0.0  ;;  %v4036_v32 = vmul.f32 %v13795_v38, %v13795_v38  ;;  %v3959_v57 = vpop.f32.mrb[53].mxu0 }
 0x74d   :  { %v4008_v7 = vadd.f32 %v4007_v8, %v4006_v12 }
 0x74e   :  { %v4061_v15 = vsel %vm1078_vm5, %v4036_v32, 0.0 }
 0x74f   :  { %v4062_v22 = vadd.f32 %v4061_v15, %v4060_v6  ;;  %v13802_v23 = vpop.f32.mrb[54].mxu0 }
 0x750   :  { %v4009_v33 = vsel %vm1078_vm5, %v13802_v23, 0.0  ;;  %v4037_v2 = vmul.f32 %v13802_v23, %v13802_v23  ;;  %v3964_v34 = vpop.f32.mrb[55].mxu0 }
 0x751   :  { %v4010_v55 = vadd.f32 %v4009_v33, %v4008_v7 }
 0x752   :  { %v4063_v9 = vsel %vm1078_vm5, %v4037_v2, 0.0 }
 0x753   :  { %v4064_v27 = vadd.f32 %v4063_v9, %v4062_v22 }
 0x75a   :  { %v13809_v18 = vpop.f32.mrb[56].mxu0 }
 0x75b   :  { %v4011_v42 = vsel %vm1078_vm5, %v13809_v18, 0.0  ;;  %v4038_v13 = vmul.f32 %v13809_v18, %v13809_v18  ;;  %v3969_v56 = vpop.f32.mrb[57].mxu0 }
 0x75c   :  { %v4012_v48 = vadd.f32 %v4011_v42, %v4010_v55 }
 0x75d   :  { %v4065_v35 = vsel %vm1078_vm5, %v4038_v13, 0.0 }
 0x75e   :  { %v4066_v16 = vadd.f32 %v4065_v35, %v4064_v27  ;;  %v13816_v10 = vpop.f32.mrb[58].mxu0 }
 0x75f   :  { %v4013_v53 = vsel %vm1078_vm5, %v13816_v10, 0.0  ;;  %v4039_v44 = vmul.f32 %v13816_v10, %v13816_v10  ;;  %v3974_v1 = vpop.f32.mrb[59].mxu0 }
 0x760   :  { %v4014_v20 = vadd.f32 %v4013_v53, %v4012_v48  ;;  %v4193_v53 = vld [vmem:[%s16459_s2 + $0x88] sm:$0xff] }
 0x761   :  { %v4067_v36 = vsel %vm1078_vm5, %v4039_v44, 0.0 }
 0x762   :  { %v4068_v3 = vadd.f32 %v4067_v36, %v4066_v16  ;;  %v4192_v16 = vld [vmem:[%s16459_s2 + $0x80] sm:$0xff] }
 0x763   :  { %v9719_v44 = vpack.c.bf16 %v4193_v53, %v4192_v16  ;;  %v4203_v16 = vld [vmem:[%s16459_s2 + $0xd8] sm:$0xff]  ;;  %v4186_v53 = vld [vmem:[%s16459_s2 + $0x50] sm:$0xff] }
 0x765   :  { %v13823_v46 = vpop.f32.mrb[60].mxu0  ;;  %9720 = vmatprep.subr.bf16.mxu1 %v9719_v44  ;;  %v4187_v44 = vld [vmem:[%s16459_s2 + $0x58] sm:$0xff] }
 0x766   :  { %v4015_v62 = vsel %vm1078_vm5, %v13823_v46, 0.0  ;;  %v4040_v29 = vmul.f32 %v13823_v46, %v13823_v46  ;;  %v3979_v59 = vpop.f32.mrb[61].mxu0 }
 0x767   :  { %v4016_v45 = vadd.f32 %v4015_v62, %v4014_v20 }
 0x768   :  { %v4069_v39 = vsel %vm1078_vm5, %v4040_v29, 0.0 }
 0x769   :  { %v4070_v21 = vadd.f32 %v4069_v39, %v4068_v3 }
 0x76c   :  { %v13830_v12 = vpop.f32.mrb[62].mxu0 }
 0x76d   :  { %v4017_v30 = vsel %vm1078_vm5, %v13830_v12, 0.0  ;;  %v4041_v6 = vmul.f32 %v13830_v12, %v13830_v12  ;;  %v3984_v8 = vpop.f32.mrb[63].mxu0 }
 0x76e   :  { %v4018_v32 = vadd.f32 %v4017_v30, %v4016_v45  ;;  %v4195_v8 = vld [vmem:[%s16459_s2 + $0x98] sm:$0xff] }
 0x76f   :  { %v4071_v57 = vsel %vm1078_vm5, %v4041_v6, 0.0 }
 0x770   :  { %v4019_v7 = vrot.slane %v4018_v32, 4  ;;  %v4072_v15 = vadd.f32 %v4071_v57, %v4070_v21  ;;  %v4177_v21 = vld [vmem:[%s16459_s2 + $0x8] sm:$0xff] }
 0x771   :  { %v4197_v57 = vld [vmem:[%s16459_s2 + $0xa8] sm:$0xff] }
 0x772   :  { %v4020_v22 = vadd.f32 %v4019_v7, %v4018_v32  ;;  %v4073_v33 = vrot.slane %v4072_v15, 4  ;;  %v4179_v32 = vld [vmem:[%s16459_s2 + $0x18] sm:$0xff] }
 0x774   :  { %v4021_v2 = vrot.slane %v4020_v22, 2  ;;  %v4074_v34 = vadd.f32 %v4073_v33, %v4072_v15  ;;  %v4180_v15 = vld [vmem:[%s16459_s2 + $0x20] sm:$0xff]  ;;  %v4198_v33 = vld [vmem:[%s16459_s2 + $0xb0] sm:$0xff] }
 0x776   :  { %v4022_v55 = vadd.f32 %v4021_v2, %v4020_v22  ;;  %v4075_v9 = vrot.slane %v4074_v34, 2  ;;  %v4181_v22 = vld [vmem:[%s16459_s2 + $0x28] sm:$0xff]  ;;  %v4199_v2 = vld [vmem:[%s16459_s2 + $0xb8] sm:$0xff] }
 0x778   :  { %v4023_v27 = vrot.slane %v4022_v55, 1  ;;  %v4076_v42 = vadd.f32 %v4075_v9, %v4074_v34  ;;  %v4182_v34 = vld [vmem:[%s16459_s2 + $0x30] sm:$0xff]  ;;  %v4183_v9 = vld [vmem:[%s16459_s2 + $0x38] sm:$0xff] }
 0x77a   :  { %v4024_v13 = vadd.f32 %v4023_v27, %v4022_v55  ;;  %v4077_v56 = vrot.slane %v4076_v42, 1  ;;  %v9729_v55 = vpack.c.bf16 %v4181_v22, %v4180_v15  ;;  %v4200_v27 = vld [vmem:[%s16459_s2 + $0xc0] sm:$0xff] }
 0x77c   :  { %v13837_v48 = vmul.f32 0.0078125, %v4024_v13  ;;  %v4078_v35 = vadd.f32 %v4077_v56, %v4076_v42  ;;  %v4201_v42 = vld [vmem:[%s16459_s2 + $0xc8] sm:$0xff]  ;;  %v9731_v13 = vpack.c.bf16 %v4199_v2, %v4198_v33  ;;  %v4184_v56 = vld [vmem:[%s16459_s2 + $0x40] sm:$0xff] }
 0x77e   :  { %v4079_v1 = vmul.f32 0.0078125, %v4078_v35  ;;  %v4080_v20 = vmul.f32 %v13837_v48, %v13837_v48  ;;  %v4082_v36 = vsub.f32 %v13721_v52, %v13837_v48  ;;  %v4083_v3 = vsub.f32 %v13725_v26, %v13837_v48  ;;  %v4202_v35 = vld [vmem:[%s16459_s2 + $0xd0] sm:$0xff] }
 0x77f   :  { %v4084_v62 = vsub.f32 %v13735_v17, %v13837_v48  ;;  %v4085_v29 = vsub.f32 %v13742_v50, %v13837_v48  ;;  %v4086_v59 = vsub.f32 %v13753_v40, %v13837_v48  ;;  %v4087_v45 = vsub.f32 %v13760_v11, %v13837_v48  ;;  %v4176_v50 = vld [vmem:[%s16459_s2] sm:$0xff] }
 0x780   :  { %v4081_v39 = vsub.f32 %v4079_v1, %v4080_v20  ;;  %v4088_v52 = vsub.f32 %v13767_v24, %v13837_v48  ;;  %v4089_v26 = vsub.f32 %v13774_v51, %v13837_v48  ;;  %v4090_v17 = vsub.f32 %v13781_v28, %v13837_v48 }
 0x781   :  { %v4091_v40 = vsub.f32 %v13788_v61, %v13837_v48  ;;  %v4092_v11 = vsub.f32 %v13795_v38, %v13837_v48  ;;  %v4093_v24 = vsub.f32 %v13802_v23, %v13837_v48  ;;  %v4094_v51 = vsub.f32 %v13809_v18, %v13837_v48  ;;  %v4194_v23 = vld [vmem:[%s16459_s2 + $0x90] sm:$0xff] }
 0x782   :  { %v4095_v28 = vsub.f32 %v13816_v10, %v13837_v48  ;;  %v4096_v30 = vsub.f32 %v13823_v46, %v13837_v48  ;;  %v4097_v61 = vsub.f32 %v13830_v12, %v13837_v48  ;;  %v4098_v6 = vadd.f32 1e-05, %v4081_v39  ;;  %v4178_v18 = vld [vmem:[%s16459_s2 + $0x10] sm:$0xff]  ;;  %v4196_v46 = vld [vmem:[%s16459_s2 + $0xa0] sm:$0xff]  ;;  %v4185_v48 = vld [vmem:[%s16459_s2 + $0x48] sm:$0xff] }
 0x783   :  { %v9721_v38 = vpack.c.bf16 %v4177_v21, %v4176_v50  ;;  %v9723_v10 = vpack.c.bf16 %v4195_v8, %v4194_v23  ;;  %v9725_v7 = vpack.c.bf16 %v4179_v32, %v4178_v18  ;;  %v9727_v12 = vpack.c.bf16 %v4197_v57, %v4196_v46 }
 0x784   :  { %11137 = vrsqrt.f32 %v4098_v6  ;;  %v9733_v1 = vpack.c.bf16 %v4183_v9, %v4182_v34  ;;  %v9735_v39 = vpack.c.bf16 %v4201_v42, %v4200_v27  ;;  %v9737_v50 = vpack.c.bf16 %v4185_v48, %v4184_v56 }
 0x785   :  { %9722 = vmatpush3.bf16.msra.mxu1 %v9721_v38  ;;  %v9739_v21 = vpack.c.bf16 %v4203_v16, %v4202_v35  ;;  %v9741_v6 = vpack.c.bf16 %v4187_v44, %v4186_v53 }
 0x786   :  { %9724 = vmatprep.subr.bf16.mxu1 %v9723_v10  ;;  %v8831_v10 = vld [vmem:[#allocation12] ss:$0 sm:$0xff] }
 0x789   :  { %9726 = vmatpush3.bf16.msra.mxu1 %v9725_v7 }
 0x78a   :  { %9728 = vmatprep.subr.bf16.mxu1 %v9727_v12 }
 0x78d   :  { %9730 = vmatpush3.bf16.msra.mxu1 %v9729_v55 }
 0x78e   :  { %v11138_v20 = vpop.eup %11137  ;;  %9732 = vmatprep.subr.bf16.mxu1 %v9731_v13 }
 0x78f   :  { %v4100_v38 = vmul.f32 %v11138_v20, %v4082_v36  ;;  %v4101_v23 = vmul.f32 %v11138_v20, %v4083_v3  ;;  %v4102_v8 = vmul.f32 %v11138_v20, %v4084_v62  ;;  %v4103_v18 = vmul.f32 %v11138_v20, %v4085_v29  ;;  %v8832_v29 = vld [vmem:[#allocation14] ss:$0 sm:$0xff] }
 0x790   :  { %v4104_v32 = vmul.f32 %v11138_v20, %v4086_v59  ;;  %v4105_v46 = vmul.f32 %v11138_v20, %v4087_v45  ;;  %v4106_v57 = vmul.f32 %v11138_v20, %v4088_v52  ;;  %v4107_v7 = vmul.f32 %v11138_v20, %v4089_v26 }
 0x791   :  { %v4108_v12 = vmul.f32 %v11138_v20, %v4090_v17  ;;  %v4109_v15 = vmul.f32 %v11138_v20, %v4091_v40  ;;  %v4110_v22 = vmul.f32 %v11138_v20, %v4092_v11  ;;  %v4111_v33 = vmul.f32 %v11138_v20, %v4093_v24  ;;  %9734 = vmatpush3.bf16.msra.mxu1 %v9733_v1 }
 0x792   :  { %v4112_v2 = vmul.f32 %v11138_v20, %v4094_v51  ;;  %v4113_v34 = vmul.f32 %v11138_v20, %v4095_v28  ;;  %v4114_v55 = vmul.f32 %v11138_v20, %v4096_v30  ;;  %v4115_v9 = vmul.f32 %v11138_v20, %v4097_v61  ;;  %9736 = vmatprep.subr.bf16.mxu1 %v9735_v39 }
 0x793   :  { %v4122_v27 = vmul.f32 %v8831_v10, %v4100_v38  ;;  %v4123_v36 = vmul.f32 %v8831_v10, %v4101_v23  ;;  %v4124_v3 = vmul.f32 %v8831_v10, %v4102_v8  ;;  %v4125_v62 = vmul.f32 %v8831_v10, %v4103_v18 }
 0x794   :  { %v4126_v42 = vmul.f32 %v8831_v10, %v4104_v32  ;;  %v4127_v59 = vmul.f32 %v8831_v10, %v4105_v46  ;;  %v4128_v45 = vmul.f32 %v8831_v10, %v4106_v57  ;;  %v4129_v52 = vmul.f32 %v8831_v10, %v4107_v7 }
 0x795   :  { %v4130_v26 = vmul.f32 %v8831_v10, %v4108_v12  ;;  %v4131_v17 = vmul.f32 %v8831_v10, %v4109_v15  ;;  %v4132_v40 = vmul.f32 %v8831_v10, %v4110_v22  ;;  %v4133_v11 = vmul.f32 %v8831_v10, %v4111_v33  ;;  %9738 = vmatpush3.bf16.msra.mxu1 %v9737_v50 }
 0x796   :  { %v4134_v24 = vmul.f32 %v8831_v10, %v4112_v2  ;;  %v4135_v51 = vmul.f32 %v8831_v10, %v4113_v34  ;;  %v4136_v28 = vmul.f32 %v8831_v10, %v4114_v55  ;;  %v4137_v30 = vmul.f32 %v8831_v10, %v4115_v9  ;;  %9740 = vmatprep.subr.bf16.mxu1 %v9739_v21  ;;  %v4205_v55 = vld [vmem:[%s16459_s2 + $0xe8] sm:$0xff] }
 0x797   :  { %v4144_v61 = vadd.f32 %v8832_v29, %v4122_v27  ;;  %v4145_v13 = vadd.f32 %v8832_v29, %v4123_v36  ;;  %v4146_v56 = vadd.f32 %v8832_v29, %v4124_v3  ;;  %v4147_v48 = vadd.f32 %v8832_v29, %v4125_v62  ;;  %v4188_v62 = vld [vmem:[%s16459_s2 + $0x60] sm:$0xff] }
 0x798   :  { %v4148_v35 = vadd.f32 %v8832_v29, %v4126_v42  ;;  %v4149_v16 = vadd.f32 %v8832_v29, %v4127_v59  ;;  %v4150_v53 = vadd.f32 %v8832_v29, %v4128_v45  ;;  %v4151_v44 = vadd.f32 %v8832_v29, %v4129_v52  ;;  %v4206_v45 = vld [vmem:[%s16459_s2 + $0xf0] sm:$0xff]  ;;  %v4207_v52 = vld [vmem:[%s16459_s2 + $0xf8] sm:$0xff] }
 0x799   :  { %v4152_v1 = vadd.f32 %v8832_v29, %v4130_v26  ;;  %v4153_v20 = vadd.f32 %v8832_v29, %v4131_v17  ;;  %v4154_v39 = vadd.f32 %v8832_v29, %v4132_v40  ;;  %v4155_v38 = vadd.f32 %v8832_v29, %v4133_v11  ;;  %9742 = vmatpush3.bf16.msra.mxu1 %v9741_v6  ;;  %v4204_v6 = vld [vmem:[%s16459_s2 + $0xe0] sm:$0xff]  ;;  %v4190_v26 = vld [vmem:[%s16459_s2 + $0x70] sm:$0xff]  ;;  %v4191_v40 = vld [vmem:[%s16459_s2 + $0x78] sm:$0xff] }
 0x79a   :  { %v4156_v23 = vadd.f32 %v8832_v29, %v4134_v24  ;;  %v4157_v50 = vadd.f32 %v8832_v29, %v4135_v51  ;;  %v4158_v8 = vadd.f32 %v8832_v29, %v4136_v28  ;;  %v4159_v18 = vadd.f32 %v8832_v29, %v4137_v30  ;;  %v4189_v29 = vld [vmem:[%s16459_s2 + $0x68] sm:$0xff] }
 0x79b   :  { %v4160_v32 = vmax.f32 %v4144_v61, 0.0  ;;  %v4161_v21 = vmax.f32 %v4145_v13, 0.0  ;;  %v4162_v10 = vmax.f32 %v4146_v56, 0.0  ;;  %v4163_v46 = vmax.f32 %v4147_v48, 0.0  ;;  %v4260_v24 = vld [vmem:[#allocation2 + $0x2] sm:$0xff] }
 0x79c   :  { %v4164_v57 = vmax.f32 %v4148_v35, 0.0  ;;  %v4165_v7 = vmax.f32 %v4149_v16, 0.0  ;;  %v4166_v12 = vmax.f32 %v4150_v53, 0.0  ;;  %v4167_v15 = vmax.f32 %v4151_v44, 0.0  ;;  %v4244_v51 = vld [vmem:[#allocation2 + $0x1] sm:$0xff] }
 0x79d   :  { %v4168_v22 = vmax.f32 %v4152_v1, 0.0  ;;  %v4169_v33 = vmax.f32 %v4153_v20, 0.0  ;;  %v4170_v2 = vmax.f32 %v4154_v39, 0.0  ;;  %v4171_v34 = vmax.f32 %v4155_v38, 0.0  ;;  %4212 = vst.msk [vmem:[#allocation2 + $0x11] sm:$0xff] %vm1078_vm5, %v4160_v32  ;;  %4213 = vst.msk [vmem:[#allocation2 + $0x21] sm:$0xff] %vm1078_vm5, %v4161_v21 }
 0x79e   :  { %4214 = vst.msk [vmem:[#allocation2 + $0x31] sm:$0xff] %vm1078_vm5, %v4162_v10  ;;  %4215 = vst.msk [vmem:[#allocation2 + $0x41] sm:$0xff] %vm1078_vm5, %v4163_v46  ;;  %v4172_v9 = vmax.f32 %v4156_v23, 0.0  ;;  %v4173_v27 = vmax.f32 %v4157_v50, 0.0  ;;  %v4174_v36 = vmax.f32 %v4158_v8, 0.0  ;;  %v4175_v3 = vmax.f32 %v4159_v18, 0.0 }
 0x79f   :  { %4216 = vst.msk [vmem:[#allocation2 + $0x51] sm:$0xff] %vm1078_vm5, %v4164_v57  ;;  %4217 = vst.msk [vmem:[#allocation2 + $0x61] sm:$0xff] %vm1078_vm5, %v4165_v7  ;;  %v9743_v42 = vpack.c.bf16 %v4205_v55, %v4204_v6  ;;  %v9745_v59 = vpack.c.bf16 %v4189_v29, %v4188_v62  ;;  %v9747_v17 = vpack.c.bf16 %v4207_v52, %v4206_v45  ;;  %v5364_v45 = vld [vmem:[%s16460_s19] sm:$0xff]  ;;  %v5365_v52 = vld [vmem:[%s16460_s19 + $0x8] sm:$0xff] }
 0x7a0   :  { %4218 = vst.msk [vmem:[#allocation2 + $0x71] sm:$0xff] %vm1078_vm5, %v4166_v12  ;;  %4219 = vst.msk [vmem:[#allocation2 + $0x81] sm:$0xff] %vm1078_vm5, %v4167_v15  ;;  %v9749_v11 = vpack.c.bf16 %v4191_v40, %v4190_v26  ;;  %v14033_v26 = vpack.c.bf16 %v5365_v52, %v5364_v45 }
 0x7a1   :  { %4220 = vst.msk [vmem:[#allocation2 + $0xb1] sm:$0xff] %vm1078_vm5, %v4168_v22  ;;  %4221 = vst.msk [vmem:[#allocation2 + $0xc1] sm:$0xff] %vm1078_vm5, %v4169_v33  ;;  %9744 = vmatprep.subr.bf16.mxu1 %v9743_v42 }
 0x7a2   :  { %4222 = vst.msk [vmem:[#allocation2 + $0xd1] sm:$0xff] %vm1078_vm5, %v4170_v2  ;;  %4223 = vst.msk [vmem:[#allocation2 + $0xe1] sm:$0xff] %vm1078_vm5, %v4171_v34  ;;  %9746 = vmatpush3.bf16.msra.mxu1 %v9745_v59 }
 0x7a3   :  { %4224 = vst.msk [vmem:[#allocation2 + $0xf1] sm:$0xff] %vm1078_vm5, %v4172_v9  ;;  %4225 = vst.msk [vmem:[#allocation2 + $0x101] sm:$0xff] %vm1078_vm5, %v4173_v27  ;;  %9748 = vmatprep.subr.bf16.mxu1 %v9747_v17 }
 0x7a4   :  { %4226 = vst.msk [vmem:[#allocation2 + $0x111] sm:$0xff] %vm1078_vm5, %v4174_v36  ;;  %4227 = vst.msk [vmem:[#allocation2 + $0x121] sm:$0xff] %vm1078_vm5, %v4175_v3  ;;  %v4356_v28 = vld [vmem:[#allocation2 + $0x22] sm:$0xff]  ;;  %v4308_v13 = vld [vmem:[#allocation2 + $0x12] sm:$0xff] }
 0x7a5   :  { %v4357_v30 = vld [vmem:[#allocation2 + $0x32] sm:$0xff]  ;;  %9474 = vmatprep.mubr.msk.f32.mxu0 %vm1078_vm5, %v4356_v28  ;;  %v13922_v61 = vld [vmem:[#allocation2 + $0x20] sm:$0xff]  ;;  %v10491_v35 = vpack.i.bf16 %v4244_v51, %v4308_v13 }
 0x7a6   :  { %9475 = vmatmul.mubr.msk.f32.vlgmr.msra.gmra.mrb[64].mxu0 %vm1078_vm5, %v4357_v30  ;;  %v13925_v56 = vld [vmem:[#allocation2 + $0x42] sm:$0xff]  ;;  %v10496_v48 = vpack.i.bf16 %v4260_v24, %v13922_v61  ;;  %9750 = vmatpush3.bf16.msra.mxu1 %v9749_v11  ;;  %v13930_v16 = vld [vmem:[#allocation2 + $0x10] sm:$0xff] }
 0x7a7   :  { %9477 = vmatprep.mubr.msk.f32.mxu0 %vm1078_vm5, %v13925_v56  ;;  %v13932_v53 = vld [vmem:[#allocation2 + $0x21] sm:$0xff]  ;;  %v13934_v44 = vld [vmem:[#allocation2 + $0x11] sm:$0xff]  ;;  %10492 = vrot.lane.b32.xlu0 %v10491_v35, %s11497_s0 }
 0x7a8   :  { %10497 = vrot.lane.b32.xlu1 %v10496_v48, %s11501_s8  ;;  %v13938_v1 = vld [vmem:[#allocation2 + $0x52] sm:$0xff]  ;;  %v13942_v20 = vld [vmem:[#allocation2 + $0x62] sm:$0xff]  ;;  %v10501_v39 = vpack.i.bf16 %v13930_v16, %v13932_v53  ;;  %v10506_v38 = vpack.i.bf16 %v13934_v44, %v4356_v28  ;;  %v10521_v57 = vpack.i.bf16 %v13932_v53, %v4357_v30  ;;  %9760 = vmatprep.subr.bf16.mxu1 %v14033_v26 }
 0x7a9   :  { %v13949_v23 = vld [vmem:[#allocation2 + $0x30] sm:$0xff]  ;;  %v13959_v18 = vld [vmem:[#allocation2 + $0x82] sm:$0xff] }
 0x7aa   :  { %9478 = vmatmul.mubr.msk.f32.gmra.mrb[66].mxu0 %vm1078_vm5, %v13938_v1  ;;  %v13951_v50 = vld [vmem:[#allocation2 + $0x31] sm:$0xff]  ;;  %v10511_v32 = vpack.i.bf16 %v4308_v13, %v13949_v23  ;;  %v13966_v10 = vld [vmem:[#allocation2 + $0x40] sm:$0xff] }
 0x7ab   :  { %9480 = vmatprep.mubr.msk.f32.mxu0 %vm1078_vm5, %v13942_v20  ;;  %10502 = vrot.lane.b32.xlu0 %v10501_v39, %s11503_s26  ;;  %v13955_v8 = vld [vmem:[#allocation2 + $0x72] sm:$0xff]  ;;  %v10516_v21 = vpack.i.bf16 %v13922_v61, %v13951_v50  ;;  %v13972_v46 = vld [vmem:[#allocation2 + $0xc2] sm:$0xff]  ;;  %v10526_v7 = vpack.i.bf16 %v4356_v28, %v13966_v10  ;;  %v10536_v33 = vpack.i.bf16 %v13951_v50, %v13925_v56 }
 0x7ac   :  { %10507 = vrot.lane.b32.xlu1 %v10506_v38, %s11497_s0  ;;  %v13978_v12 = vld [vmem:[#allocation2 + $0x41] sm:$0xff]  ;;  %v13982_v15 = vld [vmem:[#allocation2 + $0xd2] sm:$0xff] }
 0x7ad   :  { %v10531_v22 = vpack.i.bf16 %v13949_v23, %v13978_v12  ;;  %v13994_v2 = vld [vmem:[#allocation2 + $0x50] sm:$0xff]  ;;  %v14004_v55 = vld [vmem:[#allocation2 + $0x102] sm:$0xff]  ;;  %v10551_v29 = vpack.i.bf16 %v13978_v12, %v13938_v1 }
 0x7ae   :  { %9481 = vmatmul.mubr.msk.f32.gmra.mrb[68].mxu0 %vm1078_vm5, %v13955_v8  ;;  %v13996_v34 = vld [vmem:[#allocation2 + $0x51] sm:$0xff]  ;;  %v10541_v9 = vpack.i.bf16 %v4357_v30, %v13994_v2  ;;  %v14011_v36 = vld [vmem:[#allocation2 + $0x60] sm:$0xff] }
 0x7af   :  { %9483 = vmatprep.mubr.msk.f32.mxu0 %vm1078_vm5, %v13959_v18  ;;  %10512 = vrot.lane.b32.xlu0 %v10511_v32, %s11501_s8  ;;  %v14000_v6 = vld [vmem:[#allocation2 + $0xf2] sm:$0xff]  ;;  %v10546_v27 = vpack.i.bf16 %v13966_v10, %v13996_v34  ;;  %v14019_v62 = vld [vmem:[#allocation2 + $0x122] sm:$0xff]  ;;  %v10556_v42 = vpack.i.bf16 %v13925_v56, %v14011_v36  ;;  %v10566_v40 = vpack.i.bf16 %v13996_v34, %v13942_v20 }
 0x7b0   :  { %10517 = vrot.lane.b32.xlu1 %v10516_v21, %s11503_s26  ;;  %v14015_v3 = vld [vmem:[#allocation2 + $0x112] sm:$0xff]  ;;  %v14027_v59 = vld [vmem:[#allocation2 + $0x61] sm:$0xff] }
 0x7b1   :  { %v10561_v17 = vpack.i.bf16 %v13994_v2, %v14027_v59  ;;  %v14040_v11 = vld [vmem:[#allocation2 + $0x70] sm:$0xff]  ;;  %v4330_v30 = vld [vmem:[#allocation2 + $0x80] sm:$0xff]  ;;  %v10581_v13 = vpack.i.bf16 %v14027_v59, %v13955_v8 }
 0x7b2   :  { %9484 = vmatmul.mubr.msk.f32.gmra.mrb[70].mxu0 %vm1078_vm5, %v13635_v25  ;;  %v13986_v25 = vld [vmem:[#allocation2 + $0xe2] sm:$0xff]  ;;  %v14042_v24 = vld [vmem:[#allocation2 + $0x71] sm:$0xff]  ;;  %v10571_v51 = vpack.i.bf16 %v13938_v1, %v14040_v11  ;;  %v10586_v56 = vpack.i.bf16 %v13942_v20, %v4330_v30 }
 0x7b3   :  { %9486 = vmatprep.mubr.msk.f32.mxu0 %vm1078_vm5, %v13972_v46  ;;  %10522 = vrot.lane.b32.xlu0 %v10521_v57, %s11497_s0  ;;  %v10576_v28 = vpack.i.bf16 %v14011_v36, %v14042_v24  ;;  %v14055_v48 = vld [vmem:[#allocation2 + $0x81] sm:$0xff]  ;;  %v10596_v1 = vpack.i.bf16 %v14042_v24, %v13959_v18  ;;  %v4331_v39 = vld [vmem:[#allocation2 + $0x90] sm:$0xff] }
 0x7b4   :  { %10527 = vrot.lane.b32.xlu1 %v10526_v7, %s11501_s8  ;;  %v10591_v35 = vpack.i.bf16 %v14040_v11, %v14055_v48  ;;  %v4347_v38 = vld [vmem:[#allocation2 + $0x91] sm:$0xff]  ;;  %v10601_v20 = vpack.i.bf16 %v13955_v8, %v4331_v39  ;;  %v4252_v21 = vld [vmem:[#allocation2 + $0xa1] sm:$0xff] }
 0x7b5   :  { %v10606_v32 = vpack.i.bf16 %v4330_v30, %v4347_v38  ;;  %v4316_v57 = vld [vmem:[#allocation2 + $0xb2] sm:$0xff]  ;;  %v4268_v7 = vld [vmem:[#allocation2 + $0xa2] sm:$0xff] }
 0x7b6   :  { %9487 = vmatmul.mubr.msk.f32.gmra.mrb[72].mxu0 %vm1078_vm5, %v13982_v15  ;;  %v14083_v45 = vld [vmem:[#allocation2 + $0xd0] sm:$0xff] }
 0x7b7   :  { %9489 = vmatprep.mubr.msk.f32.mxu0 %vm1078_vm5, %v13986_v25  ;;  %10532 = vrot.lane.b32.xlu0 %v10531_v22, %s11503_s26  ;;  %v14066_v22 = vld [vmem:[#allocation2 + $0xc0] sm:$0xff]  ;;  %v14085_v52 = vld [vmem:[#allocation2 + $0xd1] sm:$0xff] }
 0x7b8   :  { %10537 = vrot.lane.b32.xlu1 %v10536_v33, %s11497_s0  ;;  %v10611_v33 = vpack.i.bf16 %v4252_v21, %v4316_v57  ;;  %v10616_v18 = vpack.i.bf16 %v4268_v7, %v14066_v22  ;;  %v14110_v39 = vld [vmem:[#allocation2 + $0xf1] sm:$0xff] }
 0x7b9   :  { %v10686_v7 = vpack.i.bf16 %v14110_v39, %v14004_v55 }
 0x7ba   :  { %9490 = vmatmul.mubr.msk.f32.gmra.mrb[74].mxu0 %vm1078_vm5, %v14000_v6 }
 0x7bb   :  { %9492 = vmatprep.mubr.msk.f32.mxu0 %vm1078_vm5, %v14004_v55  ;;  %10542 = vrot.lane.b32.xlu0 %v10541_v9, %s11501_s8  ;;  %v14071_v9 = vld [vmem:[#allocation2 + $0xb0] sm:$0xff] }
 0x7bc   :  { %10547 = vrot.lane.b32.xlu1 %v10546_v27, %s11503_s26  ;;  %v14073_v27 = vld [vmem:[#allocation2 + $0xc1] sm:$0xff] }
 0x7bd   :  { %v10621_v8 = vpack.i.bf16 %v14071_v9, %v14073_v27 }
 0x7be   :  { %9493 = vmatmul.mubr.msk.f32.gmra.mrb[76].mxu0 %vm1078_vm5, %v14015_v3 }
 0x7bf   :  { %9495 = vmatprep.mubr.msk.f32.mxu0 %vm1078_vm5, %v14019_v62  ;;  %10552 = vrot.lane.b32.xlu0 %v10551_v29, %s11497_s0  ;;  %v14075_v29 = vld [vmem:[#allocation2 + $0xb1] sm:$0xff] }
 0x7c0   :  { %10557 = vrot.lane.b32.xlu1 %v10556_v42, %s11501_s8  ;;  %v10626_v42 = vpack.i.bf16 %v14075_v29, %v13972_v46 }
 0x7c3   :  { %10562 = vrot.lane.b32.xlu0 %v10561_v17, %s11503_s26  ;;  %v10631_v17 = vpack.i.bf16 %v4316_v57, %v14083_v45  ;;  %v14126_v57 = vld [vmem:[#allocation2 + $0x101] sm:$0xff] }
 0x7c4   :  { %10567 = vrot.lane.b32.xlu1 %v10566_v40, %s11497_s0  ;;  %v10636_v40 = vpack.i.bf16 %v14066_v22, %v14085_v52 }
 0x7c7   :  { %10572 = vrot.lane.b32.xlu0 %v10571_v51, %s11501_s8  ;;  %v14092_v51 = vld [vmem:[#allocation2 + $0xe0] sm:$0xff] }
 0x7c8   :  { %10577 = vrot.lane.b32.xlu1 %v10576_v28, %s11503_s26  ;;  %v10641_v28 = vpack.i.bf16 %v14073_v27, %v13982_v15  ;;  %v10646_v30 = vpack.i.bf16 %v13972_v46, %v14092_v51  ;;  %v10666_v38 = vpack.i.bf16 %v14092_v51, %v14110_v39 }
 0x7cb   :  { %10582 = vrot.lane.b32.xlu0 %v10581_v13, %s11497_s0  ;;  %v14100_v13 = vld [vmem:[#allocation2 + $0xe1] sm:$0xff] }
 0x7cc   :  { %10587 = vrot.lane.b32.xlu1 %v10586_v56, %s11501_s8  ;;  %v10651_v56 = vpack.i.bf16 %v14083_v45, %v14100_v13 }
 0x7cf   :  { %10592 = vrot.lane.b32.xlu0 %v10591_v35, %s11503_s26  ;;  %v10656_v35 = vpack.i.bf16 %v14085_v52, %v13986_v25 }
 0x7d0   :  { %10597 = vrot.lane.b32.xlu1 %v10596_v1, %s11497_s0  ;;  %v14108_v1 = vld [vmem:[#allocation2 + $0xf0] sm:$0xff] }
 0x7d1   :  { %v10661_v46 = vpack.i.bf16 %v13982_v15, %v14108_v1  ;;  %v10681_v15 = vpack.i.bf16 %v14108_v1, %v14126_v57 }
 0x7d3   :  { %10602 = vrot.lane.b32.xlu0 %v10601_v20, %s11501_s8  ;;  %v14118_v20 = vld [vmem:[#allocation2 + $0x100] sm:$0xff] }
 0x7d4   :  { %10607 = vrot.lane.b32.xlu1 %v10606_v32, %s11503_s26  ;;  %v10671_v32 = vpack.i.bf16 %v14100_v13, %v14000_v6  ;;  %v10676_v21 = vpack.i.bf16 %v13986_v25, %v14118_v20 }
 0x7d7   :  { %10612 = vrot.lane.b32.xlu0 %v10611_v33, %s11497_s0  ;;  %v14134_v33 = vld [vmem:[#allocation2 + $0x110] sm:$0xff] }
 0x7d8   :  { %10617 = vrot.lane.b32.xlu1 %v10616_v18, %s11501_s8  ;;  %v14136_v18 = vld [vmem:[#allocation2 + $0x111] sm:$0xff]  ;;  %v10691_v25 = vpack.i.bf16 %v14000_v6, %v14134_v33 }
 0x7db   :  { %10622 = vrot.lane.b32.xlu0 %v10621_v8, %s11503_s26  ;;  %v10696_v8 = vpack.i.bf16 %v14118_v20, %v14136_v18 }
 0x7dc   :  { %10627 = vrot.lane.b32.xlu1 %v10626_v42, %s11497_s0  ;;  %v4338_v42 = vld [vmem:[#allocation2 + $0x120] sm:$0xff] }
 0x7df   :  { %10632 = vrot.lane.b32.xlu0 %v10631_v17, %s11501_s8  ;;  %v4371_v17 = vld [vmem:[#allocation2 + $0x132] sm:$0xff] }
 0x7e0   :  { %10637 = vrot.lane.b32.xlu1 %v10636_v40, %s11503_s26  ;;  %9496 = vmatmul.mubr.msk.f32.gmra.mrb[78].mxu0 %vm1078_vm5, %v4371_v17  ;;  %v10701_v40 = vpack.i.bf16 %v14126_v57, %v14015_v3 }
 0x7e3   :  { %10642 = vrot.lane.b32.xlu0 %v10641_v28, %s11497_s0  ;;  %v10706_v28 = vpack.i.bf16 %v14004_v55, %v4338_v42 }
 0x7e4   :  { %10647 = vrot.lane.b32.xlu1 %v10646_v30, %s11501_s8  ;;  %v14150_v30 = vld [vmem:[#allocation2 + $0x121] sm:$0xff] }
 0x7e5   :  { %v10711_v6 = vpack.i.bf16 %v14134_v33, %v14150_v30 }
 0x7e7   :  { %10652 = vrot.lane.b32.xlu0 %v10651_v56, %s11503_s26  ;;  %v10716_v56 = vpack.i.bf16 %v14136_v18, %v14019_v62 }
 0x7e8   :  { %10657 = vrot.lane.b32.xlu1 %v10656_v35, %s11497_s0  ;;  %v4339_v35 = vld [vmem:[#allocation2 + $0x130] sm:$0xff] }
 0x7e9   :  { %v10721_v55 = vpack.i.bf16 %v14015_v3, %v4339_v35 }
 0x7eb   :  { %10662 = vrot.lane.b32.xlu0 %v10661_v46, %s11501_s8  ;;  %v4355_v46 = vld [vmem:[#allocation2 + $0x131] sm:$0xff] }
 0x7ec   :  { %10667 = vrot.lane.b32.xlu1 %v10666_v38, %s11503_s26  ;;  %v10726_v38 = vpack.i.bf16 %v4338_v42, %v4355_v46 }
 0x7ef   :  { %10672 = vrot.lane.b32.xlu0 %v10671_v32, %s11497_s0 }
 0x7f0   :  { %10677 = vrot.lane.b32.xlu1 %v10676_v21, %s11501_s8  ;;  %v4228_v21 = vld [vmem:[#allocation2] sm:$0xff] }
 0x7f3   :  { %10682 = vrot.lane.b32.xlu0 %v10681_v15, %s11503_s26 }
 0x7f4   :  { %10687 = vrot.lane.b32.xlu1 %v10686_v7, %s11497_s0 }
 0x7f7   :  { %10692 = vrot.lane.b32.xlu0 %v10691_v25, %s11501_s8 }
 0x7f8   :  { %10697 = vrot.lane.b32.xlu1 %v10696_v8, %s11503_s26 }
 0x7fb   :  { %10702 = vrot.lane.b32.xlu0 %v10701_v40, %s11497_s0 }
 0x7fc   :  { %10707 = vrot.lane.b32.xlu1 %v10706_v28, %s11501_s8 }
 0x7ff   :  { %10712 = vrot.lane.b32.xlu0 %v10711_v6, %s11503_s26 }
 0x800   :  { %10717 = vrot.lane.b32.xlu1 %v10716_v56, %s11497_s0 }
 0x803   :  { %10722 = vrot.lane.b32.xlu0 %v10721_v55, %s11501_s8 }
 0x804   :  { %10727 = vrot.lane.b32.xlu1 %v10726_v38, %s11503_s26 }
 0x819   :  { %v10493_v15 = vpop.permute.xlu0 %10492 }
 0x81a   :  { %v10498_v32 = vpop.permute.xlu1 %10497  ;;  %v10495_v7 = vunpack.i.h.bf16 %v10493_v15  ;;  %v10494_v25 = vunpack.i.l.bf16 %v10493_v15 }
 0x81b   :  { %v10500_v8 = vunpack.i.h.bf16 %v10498_v32  ;;  %v10499_v62 = vunpack.i.l.bf16 %v10498_v32 }
 0x81c   :  { %v4756_v17 = vsel %vm1078_vm5, %v4228_v21, %v10495_v7  ;;  %v4804_v40 = vsel %vm1078_vm5, %v13934_v44, %v10494_v25 }
 0x81d   :  { %v10503_v28 = vpop.permute.xlu0 %10502  ;;  %v4820_v46 = vsel %vm286_vm0, %v4804_v40, %v10499_v62  ;;  %v4772_v55 = vsel %vm286_vm0, %v4756_v17, %v10500_v8 }
 0x81e   :  { %v10508_v6 = vpop.permute.xlu1 %10507  ;;  %v10505_v3 = vunpack.i.h.bf16 %v10503_v28  ;;  %v10504_v42 = vunpack.i.l.bf16 %v10503_v28 }
 0x81f   :  { %v10510_v56 = vunpack.i.h.bf16 %v10508_v6  ;;  %v10509_v35 = vunpack.i.l.bf16 %v10508_v6 }
 0x820   :  { %v4836_v38 = vsel %vm2254_vm11, %v4820_v46, %v10504_v42  ;;  %v4788_v15 = vsel %vm2254_vm11, %v4772_v55, %v10505_v3 }
 0x821   :  { %4964 = vmatprep.mubr.f32.mxu1 %v4836_v38  ;;  %v10513_v32 = vpop.permute.xlu0 %10512  ;;  %v4805_v28 = vsel %vm1078_vm5, %v13932_v53, %v10509_v35  ;;  %v4757_v62 = vsel %vm1078_vm5, %v13930_v16, %v10510_v56 }
 0x822   :  { %v10518_v21 = vpop.permute.xlu1 %10517  ;;  %v10515_v7 = vunpack.i.h.bf16 %v10513_v32  ;;  %v10514_v58 = vunpack.i.l.bf16 %v10513_v32  ;;  %4965 = vmatmul.mubr.f32.vlgmr.msra.gmra.mrb[32].mxu1 %v4788_v15 }
 0x823   :  { %v10520_v44 = vunpack.i.h.bf16 %v10518_v21  ;;  %v10519_v25 = vunpack.i.l.bf16 %v10518_v21  ;;  %9762 = vmatpush3.bf16.msra.mxu1 %v14033_v26 }
 0x824   :  { %v4821_v8 = vsel %vm286_vm0, %v4805_v28, %v10514_v58  ;;  %v4773_v17 = vsel %vm286_vm0, %v4757_v62, %v10515_v7 }
 0x825   :  { %v10523_v40 = vpop.permute.xlu0 %10522  ;;  %v4837_v3 = vsel %vm2254_vm11, %v4821_v8, %v10519_v25  ;;  %v4789_v42 = vsel %vm2254_vm11, %v4773_v17, %v10520_v44 }
 0x826   :  { %v10528_v6 = vpop.permute.xlu1 %10527  ;;  %v10525_v46 = vunpack.i.h.bf16 %v10523_v40  ;;  %v10524_v55 = vunpack.i.l.bf16 %v10523_v40  ;;  %4969 = vmatprep.mubr.f32.mxu1 %v4837_v3 }
 0x827   :  { %v10530_v38 = vunpack.i.h.bf16 %v10528_v6  ;;  %v10529_v53 = vunpack.i.l.bf16 %v10528_v6  ;;  %4970 = vmatmul.mubr.f32.gmra.mrb[34].mxu1 %v4789_v42 }
 0x828   :  { %v4806_v16 = vsel %vm1078_vm5, %v13951_v50, %v10524_v55  ;;  %v4758_v58 = vsel %vm1078_vm5, %v13922_v61, %v10525_v46 }
 0x829   :  { %v10533_v26 = vpop.permute.xlu0 %10532  ;;  %v4822_v7 = vsel %vm286_vm0, %v4806_v16, %v10529_v53  ;;  %v4774_v44 = vsel %vm286_vm0, %v4758_v58, %v10530_v38 }
 0x82a   :  { %v10538_v56 = vpop.permute.xlu1 %10537  ;;  %v10535_v35 = vunpack.i.h.bf16 %v10533_v26  ;;  %v10534_v15 = vunpack.i.l.bf16 %v10533_v26 }
 0x82b   :  { %v10540_v32 = vunpack.i.h.bf16 %v10538_v56  ;;  %v10539_v21 = vunpack.i.l.bf16 %v10538_v56 }
 0x82c   :  { %v4838_v25 = vsel %vm2254_vm11, %v4822_v7, %v10534_v15  ;;  %v4790_v28 = vsel %vm2254_vm11, %v4774_v44, %v10535_v35 }
 0x82d   :  { %v10543_v62 = vpop.permute.xlu0 %10542  ;;  %4974 = vmatprep.mubr.f32.mxu1 %v4838_v25  ;;  %v4807_v6 = vsel %vm1078_vm5, %v13978_v12, %v10539_v21  ;;  %v4759_v3 = vsel %vm1078_vm5, %v13949_v23, %v10540_v32 }
 0x82e   :  { %v10548_v8 = vpop.permute.xlu1 %10547  ;;  %v10545_v50 = vunpack.i.h.bf16 %v10543_v62  ;;  %v10544_v17 = vunpack.i.l.bf16 %v10543_v62  ;;  %4975 = vmatmul.mubr.f32.gmra.mrb[36].mxu1 %v4790_v28 }
 0x82f   :  { %v10550_v61 = vunpack.i.h.bf16 %v10548_v8  ;;  %v10549_v40 = vunpack.i.l.bf16 %v10548_v8 }
 0x830   :  { %v4823_v42 = vsel %vm286_vm0, %v4807_v6, %v10544_v17  ;;  %v4775_v46 = vsel %vm286_vm0, %v4759_v3, %v10545_v50 }
 0x831   :  { %v10553_v55 = vpop.permute.xlu0 %10552  ;;  %v4839_v53 = vsel %vm2254_vm11, %v4823_v42, %v10549_v40  ;;  %v4791_v16 = vsel %vm2254_vm11, %v4775_v46, %v10550_v61 }
 0x832   :  { %v10558_v38 = vpop.permute.xlu1 %10557  ;;  %v10555_v58 = vunpack.i.h.bf16 %v10553_v55  ;;  %v10554_v26 = vunpack.i.l.bf16 %v10553_v55  ;;  %4979 = vmatprep.mubr.f32.mxu1 %v4839_v53 }
 0x833   :  { %v10560_v56 = vunpack.i.h.bf16 %v10558_v38  ;;  %v10559_v35 = vunpack.i.l.bf16 %v10558_v38  ;;  %4980 = vmatmul.mubr.f32.gmra.mrb[38].mxu1 %v4791_v16 }
 0x834   :  { %v4808_v12 = vsel %vm1078_vm5, %v13996_v34, %v10554_v26  ;;  %v4760_v23 = vsel %vm1078_vm5, %v13966_v10, %v10555_v58 }
 0x835   :  { %v10563_v15 = vpop.permute.xlu0 %10562  ;;  %v4824_v28 = vsel %vm286_vm0, %v4808_v12, %v10559_v35  ;;  %v4776_v62 = vsel %vm286_vm0, %v4760_v23, %v10560_v56 }
 0x836   :  { %v10568_v32 = vpop.permute.xlu1 %10567  ;;  %v10565_v21 = vunpack.i.h.bf16 %v10563_v15  ;;  %v10564_v7 = vunpack.i.l.bf16 %v10563_v15 }
 0x837   :  { %v10570_v44 = vunpack.i.h.bf16 %v10568_v32  ;;  %v10569_v25 = vunpack.i.l.bf16 %v10568_v32 }
 0x838   :  { %v4840_v8 = vsel %vm2254_vm11, %v4824_v28, %v10564_v7  ;;  %v4792_v50 = vsel %vm2254_vm11, %v4776_v62, %v10565_v21 }
 0x839   :  { %v10573_v17 = vpop.permute.xlu0 %10572  ;;  %4984 = vmatprep.mubr.f32.mxu1 %v4840_v8  ;;  %v4809_v3 = vsel %vm1078_vm5, %v14027_v59, %v10569_v25  ;;  %v4761_v42 = vsel %vm1078_vm5, %v13994_v2, %v10570_v44 }
 0x83a   :  { %v10578_v61 = vpop.permute.xlu1 %10577  ;;  %v10575_v34 = vunpack.i.h.bf16 %v10573_v17  ;;  %v10574_v40 = vunpack.i.l.bf16 %v10573_v17  ;;  %4985 = vmatmul.mubr.f32.gmra.mrb[40].mxu1 %v4792_v50 }
 0x83b   :  { %v10580_v10 = vunpack.i.h.bf16 %v10578_v61  ;;  %v10579_v6 = vunpack.i.l.bf16 %v10578_v61 }
 0x83c   :  { %v4825_v46 = vsel %vm286_vm0, %v4809_v3, %v10574_v40  ;;  %v4777_v55 = vsel %vm286_vm0, %v4761_v42, %v10575_v34 }
 0x83d   :  { %v10583_v38 = vpop.permute.xlu0 %10582  ;;  %v4841_v16 = vsel %vm2254_vm11, %v4825_v46, %v10579_v6  ;;  %v4793_v58 = vsel %vm2254_vm11, %v4777_v55, %v10580_v10 }
 0x83e   :  { %v10588_v53 = vpop.permute.xlu1 %10587  ;;  %v10585_v26 = vunpack.i.h.bf16 %v10583_v38  ;;  %v10584_v56 = vunpack.i.l.bf16 %v10583_v38  ;;  %4989 = vmatprep.mubr.f32.mxu1 %v4841_v16 }
 0x83f   :  { %v10590_v35 = vunpack.i.h.bf16 %v10588_v53  ;;  %v10589_v12 = vunpack.i.l.bf16 %v10588_v53  ;;  %4990 = vmatmul.mubr.f32.gmra.mrb[42].mxu1 %v4793_v58  ;;  %v4236_v53 = vld [vmem:[#allocation2 + $0xa0] sm:$0xff] }
 0x840   :  { %v4810_v59 = vsel %vm1078_vm5, %v14042_v24, %v10584_v56  ;;  %v4762_v2 = vsel %vm1078_vm5, %v14011_v36, %v10585_v26 }
 0x841   :  { %v10593_v23 = vpop.permute.xlu0 %10592  ;;  %v4826_v25 = vsel %vm286_vm0, %v4810_v59, %v10589_v12  ;;  %v4778_v28 = vsel %vm286_vm0, %v4762_v2, %v10590_v35 }
 0x842   :  { %v10598_v15 = vpop.permute.xlu1 %10597  ;;  %v10595_v32 = vunpack.i.h.bf16 %v10593_v23  ;;  %v10594_v21 = vunpack.i.l.bf16 %v10593_v23 }
 0x843   :  { %v10600_v7 = vunpack.i.h.bf16 %v10598_v15  ;;  %v10599_v44 = vunpack.i.l.bf16 %v10598_v15 }
 0x844   :  { %v4842_v62 = vsel %vm2254_vm11, %v4826_v25, %v10594_v21  ;;  %v4794_v8 = vsel %vm2254_vm11, %v4778_v28, %v10595_v32 }
 0x845   :  { %v10603_v50 = vpop.permute.xlu0 %10602  ;;  %4994 = vmatprep.mubr.f32.mxu1 %v4842_v62  ;;  %v4811_v40 = vsel %vm1078_vm5, %v14055_v48, %v10599_v44  ;;  %v4763_v10 = vsel %vm1078_vm5, %v14040_v11, %v10600_v7 }
 0x846   :  { %v10608_v17 = vpop.permute.xlu1 %10607  ;;  %v10605_v24 = vunpack.i.h.bf16 %v10603_v50  ;;  %v10604_v61 = vunpack.i.l.bf16 %v10603_v50  ;;  %4995 = vmatmul.mubr.f32.gmra.mrb[44].mxu1 %v4794_v8 }
 0x847   :  { %v10610_v36 = vunpack.i.h.bf16 %v10608_v17  ;;  %v10609_v34 = vunpack.i.l.bf16 %v10608_v17 }
 0x848   :  { %v4827_v6 = vsel %vm286_vm0, %v4811_v40, %v10604_v61  ;;  %v4779_v3 = vsel %vm286_vm0, %v4763_v10, %v10605_v24 }
 0x849   :  { %v10613_v42 = vpop.permute.xlu0 %10612  ;;  %v4843_v55 = vsel %vm2254_vm11, %v4827_v6, %v10609_v34  ;;  %v4795_v38 = vsel %vm2254_vm11, %v4779_v3, %v10610_v36 }
 0x84a   :  { %v10618_v46 = vpop.permute.xlu1 %10617  ;;  %v10615_v16 = vunpack.i.h.bf16 %v10613_v42  ;;  %v10614_v58 = vunpack.i.l.bf16 %v10613_v42  ;;  %4999 = vmatprep.mubr.f32.mxu1 %v4843_v55 }
 0x84b   :  { %v10620_v26 = vunpack.i.h.bf16 %v10618_v46  ;;  %v10619_v56 = vunpack.i.l.bf16 %v10618_v46  ;;  %5000 = vmatmul.mubr.f32.gmra.mrb[46].mxu1 %v4795_v38 }
 0x84c   :  { %v4812_v11 = vsel %vm1078_vm5, %v14075_v29, %v10614_v58  ;;  %v4764_v48 = vsel %vm1078_vm5, %v4236_v53, %v10615_v16 }
 0x84d   :  { %v10623_v35 = vpop.permute.xlu0 %10622  ;;  %v4828_v32 = vsel %vm286_vm0, %v4812_v11, %v10619_v56  ;;  %v4780_v21 = vsel %vm286_vm0, %v4764_v48, %v10620_v26 }
 0x84e   :  { %v10628_v12 = vpop.permute.xlu1 %10627  ;;  %v10625_v59 = vunpack.i.h.bf16 %v10623_v35  ;;  %v10624_v2 = vunpack.i.l.bf16 %v10623_v35 }
 0x84f   :  { %v10630_v23 = vunpack.i.h.bf16 %v10628_v12  ;;  %v10629_v15 = vunpack.i.l.bf16 %v10628_v12 }
 0x850   :  { %v4844_v7 = vsel %vm2254_vm11, %v4828_v32, %v10624_v2  ;;  %v4796_v44 = vsel %vm2254_vm11, %v4780_v21, %v10625_v59 }
 0x851   :  { %v10633_v25 = vpop.permute.xlu0 %10632  ;;  %5004 = vmatprep.mubr.f32.mxu1 %v4844_v7  ;;  %v4813_v17 = vsel %vm1078_vm5, %v14073_v27, %v10629_v15  ;;  %v4765_v24 = vsel %vm1078_vm5, %v14071_v9, %v10630_v23 }
 0x852   :  { %v10638_v28 = vpop.permute.xlu1 %10637  ;;  %v10635_v29 = vunpack.i.h.bf16 %v10633_v25  ;;  %v10634_v62 = vunpack.i.l.bf16 %v10633_v25  ;;  %5005 = vmatmul.mubr.f32.gmra.mrb[48].mxu1 %v4796_v44 }
 0x853   :  { %v10640_v8 = vunpack.i.h.bf16 %v10638_v28  ;;  %v10639_v50 = vunpack.i.l.bf16 %v10638_v28 }
 0x854   :  { %v4829_v61 = vsel %vm286_vm0, %v4813_v17, %v10634_v62  ;;  %v4781_v36 = vsel %vm286_vm0, %v4765_v24, %v10635_v29 }
 0x855   :  { %v10643_v34 = vpop.permute.xlu0 %10642  ;;  %v4845_v10 = vsel %vm2254_vm11, %v4829_v61, %v10639_v50  ;;  %v4797_v6 = vsel %vm2254_vm11, %v4781_v36, %v10640_v8 }
 0x856   :  { %v10648_v40 = vpop.permute.xlu1 %10647  ;;  %v10645_v3 = vunpack.i.h.bf16 %v10643_v34  ;;  %v10644_v42 = vunpack.i.l.bf16 %v10643_v34  ;;  %5009 = vmatprep.mubr.f32.mxu1 %v4845_v10 }
 0x857   :  { %v10650_v46 = vunpack.i.h.bf16 %v10648_v40  ;;  %v10649_v55 = vunpack.i.l.bf16 %v10648_v40  ;;  %5010 = vmatmul.mubr.f32.gmra.mrb[50].mxu1 %v4797_v6 }
 0x858   :  { %v4814_v27 = vsel %vm1078_vm5, %v14085_v52, %v10644_v42  ;;  %v4766_v9 = vsel %vm1078_vm5, %v14066_v22, %v10645_v3 }
 0x859   :  { %v10653_v38 = vpop.permute.xlu0 %10652  ;;  %v4830_v11 = vsel %vm286_vm0, %v4814_v27, %v10649_v55  ;;  %v4782_v48 = vsel %vm286_vm0, %v4766_v9, %v10650_v46 }
 0x85a   :  { %v10658_v53 = vpop.permute.xlu1 %10657  ;;  %v10655_v16 = vunpack.i.h.bf16 %v10653_v38  ;;  %v10654_v58 = vunpack.i.l.bf16 %v10653_v38 }
 0x85b   :  { %v10660_v26 = vunpack.i.h.bf16 %v10658_v53  ;;  %v10659_v56 = vunpack.i.l.bf16 %v10658_v53 }
 0x85c   :  { %v4846_v35 = vsel %vm2254_vm11, %v4830_v11, %v10654_v58  ;;  %v4798_v12 = vsel %vm2254_vm11, %v4782_v48, %v10655_v16 }
 0x85d   :  { %v10663_v59 = vpop.permute.xlu0 %10662  ;;  %5014 = vmatprep.mubr.f32.mxu1 %v4846_v35  ;;  %v4815_v32 = vsel %vm1078_vm5, %v14100_v13, %v10659_v56  ;;  %v4767_v21 = vsel %vm1078_vm5, %v14083_v45, %v10660_v26 }
 0x85e   :  { %v10668_v2 = vpop.permute.xlu1 %10667  ;;  %v10665_v52 = vunpack.i.h.bf16 %v10663_v59  ;;  %v10664_v23 = vunpack.i.l.bf16 %v10663_v59  ;;  %5015 = vmatmul.mubr.f32.gmra.mrb[52].mxu1 %v4798_v12 }
 0x85f   :  { %v10670_v22 = vunpack.i.h.bf16 %v10668_v2  ;;  %v10669_v15 = vunpack.i.l.bf16 %v10668_v2 }
 0x860   :  { %v4831_v7 = vsel %vm286_vm0, %v4815_v32, %v10664_v23  ;;  %v4783_v44 = vsel %vm286_vm0, %v4767_v21, %v10665_v52 }
 0x861   :  { %v10673_v25 = vpop.permute.xlu0 %10672  ;;  %v4847_v29 = vsel %vm2254_vm11, %v4831_v7, %v10669_v15  ;;  %v4799_v62 = vsel %vm2254_vm11, %v4783_v44, %v10670_v22 }
 0x862   :  { %v10678_v28 = vpop.permute.xlu1 %10677  ;;  %v10675_v8 = vunpack.i.h.bf16 %v10673_v25  ;;  %v10674_v50 = vunpack.i.l.bf16 %v10673_v25  ;;  %5019 = vmatprep.mubr.f32.mxu1 %v4847_v29 }
 0x863   :  { %v10680_v17 = vunpack.i.h.bf16 %v10678_v28  ;;  %v10679_v24 = vunpack.i.l.bf16 %v10678_v28  ;;  %5020 = vmatmul.mubr.f32.gmra.mrb[54].mxu1 %v4799_v62 }
 0x864   :  { %v4816_v13 = vsel %vm1078_vm5, %v14110_v39, %v10674_v50  ;;  %v4768_v45 = vsel %vm1078_vm5, %v14092_v51, %v10675_v8 }
 0x865   :  { %v10683_v61 = vpop.permute.xlu0 %10682  ;;  %v4832_v3 = vsel %vm286_vm0, %v4816_v13, %v10679_v24  ;;  %v4784_v42 = vsel %vm286_vm0, %v4768_v45, %v10680_v17 }
 0x866   :  { %v10688_v36 = vpop.permute.xlu1 %10687  ;;  %v10685_v34 = vunpack.i.h.bf16 %v10683_v61  ;;  %v10684_v40 = vunpack.i.l.bf16 %v10683_v61 }
 0x867   :  { %v10690_v10 = vunpack.i.h.bf16 %v10688_v36  ;;  %v10689_v6 = vunpack.i.l.bf16 %v10688_v36 }
 0x868   :  { %v4848_v46 = vsel %vm2254_vm11, %v4832_v3, %v10684_v40  ;;  %v4800_v55 = vsel %vm2254_vm11, %v4784_v42, %v10685_v34  ;;  %v16461_v3 = vmax.f32 %v13283_v49, 0.0  ;;  %v16465_v49 = vmax.f32 %v13295_v0, 0.0 }
 0x869   :  { %v10693_v27 = vpop.permute.xlu0 %10692  ;;  %5024 = vmatprep.mubr.f32.mxu1 %v4848_v46  ;;  %v4817_v16 = vsel %vm1078_vm5, %v14126_v57, %v10689_v6  ;;  %v4769_v58 = vsel %vm1078_vm5, %v14108_v1, %v10690_v10  ;;  %v16463_v46 = vmax.f32 %v13289_v60, 0.0  ;;  %v16467_v60 = vmax.f32 %v13301_v19, 0.0 }
 0x86a   :  { %v10698_v9 = vpop.permute.xlu1 %10697  ;;  %v10695_v39 = vunpack.i.h.bf16 %v10693_v27  ;;  %v10694_v38 = vunpack.i.l.bf16 %v10693_v27  ;;  %5025 = vmatmul.mubr.f32.gmra.mrb[56].mxu1 %v4800_v55  ;;  %v16468_v0 = vmax.f32 %v13304_v31, 0.0  ;;  %v16470_v19 = vmax.f32 %v13310_v43, 0.0 }
 0x86b   :  { %v10700_v51 = vunpack.i.h.bf16 %v10698_v9  ;;  %v10699_v53 = vunpack.i.l.bf16 %v10698_v9  ;;  %v16464_v9 = vmax.f32 %v13292_v47, 0.0  ;;  %v16474_v43 = vmax.f32 %v13322_v37, 0.0 }
 0x86c   :  { %v4833_v26 = vsel %vm286_vm0, %v4817_v16, %v10694_v38  ;;  %v4785_v56 = vsel %vm286_vm0, %v4769_v58, %v10695_v39  ;;  %v16466_v38 = vmax.f32 %v13298_v54, 0.0  ;;  %v16471_v58 = vmax.f32 %v13313_v5, 0.0 }
 0x86d   :  { %v10703_v11 = vpop.permute.xlu0 %10702  ;;  %v4849_v35 = vsel %vm2254_vm11, %v4833_v26, %v10699_v53  ;;  %v4801_v12 = vsel %vm2254_vm11, %v4785_v56, %v10700_v51  ;;  %v16469_v53 = vmax.f32 %v13307_v14, 0.0  ;;  %v16472_v14 = vmax.f32 %v13316_v4, 0.0 }
 0x86e   :  { %v10708_v48 = vpop.permute.xlu1 %10707  ;;  %v10705_v59 = vunpack.i.h.bf16 %v10703_v11  ;;  %v10704_v2 = vunpack.i.l.bf16 %v10703_v11  ;;  %5029 = vmatprep.mubr.f32.mxu1 %v4849_v35  ;;  %v16473_v56 = vmax.f32 %v13319_v41, 0.0  ;;  %v16475_v11 = vld [vmem:[#allocation44_spill] sm:$0xff] }
 0x86f   :  { %v10710_v52 = vunpack.i.h.bf16 %v10708_v48  ;;  %v10709_v23 = vunpack.i.l.bf16 %v10708_v48  ;;  %5030 = vmatmul.mubr.f32.gmra.mrb[58].mxu1 %v4801_v12  ;;  %v16476_v5 = vmax.f32 %v16475_v11, 0.0  ;;  %v16477_v48 = vld [vmem:[#allocation45_spill] sm:$0xff] }
 0x870   :  { %v4818_v57 = vsel %vm1078_vm5, %v14136_v18, %v10704_v2  ;;  %v4770_v1 = vsel %vm1078_vm5, %v14118_v20, %v10705_v59  ;;  %v16478_v35 = vmax.f32 %v16477_v48, 0.0 }
 0x871   :  { %v10713_v22 = vpop.permute.xlu0 %10712  ;;  %v4834_v25 = vsel %vm286_vm0, %v4818_v57, %v10709_v23  ;;  %v4786_v28 = vsel %vm286_vm0, %v4770_v1, %v10710_v52 }
 0x872   :  { %v10718_v15 = vpop.permute.xlu1 %10717  ;;  %v10715_v32 = vunpack.i.h.bf16 %v10713_v22  ;;  %v10714_v21 = vunpack.i.l.bf16 %v10713_v22 }
 0x873   :  { %v10720_v7 = vunpack.i.h.bf16 %v10718_v15  ;;  %v10719_v44 = vunpack.i.l.bf16 %v10718_v15 }
 0x874   :  { %v4850_v29 = vsel %vm2254_vm11, %v4834_v25, %v10714_v21  ;;  %v4802_v62 = vsel %vm2254_vm11, %v4786_v28, %v10715_v32 }
 0x875   :  { %v10723_v8 = vpop.permute.xlu0 %10722  ;;  %5034 = vmatprep.mubr.f32.mxu1 %v4850_v29  ;;  %v4819_v13 = vsel %vm1078_vm5, %v14150_v30, %v10719_v44  ;;  %v4771_v45 = vsel %vm1078_vm5, %v14134_v33, %v10720_v7  ;;  %v16462_v33 = vmax.f32 %v13286_v63, 0.0 }
 0x876   :  { %v10728_v50 = vpop.permute.xlu1 %10727  ;;  %v10725_v18 = vunpack.i.h.bf16 %v10723_v8  ;;  %v10724_v17 = vunpack.i.l.bf16 %v10723_v8  ;;  %5035 = vmatmul.mubr.f32.gmra.mrb[60].mxu1 %v4802_v62 }
 0x877   :  { %v10730_v20 = vunpack.i.h.bf16 %v10728_v50  ;;  %v10729_v24 = vunpack.i.l.bf16 %v10728_v50 }
 0x878   :  { %v4835_v36 = vsel %vm286_vm0, %v4819_v13, %v10724_v17  ;;  %v4787_v34 = vsel %vm286_vm0, %v4771_v45, %v10725_v18 }
 0x879   :  { %v9476_v61 = vpop.f32.mrb[64].mxu0  ;;  %v4851_v40 = vsel %vm2254_vm11, %v4835_v36, %v10729_v24  ;;  %v4803_v6 = vsel %vm2254_vm11, %v4787_v34, %v10730_v20 }
 0x87a   :  { %v5111_v10 = vpop.f32.mrb[65].mxu0  ;;  %5039 = vmatprep.mubr.f32.mxu1 %v4851_v40 }
 0x87b   :  { %5040 = vmatmul.mubr.f32.gmra.mrb[62].mxu1 %v4803_v6 }
 0x87c   :  { %9502 = vmatprep.mubr.msk.f32.mxu1 %vm1044_vm3, %v16461_v3 }
 0x87d   :  { %v9479_v30 = vpop.f32.mrb[66].mxu0 }
 0x87e   :  { %v5121_v42 = vpop.f32.mrb[67].mxu0 }
 0x87f   :  { %9503 = vmatmul.mubr.msk.f32.vlgmr.msra.gmra.mrb[64].mxu1 %vm1044_vm3, %v16462_v33 }
 0x880   :  { %9505 = vmatprep.mubr.msk.f32.mxu1 %vm1044_vm3, %v16463_v46 }
 0x881   :  { %v14299_v55 = vpop.f32.mrb[68].mxu0 }
 0x882   :  { %v5131_v27 = vpop.f32.mrb[69].mxu0 }
 0x883   :  { %9506 = vmatmul.mubr.msk.f32.gmra.mrb[66].mxu1 %vm1044_vm3, %v16464_v9 }
 0x884   :  { %9508 = vmatprep.mubr.msk.f32.mxu1 %vm1044_vm3, %v16465_v49 }
 0x885   :  { %v14307_v39 = vpop.f32.mrb[70].mxu0 }
 0x886   :  { %v14309_v63 = vpop.f32.mrb[71].mxu0 }
 0x887   :  { %9509 = vmatmul.mubr.msk.f32.gmra.mrb[68].mxu1 %vm1044_vm3, %v16466_v38 }
 0x888   :  { %9511 = vmatprep.mubr.msk.f32.mxu1 %vm1044_vm3, %v16467_v60 }
 0x889   :  { %v14317_v51 = vpop.f32.mrb[72].mxu0 }
 0x88a   :  { %v14319_v47 = vpop.f32.mrb[73].mxu0 }
 0x88b   :  { %9512 = vmatmul.mubr.msk.f32.gmra.mrb[70].mxu1 %vm1044_vm3, %v16468_v0 }
 0x88c   :  { %9514 = vmatprep.mubr.msk.f32.mxu1 %vm1044_vm3, %v16469_v53 }
 0x88d   :  { %v14327_v16 = vpop.f32.mrb[74].mxu0 }
 0x88e   :  { %v14329_v54 = vpop.f32.mrb[75].mxu0 }
 0x88f   :  { %9515 = vmatmul.mubr.msk.f32.gmra.mrb[72].mxu1 %vm1044_vm3, %v16470_v19 }
 0x890   :  { %9517 = vmatprep.mubr.msk.f32.mxu1 %vm1044_vm3, %v16471_v58 }
 0x891   :  { %v14337_v26 = vpop.f32.mrb[76].mxu0 }
 0x892   :  { %v14339_v31 = vpop.f32.mrb[77].mxu0 }
 0x893   :  { %9518 = vmatmul.mubr.msk.f32.gmra.mrb[74].mxu1 %vm1044_vm3, %v16472_v14 }
 0x894   :  { %9520 = vmatprep.mubr.msk.f32.mxu1 %vm1044_vm3, %v16473_v56 }
 0x897   :  { %9521 = vmatmul.mubr.msk.f32.gmra.mrb[76].mxu1 %vm1044_vm3, %v16474_v43 }
 0x898   :  { %9523 = vmatprep.mubr.msk.f32.mxu1 %vm1044_vm3, %v16476_v5 }
 0x89b   :  { %9524 = vmatmul.mubr.msk.f32.gmra.mrb[78].mxu1 %vm1044_vm3, %v16478_v35 }
 0x8b3   :  { %v14356_v12 = vpop.f32.mrb[78].mxu0 }
 0x8b4   :  { %v14358_v4 = vpop.f32.mrb[79].mxu0 }
 0x8f5   :  { %v8999_v59 = vpop.f32.mrb[32].mxu1 }
 0x8f6   :  { %v9000_v41 = vpop.f32.mrb[33].mxu1 }
 0x8f7   :  { %v9001_v2 = vadd.f32 %v9000_v41, %v8999_v59 }
 0x8f9   :  { %v14360_v52 = vadd.f32 %v9001_v2, %v5111_v10 }
 0x8fa   :  { %v9002_v37 = vpop.f32.mrb[34].mxu1 }
 0x8fb   :  { %v9003_v23 = vpop.f32.mrb[35].mxu1  ;;  %v5230_v1 = vmul.f32 %v14360_v52, %v14360_v52  ;;  %v5192_v15 = vsel %vm1078_vm5, %v14360_v52, 0.0 }
 0x8fc   :  { %v9004_v57 = vadd.f32 %v9003_v23, %v9002_v37 }
 0x8fd   :  { %v5246_v25 = vsel %vm1078_vm5, %v5230_v1, 0.0 }
 0x8fe   :  { %v14364_v22 = vadd.f32 %v9476_v61, %v9004_v57 }
 0x900   :  { %v5193_v32 = vsel %vm1078_vm5, %v14364_v22, 0.0  ;;  %v5231_v21 = vmul.f32 %v14364_v22, %v14364_v22 }
 0x901   :  { %v5194_v7 = vadd.f32 %v5193_v32, %v5192_v15  ;;  %v9005_v44 = vpop.f32.mrb[36].mxu1 }
 0x902   :  { %v5247_v28 = vsel %vm1078_vm5, %v5231_v21, 0.0  ;;  %v9006_v29 = vpop.f32.mrb[37].mxu1 }
 0x903   :  { %v5248_v62 = vadd.f32 %v5247_v28, %v5246_v25  ;;  %v9007_v8 = vadd.f32 %v9006_v29, %v9005_v44 }
 0x905   :  { %v14374_v50 = vadd.f32 %v9007_v8, %v5121_v42 }
 0x906   :  { %v9008_v18 = vpop.f32.mrb[38].mxu1 }
 0x907   :  { %v5195_v17 = vsel %vm1078_vm5, %v14374_v50, 0.0  ;;  %v5232_v20 = vmul.f32 %v14374_v50, %v14374_v50  ;;  %v9009_v24 = vpop.f32.mrb[39].mxu1 }
 0x908   :  { %v5196_v13 = vadd.f32 %v5195_v17, %v5194_v7  ;;  %v9010_v45 = vadd.f32 %v9009_v24, %v9008_v18 }
 0x909   :  { %v5249_v61 = vsel %vm1078_vm5, %v5232_v20, 0.0 }
 0x90a   :  { %v5250_v36 = vadd.f32 %v5249_v61, %v5248_v62  ;;  %v14381_v34 = vadd.f32 %v9479_v30, %v9010_v45 }
 0x90c   :  { %v5197_v40 = vsel %vm1078_vm5, %v14381_v34, 0.0  ;;  %v5233_v10 = vmul.f32 %v14381_v34, %v14381_v34 }
 0x90d   :  { %v5198_v6 = vadd.f32 %v5197_v40, %v5196_v13  ;;  %v9011_v3 = vpop.f32.mrb[40].mxu1 }
 0x90e   :  { %v5251_v42 = vsel %vm1078_vm5, %v5233_v10, 0.0  ;;  %v9012_v33 = vpop.f32.mrb[41].mxu1 }
 0x90f   :  { %v5252_v46 = vadd.f32 %v5251_v42, %v5250_v36  ;;  %v9013_v9 = vadd.f32 %v9012_v33, %v9011_v3 }
 0x911   :  { %v14388_v49 = vadd.f32 %v9013_v9, %v5131_v27 }
 0x912   :  { %v9014_v38 = vpop.f32.mrb[42].mxu1 }
 0x913   :  { %v5199_v30 = vsel %vm1078_vm5, %v14388_v49, 0.0  ;;  %v5234_v60 = vmul.f32 %v14388_v49, %v14388_v49  ;;  %v9015_v0 = vpop.f32.mrb[43].mxu1 }
 0x914   :  { %v5200_v53 = vadd.f32 %v5199_v30, %v5198_v6  ;;  %v9016_v19 = vadd.f32 %v9015_v0, %v9014_v38 }
 0x915   :  { %v5253_v58 = vsel %vm1078_vm5, %v5234_v60, 0.0 }
 0x916   :  { %v5254_v14 = vadd.f32 %v5253_v58, %v5252_v46  ;;  %v14396_v56 = vadd.f32 %v14299_v55, %v9016_v19  ;;  %v5797_v19 = vld [vmem:[#allocation21 + $0x100] sm:$0xff]  ;;  %v5798_v58 = vld [vmem:[#allocation21 + $0x108] sm:$0xff] }
 0x918   :  { %v5201_v27 = vsel %vm1078_vm5, %v14396_v56, 0.0  ;;  %v5235_v43 = vmul.f32 %v14396_v56, %v14396_v56 }
 0x919   :  { %v5202_v11 = vadd.f32 %v5201_v27, %v5200_v53  ;;  %v9017_v5 = vpop.f32.mrb[44].mxu1 }
 0x91a   :  { %v5255_v48 = vsel %vm1078_vm5, %v5235_v43, 0.0  ;;  %v9018_v35 = vpop.f32.mrb[45].mxu1  ;;  %v9795_v43 = vpack.c.bf16 %v5798_v58, %v5797_v19 }
 0x91b   :  { %v5256_v59 = vadd.f32 %v5255_v48, %v5254_v14  ;;  %v9019_v41 = vadd.f32 %v9018_v35, %v9017_v5  ;;  %v5799_v5 = vld [vmem:[#allocation21 + $0x110] sm:$0xff]  ;;  %v5800_v48 = vld [vmem:[#allocation21 + $0x118] sm:$0xff] }
 0x91c   :  { %9796 = vmatprep.subr.bf16.mxu1 %v9795_v43 }
 0x91d   :  { %v14404_v2 = vadd.f32 %v9019_v41, %v14309_v63  ;;  %9798 = vmatpush3.bf16.msra.mxu1 %v9795_v43 }
 0x91e   :  { %v9020_v37 = vpop.f32.mrb[46].mxu1 }
 0x91f   :  { %v5203_v55 = vsel %vm1078_vm5, %v14404_v2, 0.0  ;;  %v5236_v23 = vmul.f32 %v14404_v2, %v14404_v2  ;;  %v9021_v57 = vpop.f32.mrb[47].mxu1 }
 0x920   :  { %v5204_v1 = vadd.f32 %v5203_v55, %v5202_v11  ;;  %v9022_v15 = vadd.f32 %v9021_v57, %v9020_v37 }
 0x921   :  { %v5257_v32 = vsel %vm1078_vm5, %v5236_v23, 0.0 }
 0x922   :  { %v5258_v21 = vadd.f32 %v5257_v32, %v5256_v59  ;;  %v14412_v7 = vadd.f32 %v14307_v39, %v9022_v15  ;;  %v9799_v59 = vpack.c.bf16 %v5800_v48, %v5799_v5 }
 0x924   :  { %v5205_v63 = vsel %vm1078_vm5, %v14412_v7, 0.0  ;;  %v5237_v44 = vmul.f32 %v14412_v7, %v14412_v7  ;;  %9800 = vmatprep.subr.bf16.mxu1 %v9799_v59 }
 0x925   :  { %v5206_v25 = vadd.f32 %v5205_v63, %v5204_v1  ;;  %v9023_v28 = vpop.f32.mrb[48].mxu1  ;;  %9802 = vmatpush3.bf16.msra.mxu1 %v9799_v59 }
 0x926   :  { %v5259_v29 = vsel %vm1078_vm5, %v5237_v44, 0.0  ;;  %v9024_v62 = vpop.f32.mrb[49].mxu1 }
 0x927   :  { %v5260_v8 = vadd.f32 %v5259_v29, %v5258_v21  ;;  %v9025_v18 = vadd.f32 %v9024_v62, %v9023_v28 }
 0x929   :  { %v14420_v17 = vadd.f32 %v9025_v18, %v14319_v47 }
 0x92a   :  { %v9026_v20 = vpop.f32.mrb[50].mxu1 }
 0x92b   :  { %v5207_v39 = vsel %vm1078_vm5, %v14420_v17, 0.0  ;;  %v5238_v24 = vmul.f32 %v14420_v17, %v14420_v17  ;;  %v9027_v13 = vpop.f32.mrb[51].mxu1 }
 0x92c   :  { %v5208_v45 = vadd.f32 %v5207_v39, %v5206_v25  ;;  %v9028_v61 = vadd.f32 %v9027_v13, %v9026_v20 }
 0x92d   :  { %v5261_v36 = vsel %vm1078_vm5, %v5238_v24, 0.0 }
 0x92e   :  { %v5262_v40 = vadd.f32 %v5261_v36, %v5260_v8  ;;  %v14428_v10 = vadd.f32 %v14317_v51, %v9028_v61 }
 0x930   :  { %v5209_v47 = vsel %vm1078_vm5, %v14428_v10, 0.0  ;;  %v5239_v6 = vmul.f32 %v14428_v10, %v14428_v10 }
 0x931   :  { %v5210_v3 = vadd.f32 %v5209_v47, %v5208_v45  ;;  %v9029_v42 = vpop.f32.mrb[52].mxu1 }
 0x932   :  { %v5263_v33 = vsel %vm1078_vm5, %v5239_v6, 0.0  ;;  %v9030_v46 = vpop.f32.mrb[53].mxu1 }
 0x933   :  { %v5264_v9 = vadd.f32 %v5263_v33, %v5262_v40  ;;  %v9031_v38 = vadd.f32 %v9030_v46, %v9029_v42 }
 0x935   :  { %v14436_v30 = vadd.f32 %v9031_v38, %v14329_v54 }
 0x936   :  { %v9032_v60 = vpop.f32.mrb[54].mxu1 }
 0x937   :  { %v5211_v51 = vsel %vm1078_vm5, %v14436_v30, 0.0  ;;  %v5240_v0 = vmul.f32 %v14436_v30, %v14436_v30  ;;  %v9033_v53 = vpop.f32.mrb[55].mxu1 }
 0x938   :  { %v5212_v14 = vadd.f32 %v5211_v51, %v5210_v3  ;;  %v9034_v27 = vadd.f32 %v9033_v53, %v9032_v60 }
 0x939   :  { %v5265_v11 = vsel %vm1078_vm5, %v5240_v0, 0.0 }
 0x93a   :  { %v5266_v35 = vadd.f32 %v5265_v11, %v5264_v9  ;;  %v14444_v54 = vadd.f32 %v14327_v16, %v9034_v27 }
 0x93c   :  { %v5213_v41 = vsel %vm1078_vm5, %v14444_v54, 0.0  ;;  %v5241_v37 = vmul.f32 %v14444_v54, %v14444_v54 }
 0x93d   :  { %v5214_v55 = vadd.f32 %v5213_v41, %v5212_v14  ;;  %v9035_v23 = vpop.f32.mrb[56].mxu1 }
 0x93e   :  { %v5267_v57 = vsel %vm1078_vm5, %v5241_v37, 0.0  ;;  %v9036_v1 = vpop.f32.mrb[57].mxu1 }
 0x93f   :  { %v5268_v15 = vadd.f32 %v5267_v57, %v5266_v35  ;;  %v9037_v32 = vadd.f32 %v9036_v1, %v9035_v23 }
 0x941   :  { %v14452_v16 = vadd.f32 %v9037_v32, %v14339_v31 }
 0x942   :  { %v9038_v21 = vpop.f32.mrb[58].mxu1 }
 0x943   :  { %v5215_v63 = vsel %vm1078_vm5, %v14452_v16, 0.0  ;;  %v5242_v44 = vmul.f32 %v14452_v16, %v14452_v16  ;;  %v9039_v25 = vpop.f32.mrb[59].mxu1 }
 0x944   :  { %v5216_v28 = vadd.f32 %v5215_v63, %v5214_v55  ;;  %v9040_v29 = vadd.f32 %v9039_v25, %v9038_v21 }
 0x945   :  { %v5269_v62 = vsel %vm1078_vm5, %v5242_v44, 0.0 }
 0x946   :  { %v5270_v8 = vadd.f32 %v5269_v62, %v5268_v15  ;;  %v14460_v18 = vadd.f32 %v14337_v26, %v9040_v29 }
 0x948   :  { %v5217_v31 = vsel %vm1078_vm5, %v14460_v18, 0.0  ;;  %v5243_v20 = vmul.f32 %v14460_v18, %v14460_v18 }
 0x949   :  { %v9041_v39 = vpop.f32.mrb[60].mxu1  ;;  %v5218_v24 = vadd.f32 %v5217_v31, %v5216_v28 }
 0x94a   :  { %v5271_v13 = vsel %vm1078_vm5, %v5243_v20, 0.0  ;;  %v9042_v45 = vpop.f32.mrb[61].mxu1 }
 0x94b   :  { %v9043_v61 = vadd.f32 %v9042_v45, %v9041_v39  ;;  %v5272_v36 = vadd.f32 %v5271_v13, %v5270_v8 }
 0x94d   :  { %v14468_v40 = vadd.f32 %v9043_v61, %v14358_v4 }
 0x94e   :  { %v9044_v47 = vpop.f32.mrb[62].mxu1 }
 0x94f   :  { %v5219_v26 = vsel %vm1078_vm5, %v14468_v40, 0.0  ;;  %v5244_v6 = vmul.f32 %v14468_v40, %v14468_v40  ;;  %v9045_v3 = vpop.f32.mrb[63].mxu1 }
 0x950   :  { %v5220_v42 = vadd.f32 %v5219_v26, %v5218_v24  ;;  %v9046_v33 = vadd.f32 %v9045_v3, %v9044_v47 }
 0x951   :  { %v5273_v46 = vsel %vm1078_vm5, %v5244_v6, 0.0 }
 0x952   :  { %v5274_v9 = vadd.f32 %v5273_v46, %v5272_v36  ;;  %v14476_v38 = vadd.f32 %v14356_v12, %v9046_v33  ;;  %v14478_v60 = vpop.f32.mrb[64].mxu1 }
 0x953   :  { %v5562_v4 = vsel %vm1078_vm5, %v14478_v60, 0.0  ;;  %v5600_v51 = vmul.f32 %v14478_v60, %v14478_v60  ;;  %v14484_v0 = vpop.f32.mrb[65].mxu1 }
 0x954   :  { %v5221_v53 = vsel %vm1078_vm5, %v14476_v38, 0.0  ;;  %v5245_v19 = vmul.f32 %v14476_v38, %v14476_v38  ;;  %v5561_v12 = vsel %vm1078_vm5, %v14484_v0, 0.0  ;;  %v5599_v58 = vmul.f32 %v14484_v0, %v14484_v0 }
 0x955   :  { %v5222_v14 = vadd.f32 %v5221_v53, %v5220_v42  ;;  %v5616_v27 = vsel %vm1078_vm5, %v5600_v51, 0.0  ;;  %v5563_v43 = vadd.f32 %v5562_v4, %v5561_v12 }
 0x956   :  { %v5275_v11 = vsel %vm1078_vm5, %v5245_v19, 0.0  ;;  %v5615_v5 = vsel %vm1078_vm5, %v5599_v58, 0.0  ;;  %v14497_v48 = vpop.f32.mrb[66].mxu1 }
 0x957   :  { %v5223_v35 = vrot.slane %v5222_v14, 4  ;;  %v5276_v59 = vadd.f32 %v5275_v11, %v5274_v9  ;;  %v5617_v41 = vadd.f32 %v5616_v27, %v5615_v5  ;;  %v14499_v37 = vpop.f32.mrb[67].mxu1  ;;  %v5602_v55 = vmul.f32 %v14497_v48, %v14497_v48 }
 0x958   :  { %v5564_v23 = vsel %vm1078_vm5, %v14499_v37, 0.0  ;;  %v5601_v57 = vmul.f32 %v14499_v37, %v14499_v37  ;;  %v5566_v21 = vsel %vm1078_vm5, %v14497_v48, 0.0 }
 0x959   :  { %v5224_v1 = vadd.f32 %v5223_v35, %v5222_v14  ;;  %v5277_v15 = vrot.slane %v5276_v59, 4  ;;  %v5565_v32 = vadd.f32 %v5564_v23, %v5563_v43  ;;  %v5620_v29 = vsel %vm1078_vm5, %v5602_v55, 0.0 }
 0x95a   :  { %v5618_v63 = vsel %vm1078_vm5, %v5601_v57, 0.0  ;;  %v14510_v44 = vpop.f32.mrb[68].mxu1 }
 0x95b   :  { %v5225_v25 = vrot.slane %v5224_v1, 2  ;;  %v5278_v28 = vadd.f32 %v5277_v15, %v5276_v59  ;;  %v5619_v62 = vadd.f32 %v5618_v63, %v5617_v41  ;;  %v14513_v8 = vpop.f32.mrb[69].mxu1  ;;  %v5604_v31 = vmul.f32 %v14510_v44, %v14510_v44 }
 0x95c   :  { %v5567_v20 = vadd.f32 %v5566_v21, %v5565_v32  ;;  %v5568_v39 = vsel %vm1078_vm5, %v14513_v8, 0.0  ;;  %v5603_v24 = vmul.f32 %v14513_v8, %v14513_v8  ;;  %v5570_v36 = vsel %vm1078_vm5, %v14510_v44, 0.0 }
 0x95d   :  { %v5226_v13 = vadd.f32 %v5225_v25, %v5224_v1  ;;  %v5279_v45 = vrot.slane %v5278_v28, 2  ;;  %v5621_v61 = vadd.f32 %v5620_v29, %v5619_v62  ;;  %v5624_v33 = vsel %vm1078_vm5, %v5604_v31, 0.0 }
 0x95e   :  { %v5569_v47 = vadd.f32 %v5568_v39, %v5567_v20  ;;  %v5622_v26 = vsel %vm1078_vm5, %v5603_v24, 0.0  ;;  %v14524_v6 = vpop.f32.mrb[70].mxu1 }
 0x95f   :  { %v5227_v3 = vrot.slane %v5226_v13, 1  ;;  %v5280_v42 = vadd.f32 %v5279_v45, %v5278_v28  ;;  %v5623_v46 = vadd.f32 %v5622_v26, %v5621_v61  ;;  %v14527_v9 = vpop.f32.mrb[71].mxu1  ;;  %v5606_v4 = vmul.f32 %v14524_v6, %v14524_v6 }
 0x960   :  { %v5571_v51 = vadd.f32 %v5570_v36, %v5569_v47  ;;  %v5572_v53 = vsel %vm1078_vm5, %v14527_v9, 0.0  ;;  %v5605_v19 = vmul.f32 %v14527_v9, %v14527_v9  ;;  %v5574_v59 = vsel %vm1078_vm5, %v14524_v6, 0.0 }
 0x961   :  { %v5228_v12 = vadd.f32 %v5227_v3, %v5226_v13  ;;  %v5281_v58 = vrot.slane %v5280_v42, 1  ;;  %v5625_v14 = vadd.f32 %v5624_v33, %v5623_v46  ;;  %v5628_v23 = vsel %vm1078_vm5, %v5606_v4, 0.0 }
 0x962   :  { %v5573_v27 = vadd.f32 %v5572_v53, %v5571_v51  ;;  %v5626_v43 = vsel %vm1078_vm5, %v5605_v19, 0.0  ;;  %v14536_v11 = vpop.f32.mrb[72].mxu1 }
 0x963   :  { %v14538_v5 = vmul.f32 0.0078125, %v5228_v12  ;;  %v5282_v35 = vadd.f32 %v5281_v58, %v5280_v42  ;;  %v5627_v41 = vadd.f32 %v5626_v43, %v5625_v14  ;;  %v14542_v55 = vpop.f32.mrb[73].mxu1  ;;  %v5608_v45 = vmul.f32 %v14536_v11, %v14536_v11 }
 0x964   :  { %v5575_v57 = vadd.f32 %v5574_v59, %v5573_v27  ;;  %v5576_v1 = vsel %vm1078_vm5, %v14542_v55, 0.0  ;;  %v5607_v15 = vmul.f32 %v14542_v55, %v14542_v55 }
 0x965   :  { %v5283_v32 = vmul.f32 0.0078125, %v5282_v35  ;;  %v5284_v21 = vmul.f32 %v14538_v5, %v14538_v5  ;;  %v5286_v63 = vsub.f32 %v14360_v52, %v14538_v5  ;;  %v5287_v25 = vsub.f32 %v14364_v22, %v14538_v5 }
 0x966   :  { %v5288_v28 = vsub.f32 %v14374_v50, %v14538_v5  ;;  %v5289_v29 = vsub.f32 %v14381_v34, %v14538_v5  ;;  %v5290_v62 = vsub.f32 %v14388_v49, %v14538_v5  ;;  %v5291_v31 = vsub.f32 %v14396_v56, %v14538_v5  ;;  %v14563_v20 = vpop.f32.mrb[74].mxu1 }
 0x967   :  { %v5285_v39 = vsub.f32 %v5283_v32, %v5284_v21  ;;  %v5292_v52 = vsub.f32 %v14404_v2, %v14538_v5  ;;  %v5293_v22 = vsub.f32 %v14412_v7, %v14538_v5  ;;  %v5294_v50 = vsub.f32 %v14420_v17, %v14538_v5  ;;  %v14571_v24 = vpop.f32.mrb[75].mxu1 }
 0x968   :  { %v5295_v34 = vsub.f32 %v14428_v10, %v14538_v5  ;;  %v5296_v49 = vsub.f32 %v14436_v30, %v14538_v5  ;;  %v5297_v56 = vsub.f32 %v14444_v54, %v14538_v5  ;;  %v5298_v2 = vsub.f32 %v14452_v16, %v14538_v5 }
 0x969   :  { %v5299_v7 = vsub.f32 %v14460_v18, %v14538_v5  ;;  %v5301_v17 = vsub.f32 %v14476_v38, %v14538_v5  ;;  %v5302_v13 = vadd.f32 1e-05, %v5285_v39  ;;  %v5577_v10 = vadd.f32 %v5576_v1, %v5575_v57 }
 0x96a   :  { %v5629_v61 = vadd.f32 %v5628_v23, %v5627_v41  ;;  %v5630_v30 = vsel %vm1078_vm5, %v5607_v15, 0.0  ;;  %v14588_v36 = vpop.f32.mrb[76].mxu1  ;;  %v5578_v54 = vsel %vm1078_vm5, %v14536_v11, 0.0  ;;  %v5580_v16 = vsel %vm1078_vm5, %v14571_v24, 0.0 }
 0x96b   :  { %11139 = vrsqrt.f32 %v5302_v13  ;;  %v5609_v18 = vmul.f32 %v14571_v24, %v14571_v24  ;;  %v14596_v38 = vpop.f32.mrb[77].mxu1  ;;  %v5579_v26 = vadd.f32 %v5578_v54, %v5577_v10  ;;  %v5632_v3 = vsel %vm1078_vm5, %v5608_v45, 0.0 }
 0x96c   :  { %v5631_v47 = vadd.f32 %v5630_v30, %v5629_v61  ;;  %v5610_v42 = vmul.f32 %v14563_v20, %v14563_v20  ;;  %v5611_v46 = vmul.f32 %v14596_v38, %v14596_v38  ;;  %v5300_v19 = vsub.f32 %v14468_v40, %v14538_v5 }
 0x96d   :  { %v5634_v33 = vsel %vm1078_vm5, %v5609_v18, 0.0  ;;  %v5581_v4 = vadd.f32 %v5580_v16, %v5579_v26  ;;  %v5582_v12 = vsel %vm1078_vm5, %v14563_v20, 0.0  ;;  %v5584_v58 = vsel %vm1078_vm5, %v14596_v38, 0.0 }
 0x96e   :  { %v5633_v51 = vadd.f32 %v5632_v3, %v5631_v47  ;;  %v14604_v53 = vpop.f32.mrb[78].mxu1  ;;  %v5636_v35 = vsel %vm1078_vm5, %v5610_v42, 0.0  ;;  %v5638_v59 = vsel %vm1078_vm5, %v5611_v46, 0.0  ;;  %v5586_v57 = vsel %vm1078_vm5, %v14588_v36, 0.0 }
 0x96f   :  { %v14612_v14 = vpop.f32.mrb[79].mxu1  ;;  %v5583_v43 = vadd.f32 %v5582_v12, %v5581_v4 }
 0x970   :  { %v5635_v27 = vadd.f32 %v5634_v33, %v5633_v51 }
 0x971   :  { %v5585_v41 = vadd.f32 %v5584_v58, %v5583_v43 }
 0x972   :  { %v5637_v23 = vadd.f32 %v5636_v35, %v5635_v27 }
 0x973   :  { %v5587_v5 = vadd.f32 %v5586_v57, %v5585_v41 }
 0x974   :  { %v5639_v40 = vadd.f32 %v5638_v59, %v5637_v23 }
 0x975   :  { %v11140_v1 = vpop.eup %11139 }
 0x976   :  { %v14618_v15 = vmul.f32 %v11140_v1, %v5286_v63  ;;  %v14620_v32 = vmul.f32 %v11140_v1, %v5287_v25  ;;  %v14622_v21 = vmul.f32 %v11140_v1, %v5288_v28  ;;  %v14624_v39 = vmul.f32 %v11140_v1, %v5289_v29 }
 0x977   :  { %v14626_v13 = vmul.f32 %v11140_v1, %v5290_v62  ;;  %v14628_v45 = vmul.f32 %v11140_v1, %v5291_v31  ;;  %v14630_v10 = vmul.f32 %v11140_v1, %v5292_v52  ;;  %v14632_v61 = vmul.f32 %v11140_v1, %v5293_v22 }
 0x978   :  { %v14634_v30 = vmul.f32 %v11140_v1, %v5294_v50  ;;  %v14636_v54 = vmul.f32 %v11140_v1, %v5295_v34  ;;  %v14638_v63 = vmul.f32 %v11140_v1, %v5296_v49  ;;  %v14640_v25 = vmul.f32 %v11140_v1, %v5297_v56 }
 0x979   :  { %v14642_v28 = vmul.f32 %v11140_v1, %v5298_v2  ;;  %v14644_v29 = vmul.f32 %v11140_v1, %v5299_v7  ;;  %v14646_v62 = vmul.f32 %v11140_v1, %v5301_v17  ;;  %v5612_v31 = vmul.f32 %v14588_v36, %v14588_v36 }
 0x97a   :  { %v5613_v52 = vmul.f32 %v14612_v14, %v14612_v14  ;;  %v5588_v22 = vsel %vm1078_vm5, %v14612_v14, 0.0  ;;  %v5614_v34 = vmul.f32 %v14604_v53, %v14604_v53  ;;  %v14658_v56 = vmul.f32 %v11140_v1, %v5300_v19 }
 0x97b   :  { %v5640_v50 = vsel %vm1078_vm5, %v5612_v31, 0.0  ;;  %v5589_v2 = vadd.f32 %v5588_v22, %v5587_v5  ;;  %v5590_v17 = vsel %vm1078_vm5, %v14604_v53, 0.0 }
 0x97c   :  { %v5642_v49 = vsel %vm1078_vm5, %v5613_v52, 0.0  ;;  %v5641_v7 = vadd.f32 %v5640_v50, %v5639_v40  ;;  %v5644_v47 = vsel %vm1078_vm5, %v5614_v34, 0.0 }
 0x97d   :  { %v5591_v16 = vadd.f32 %v5590_v17, %v5589_v2  ;;  %v8849_v2 = vld [vmem:[#allocation15] ss:$0 sm:$0xff]  ;;  %v5774_v17 = vld [vmem:[#allocation21 + $0x48] sm:$0xff] }
 0x97e   :  { %v5643_v18 = vadd.f32 %v5642_v49, %v5641_v7  ;;  %v5792_v7 = vld [vmem:[#allocation21 + $0xd8] sm:$0xff] }
 0x97f   :  { %v5592_v26 = vrot.slane %v5591_v16, 4 }
 0x980   :  { %v5645_v3 = vadd.f32 %v5644_v47, %v5643_v18  ;;  %v5770_v47 = vld [vmem:[#allocation21 + $0x28] sm:$0xff]  ;;  %v5787_v18 = vld [vmem:[#allocation21 + $0xb0] sm:$0xff] }
 0x981   :  { %v5593_v42 = vadd.f32 %v5592_v26, %v5591_v16  ;;  %v5337_v26 = vmul.f32 %v8849_v2, %v14640_v25  ;;  %v5340_v25 = vmul.f32 %v8849_v2, %v14658_v56 }
 0x982   :  { %v5646_v33 = vrot.slane %v5645_v3, 4 }
 0x983   :  { %v5594_v46 = vrot.slane %v5593_v42, 2 }
 0x984   :  { %v5647_v4 = vadd.f32 %v5646_v33, %v5645_v3  ;;  %v5326_v33 = vmul.f32 %v8849_v2, %v14618_v15  ;;  %v5333_v15 = vmul.f32 %v8849_v2, %v14632_v61  ;;  %v5336_v3 = vmul.f32 %v8849_v2, %v14638_v63  ;;  %v5783_v61 = vld [vmem:[#allocation21 + $0x90] sm:$0xff] }
 0x985   :  { %v5595_v51 = vadd.f32 %v5594_v46, %v5593_v42  ;;  %v5327_v46 = vmul.f32 %v8849_v2, %v14620_v32  ;;  %v5334_v32 = vmul.f32 %v8849_v2, %v14634_v30  ;;  %v5784_v30 = vld [vmem:[#allocation21 + $0x98] sm:$0xff] }
 0x986   :  { %v5648_v12 = vrot.slane %v5647_v4, 2 }
 0x987   :  { %v5596_v58 = vrot.slane %v5595_v51, 1 }
 0x988   :  { %v5649_v19 = vadd.f32 %v5648_v12, %v5647_v4  ;;  %v5328_v4 = vmul.f32 %v8849_v2, %v14622_v21  ;;  %v5782_v12 = vld [vmem:[#allocation21 + $0x88] sm:$0xff] }
 0x989   :  { %v5597_v27 = vadd.f32 %v5596_v58, %v5595_v51  ;;  %v5781_v51 = vld [vmem:[#allocation21 + $0x80] sm:$0xff] }
 0x98a   :  { %v5650_v43 = vrot.slane %v5649_v19, 1  ;;  %v5765_v58 = vld [vmem:[#allocation21] sm:$0xff] }
 0x98b   :  { %v14663_v35 = vmul.f32 0.0078125, %v5597_v27  ;;  %v5329_v27 = vmul.f32 %v8849_v2, %v14624_v39  ;;  %v5338_v39 = vmul.f32 %v8849_v2, %v14642_v28  ;;  %v9767_v28 = vpack.c.bf16 %v5784_v30, %v5783_v61  ;;  %v5771_v61 = vld [vmem:[#allocation21 + $0x30] sm:$0xff] }
 0x98c   :  { %v5651_v59 = vadd.f32 %v5650_v43, %v5649_v19  ;;  %v8850_v19 = vld [vmem:[#allocation17] ss:$0 sm:$0xff]  ;;  %v5330_v43 = vmul.f32 %v8849_v2, %v14626_v13  ;;  %v5339_v13 = vmul.f32 %v8849_v2, %v14644_v29  ;;  %v5786_v29 = vld [vmem:[#allocation21 + $0xa8] sm:$0xff] }
 0x98d   :  { %v5653_v23 = vmul.f32 %v14663_v35, %v14663_v35  ;;  %v5655_v57 = vsub.f32 %v14484_v0, %v14663_v35  ;;  %v5656_v40 = vsub.f32 %v14478_v60, %v14663_v35  ;;  %v5657_v5 = vsub.f32 %v14499_v37, %v14663_v35 }
 0x98e   :  { %v5652_v41 = vmul.f32 0.0078125, %v5651_v59  ;;  %v5658_v1 = vsub.f32 %v14497_v48, %v14663_v35  ;;  %v5659_v31 = vsub.f32 %v14513_v8, %v14663_v35  ;;  %v5660_v52 = vsub.f32 %v14510_v44, %v14663_v35 }
 0x98f   :  { %v5661_v50 = vsub.f32 %v14527_v9, %v14663_v35  ;;  %v5331_v59 = vmul.f32 %v8849_v2, %v14628_v45  ;;  %v5341_v45 = vmul.f32 %v8849_v2, %v14646_v62  ;;  %v14720_v63 = vadd.f32 %v8850_v19, %v5329_v27 }
 0x990   :  { %v5654_v22 = vsub.f32 %v5652_v41, %v5653_v23  ;;  %v9763_v41 = vpack.c.bf16 %v5782_v12, %v5781_v51  ;;  %v5766_v23 = vld [vmem:[#allocation21 + $0x8] sm:$0xff]  ;;  %v14714_v51 = vadd.f32 %v8850_v19, %v5326_v33  ;;  %v5767_v12 = vld [vmem:[#allocation21 + $0x10] sm:$0xff]  ;;  %v14731_v27 = vadd.f32 %v8850_v19, %v5334_v32 }
 0x991   :  { %v9765_v21 = vpack.c.bf16 %v5766_v23, %v5765_v58  ;;  %v5768_v58 = vld [vmem:[#allocation21 + $0x18] sm:$0xff]  ;;  %v14723_v23 = vadd.f32 %v8850_v19, %v5330_v43  ;;  %v14725_v62 = vadd.f32 %v8850_v19, %v5331_v59  ;;  %v14735_v30 = vadd.f32 %v8850_v19, %v5336_v3  ;;  %v5791_v3 = vld [vmem:[#allocation21 + $0xd0] sm:$0xff] }
 0x992   :  { %v5671_v42 = vadd.f32 1e-05, %v5654_v22  ;;  %v5332_v22 = vmul.f32 %v8849_v2, %v14630_v10  ;;  %9764 = vmatprep.subr.bf16.mxu0 %v9763_v41  ;;  %v14716_v10 = vadd.f32 %v8850_v19, %v5327_v46  ;;  %v5785_v41 = vld [vmem:[#allocation21 + $0xa0] sm:$0xff]  ;;  %v9769_v33 = vpack.c.bf16 %v5768_v58, %v5767_v12  ;;  %v5772_v43 = vld [vmem:[#allocation21 + $0x38] sm:$0xff] }
 0x993   :  { %9766 = vmatpush3.bf16.msra.mxu0 %v9765_v21  ;;  %v9771_v46 = vpack.c.bf16 %v5786_v29, %v5785_v41  ;;  %v5769_v21 = vld [vmem:[#allocation21 + $0x20] sm:$0xff]  ;;  %v14737_v59 = vadd.f32 %v8850_v19, %v5337_v26  ;;  %v14739_v12 = vadd.f32 %v8850_v19, %v5338_v39  ;;  %v5790_v41 = vld [vmem:[#allocation21 + $0xc8] sm:$0xff]  ;;  %v14741_v29 = vadd.f32 %v8850_v19, %v5339_v13 }
 0x994   :  { %11141 = vrsqrt.f32 %v5671_v42  ;;  %v5335_v42 = vmul.f32 %v8849_v2, %v14636_v54  ;;  %v14718_v54 = vadd.f32 %v8850_v19, %v5328_v4  ;;  %v14727_v16 = vadd.f32 %v8850_v19, %v5332_v22  ;;  %9768 = vmatprep.subr.bf16.mxu0 %v9767_v28  ;;  %v5788_v2 = vld [vmem:[#allocation21 + $0xb8] sm:$0xff]  ;;  %v5789_v22 = vld [vmem:[#allocation21 + $0xc0] sm:$0xff] }
 0x995   :  { %v14729_v4 = vadd.f32 %v8850_v19, %v5333_v15  ;;  %v9773_v58 = vpack.c.bf16 %v5770_v47, %v5769_v21  ;;  %v5773_v15 = vld [vmem:[#allocation21 + $0x40] sm:$0xff]  ;;  %v14743_v32 = vadd.f32 %v8850_v19, %v5341_v45  ;;  %v9775_v28 = vpack.c.bf16 %v5788_v2, %v5787_v18  ;;  %v8867_v45 = vld [vmem:[#allocation18] ss:$0 sm:$0xff] }
 0x996   :  { %v14733_v56 = vadd.f32 %v8850_v19, %v5335_v42  ;;  %v14745_v42 = vadd.f32 %v8850_v19, %v5340_v25  ;;  %v9777_v49 = vpack.c.bf16 %v5772_v43, %v5771_v61  ;;  %v9779_v39 = vpack.c.bf16 %v5790_v41, %v5789_v22  ;;  %v8868_v61 = vld [vmem:[#allocation20] ss:$0 sm:$0xff] }
 0x997   :  { %9770 = vmatpush3.bf16.msra.mxu0 %v9769_v33  ;;  %v9781_v34 = vpack.c.bf16 %v5774_v17, %v5773_v15  ;;  %v9783_v33 = vpack.c.bf16 %v5792_v7, %v5791_v3  ;;  %v16479_v37 = vsub.f32 %v14524_v6, %v14663_v35  ;;  %v16480_v48 = vsub.f32 %v14542_v55, %v14663_v35 }
 0x998   :  { %9772 = vmatprep.subr.bf16.mxu0 %v9771_v46  ;;  %v16481_v8 = vsub.f32 %v14536_v11, %v14663_v35  ;;  %v16482_v44 = vsub.f32 %v14571_v24, %v14663_v35  ;;  %v16483_v9 = vsub.f32 %v14563_v20, %v14663_v35  ;;  %v16484_v6 = vsub.f32 %v14596_v38, %v14663_v35 }
 0x999   :  { %v16485_v55 = vsub.f32 %v14588_v36, %v14663_v35  ;;  %v16486_v11 = vsub.f32 %v14612_v14, %v14663_v35  ;;  %v16487_v24 = vsub.f32 %v14604_v53, %v14663_v35 }
 0x99b   :  { %9774 = vmatpush3.bf16.msra.mxu0 %v9773_v58 }
 0x99c   :  { %9776 = vmatprep.subr.bf16.mxu0 %v9775_v28 }
 0x99e   :  { %v11142_v26 = vpop.eup %11141 }
 0x99f   :  { %v5673_v47 = vmul.f32 %v11142_v26, %v5655_v57  ;;  %v5674_v13 = vmul.f32 %v11142_v26, %v5656_v40  ;;  %v5675_v18 = vmul.f32 %v11142_v26, %v5657_v5  ;;  %v5676_v19 = vmul.f32 %v11142_v26, %v5658_v1  ;;  %9778 = vmatpush3.bf16.msra.mxu0 %v9777_v49 }
 0x9a0   :  { %v5677_v7 = vmul.f32 %v11142_v26, %v5659_v31  ;;  %v5678_v0 = vmul.f32 %v11142_v26, %v5660_v52  ;;  %v5679_v60 = vmul.f32 %v11142_v26, %v5661_v50  ;;  %v5680_v57 = vmul.f32 %v11142_v26, %v16479_v37  ;;  %9780 = vmatprep.subr.bf16.mxu0 %v9779_v39 }
 0x9a1   :  { %v5681_v40 = vmul.f32 %v11142_v26, %v16480_v48  ;;  %v5682_v5 = vmul.f32 %v11142_v26, %v16481_v8  ;;  %v5683_v1 = vmul.f32 %v11142_v26, %v16482_v44  ;;  %v5684_v31 = vmul.f32 %v11142_v26, %v16483_v9 }
 0x9a2   :  { %v5685_v52 = vmul.f32 %v11142_v26, %v16484_v6  ;;  %v5686_v50 = vmul.f32 %v11142_v26, %v16485_v55  ;;  %v5687_v17 = vmul.f32 %v11142_v26, %v16486_v11  ;;  %v5688_v25 = vmul.f32 %v11142_v26, %v16487_v24  ;;  %v5775_v55 = vld [vmem:[#allocation21 + $0x50] sm:$0xff] }
 0x9a3   :  { %v5695_v46 = vmul.f32 %v8867_v45, %v5673_v47  ;;  %v5696_v20 = vmul.f32 %v8867_v45, %v5674_v13  ;;  %v5697_v21 = vmul.f32 %v8867_v45, %v5675_v18  ;;  %v5698_v2 = vmul.f32 %v8867_v45, %v5676_v19  ;;  %9782 = vmatpush3.bf16.msra.mxu0 %v9781_v34 }
 0x9a4   :  { %v5699_v43 = vmul.f32 %v8867_v45, %v5677_v7  ;;  %v5700_v38 = vmul.f32 %v8867_v45, %v5678_v0  ;;  %v5701_v58 = vmul.f32 %v8867_v45, %v5679_v60  ;;  %v5702_v22 = vmul.f32 %v8867_v45, %v5680_v57  ;;  %9784 = vmatprep.subr.bf16.mxu0 %v9783_v33 }
 0x9a5   :  { %v5703_v36 = vmul.f32 %v8867_v45, %v5681_v40  ;;  %v5704_v41 = vmul.f32 %v8867_v45, %v5682_v5  ;;  %v5705_v15 = vmul.f32 %v8867_v45, %v5683_v1  ;;  %v5706_v28 = vmul.f32 %v8867_v45, %v5684_v31 }
 0x9a6   :  { %v5707_v14 = vmul.f32 %v8867_v45, %v5685_v52  ;;  %v5708_v3 = vmul.f32 %v8867_v45, %v5686_v50  ;;  %v5709_v37 = vmul.f32 %v8867_v45, %v5687_v17  ;;  %v5710_v53 = vmul.f32 %v8867_v45, %v5688_v25  ;;  %v5776_v50 = vld [vmem:[#allocation21 + $0x58] sm:$0xff]  ;;  %v5793_v25 = vld [vmem:[#allocation21 + $0xe0] sm:$0xff] }
 0x9a7   :  { %v5717_v35 = vadd.f32 %v8868_v61, %v5695_v46  ;;  %v5718_v26 = vadd.f32 %v8868_v61, %v5696_v20  ;;  %v5719_v47 = vadd.f32 %v8868_v61, %v5697_v21  ;;  %v5720_v13 = vadd.f32 %v8868_v61, %v5698_v2  ;;  %v5794_v46 = vld [vmem:[#allocation21 + $0xe8] sm:$0xff] }
 0x9a8   :  { %v5721_v18 = vadd.f32 %v8868_v61, %v5699_v43  ;;  %v5722_v19 = vadd.f32 %v8868_v61, %v5700_v38  ;;  %v5723_v7 = vadd.f32 %v8868_v61, %v5701_v58  ;;  %v5724_v0 = vadd.f32 %v8868_v61, %v5702_v22  ;;  %v5777_v43 = vld [vmem:[#allocation21 + $0x60] sm:$0xff]  ;;  %v5778_v38 = vld [vmem:[#allocation21 + $0x68] sm:$0xff] }
 0x9a9   :  { %v5725_v60 = vadd.f32 %v8868_v61, %v5703_v36  ;;  %v5726_v49 = vadd.f32 %v8868_v61, %v5704_v41  ;;  %v5727_v57 = vadd.f32 %v8868_v61, %v5705_v15  ;;  %v5728_v48 = vadd.f32 %v8868_v61, %v5706_v28  ;;  %v5795_v36 = vld [vmem:[#allocation21 + $0xf0] sm:$0xff]  ;;  %v5796_v41 = vld [vmem:[#allocation21 + $0xf8] sm:$0xff] }
 0x9aa   :  { %v5729_v40 = vadd.f32 %v8868_v61, %v5707_v14  ;;  %v5730_v39 = vadd.f32 %v8868_v61, %v5708_v3  ;;  %v5731_v8 = vadd.f32 %v8868_v61, %v5709_v37  ;;  %v5732_v5 = vadd.f32 %v8868_v61, %v5710_v53  ;;  %v5779_v14 = vld [vmem:[#allocation21 + $0x70] sm:$0xff]  ;;  %v5780_v3 = vld [vmem:[#allocation21 + $0x78] sm:$0xff] }
 0x9ab   :  { %v14796_v45 = vadd.f32 %v5717_v35, %v14714_v51  ;;  %v14799_v44 = vadd.f32 %v5718_v26, %v14716_v10  ;;  %v14802_v1 = vadd.f32 %v5719_v47, %v14718_v54  ;;  %v14805_v34 = vadd.f32 %v5720_v13, %v14720_v63  ;;  %v5849_v37 = vld [vmem:[#allocation2 + $0x2] sm:$0xff] }
 0x9ac   :  { %v14808_v9 = vadd.f32 %v5721_v18, %v14723_v23  ;;  %v14811_v33 = vadd.f32 %v5722_v19, %v14725_v62  ;;  %v14814_v31 = vadd.f32 %v5723_v7, %v14727_v16  ;;  %v14817_v51 = vadd.f32 %v5724_v0, %v14729_v4  ;;  %v5833_v53 = vld [vmem:[#allocation2 + $0x1] sm:$0xff] }
 0x9ad   :  { %16488 = vst [vmem:[#allocation44_spill] sm:$0xff] %v14796_v45  ;;  %16489 = vst [vmem:[#allocation45_spill] sm:$0xff] %v14799_v44  ;;  %v14820_v10 = vadd.f32 %v5725_v60, %v14731_v27  ;;  %v14823_v54 = vadd.f32 %v5726_v49, %v14733_v56  ;;  %v14826_v63 = vadd.f32 %v5727_v57, %v14735_v30  ;;  %v16413_v56 = vmax.f32 %v14796_v45, 0.0 }
 0x9ae   :  { %16490 = vst [vmem:[#allocation46_spill] sm:$0xff] %v14802_v1  ;;  %16491 = vst [vmem:[#allocation47_spill] sm:$0xff] %v14805_v34  ;;  %v14829_v23 = vadd.f32 %v5728_v48, %v14737_v59  ;;  %v14832_v62 = vadd.f32 %v5729_v40, %v14739_v12  ;;  %v14835_v16 = vadd.f32 %v5730_v39, %v14741_v29  ;;  %v16412_v30 = vmax.f32 %v14799_v44, 0.0 }
 0x9af   :  { %16492 = vst [vmem:[#allocation48_spill] sm:$0xff] %v14808_v9  ;;  %16493 = vst [vmem:[#allocation49_spill] sm:$0xff] %v14811_v33  ;;  %v14838_v4 = vadd.f32 %v5731_v8, %v14745_v42  ;;  %v14841_v27 = vadd.f32 %v5732_v5, %v14743_v32  ;;  %v16411_v6 = vmax.f32 %v14802_v1, 0.0  ;;  %v16410_v59 = vmax.f32 %v14805_v34, 0.0 }
 0x9b0   :  { %16494 = vst [vmem:[#allocation50_spill] sm:$0xff] %v14814_v31  ;;  %16495 = vst [vmem:[#allocation51_spill] sm:$0xff] %v14817_v51  ;;  %v16409_v12 = vmax.f32 %v14808_v9, 0.0  ;;  %v16408_v52 = vmax.f32 %v14811_v33, 0.0  ;;  %v16407_v29 = vmax.f32 %v14814_v31, 0.0  ;;  %v16406_v42 = vmax.f32 %v14817_v51, 0.0 }
 0x9b1   :  { %16496 = vst [vmem:[#allocation52_spill] sm:$0xff] %v14820_v10  ;;  %16497 = vst [vmem:[#allocation53_spill] sm:$0xff] %v14823_v54  ;;  %v16405_v32 = vmax.f32 %v14820_v10, 0.0  ;;  %v16404_v11 = vmax.f32 %v14823_v54, 0.0  ;;  %v16403_v17 = vmax.f32 %v14826_v63, 0.0  ;;  %v16402_v24 = vmax.f32 %v14829_v23, 0.0 }
 0x9b2   :  { %16498 = vst [vmem:[#allocation54_spill] sm:$0xff] %v14826_v63  ;;  %16499 = vst [vmem:[#allocation55_spill] sm:$0xff] %v14829_v23  ;;  %v16401_v20 = vmax.f32 %v14832_v62, 0.0  ;;  %v16400_v21 = vmax.f32 %v14835_v16, 0.0  ;;  %v16399_v2 = vmax.f32 %v14838_v4, 0.0  ;;  %v16398_v61 = vmax.f32 %v14841_v27, 0.0 }
 0x9b3   :  { %16500 = vst [vmem:[#allocation56_spill] sm:$0xff] %v14832_v62  ;;  %16501 = vst [vmem:[#allocation57_spill] sm:$0xff] %v14835_v16  ;;  %v9785_v58 = vpack.c.bf16 %v5776_v50, %v5775_v55  ;;  %v9787_v22 = vpack.c.bf16 %v5794_v46, %v5793_v25  ;;  %v9789_v15 = vpack.c.bf16 %v5778_v38, %v5777_v43  ;;  %v5952_v38 = vld [vmem:[#allocation2 + $0x92] sm:$0xff]  ;;  %v7089_v33 = vld [vmem:[#allocation2 + $0x2] sm:$0xff] }
 0x9b4   :  { %16502 = vst [vmem:[#allocation58_spill] sm:$0xff] %v14838_v4  ;;  %16503 = vst [vmem:[#allocation59_spill] sm:$0xff] %v14841_v27  ;;  %v9791_v28 = vpack.c.bf16 %v5796_v41, %v5795_v36  ;;  %v9793_v18 = vpack.c.bf16 %v5780_v3, %v5779_v14  ;;  %v7184_v23 = vld [vmem:[#allocation2 + $0x131] sm:$0xff]  ;;  %v7057_v9 = vld [vmem:[#allocation2] sm:$0xff] }
 0x9b5   :  { %5801 = vst.msk [vmem:[#allocation2 + $0x11] sm:$0xff] %vm1078_vm5, %v16413_v56  ;;  %5802 = vst.msk [vmem:[#allocation2 + $0x21] sm:$0xff] %vm1078_vm5, %v16412_v30  ;;  %9786 = vmatpush3.bf16.msra.mxu0 %v9785_v58  ;;  %v7036_v10 = vld [vmem:[#allocation23 + $0x218] sm:$0xff] }
 0x9b6   :  { %5803 = vst.msk [vmem:[#allocation2 + $0x31] sm:$0xff] %vm1078_vm5, %v16411_v6  ;;  %5804 = vst.msk [vmem:[#allocation2 + $0x41] sm:$0xff] %vm1078_vm5, %v16410_v59  ;;  %9788 = vmatprep.subr.bf16.mxu0 %v9787_v22 }
 0x9b7   :  { %5805 = vst.msk [vmem:[#allocation2 + $0x51] sm:$0xff] %vm1078_vm5, %v16409_v12  ;;  %5806 = vst.msk [vmem:[#allocation2 + $0x61] sm:$0xff] %vm1078_vm5, %v16408_v52 }
 0x9b8   :  { %5807 = vst.msk [vmem:[#allocation2 + $0x71] sm:$0xff] %vm1078_vm5, %v16407_v29  ;;  %5808 = vst.msk [vmem:[#allocation2 + $0x81] sm:$0xff] %vm1078_vm5, %v16406_v42  ;;  %v5944_v42 = vld [vmem:[#allocation2 + $0x131] sm:$0xff] }
 0x9b9   :  { %5809 = vst.msk [vmem:[#allocation2 + $0xb1] sm:$0xff] %vm1078_vm5, %v16405_v32  ;;  %5810 = vst.msk [vmem:[#allocation2 + $0xc1] sm:$0xff] %vm1078_vm5, %v16404_v11  ;;  %9790 = vmatpush3.bf16.msra.mxu0 %v9789_v15  ;;  %v5960_v11 = vld [vmem:[#allocation2 + $0x132] sm:$0xff] }
 0x9ba   :  { %5811 = vst.msk [vmem:[#allocation2 + $0xd1] sm:$0xff] %vm1078_vm5, %v16403_v17  ;;  %5812 = vst.msk [vmem:[#allocation2 + $0xe1] sm:$0xff] %vm1078_vm5, %v16402_v24  ;;  %9792 = vmatprep.subr.bf16.mxu0 %v9791_v28 }
 0x9bb   :  { %5813 = vst.msk [vmem:[#allocation2 + $0xf1] sm:$0xff] %vm1078_vm5, %v16401_v20  ;;  %5814 = vst.msk [vmem:[#allocation2 + $0x101] sm:$0xff] %vm1078_vm5, %v16400_v21 }
 0x9bc   :  { %5815 = vst.msk [vmem:[#allocation2 + $0x111] sm:$0xff] %vm1078_vm5, %v16399_v2  ;;  %5816 = vst.msk [vmem:[#allocation2 + $0x121] sm:$0xff] %vm1078_vm5, %v16398_v61  ;;  %v5945_v35 = vld [vmem:[#allocation2 + $0x22] sm:$0xff]  ;;  %v5897_v13 = vld [vmem:[#allocation2 + $0x12] sm:$0xff] }
 0x9bd   :  { %v14907_v26 = vld [vmem:[#allocation2 + $0x32] sm:$0xff]  ;;  %9534 = vmatprep.mubr.msk.f32.mxu1 %vm1078_vm5, %v5945_v35  ;;  %v14910_v47 = vld [vmem:[#allocation2 + $0x20] sm:$0xff]  ;;  %v10731_v0 = vpack.i.bf16 %v5833_v53, %v5897_v13  ;;  %9794 = vmatpush3.bf16.msra.mxu0 %v9793_v18 }
 0x9be   :  { %9535 = vmatmul.mubr.msk.f32.vlgmr.msra.gmra.mrb[80].mxu1 %vm1078_vm5, %v14907_v26  ;;  %v14914_v19 = vld [vmem:[#allocation2 + $0x42] sm:$0xff]  ;;  %v10736_v7 = vpack.i.bf16 %v5849_v37, %v14910_v47  ;;  %v14919_v60 = vld [vmem:[#allocation2 + $0x10] sm:$0xff] }
 0x9bf   :  { %9537 = vmatprep.mubr.msk.f32.mxu1 %vm1078_vm5, %v14914_v19  ;;  %v14921_v49 = vld [vmem:[#allocation2 + $0x21] sm:$0xff]  ;;  %v14923_v57 = vld [vmem:[#allocation2 + $0x11] sm:$0xff]  ;;  %10732 = vrot.lane.b32.xlu0 %v10731_v0, %s11497_s0 }
 0x9c0   :  { %10737 = vrot.lane.b32.xlu1 %v10736_v7, %s11501_s8  ;;  %v14927_v48 = vld [vmem:[#allocation2 + $0x52] sm:$0xff]  ;;  %v14931_v40 = vld [vmem:[#allocation2 + $0x62] sm:$0xff]  ;;  %v10741_v39 = vpack.i.bf16 %v14919_v60, %v14921_v49  ;;  %v10746_v8 = vpack.i.bf16 %v14923_v57, %v5945_v35  ;;  %v10761_v36 = vpack.i.bf16 %v14921_v49, %v14907_v26 }
 0x9c1   :  { %v14938_v5 = vld [vmem:[#allocation2 + $0x30] sm:$0xff]  ;;  %v14948_v25 = vld [vmem:[#allocation2 + $0x82] sm:$0xff] }
 0x9c2   :  { %9538 = vmatmul.mubr.msk.f32.gmra.mrb[82].mxu1 %vm1078_vm5, %v14927_v48  ;;  %v14940_v55 = vld [vmem:[#allocation2 + $0x31] sm:$0xff]  ;;  %v10751_v46 = vpack.i.bf16 %v5897_v13, %v14938_v5  ;;  %v14955_v58 = vld [vmem:[#allocation2 + $0x40] sm:$0xff] }
 0x9c3   :  { %9540 = vmatprep.mubr.msk.f32.mxu1 %vm1078_vm5, %v14931_v40  ;;  %10742 = vrot.lane.b32.xlu0 %v10741_v39, %s11503_s26  ;;  %v14944_v50 = vld [vmem:[#allocation2 + $0x72] sm:$0xff]  ;;  %v10756_v43 = vpack.i.bf16 %v14910_v47, %v14940_v55  ;;  %v14960_v22 = vld [vmem:[#allocation2 + $0xc2] sm:$0xff]  ;;  %v10766_v41 = vpack.i.bf16 %v5945_v35, %v14955_v58  ;;  %v10776_v37 = vpack.i.bf16 %v14940_v55, %v14914_v19 }
 0x9c4   :  { %10747 = vrot.lane.b32.xlu1 %v10746_v8, %s11497_s0  ;;  %v14967_v15 = vld [vmem:[#allocation2 + $0x41] sm:$0xff]  ;;  %v14971_v28 = vld [vmem:[#allocation2 + $0xd2] sm:$0xff] }
 0x9c5   :  { %v14975_v14 = vld [vmem:[#allocation2 + $0xe2] sm:$0xff]  ;;  %v10771_v3 = vpack.i.bf16 %v14938_v5, %v14967_v15  ;;  %v14983_v53 = vld [vmem:[#allocation2 + $0x50] sm:$0xff] }
 0x9c6   :  { %9541 = vmatmul.mubr.msk.f32.gmra.mrb[84].mxu1 %vm1078_vm5, %v14944_v50  ;;  %v14985_v35 = vld [vmem:[#allocation2 + $0x51] sm:$0xff]  ;;  %v14993_v18 = vld [vmem:[#allocation2 + $0x102] sm:$0xff]  ;;  %v10781_v7 = vpack.i.bf16 %v14907_v26, %v14983_v53  ;;  %v10791_v26 = vpack.i.bf16 %v14967_v15, %v14927_v48 }
 0x9c7   :  { %9543 = vmatprep.mubr.msk.f32.mxu1 %vm1078_vm5, %v14948_v25  ;;  %10752 = vrot.lane.b32.xlu0 %v10751_v46, %s11501_s8  ;;  %v14989_v13 = vld [vmem:[#allocation2 + $0xf2] sm:$0xff]  ;;  %v10786_v0 = vpack.i.bf16 %v14955_v58, %v14985_v35  ;;  %v15001_v39 = vld [vmem:[#allocation2 + $0x60] sm:$0xff] }
 0x9c8   :  { %10757 = vrot.lane.b32.xlu1 %v10756_v43, %s11503_s26  ;;  %v15005_v8 = vld [vmem:[#allocation2 + $0x112] sm:$0xff]  ;;  %v15009_v46 = vld [vmem:[#allocation2 + $0x122] sm:$0xff]  ;;  %v10796_v43 = vpack.i.bf16 %v14914_v19, %v15001_v39 }
 0x9c9   :  { %v15040_v61 = vld [vmem:[#allocation2 + $0x81] sm:$0xff]  ;;  %v5905_v21 = vld [vmem:[#allocation2 + $0xb2] sm:$0xff] }
 0x9ca   :  { %9544 = vmatmul.mubr.msk.f32.gmra.mrb[86].mxu1 %vm1078_vm5, %v5952_v38  ;;  %v15017_v38 = vld [vmem:[#allocation2 + $0x61] sm:$0xff]  ;;  %v15056_v24 = vld [vmem:[#allocation2 + $0xb0] sm:$0xff] }
 0x9cb   :  { %9546 = vmatprep.mubr.msk.f32.mxu1 %vm1078_vm5, %v14960_v22  ;;  %10762 = vrot.lane.b32.xlu0 %v10761_v36, %s11497_s0  ;;  %v10801_v36 = vpack.i.bf16 %v14983_v53, %v15017_v38  ;;  %v5841_v2 = vld [vmem:[#allocation2 + $0xa1] sm:$0xff] }
 0x9cc   :  { %10767 = vrot.lane.b32.xlu1 %v10766_v41, %s11501_s8  ;;  %v10806_v41 = vpack.i.bf16 %v14985_v35, %v14931_v40  ;;  %v15051_v20 = vld [vmem:[#allocation2 + $0xc0] sm:$0xff] }
 0x9cd   :  { %v15111_v17 = vld [vmem:[#allocation2 + $0x101] sm:$0xff] }
 0x9ce   :  { %9547 = vmatmul.mubr.msk.f32.gmra.mrb[88].mxu1 %vm1078_vm5, %v14971_v28  ;;  %v10941_v32 = vpack.i.bf16 %v15111_v17, %v15005_v8 }
 0x9cf   :  { %9549 = vmatprep.mubr.msk.f32.mxu1 %vm1078_vm5, %v14975_v14  ;;  %10772 = vrot.lane.b32.xlu0 %v10771_v3, %s11503_s26  ;;  %v15025_v3 = vld [vmem:[#allocation2 + $0x70] sm:$0xff] }
 0x9d0   :  { %10777 = vrot.lane.b32.xlu1 %v10776_v37, %s11497_s0  ;;  %v15027_v37 = vld [vmem:[#allocation2 + $0x71] sm:$0xff]  ;;  %v10811_v19 = vpack.i.bf16 %v14927_v48, %v15025_v3  ;;  %v10831_v48 = vpack.i.bf16 %v15025_v3, %v15040_v61 }
 0x9d2   :  { %9550 = vmatmul.mubr.msk.f32.gmra.mrb[90].mxu1 %vm1078_vm5, %v14989_v13 }
 0x9d3   :  { %9552 = vmatprep.mubr.msk.f32.mxu1 %vm1078_vm5, %v14993_v18  ;;  %10782 = vrot.lane.b32.xlu0 %v10781_v7, %s11501_s8  ;;  %v10816_v7 = vpack.i.bf16 %v15001_v39, %v15027_v37 }
 0x9d4   :  { %10787 = vrot.lane.b32.xlu1 %v10786_v0, %s11503_s26  ;;  %v5919_v0 = vld [vmem:[#allocation2 + $0x80] sm:$0xff] }
 0x9d6   :  { %9553 = vmatmul.mubr.msk.f32.gmra.mrb[92].mxu1 %vm1078_vm5, %v15005_v8 }
 0x9d7   :  { %9555 = vmatprep.mubr.msk.f32.mxu1 %vm1078_vm5, %v15009_v46  ;;  %10792 = vrot.lane.b32.xlu0 %v10791_v26, %s11497_s0  ;;  %v10821_v26 = vpack.i.bf16 %v15017_v38, %v14944_v50 }
 0x9d8   :  { %10797 = vrot.lane.b32.xlu1 %v10796_v43, %s11501_s8  ;;  %v10826_v43 = vpack.i.bf16 %v14931_v40, %v5919_v0 }
 0x9da   :  { %9556 = vmatmul.mubr.msk.f32.gmra.mrb[94].mxu1 %vm1078_vm5, %v5960_v11 }
 0x9db   :  { %10802 = vrot.lane.b32.xlu0 %v10801_v36, %s11503_s26  ;;  %v10836_v36 = vpack.i.bf16 %v15027_v37, %v14948_v25 }
 0x9dc   :  { %10807 = vrot.lane.b32.xlu1 %v10806_v41, %s11497_s0  ;;  %v5920_v41 = vld [vmem:[#allocation2 + $0x90] sm:$0xff] }
 0x9dd   :  { %v10841_v40 = vpack.i.bf16 %v14944_v50, %v5920_v41  ;;  %v15068_v41 = vld [vmem:[#allocation2 + $0xd0] sm:$0xff] }
 0x9df   :  { %10812 = vrot.lane.b32.xlu0 %v10811_v19, %s11501_s8  ;;  %v5936_v19 = vld [vmem:[#allocation2 + $0x91] sm:$0xff] }
 0x9e0   :  { %10817 = vrot.lane.b32.xlu1 %v10816_v7, %s11503_s26  ;;  %v10846_v7 = vpack.i.bf16 %v5919_v0, %v5936_v19  ;;  %v10871_v19 = vpack.i.bf16 %v5905_v21, %v15068_v41 }
 0x9e3   :  { %10822 = vrot.lane.b32.xlu0 %v10821_v26, %s11497_s0  ;;  %v5857_v26 = vld [vmem:[#allocation2 + $0xa2] sm:$0xff] }
 0x9e4   :  { %10827 = vrot.lane.b32.xlu1 %v10826_v43, %s11501_s8  ;;  %v10851_v43 = vpack.i.bf16 %v5841_v2, %v5905_v21  ;;  %v10856_v25 = vpack.i.bf16 %v5857_v26, %v15051_v20  ;;  %v15070_v2 = vld [vmem:[#allocation2 + $0xd1] sm:$0xff] }
 0x9e7   :  { %10832 = vrot.lane.b32.xlu0 %v10831_v48, %s11503_s26  ;;  %v15058_v48 = vld [vmem:[#allocation2 + $0xc1] sm:$0xff] }
 0x9e8   :  { %10837 = vrot.lane.b32.xlu1 %v10836_v36, %s11497_s0  ;;  %v15060_v36 = vld [vmem:[#allocation2 + $0xb1] sm:$0xff]  ;;  %v10861_v50 = vpack.i.bf16 %v15056_v24, %v15058_v48  ;;  %v10881_v26 = vpack.i.bf16 %v15058_v48, %v14971_v28 }
 0x9e9   :  { %v10866_v0 = vpack.i.bf16 %v15060_v36, %v14960_v22 }
 0x9eb   :  { %10842 = vrot.lane.b32.xlu0 %v10841_v40, %s11501_s8  ;;  %v10876_v40 = vpack.i.bf16 %v15051_v20, %v15070_v2 }
 0x9ec   :  { %10847 = vrot.lane.b32.xlu1 %v10846_v7, %s11503_s26  ;;  %v15077_v7 = vld [vmem:[#allocation2 + $0xe0] sm:$0xff] }
 0x9ef   :  { %10852 = vrot.lane.b32.xlu0 %v10851_v43, %s11497_s0  ;;  %v10886_v43 = vpack.i.bf16 %v14960_v22, %v15077_v7 }
 0x9f0   :  { %10857 = vrot.lane.b32.xlu1 %v10856_v25, %s11501_s8  ;;  %v15085_v25 = vld [vmem:[#allocation2 + $0xe1] sm:$0xff] }
 0x9f1   :  { %v10891_v21 = vpack.i.bf16 %v15068_v41, %v15085_v25 }
 0x9f3   :  { %10862 = vrot.lane.b32.xlu0 %v10861_v50, %s11503_s26  ;;  %v10896_v50 = vpack.i.bf16 %v15070_v2, %v14975_v14 }
 0x9f4   :  { %10867 = vrot.lane.b32.xlu1 %v10866_v0, %s11497_s0  ;;  %v15093_v0 = vld [vmem:[#allocation2 + $0xf0] sm:$0xff] }
 0x9f5   :  { %v10901_v22 = vpack.i.bf16 %v14971_v28, %v15093_v0  ;;  %v10921_v28 = vpack.i.bf16 %v15093_v0, %v15111_v17 }
 0x9f7   :  { %10872 = vrot.lane.b32.xlu0 %v10871_v19, %s11501_s8  ;;  %v15095_v19 = vld [vmem:[#allocation2 + $0xf1] sm:$0xff] }
 0x9f8   :  { %10877 = vrot.lane.b32.xlu1 %v10876_v40, %s11503_s26  ;;  %v10906_v40 = vpack.i.bf16 %v15077_v7, %v15095_v19 }
 0x9fb   :  { %10882 = vrot.lane.b32.xlu0 %v10881_v26, %s11497_s0  ;;  %v15103_v26 = vld [vmem:[#allocation2 + $0x100] sm:$0xff] }
 0x9fc   :  { %10887 = vrot.lane.b32.xlu1 %v10886_v43, %s11501_s8  ;;  %v10911_v43 = vpack.i.bf16 %v15085_v25, %v14989_v13 }
 0x9ff   :  { %10892 = vrot.lane.b32.xlu0 %v10891_v21, %s11503_s26  ;;  %v10916_v21 = vpack.i.bf16 %v14975_v14, %v15103_v26 }
 0xa00   :  { %10897 = vrot.lane.b32.xlu1 %v10896_v50, %s11497_s0  ;;  %v10926_v50 = vpack.i.bf16 %v15095_v19, %v14993_v18 }
 0xa03   :  { %10902 = vrot.lane.b32.xlu0 %v10901_v22, %s11501_s8  ;;  %v15119_v22 = vld [vmem:[#allocation2 + $0x110] sm:$0xff] }
 0xa04   :  { %10907 = vrot.lane.b32.xlu1 %v10906_v40, %s11503_s26  ;;  %v15121_v40 = vld [vmem:[#allocation2 + $0x111] sm:$0xff]  ;;  %v10931_v14 = vpack.i.bf16 %v14989_v13, %v15119_v22 }
 0xa07   :  { %10912 = vrot.lane.b32.xlu0 %v10911_v43, %s11497_s0  ;;  %v10936_v43 = vpack.i.bf16 %v15103_v26, %v15121_v40 }
 0xa08   :  { %10917 = vrot.lane.b32.xlu1 %v10916_v21, %s11501_s8  ;;  %v5927_v21 = vld [vmem:[#allocation2 + $0x120] sm:$0xff] }
 0xa0b   :  { %10922 = vrot.lane.b32.xlu0 %v10921_v28, %s11503_s26  ;;  %v10946_v28 = vpack.i.bf16 %v14993_v18, %v5927_v21  ;;  %v10966_v18 = vpack.i.bf16 %v5927_v21, %v5944_v42 }
 0xa0c   :  { %10927 = vrot.lane.b32.xlu1 %v10926_v50, %s11497_s0  ;;  %v15135_v50 = vld [vmem:[#allocation2 + $0x121] sm:$0xff] }
 0xa0d   :  { %v10951_v13 = vpack.i.bf16 %v15119_v22, %v15135_v50 }
 0xa0f   :  { %10932 = vrot.lane.b32.xlu0 %v10931_v14, %s11501_s8  ;;  %v10956_v14 = vpack.i.bf16 %v15121_v40, %v15009_v46 }
 0xa10   :  { %10937 = vrot.lane.b32.xlu1 %v10936_v43, %s11503_s26  ;;  %v5928_v43 = vld [vmem:[#allocation2 + $0x130] sm:$0xff] }
 0xa11   :  { %v10961_v11 = vpack.i.bf16 %v15005_v8, %v5928_v43 }
 0xa13   :  { %10942 = vrot.lane.b32.xlu0 %v10941_v32, %s11497_s0 }
 0xa14   :  { %10947 = vrot.lane.b32.xlu1 %v10946_v28, %s11501_s8  ;;  %v5817_v28 = vld [vmem:[#allocation2] sm:$0xff] }
 0xa17   :  { %10952 = vrot.lane.b32.xlu0 %v10951_v13, %s11503_s26 }
 0xa18   :  { %10957 = vrot.lane.b32.xlu1 %v10956_v14, %s11497_s0 }
 0xa1b   :  { %10962 = vrot.lane.b32.xlu0 %v10961_v11, %s11501_s8 }
 0xa1c   :  { %10967 = vrot.lane.b32.xlu1 %v10966_v18, %s11503_s26 }
 0xa31   :  { %v10733_v29 = vpop.permute.xlu0 %10732 }
 0xa32   :  { %v10738_v32 = vpop.permute.xlu1 %10737  ;;  %v10735_v52 = vunpack.i.h.bf16 %v10733_v29  ;;  %v10734_v12 = vunpack.i.l.bf16 %v10733_v29 }
 0xa33   :  { %v10740_v59 = vunpack.i.h.bf16 %v10738_v32  ;;  %v10739_v46 = vunpack.i.l.bf16 %v10738_v32 }
 0xa34   :  { %v6345_v6 = vsel %vm1078_vm5, %v5817_v28, %v10735_v52  ;;  %v6393_v13 = vsel %vm1078_vm5, %v14923_v57, %v10734_v12 }
 0xa35   :  { %v10743_v14 = vpop.permute.xlu0 %10742  ;;  %v6409_v11 = vsel %vm286_vm0, %v6393_v13, %v10739_v46  ;;  %v6361_v18 = vsel %vm286_vm0, %v6345_v6, %v10740_v59 }
 0xa36   :  { %v10748_v30 = vpop.permute.xlu1 %10747  ;;  %v10745_v8 = vunpack.i.h.bf16 %v10743_v14  ;;  %v10744_v42 = vunpack.i.l.bf16 %v10743_v14 }
 0xa37   :  { %v10750_v21 = vunpack.i.h.bf16 %v10748_v30  ;;  %v10749_v43 = vunpack.i.l.bf16 %v10748_v30 }
 0xa38   :  { %v6425_v56 = vsel %vm2254_vm11, %v6409_v11, %v10744_v42  ;;  %v6377_v29 = vsel %vm2254_vm11, %v6361_v18, %v10745_v8 }
 0xa39   :  { %6553 = vmatprep.mubr.f32.mxu0 %v6425_v56  ;;  %v10753_v32 = vpop.permute.xlu0 %10752  ;;  %v6394_v14 = vsel %vm1078_vm5, %v14921_v49, %v10749_v43  ;;  %v6346_v30 = vsel %vm1078_vm5, %v14919_v60, %v10750_v21 }
 0xa3a   :  { %v10758_v52 = vpop.permute.xlu1 %10757  ;;  %v10755_v28 = vunpack.i.h.bf16 %v10753_v32  ;;  %v10754_v27 = vunpack.i.l.bf16 %v10753_v32  ;;  %6554 = vmatmul.mubr.f32.vlgmr.msra.gmra.mrb[80].mxu0 %v6377_v29 }
 0xa3b   :  { %v10760_v12 = vunpack.i.h.bf16 %v10758_v52  ;;  %v10759_v57 = vunpack.i.l.bf16 %v10758_v52 }
 0xa3c   :  { %v6410_v6 = vsel %vm286_vm0, %v6394_v14, %v10754_v27  ;;  %v6362_v59 = vsel %vm286_vm0, %v6346_v30, %v10755_v28 }
 0xa3d   :  { %v10763_v46 = vpop.permute.xlu0 %10762  ;;  %v6426_v56 = vsel %vm2254_vm11, %v6410_v6, %v10759_v57  ;;  %v6378_v8 = vsel %vm2254_vm11, %v6362_v59, %v10760_v12 }
 0xa3e   :  { %v10768_v13 = vpop.permute.xlu1 %10767  ;;  %v10765_v42 = vunpack.i.h.bf16 %v10763_v46  ;;  %v10764_v11 = vunpack.i.l.bf16 %v10763_v46  ;;  %6558 = vmatprep.mubr.f32.mxu0 %v6426_v56 }
 0xa3f   :  { %v10770_v18 = vunpack.i.h.bf16 %v10768_v13  ;;  %v10769_v29 = vunpack.i.l.bf16 %v10768_v13  ;;  %6559 = vmatmul.mubr.f32.gmra.mrb[82].mxu0 %v6378_v8 }
 0xa40   :  { %v6395_v49 = vsel %vm1078_vm5, %v14940_v55, %v10764_v11  ;;  %v6347_v27 = vsel %vm1078_vm5, %v14910_v47, %v10765_v42 }
 0xa41   :  { %v10773_v60 = vpop.permute.xlu0 %10772  ;;  %v6411_v12 = vsel %vm286_vm0, %v6395_v49, %v10769_v29  ;;  %v6363_v57 = vsel %vm286_vm0, %v6347_v27, %v10770_v18 }
 0xa42   :  { %v10778_v21 = vpop.permute.xlu1 %10777  ;;  %v10775_v43 = vunpack.i.h.bf16 %v10773_v60  ;;  %v10774_v32 = vunpack.i.l.bf16 %v10773_v60 }
 0xa43   :  { %v10780_v52 = vunpack.i.h.bf16 %v10778_v21  ;;  %v10779_v28 = vunpack.i.l.bf16 %v10778_v21 }
 0xa44   :  { %v6427_v14 = vsel %vm2254_vm11, %v6411_v12, %v10774_v32  ;;  %v6379_v30 = vsel %vm2254_vm11, %v6363_v57, %v10775_v43 }
 0xa45   :  { %v10783_v6 = vpop.permute.xlu0 %10782  ;;  %6563 = vmatprep.mubr.f32.mxu0 %v6427_v14  ;;  %v6396_v56 = vsel %vm1078_vm5, %v14967_v15, %v10779_v28  ;;  %v6348_v8 = vsel %vm1078_vm5, %v14938_v5, %v10780_v52 }
 0xa46   :  { %v10788_v59 = vpop.permute.xlu1 %10787  ;;  %v10785_v55 = vunpack.i.h.bf16 %v10783_v6  ;;  %v10784_v46 = vunpack.i.l.bf16 %v10783_v6  ;;  %6564 = vmatmul.mubr.f32.gmra.mrb[84].mxu0 %v6379_v30 }
 0xa47   :  { %v10790_v47 = vunpack.i.h.bf16 %v10788_v59  ;;  %v10789_v13 = vunpack.i.l.bf16 %v10788_v59 }
 0xa48   :  { %v6412_v42 = vsel %vm286_vm0, %v6396_v56, %v10784_v46  ;;  %v6364_v11 = vsel %vm286_vm0, %v6348_v8, %v10785_v55 }
 0xa49   :  { %v10793_v18 = vpop.permute.xlu0 %10792  ;;  %v6428_v49 = vsel %vm2254_vm11, %v6412_v42, %v10789_v13  ;;  %v6380_v27 = vsel %vm2254_vm11, %v6364_v11, %v10790_v47 }
 0xa4a   :  { %v10798_v29 = vpop.permute.xlu1 %10797  ;;  %v10795_v60 = vunpack.i.h.bf16 %v10793_v18  ;;  %v10794_v21 = vunpack.i.l.bf16 %v10793_v18  ;;  %6568 = vmatprep.mubr.f32.mxu0 %v6428_v49 }
 0xa4b   :  { %v10800_v43 = vunpack.i.h.bf16 %v10798_v29  ;;  %v10799_v32 = vunpack.i.l.bf16 %v10798_v29  ;;  %6569 = vmatmul.mubr.f32.gmra.mrb[86].mxu0 %v6380_v27 }
 0xa4c   :  { %v6397_v15 = vsel %vm1078_vm5, %v14985_v35, %v10794_v21  ;;  %v6349_v5 = vsel %vm1078_vm5, %v14955_v58, %v10795_v60 }
 0xa4d   :  { %v10803_v52 = vpop.permute.xlu0 %10802  ;;  %v6413_v6 = vsel %vm286_vm0, %v6397_v15, %v10799_v32  ;;  %v6365_v59 = vsel %vm286_vm0, %v6349_v5, %v10800_v43 }
 0xa4e   :  { %v10808_v28 = vpop.permute.xlu1 %10807  ;;  %v10805_v12 = vunpack.i.h.bf16 %v10803_v52  ;;  %v10804_v57 = vunpack.i.l.bf16 %v10803_v52 }
 0xa4f   :  { %v10810_v14 = vunpack.i.h.bf16 %v10808_v28  ;;  %v10809_v30 = vunpack.i.l.bf16 %v10808_v28 }
 0xa50   :  { %v6429_v55 = vsel %vm2254_vm11, %v6413_v6, %v10804_v57  ;;  %v6381_v46 = vsel %vm2254_vm11, %v6365_v59, %v10805_v12 }
 0xa51   :  { %v10813_v47 = vpop.permute.xlu0 %10812  ;;  %6573 = vmatprep.mubr.f32.mxu0 %v6429_v55  ;;  %v6398_v42 = vsel %vm1078_vm5, %v15017_v38, %v10809_v30  ;;  %v6350_v11 = vsel %vm1078_vm5, %v14983_v53, %v10810_v14 }
 0xa52   :  { %v10818_v13 = vpop.permute.xlu1 %10817  ;;  %v10815_v35 = vunpack.i.h.bf16 %v10813_v47  ;;  %v10814_v56 = vunpack.i.l.bf16 %v10813_v47  ;;  %6574 = vmatmul.mubr.f32.gmra.mrb[88].mxu0 %v6381_v46 }
 0xa53   :  { %v10820_v58 = vunpack.i.h.bf16 %v10818_v13  ;;  %v10819_v8 = vunpack.i.l.bf16 %v10818_v13 }
 0xa54   :  { %v6414_v18 = vsel %vm286_vm0, %v6398_v42, %v10814_v56  ;;  %v6366_v29 = vsel %vm286_vm0, %v6350_v11, %v10815_v35 }
 0xa55   :  { %v10823_v49 = vpop.permute.xlu0 %10822  ;;  %v6430_v60 = vsel %vm2254_vm11, %v6414_v18, %v10819_v8  ;;  %v6382_v21 = vsel %vm2254_vm11, %v6366_v29, %v10820_v58 }
 0xa56   :  { %v10828_v27 = vpop.permute.xlu1 %10827  ;;  %v10825_v43 = vunpack.i.h.bf16 %v10823_v49  ;;  %v10824_v32 = vunpack.i.l.bf16 %v10823_v49  ;;  %6578 = vmatprep.mubr.f32.mxu0 %v6430_v60  ;;  %v5825_v60 = vld [vmem:[#allocation2 + $0xa0] sm:$0xff] }
 0xa57   :  { %v10830_v15 = vunpack.i.h.bf16 %v10828_v27  ;;  %v10829_v5 = vunpack.i.l.bf16 %v10828_v27  ;;  %6579 = vmatmul.mubr.f32.gmra.mrb[90].mxu0 %v6382_v21 }
 0xa58   :  { %v6399_v38 = vsel %vm1078_vm5, %v15027_v37, %v10824_v32  ;;  %v6351_v53 = vsel %vm1078_vm5, %v15001_v39, %v10825_v43 }
 0xa59   :  { %v10833_v52 = vpop.permute.xlu0 %10832  ;;  %v6415_v6 = vsel %vm286_vm0, %v6399_v38, %v10829_v5  ;;  %v6367_v59 = vsel %vm286_vm0, %v6351_v53, %v10830_v15 }
 0xa5a   :  { %v10838_v28 = vpop.permute.xlu1 %10837  ;;  %v10835_v12 = vunpack.i.h.bf16 %v10833_v52  ;;  %v10834_v57 = vunpack.i.l.bf16 %v10833_v52 }
 0xa5b   :  { %v10840_v14 = vunpack.i.h.bf16 %v10838_v28  ;;  %v10839_v30 = vunpack.i.l.bf16 %v10838_v28 }
 0xa5c   :  { %v6431_v55 = vsel %vm2254_vm11, %v6415_v6, %v10834_v57  ;;  %v6383_v46 = vsel %vm2254_vm11, %v6367_v59, %v10835_v12 }
 0xa5d   :  { %v10843_v47 = vpop.permute.xlu0 %10842  ;;  %6583 = vmatprep.mubr.f32.mxu0 %v6431_v55  ;;  %v6400_v58 = vsel %vm1078_vm5, %v15040_v61, %v10839_v30  ;;  %v6352_v8 = vsel %vm1078_vm5, %v15025_v3, %v10840_v14 }
 0xa5e   :  { %v10848_v13 = vpop.permute.xlu1 %10847  ;;  %v10845_v37 = vunpack.i.h.bf16 %v10843_v47  ;;  %v10844_v35 = vunpack.i.l.bf16 %v10843_v47  ;;  %6584 = vmatmul.mubr.f32.gmra.mrb[92].mxu0 %v6383_v46 }
 0xa5f   :  { %v10850_v39 = vunpack.i.h.bf16 %v10848_v13  ;;  %v10849_v56 = vunpack.i.l.bf16 %v10848_v13 }
 0xa60   :  { %v6416_v42 = vsel %vm286_vm0, %v6400_v58, %v10844_v35  ;;  %v6368_v11 = vsel %vm286_vm0, %v6352_v8, %v10845_v37 }
 0xa61   :  { %v10853_v18 = vpop.permute.xlu0 %10852  ;;  %v6432_v49 = vsel %vm2254_vm11, %v6416_v42, %v10849_v56  ;;  %v6384_v27 = vsel %vm2254_vm11, %v6368_v11, %v10850_v39 }
 0xa62   :  { %v10858_v29 = vpop.permute.xlu1 %10857  ;;  %v10855_v21 = vunpack.i.h.bf16 %v10853_v18  ;;  %v10854_v43 = vunpack.i.l.bf16 %v10853_v18  ;;  %6588 = vmatprep.mubr.f32.mxu0 %v6432_v49 }
 0xa63   :  { %v10860_v32 = vunpack.i.h.bf16 %v10858_v29  ;;  %v10859_v15 = vunpack.i.l.bf16 %v10858_v29  ;;  %6589 = vmatmul.mubr.f32.gmra.mrb[94].mxu0 %v6384_v27 }
 0xa64   :  { %v6401_v61 = vsel %vm1078_vm5, %v15060_v36, %v10854_v43  ;;  %v6353_v3 = vsel %vm1078_vm5, %v5825_v60, %v10855_v21 }
 0xa65   :  { %v10863_v5 = vpop.permute.xlu0 %10862  ;;  %v6417_v57 = vsel %vm286_vm0, %v6401_v61, %v10859_v15  ;;  %v6369_v14 = vsel %vm286_vm0, %v6353_v3, %v10860_v32 }
 0xa66   :  { %v10868_v38 = vpop.permute.xlu1 %10867  ;;  %v10865_v53 = vunpack.i.h.bf16 %v10863_v5  ;;  %v10864_v52 = vunpack.i.l.bf16 %v10863_v5 }
 0xa67   :  { %v10870_v28 = vunpack.i.h.bf16 %v10868_v38  ;;  %v10869_v12 = vunpack.i.l.bf16 %v10868_v38 }
 0xa68   :  { %v6433_v30 = vsel %vm2254_vm11, %v6417_v57, %v10864_v52  ;;  %v6385_v6 = vsel %vm2254_vm11, %v6369_v14, %v10865_v53 }
 0xa69   :  { %v10873_v59 = vpop.permute.xlu0 %10872  ;;  %6593 = vmatprep.mubr.f32.mxu0 %v6433_v30  ;;  %v6402_v37 = vsel %vm1078_vm5, %v15058_v48, %v10869_v12  ;;  %v6354_v35 = vsel %vm1078_vm5, %v15056_v24, %v10870_v28 }
 0xa6a   :  { %v10878_v55 = vpop.permute.xlu1 %10877  ;;  %v10875_v36 = vunpack.i.h.bf16 %v10873_v59  ;;  %v10874_v46 = vunpack.i.l.bf16 %v10873_v59  ;;  %6594 = vmatmul.mubr.f32.gmra.mrb[96].mxu0 %v6385_v6 }
 0xa6b   :  { %v10880_v47 = vunpack.i.h.bf16 %v10878_v55  ;;  %v10879_v13 = vunpack.i.l.bf16 %v10878_v55 }
 0xa6c   :  { %v6418_v39 = vsel %vm286_vm0, %v6402_v37, %v10874_v46  ;;  %v6370_v56 = vsel %vm286_vm0, %v6354_v35, %v10875_v36 }
 0xa6d   :  { %v10883_v58 = vpop.permute.xlu0 %10882  ;;  %v6434_v42 = vsel %vm2254_vm11, %v6418_v39, %v10879_v13  ;;  %v6386_v11 = vsel %vm2254_vm11, %v6370_v56, %v10880_v47 }
 0xa6e   :  { %v10888_v8 = vpop.permute.xlu1 %10887  ;;  %v10885_v18 = vunpack.i.h.bf16 %v10883_v58  ;;  %v10884_v29 = vunpack.i.l.bf16 %v10883_v58  ;;  %6598 = vmatprep.mubr.f32.mxu0 %v6434_v42 }
 0xa6f   :  { %v10890_v49 = vunpack.i.h.bf16 %v10888_v8  ;;  %v10889_v27 = vunpack.i.l.bf16 %v10888_v8  ;;  %6599 = vmatmul.mubr.f32.gmra.mrb[98].mxu0 %v6386_v11 }
 0xa70   :  { %v6403_v48 = vsel %vm1078_vm5, %v15070_v2, %v10884_v29  ;;  %v6355_v24 = vsel %vm1078_vm5, %v15051_v20, %v10885_v18 }
 0xa71   :  { %v10893_v60 = vpop.permute.xlu0 %10892  ;;  %v6419_v3 = vsel %vm286_vm0, %v6403_v48, %v10889_v27  ;;  %v6371_v5 = vsel %vm286_vm0, %v6355_v24, %v10890_v49 }
 0xa72   :  { %v10898_v21 = vpop.permute.xlu1 %10897  ;;  %v10895_v43 = vunpack.i.h.bf16 %v10893_v60  ;;  %v10894_v32 = vunpack.i.l.bf16 %v10893_v60 }
 0xa73   :  { %v10900_v15 = vunpack.i.h.bf16 %v10898_v21  ;;  %v10899_v61 = vunpack.i.l.bf16 %v10898_v21 }
 0xa74   :  { %v6435_v38 = vsel %vm2254_vm11, %v6419_v3, %v10894_v32  ;;  %v6387_v53 = vsel %vm2254_vm11, %v6371_v5, %v10895_v43 }
 0xa75   :  { %v10903_v52 = vpop.permute.xlu0 %10902  ;;  %6603 = vmatprep.mubr.f32.mxu0 %v6435_v38  ;;  %v6404_v14 = vsel %vm1078_vm5, %v15085_v25, %v10899_v61  ;;  %v6356_v30 = vsel %vm1078_vm5, %v15068_v41, %v10900_v15 }
 0xa76   :  { %v10908_v28 = vpop.permute.xlu1 %10907  ;;  %v10905_v2 = vunpack.i.h.bf16 %v10903_v52  ;;  %v10904_v12 = vunpack.i.l.bf16 %v10903_v52  ;;  %6604 = vmatmul.mubr.f32.gmra.mrb[100].mxu0 %v6387_v53 }
 0xa77   :  { %v10910_v20 = vunpack.i.h.bf16 %v10908_v28  ;;  %v10909_v57 = vunpack.i.l.bf16 %v10908_v28 }
 0xa78   :  { %v6420_v6 = vsel %vm286_vm0, %v6404_v14, %v10904_v12  ;;  %v6372_v59 = vsel %vm286_vm0, %v6356_v30, %v10905_v2 }
 0xa79   :  { %v10913_v55 = vpop.permute.xlu0 %10912  ;;  %v6436_v46 = vsel %vm2254_vm11, %v6420_v6, %v10909_v57  ;;  %v6388_v47 = vsel %vm2254_vm11, %v6372_v59, %v10910_v20 }
 0xa7a   :  { %v10918_v36 = vpop.permute.xlu1 %10917  ;;  %v10915_v13 = vunpack.i.h.bf16 %v10913_v55  ;;  %v10914_v37 = vunpack.i.l.bf16 %v10913_v55  ;;  %6608 = vmatprep.mubr.f32.mxu0 %v6436_v46 }
 0xa7b   :  { %v10920_v35 = vunpack.i.h.bf16 %v10918_v36  ;;  %v10919_v39 = vunpack.i.l.bf16 %v10918_v36  ;;  %6609 = vmatmul.mubr.f32.gmra.mrb[102].mxu0 %v6388_v47 }
 0xa7c   :  { %v6405_v25 = vsel %vm1078_vm5, %v15095_v19, %v10914_v37  ;;  %v6357_v41 = vsel %vm1078_vm5, %v15077_v7, %v10915_v13 }
 0xa7d   :  { %v10923_v56 = vpop.permute.xlu0 %10922  ;;  %v6421_v29 = vsel %vm286_vm0, %v6405_v25, %v10919_v39  ;;  %v6373_v49 = vsel %vm286_vm0, %v6357_v41, %v10920_v35 }
 0xa7e   :  { %v10928_v58 = vpop.permute.xlu1 %10927  ;;  %v10925_v8 = vunpack.i.h.bf16 %v10923_v56  ;;  %v10924_v42 = vunpack.i.l.bf16 %v10923_v56 }
 0xa7f   :  { %v10930_v11 = vunpack.i.h.bf16 %v10928_v58  ;;  %v10929_v18 = vunpack.i.l.bf16 %v10928_v58 }
 0xa80   :  { %v6437_v27 = vsel %vm2254_vm11, %v6421_v29, %v10924_v42  ;;  %v6389_v48 = vsel %vm2254_vm11, %v6373_v49, %v10925_v8 }
 0xa81   :  { %v10933_v24 = vpop.permute.xlu0 %10932  ;;  %6613 = vmatprep.mubr.f32.mxu0 %v6437_v27  ;;  %v6406_v32 = vsel %vm1078_vm5, %v15111_v17, %v10929_v18  ;;  %v6358_v15 = vsel %vm1078_vm5, %v15093_v0, %v10930_v11 }
 0xa82   :  { %v10938_v60 = vpop.permute.xlu1 %10937  ;;  %v10935_v19 = vunpack.i.h.bf16 %v10933_v24  ;;  %v10934_v21 = vunpack.i.l.bf16 %v10933_v24  ;;  %6614 = vmatmul.mubr.f32.gmra.mrb[104].mxu0 %v6389_v48 }
 0xa83   :  { %v10940_v7 = vunpack.i.h.bf16 %v10938_v60  ;;  %v10939_v43 = vunpack.i.l.bf16 %v10938_v60 }
 0xa84   :  { %v6422_v61 = vsel %vm286_vm0, %v6406_v32, %v10934_v21  ;;  %v6374_v3 = vsel %vm286_vm0, %v6358_v15, %v10935_v19 }
 0xa85   :  { %v10943_v5 = vpop.permute.xlu0 %10942  ;;  %v6438_v53 = vsel %vm2254_vm11, %v6422_v61, %v10939_v43  ;;  %v6390_v52 = vsel %vm2254_vm11, %v6374_v3, %v10940_v7 }
 0xa86   :  { %v10948_v38 = vpop.permute.xlu1 %10947  ;;  %v10945_v28 = vunpack.i.h.bf16 %v10943_v5  ;;  %v10944_v2 = vunpack.i.l.bf16 %v10943_v5  ;;  %6618 = vmatprep.mubr.f32.mxu0 %v6438_v53 }
 0xa87   :  { %v10950_v12 = vunpack.i.h.bf16 %v10948_v38  ;;  %v10949_v20 = vunpack.i.l.bf16 %v10948_v38  ;;  %6619 = vmatmul.mubr.f32.gmra.mrb[106].mxu0 %v6390_v52 }
 0xa88   :  { %v6407_v17 = vsel %vm1078_vm5, %v15121_v40, %v10944_v2  ;;  %v6359_v0 = vsel %vm1078_vm5, %v15103_v26, %v10945_v28 }
 0xa89   :  { %v10953_v57 = vpop.permute.xlu0 %10952  ;;  %v6423_v36 = vsel %vm286_vm0, %v6407_v17, %v10949_v20  ;;  %v6375_v46 = vsel %vm286_vm0, %v6359_v0, %v10950_v12 }
 0xa8a   :  { %v10958_v14 = vpop.permute.xlu1 %10957  ;;  %v10955_v30 = vunpack.i.h.bf16 %v10953_v57  ;;  %v10954_v6 = vunpack.i.l.bf16 %v10953_v57 }
 0xa8b   :  { %v10960_v59 = vunpack.i.h.bf16 %v10958_v14  ;;  %v10959_v55 = vunpack.i.l.bf16 %v10958_v14 }
 0xa8c   :  { %v6439_v47 = vsel %vm2254_vm11, %v6423_v36, %v10954_v6  ;;  %v6391_v13 = vsel %vm2254_vm11, %v6375_v46, %v10955_v30 }
 0xa8d   :  { %v10963_v37 = vpop.permute.xlu0 %10962  ;;  %6623 = vmatprep.mubr.f32.mxu0 %v6439_v47  ;;  %v6408_v41 = vsel %vm1078_vm5, %v15135_v50, %v10959_v55  ;;  %v6360_v56 = vsel %vm1078_vm5, %v15119_v22, %v10960_v59 }
 0xa8e   :  { %v10968_v35 = vpop.permute.xlu1 %10967  ;;  %v10965_v40 = vunpack.i.h.bf16 %v10963_v37  ;;  %v10964_v39 = vunpack.i.l.bf16 %v10963_v37  ;;  %6624 = vmatmul.mubr.f32.gmra.mrb[108].mxu0 %v6391_v13 }
 0xa8f   :  { %v10970_v26 = vunpack.i.h.bf16 %v10968_v35  ;;  %v10969_v25 = vunpack.i.l.bf16 %v10968_v35 }
 0xa90   :  { %v6424_v8 = vsel %vm286_vm0, %v6408_v41, %v10964_v39  ;;  %v6376_v42 = vsel %vm286_vm0, %v6360_v56, %v10965_v40 }
 0xa91   :  { %v9536_v58 = vpop.f32.mrb[80].mxu1  ;;  %v6440_v11 = vsel %vm2254_vm11, %v6424_v8, %v10969_v25  ;;  %v6392_v29 = vsel %vm2254_vm11, %v6376_v42, %v10970_v26 }
 0xa92   :  { %v6700_v18 = vpop.f32.mrb[81].mxu1  ;;  %6628 = vmatprep.mubr.f32.mxu0 %v6440_v11 }
 0xa93   :  { %6629 = vmatmul.mubr.f32.gmra.mrb[110].mxu0 %v6392_v29 }
 0xa95   :  { %v9539_v49 = vpop.f32.mrb[82].mxu1 }
 0xa96   :  { %v6710_v27 = vpop.f32.mrb[83].mxu1 }
 0xa99   :  { %v9542_v48 = vpop.f32.mrb[84].mxu1 }
 0xa9a   :  { %v6720_v24 = vpop.f32.mrb[85].mxu1 }
 0xa9d   :  { %v15274_v50 = vpop.f32.mrb[86].mxu1 }
 0xa9e   :  { %v15276_v60 = vpop.f32.mrb[87].mxu1 }
 0xaa1   :  { %v15278_v22 = vpop.f32.mrb[88].mxu1 }
 0xaa2   :  { %v15280_v19 = vpop.f32.mrb[89].mxu1 }
 0xaa5   :  { %v15282_v21 = vpop.f32.mrb[90].mxu1 }
 0xaa6   :  { %v15284_v7 = vpop.f32.mrb[91].mxu1 }
 0xaa9   :  { %v15286_v43 = vpop.f32.mrb[92].mxu1 }
 0xaaa   :  { %v15288_v32 = vpop.f32.mrb[93].mxu1 }
 0xaad   :  { %v15290_v15 = vpop.f32.mrb[94].mxu1 }
 0xaae   :  { %v15292_v61 = vpop.f32.mrb[95].mxu1 }
 0xb0d   :  { %v9117_v3 = vpop.f32.mrb[80].mxu0 }
 0xb0e   :  { %v9118_v5 = vpop.f32.mrb[81].mxu0 }
 0xb0f   :  { %v9119_v38 = vadd.f32 %v9118_v5, %v9117_v3 }
 0xb11   :  { %v15294_v53 = vadd.f32 %v9119_v38, %v6700_v18 }
 0xb12   :  { %v9120_v52 = vpop.f32.mrb[82].mxu0 }
 0xb13   :  { %v9121_v28 = vpop.f32.mrb[83].mxu0  ;;  %v6819_v12 = vmul.f32 %v15294_v53, %v15294_v53  ;;  %v6781_v17 = vsel %vm286_vm0, %v15294_v53, 0.0 }
 0xb14   :  { %v9122_v2 = vadd.f32 %v9121_v28, %v9120_v52 }
 0xb15   :  { %v6835_v6 = vsel %vm286_vm0, %v6819_v12, 0.0 }
 0xb16   :  { %v15298_v20 = vadd.f32 %v9536_v58, %v9122_v2 }
 0xb18   :  { %v6782_v0 = vsel %vm286_vm0, %v15298_v20, 0.0  ;;  %v6820_v57 = vmul.f32 %v15298_v20, %v15298_v20 }
 0xb19   :  { %v6783_v14 = vadd.f32 %v6782_v0, %v6781_v17  ;;  %v9123_v30 = vpop.f32.mrb[84].mxu0 }
 0xb1a   :  { %v6836_v59 = vsel %vm286_vm0, %v6820_v57, 0.0  ;;  %v9124_v55 = vpop.f32.mrb[85].mxu0 }
 0xb1b   :  { %v6837_v36 = vadd.f32 %v6836_v59, %v6835_v6  ;;  %v9125_v46 = vadd.f32 %v9124_v55, %v9123_v30 }
 0xb1d   :  { %v15308_v47 = vadd.f32 %v9125_v46, %v6710_v27 }
 0xb1e   :  { %v9126_v13 = vpop.f32.mrb[86].mxu0 }
 0xb1f   :  { %v6784_v37 = vsel %vm286_vm0, %v15308_v47, 0.0  ;;  %v6821_v35 = vmul.f32 %v15308_v47, %v15308_v47  ;;  %v9127_v40 = vpop.f32.mrb[87].mxu0 }
 0xb20   :  { %v6785_v39 = vadd.f32 %v6784_v37, %v6783_v14  ;;  %v9128_v26 = vadd.f32 %v9127_v40, %v9126_v13 }
 0xb21   :  { %v6838_v25 = vsel %vm286_vm0, %v6821_v35, 0.0 }
 0xb22   :  { %v6839_v41 = vadd.f32 %v6838_v25, %v6837_v36  ;;  %v15315_v56 = vadd.f32 %v9539_v49, %v9128_v26 }
 0xb24   :  { %v6786_v58 = vsel %vm286_vm0, %v15315_v56, 0.0  ;;  %v6822_v8 = vmul.f32 %v15315_v56, %v15315_v56 }
 0xb25   :  { %v6787_v42 = vadd.f32 %v6786_v58, %v6785_v39  ;;  %v9129_v11 = vpop.f32.mrb[88].mxu0 }
 0xb26   :  { %v6840_v18 = vsel %vm286_vm0, %v6822_v8, 0.0  ;;  %v9130_v29 = vpop.f32.mrb[89].mxu0 }
 0xb27   :  { %v6841_v27 = vadd.f32 %v6840_v18, %v6839_v41  ;;  %v9131_v3 = vadd.f32 %v9130_v29, %v9129_v11 }
 0xb29   :  { %v15322_v5 = vadd.f32 %v9131_v3, %v6720_v24 }
 0xb2a   :  { %v9132_v38 = vpop.f32.mrb[90].mxu0 }
 0xb2b   :  { %v6788_v49 = vsel %vm286_vm0, %v15322_v5, 0.0  ;;  %v6823_v52 = vmul.f32 %v15322_v5, %v15322_v5  ;;  %v9133_v28 = vpop.f32.mrb[91].mxu0 }
 0xb2c   :  { %v6789_v2 = vadd.f32 %v6788_v49, %v6787_v42  ;;  %v9134_v12 = vadd.f32 %v9133_v28, %v9132_v38 }
 0xb2d   :  { %v6842_v17 = vsel %vm286_vm0, %v6823_v52, 0.0 }
 0xb2e   :  { %v6843_v0 = vadd.f32 %v6842_v17, %v6841_v27  ;;  %v15329_v57 = vadd.f32 %v9542_v48, %v9134_v12 }
 0xb30   :  { %v6790_v14 = vsel %vm286_vm0, %v15329_v57, 0.0  ;;  %v6824_v24 = vmul.f32 %v15329_v57, %v15329_v57 }
 0xb31   :  { %v6791_v30 = vadd.f32 %v6790_v14, %v6789_v2  ;;  %v9135_v6 = vpop.f32.mrb[92].mxu0 }
 0xb32   :  { %v6844_v59 = vsel %vm286_vm0, %v6824_v24, 0.0  ;;  %v9136_v55 = vpop.f32.mrb[93].mxu0 }
 0xb33   :  { %v6845_v36 = vadd.f32 %v6844_v59, %v6843_v0  ;;  %v9137_v46 = vadd.f32 %v9136_v55, %v9135_v6 }
 0xb35   :  { %v15337_v13 = vadd.f32 %v9137_v46, %v15276_v60 }
 0xb36   :  { %v9138_v37 = vpop.f32.mrb[94].mxu0 }
 0xb37   :  { %v6792_v48 = vsel %vm286_vm0, %v15337_v13, 0.0  ;;  %v6825_v35 = vmul.f32 %v15337_v13, %v15337_v13  ;;  %v9139_v40 = vpop.f32.mrb[95].mxu0 }
 0xb38   :  { %v6793_v39 = vadd.f32 %v6792_v48, %v6791_v30  ;;  %v9140_v26 = vadd.f32 %v9139_v40, %v9138_v37 }
 0xb39   :  { %v6846_v25 = vsel %vm286_vm0, %v6825_v35, 0.0 }
 0xb3a   :  { %v6847_v41 = vadd.f32 %v6846_v25, %v6845_v36  ;;  %v15345_v58 = vadd.f32 %v15274_v50, %v9140_v26 }
 0xb3c   :  { %v6794_v60 = vsel %vm286_vm0, %v15345_v58, 0.0  ;;  %v6826_v8 = vmul.f32 %v15345_v58, %v15345_v58 }
 0xb3d   :  { %v6795_v42 = vadd.f32 %v6794_v60, %v6793_v39  ;;  %v9141_v11 = vpop.f32.mrb[96].mxu0 }
 0xb3e   :  { %v6848_v18 = vsel %vm286_vm0, %v6826_v8, 0.0  ;;  %v9142_v29 = vpop.f32.mrb[97].mxu0 }
 0xb3f   :  { %v6849_v27 = vadd.f32 %v6848_v18, %v6847_v41  ;;  %v9143_v3 = vadd.f32 %v9142_v29, %v9141_v11 }
 0xb41   :  { %v15353_v38 = vadd.f32 %v9143_v3, %v15280_v19 }
 0xb42   :  { %v9144_v49 = vpop.f32.mrb[98].mxu0 }
 0xb43   :  { %v6796_v50 = vsel %vm286_vm0, %v15353_v38, 0.0  ;;  %v6827_v52 = vmul.f32 %v15353_v38, %v15353_v38  ;;  %v9145_v28 = vpop.f32.mrb[99].mxu0 }
 0xb44   :  { %v6797_v2 = vadd.f32 %v6796_v50, %v6795_v42  ;;  %v9146_v12 = vadd.f32 %v9145_v28, %v9144_v49 }
 0xb45   :  { %v6850_v17 = vsel %vm286_vm0, %v6827_v52, 0.0  ;;  %v7017_v52 = vld [vmem:[#allocation23 + $0x180] sm:$0xff] }
 0xb46   :  { %v6851_v0 = vadd.f32 %v6850_v17, %v6849_v27  ;;  %v15361_v14 = vadd.f32 %v15278_v22, %v9146_v12 }
 0xb48   :  { %v6798_v19 = vsel %vm286_vm0, %v15361_v14, 0.0  ;;  %v6828_v24 = vmul.f32 %v15361_v14, %v15361_v14 }
 0xb49   :  { %v6799_v30 = vadd.f32 %v6798_v19, %v6797_v2  ;;  %v9147_v6 = vpop.f32.mrb[100].mxu0 }
 0xb4a   :  { %v6852_v59 = vsel %vm286_vm0, %v6828_v24, 0.0  ;;  %v9148_v55 = vpop.f32.mrb[101].mxu0 }
 0xb4b   :  { %v6853_v36 = vadd.f32 %v6852_v59, %v6851_v0  ;;  %v9149_v46 = vadd.f32 %v9148_v55, %v9147_v6  ;;  %v7001_v6 = vld [vmem:[#allocation23 + $0x100] sm:$0xff]  ;;  %v7002_v59 = vld [vmem:[#allocation23 + $0x108] sm:$0xff] }
 0xb4c   :  { %v9837_v55 = vpack.c.bf16 %v7002_v59, %v7001_v6 }
 0xb4d   :  { %v15369_v37 = vadd.f32 %v9149_v46, %v15284_v7 }
 0xb4e   :  { %v9150_v48 = vpop.f32.mrb[102].mxu0 }
 0xb4f   :  { %v6800_v22 = vsel %vm286_vm0, %v15369_v37, 0.0  ;;  %v6829_v35 = vmul.f32 %v15369_v37, %v15369_v37  ;;  %v9151_v40 = vpop.f32.mrb[103].mxu0 }
 0xb50   :  { %v6801_v39 = vadd.f32 %v6800_v22, %v6799_v30  ;;  %v9152_v26 = vadd.f32 %v9151_v40, %v9150_v48 }
 0xb51   :  { %v6854_v25 = vsel %vm286_vm0, %v6829_v35, 0.0 }
 0xb52   :  { %v6855_v41 = vadd.f32 %v6854_v25, %v6853_v36  ;;  %v15377_v60 = vadd.f32 %v15282_v21, %v9152_v26  ;;  %v7018_v21 = vld [vmem:[#allocation23 + $0x188] sm:$0xff]  ;;  %v7020_v26 = vld [vmem:[#allocation23 + $0x198] sm:$0xff]  ;;  %v7003_v25 = vld [vmem:[#allocation23 + $0x110] sm:$0xff] }
 0xb53   :  { %v9835_v17 = vpack.c.bf16 %v7018_v21, %v7017_v52  ;;  %v7024_v21 = vld [vmem:[#allocation23 + $0x1b8] sm:$0xff] }
 0xb54   :  { %v6802_v7 = vsel %vm286_vm0, %v15377_v60, 0.0  ;;  %v6830_v8 = vmul.f32 %v15377_v60, %v15377_v60 }
 0xb55   :  { %v6803_v42 = vadd.f32 %v6802_v7, %v6801_v39  ;;  %v9153_v11 = vpop.f32.mrb[104].mxu0  ;;  %9836 = vmatprep.subr.bf16.mxu0 %v9835_v17  ;;  %v7019_v39 = vld [vmem:[#allocation23 + $0x190] sm:$0xff] }
 0xb56   :  { %v6856_v18 = vsel %vm286_vm0, %v6830_v8, 0.0  ;;  %v9154_v29 = vpop.f32.mrb[105].mxu0  ;;  %9838 = vmatpush3.bf16.msra.mxu0 %v9837_v55  ;;  %v9839_v7 = vpack.c.bf16 %v7020_v26, %v7019_v39  ;;  %v7004_v8 = vld [vmem:[#allocation23 + $0x118] sm:$0xff]  ;;  %v7026_v39 = vld [vmem:[#allocation23 + $0x1c8] sm:$0xff]  ;;  %v6987_v26 = vld [vmem:[#allocation23 + $0x90] sm:$0xff] }
 0xb57   :  { %v6857_v27 = vadd.f32 %v6856_v18, %v6855_v41  ;;  %v9155_v3 = vadd.f32 %v9154_v29, %v9153_v11  ;;  %v7022_v11 = vld [vmem:[#allocation23 + $0x1a8] sm:$0xff]  ;;  %v9841_v18 = vpack.c.bf16 %v7004_v8, %v7003_v25  ;;  %v6971_v8 = vld [vmem:[#allocation23 + $0x10] sm:$0xff] }
 0xb58   :  { %9840 = vmatprep.subr.bf16.mxu0 %v9839_v7  ;;  %v6988_v7 = vld [vmem:[#allocation23 + $0x98] sm:$0xff] }
 0xb59   :  { %v15385_v49 = vadd.f32 %v9155_v3, %v15288_v32  ;;  %v7006_v3 = vld [vmem:[#allocation23 + $0x128] sm:$0xff] }
 0xb5a   :  { %v9156_v50 = vpop.f32.mrb[106].mxu0  ;;  %9842 = vmatpush3.bf16.msra.mxu0 %v9841_v18 }
 0xb5b   :  { %v6804_v28 = vsel %vm286_vm0, %v15385_v49, 0.0  ;;  %v6831_v2 = vmul.f32 %v15385_v49, %v15385_v49  ;;  %v9157_v12 = vpop.f32.mrb[107].mxu0 }
 0xb5c   :  { %v6805_v0 = vadd.f32 %v6804_v28, %v6803_v42  ;;  %v9158_v19 = vadd.f32 %v9157_v12, %v9156_v50  ;;  %v7021_v42 = vld [vmem:[#allocation23 + $0x1a0] sm:$0xff]  ;;  %v7023_v50 = vld [vmem:[#allocation23 + $0x1b0] sm:$0xff] }
 0xb5d   :  { %v6858_v24 = vsel %vm286_vm0, %v6831_v2, 0.0  ;;  %v9843_v29 = vpack.c.bf16 %v7022_v11, %v7021_v42  ;;  %v7007_v28 = vld [vmem:[#allocation23 + $0x130] sm:$0xff]  ;;  %v7008_v2 = vld [vmem:[#allocation23 + $0x138] sm:$0xff] }
 0xb5e   :  { %v6859_v30 = vadd.f32 %v6858_v24, %v6857_v27  ;;  %v15393_v32 = vadd.f32 %v15286_v43, %v9158_v19  ;;  %v7005_v27 = vld [vmem:[#allocation23 + $0x120] sm:$0xff]  ;;  %v6986_v19 = vld [vmem:[#allocation23 + $0x88] sm:$0xff]  ;;  %v6972_v42 = vld [vmem:[#allocation23 + $0x18] sm:$0xff] }
 0xb5f   :  { %v9845_v17 = vpack.c.bf16 %v7006_v3, %v7005_v27  ;;  %v6969_v24 = vld [vmem:[#allocation23] sm:$0xff]  ;;  %9844 = vmatprep.subr.bf16.mxu0 %v9843_v29  ;;  %v6990_v3 = vld [vmem:[#allocation23 + $0xa8] sm:$0xff] }
 0xb60   :  { %v6806_v36 = vsel %vm286_vm0, %v15393_v32, 0.0  ;;  %v6832_v46 = vmul.f32 %v15393_v32, %v15393_v32  ;;  %v7009_v29 = vld [vmem:[#allocation23 + $0x140] sm:$0xff] }
 0xb61   :  { %v9159_v48 = vpop.f32.mrb[108].mxu0  ;;  %v6807_v22 = vadd.f32 %v6806_v36, %v6805_v0  ;;  %v6985_v0 = vld [vmem:[#allocation23 + $0x80] sm:$0xff]  ;;  %v6970_v36 = vld [vmem:[#allocation23 + $0x8] sm:$0xff]  ;;  %9846 = vmatpush3.bf16.msra.mxu0 %v9845_v17  ;;  %v7028_v17 = vld [vmem:[#allocation23 + $0x1d8] sm:$0xff] }
 0xb62   :  { %v6860_v35 = vsel %vm286_vm0, %v6832_v46, 0.0  ;;  %v9160_v40 = vpop.f32.mrb[109].mxu0  ;;  %v9803_v55 = vpack.c.bf16 %v6986_v19, %v6985_v0  ;;  %v6989_v27 = vld [vmem:[#allocation23 + $0xa0] sm:$0xff] }
 0xb63   :  { %v9161_v43 = vadd.f32 %v9160_v40, %v9159_v48  ;;  %v6861_v41 = vadd.f32 %v6860_v35, %v6859_v30  ;;  %v9805_v35 = vpack.c.bf16 %v6970_v36, %v6969_v24  ;;  %v7025_v40 = vld [vmem:[#allocation23 + $0x1c0] sm:$0xff]  ;;  %v9811_v0 = vpack.c.bf16 %v6990_v3, %v6989_v27  ;;  %v6991_v24 = vld [vmem:[#allocation23 + $0xb0] sm:$0xff] }
 0xb64   :  { %9804 = vmatprep.subr.bf16.mxu1 %v9803_v55  ;;  %v7011_v36 = vld [vmem:[#allocation23 + $0x150] sm:$0xff] }
 0xb65   :  { %v15401_v52 = vadd.f32 %v9161_v43, %v15292_v61  ;;  %v9847_v61 = vpack.c.bf16 %v7024_v21, %v7023_v50  ;;  %v9849_v43 = vpack.c.bf16 %v7008_v2, %v7007_v28  ;;  %9806 = vmatpush3.bf16.msra.mxu1 %v9805_v35  ;;  %v9851_v50 = vpack.c.bf16 %v7026_v39, %v7025_v40  ;;  %v7010_v21 = vld [vmem:[#allocation23 + $0x148] sm:$0xff]  ;;  %v6973_v28 = vld [vmem:[#allocation23 + $0x20] sm:$0xff] }
 0xb66   :  { %v9162_v12 = vpop.f32.mrb[110].mxu0  ;;  %v6974_v2 = vld [vmem:[#allocation23 + $0x28] sm:$0xff] }
 0xb67   :  { %v6808_v30 = vsel %vm286_vm0, %v15401_v52, 0.0  ;;  %v6833_v6 = vmul.f32 %v15401_v52, %v15401_v52  ;;  %v9163_v59 = vpop.f32.mrb[111].mxu0  ;;  %9848 = vmatprep.subr.bf16.mxu0 %v9847_v61  ;;  %v9853_v61 = vpack.c.bf16 %v7010_v21, %v7009_v29  ;;  %v9813_v55 = vpack.c.bf16 %v6974_v2, %v6973_v28  ;;  %v6977_v21 = vld [vmem:[#allocation23 + $0x40] sm:$0xff] }
 0xb68   :  { %v6809_v46 = vadd.f32 %v6808_v30, %v6807_v22  ;;  %v9164_v48 = vadd.f32 %v9163_v59, %v9162_v12  ;;  %v9807_v22 = vpack.c.bf16 %v6988_v7, %v6987_v26  ;;  %v9809_v12 = vpack.c.bf16 %v6972_v42, %v6971_v8  ;;  %9850 = vmatpush3.bf16.msra.mxu0 %v9849_v43  ;;  %v6976_v7 = vld [vmem:[#allocation23 + $0x38] sm:$0xff]  ;;  %v6993_v8 = vld [vmem:[#allocation23 + $0xc0] sm:$0xff]  ;;  %v6994_v42 = vld [vmem:[#allocation23 + $0xc8] sm:$0xff] }
 0xb69   :  { %v6862_v25 = vsel %vm286_vm0, %v6833_v6, 0.0  ;;  %v6992_v6 = vld [vmem:[#allocation23 + $0xb8] sm:$0xff]  ;;  %9852 = vmatprep.subr.bf16.mxu0 %v9851_v50  ;;  %v9819_v50 = vpack.c.bf16 %v6994_v42, %v6993_v8  ;;  %v7013_v2 = vld [vmem:[#allocation23 + $0x160] sm:$0xff]  ;;  %v6982_v8 = vld [vmem:[#allocation23 + $0x68] sm:$0xff] }
 0xb6a   :  { %v6863_v11 = vadd.f32 %v6862_v25, %v6861_v41  ;;  %v15409_v18 = vadd.f32 %v15290_v15, %v9164_v48  ;;  %9808 = vmatprep.subr.bf16.mxu1 %v9807_v22  ;;  %v7027_v41 = vld [vmem:[#allocation23 + $0x1d0] sm:$0xff]  ;;  %v7012_v48 = vld [vmem:[#allocation23 + $0x158] sm:$0xff]  ;;  %v9815_v26 = vpack.c.bf16 %v6992_v6, %v6991_v24  ;;  %v7030_v22 = vld [vmem:[#allocation23 + $0x1e8] sm:$0xff] }
 0xb6b   :  { %9810 = vmatpush3.bf16.msra.mxu1 %v9809_v12  ;;  %v9855_v39 = vpack.c.bf16 %v7028_v17, %v7027_v41  ;;  %v6975_v25 = vld [vmem:[#allocation23 + $0x30] sm:$0xff]  ;;  %v9857_v43 = vpack.c.bf16 %v7012_v48, %v7011_v36  ;;  %v6978_v12 = vld [vmem:[#allocation23 + $0x48] sm:$0xff]  ;;  %v6996_v41 = vld [vmem:[#allocation23 + $0xd8] sm:$0xff] }
 0xb6c   :  { %v6810_v19 = vsel %vm286_vm0, %v15409_v18, 0.0  ;;  %v6834_v15 = vmul.f32 %v15409_v18, %v15409_v18  ;;  %9812 = vmatprep.subr.bf16.mxu1 %v9811_v0  ;;  %9854 = vmatpush3.bf16.msra.mxu0 %v9853_v61  ;;  %v9817_v29 = vpack.c.bf16 %v6976_v7, %v6975_v25  ;;  %v7031_v17 = vld [vmem:[#allocation23 + $0x1f0] sm:$0xff]  ;;  %v7032_v24 = vld [vmem:[#allocation23 + $0x1f8] sm:$0xff]  ;;  %v6981_v7 = vld [vmem:[#allocation23 + $0x60] sm:$0xff] }
 0xb6d   :  { %v6811_v30 = vadd.f32 %v6810_v19, %v6809_v46  ;;  %v7029_v46 = vld [vmem:[#allocation23 + $0x1e0] sm:$0xff]  ;;  %9856 = vmatprep.subr.bf16.mxu0 %v9855_v39  ;;  %v7014_v19 = vld [vmem:[#allocation23 + $0x168] sm:$0xff]  ;;  %v9863_v25 = vpack.c.bf16 %v7032_v24, %v7031_v17  ;;  %v7015_v42 = vld [vmem:[#allocation23 + $0x170] sm:$0xff] }
 0xb6e   :  { %v6864_v59 = vsel %vm286_vm0, %v6834_v15, 0.0  ;;  %v9859_v0 = vpack.c.bf16 %v7030_v22, %v7029_v46  ;;  %v6995_v15 = vld [vmem:[#allocation23 + $0xd0] sm:$0xff]  ;;  %v9861_v61 = vpack.c.bf16 %v7014_v19, %v7013_v2  ;;  %v6997_v39 = vld [vmem:[#allocation23 + $0xe0] sm:$0xff] }
 0xb6f   :  { %v6812_v35 = vrot.slane %v6811_v30, 4  ;;  %v6865_v40 = vadd.f32 %v6864_v59, %v6863_v11  ;;  %9814 = vmatpush3.bf16.msra.mxu1 %v9813_v55  ;;  %v9821_v59 = vpack.c.bf16 %v6978_v12, %v6977_v21  ;;  %v6979_v55 = vld [vmem:[#allocation23 + $0x50] sm:$0xff] }
 0xb70   :  { %9816 = vmatprep.subr.bf16.mxu1 %v9815_v26  ;;  %9858 = vmatpush3.bf16.msra.mxu0 %v9857_v43  ;;  %v6998_v26 = vld [vmem:[#allocation23 + $0xe8] sm:$0xff]  ;;  %v7000_v43 = vld [vmem:[#allocation23 + $0xf8] sm:$0xff] }
 0xb71   :  { %v6813_v27 = vadd.f32 %v6812_v35, %v6811_v30  ;;  %v6866_v3 = vrot.slane %v6865_v40, 4  ;;  %9860 = vmatprep.subr.bf16.mxu0 %v9859_v0  ;;  %v9823_v35 = vpack.c.bf16 %v6996_v41, %v6995_v15 }
 0xb73   :  { %v6814_v28 = vrot.slane %v6813_v27, 2  ;;  %v6867_v11 = vadd.f32 %v6866_v3, %v6865_v40  ;;  %9818 = vmatpush3.bf16.msra.mxu1 %v9817_v29  ;;  %v6980_v40 = vld [vmem:[#allocation23 + $0x58] sm:$0xff]  ;;  %v6999_v3 = vld [vmem:[#allocation23 + $0xf0] sm:$0xff] }
 0xb74   :  { %9820 = vmatprep.subr.bf16.mxu1 %v9819_v50  ;;  %9862 = vmatpush3.bf16.msra.mxu0 %v9861_v61  ;;  %v9825_v29 = vpack.c.bf16 %v6980_v40, %v6979_v55  ;;  %v9831_v0 = vpack.c.bf16 %v7000_v43, %v6999_v3  ;;  %v8885_v40 = vld [vmem:[%s16504_s29] ss:$0 sm:$0xff] }
 0xb75   :  { %v6815_v30 = vadd.f32 %v6814_v28, %v6813_v27  ;;  %v6868_v6 = vrot.slane %v6867_v11, 2  ;;  %v7016_v27 = vld [vmem:[#allocation23 + $0x178] sm:$0xff]  ;;  %v9827_v28 = vpack.c.bf16 %v6998_v26, %v6997_v39  ;;  %9864 = vmatprep.subr.bf16.mxu0 %v9863_v25 }
 0xb76   :  { %v9865_v50 = vpack.c.bf16 %v7016_v27, %v7015_v42 }
 0xb77   :  { %v6816_v36 = vrot.slane %v6815_v30, 1  ;;  %v6869_v48 = vadd.f32 %v6868_v6, %v6867_v11  ;;  %9822 = vmatpush3.bf16.msra.mxu1 %v9821_v59  ;;  %v9829_v11 = vpack.c.bf16 %v6982_v8, %v6981_v7 }
 0xb78   :  { %9824 = vmatprep.subr.bf16.mxu1 %v9823_v35  ;;  %9866 = vmatpush3.bf16.msra.mxu0 %v9865_v50 }
 0xb79   :  { %v6817_v46 = vadd.f32 %v6816_v36, %v6815_v30  ;;  %v6870_v22 = vrot.slane %v6869_v48, 1 }
 0xb7b   :  { %v6818_v21 = vmul.f32 0.0078125, %v6817_v46  ;;  %v6871_v12 = vadd.f32 %v6870_v22, %v6869_v48  ;;  %9826 = vmatpush3.bf16.msra.mxu1 %v9825_v29  ;;  %v8886_v29 = vld [vmem:[%s16505_s10] ss:$0 sm:$0xff] }
 0xb7c   :  { %9828 = vmatprep.subr.bf16.mxu1 %v9827_v28 }
 0xb7d   :  { %v6872_v2 = vmul.f32 0.0078125, %v6871_v12  ;;  %v6873_v19 = vmul.f32 %v6818_v21, %v6818_v21  ;;  %v6875_v15 = vsub.f32 %v15294_v53, %v6818_v21  ;;  %v6876_v41 = vsub.f32 %v15298_v20, %v6818_v21 }
 0xb7e   :  { %v6877_v17 = vsub.f32 %v15308_v47, %v6818_v21  ;;  %v6878_v24 = vsub.f32 %v15315_v56, %v6818_v21  ;;  %v6879_v30 = vsub.f32 %v15322_v5, %v6818_v21  ;;  %v6880_v6 = vsub.f32 %v15329_v57, %v6818_v21 }
 0xb7f   :  { %v6874_v59 = vsub.f32 %v6872_v2, %v6873_v19  ;;  %v6881_v61 = vsub.f32 %v15337_v13, %v6818_v21  ;;  %v6882_v55 = vsub.f32 %v15345_v58, %v6818_v21  ;;  %v6883_v36 = vsub.f32 %v15353_v38, %v6818_v21  ;;  %9830 = vmatpush3.bf16.msra.mxu1 %v9829_v11 }
 0xb80   :  { %v6884_v53 = vsub.f32 %v15361_v14, %v6818_v21  ;;  %v6885_v20 = vsub.f32 %v15369_v37, %v6818_v21  ;;  %v6886_v47 = vsub.f32 %v15377_v60, %v6818_v21  ;;  %v6887_v56 = vsub.f32 %v15385_v49, %v6818_v21  ;;  %9832 = vmatprep.subr.bf16.mxu1 %v9831_v0 }
 0xb81   :  { %v6888_v5 = vsub.f32 %v15393_v32, %v6818_v21  ;;  %v6889_v57 = vsub.f32 %v15401_v52, %v6818_v21  ;;  %v6890_v13 = vsub.f32 %v15409_v18, %v6818_v21  ;;  %v6891_v58 = vadd.f32 1e-05, %v6874_v59 }
 0xb83   :  { %11143 = vrsqrt.f32 %v6891_v58 }
 0xb8d   :  { %v11144_v38 = vpop.eup %11143 }
 0xb8e   :  { %v6893_v14 = vmul.f32 %v11144_v38, %v6875_v15  ;;  %v6894_v48 = vmul.f32 %v11144_v38, %v6876_v41  ;;  %v6895_v37 = vmul.f32 %v11144_v38, %v6877_v17  ;;  %v6896_v35 = vmul.f32 %v11144_v38, %v6878_v24 }
 0xb8f   :  { %v6897_v60 = vmul.f32 %v11144_v38, %v6879_v30  ;;  %v6898_v49 = vmul.f32 %v11144_v38, %v6880_v6  ;;  %v6899_v39 = vmul.f32 %v11144_v38, %v6881_v61  ;;  %v6900_v26 = vmul.f32 %v11144_v38, %v6882_v55 }
 0xb90   :  { %v6901_v32 = vmul.f32 %v11144_v38, %v6883_v36  ;;  %v6902_v25 = vmul.f32 %v11144_v38, %v6884_v53  ;;  %v6903_v52 = vmul.f32 %v11144_v38, %v6885_v20  ;;  %v6904_v7 = vmul.f32 %v11144_v38, %v6886_v47 }
 0xb91   :  { %v6905_v18 = vmul.f32 %v11144_v38, %v6887_v56  ;;  %v6906_v8 = vmul.f32 %v11144_v38, %v6888_v5  ;;  %v6907_v42 = vmul.f32 %v11144_v38, %v6889_v57  ;;  %v6908_v46 = vmul.f32 %v11144_v38, %v6890_v13 }
 0xb92   :  { %v6915_v22 = vmul.f32 %v8885_v40, %v6893_v14  ;;  %v6916_v27 = vmul.f32 %v8885_v40, %v6894_v48  ;;  %v6917_v3 = vmul.f32 %v8885_v40, %v6895_v37  ;;  %v6918_v43 = vmul.f32 %v8885_v40, %v6896_v35 }
 0xb93   :  { %v6919_v21 = vmul.f32 %v8885_v40, %v6897_v60  ;;  %v6920_v12 = vmul.f32 %v8885_v40, %v6898_v49  ;;  %v6921_v28 = vmul.f32 %v8885_v40, %v6899_v39  ;;  %v6922_v11 = vmul.f32 %v8885_v40, %v6900_v26  ;;  %v6983_v60 = vld [vmem:[#allocation23 + $0x70] sm:$0xff]  ;;  %v6984_v49 = vld [vmem:[#allocation23 + $0x78] sm:$0xff] }
 0xb94   :  { %v6923_v50 = vmul.f32 %v8885_v40, %v6901_v32  ;;  %v6924_v0 = vmul.f32 %v8885_v40, %v6902_v25  ;;  %v6925_v2 = vmul.f32 %v8885_v40, %v6903_v52  ;;  %v6926_v19 = vmul.f32 %v8885_v40, %v6904_v7  ;;  %v7033_v52 = vld [vmem:[#allocation23 + $0x200] sm:$0xff]  ;;  %v7034_v7 = vld [vmem:[#allocation23 + $0x208] sm:$0xff] }
 0xb95   :  { %v6927_v15 = vmul.f32 %v8885_v40, %v6905_v18  ;;  %v6928_v41 = vmul.f32 %v8885_v40, %v6906_v8  ;;  %v6929_v17 = vmul.f32 %v8885_v40, %v6907_v42  ;;  %v6930_v24 = vmul.f32 %v8885_v40, %v6908_v46 }
 0xb96   :  { %v6937_v30 = vadd.f32 %v8886_v29, %v6915_v22  ;;  %v6938_v6 = vadd.f32 %v8886_v29, %v6916_v27  ;;  %v6939_v59 = vadd.f32 %v8886_v29, %v6917_v3  ;;  %v6940_v61 = vadd.f32 %v8886_v29, %v6918_v43 }
 0xb97   :  { %v6941_v55 = vadd.f32 %v8886_v29, %v6919_v21  ;;  %v6942_v36 = vadd.f32 %v8886_v29, %v6920_v12  ;;  %v6943_v53 = vadd.f32 %v8886_v29, %v6921_v28  ;;  %v6944_v20 = vadd.f32 %v8886_v29, %v6922_v11  ;;  %v8178_v12 = vld [vmem:[%s16506_s30] sm:$0xff]  ;;  %v8179_v28 = vld [vmem:[%s16506_s30 + $0x8] sm:$0xff] }
 0xb98   :  { %v6945_v47 = vadd.f32 %v8886_v29, %v6923_v50  ;;  %v6946_v56 = vadd.f32 %v8886_v29, %v6924_v0  ;;  %v6947_v5 = vadd.f32 %v8886_v29, %v6925_v2  ;;  %v6948_v57 = vadd.f32 %v8886_v29, %v6926_v19  ;;  %v7073_v50 = vld [vmem:[#allocation2 + $0x1] sm:$0xff] }
 0xb99   :  { %v6949_v13 = vadd.f32 %v8886_v29, %v6927_v15  ;;  %v6950_v58 = vadd.f32 %v8886_v29, %v6928_v41  ;;  %v6951_v38 = vadd.f32 %v8886_v29, %v6929_v17  ;;  %v6952_v14 = vadd.f32 %v8886_v29, %v6930_v24 }
 0xb9a   :  { %v6953_v48 = vmax.f32 %v6937_v30, 0.0  ;;  %v6954_v37 = vmax.f32 %v6938_v6, 0.0  ;;  %v6955_v35 = vmax.f32 %v6939_v59, 0.0  ;;  %v6956_v40 = vmax.f32 %v6940_v61, 0.0 }
 0xb9b   :  { %v6957_v39 = vmax.f32 %v6941_v55, 0.0  ;;  %v6958_v26 = vmax.f32 %v6942_v36, 0.0  ;;  %v6959_v32 = vmax.f32 %v6943_v53, 0.0  ;;  %v6960_v25 = vmax.f32 %v6944_v20, 0.0 }
 0xb9c   :  { %v6961_v18 = vmax.f32 %v6945_v47, 0.0  ;;  %v6962_v8 = vmax.f32 %v6946_v56, 0.0  ;;  %v6963_v42 = vmax.f32 %v6947_v5, 0.0  ;;  %v6964_v46 = vmax.f32 %v6948_v57, 0.0  ;;  %7041 = vst.msk [vmem:[#allocation2 + $0x11] sm:$0xff] %vm286_vm0, %v6953_v48  ;;  %7042 = vst.msk [vmem:[#allocation2 + $0x21] sm:$0xff] %vm286_vm0, %v6954_v37 }
 0xb9d   :  { %7043 = vst.msk [vmem:[#allocation2 + $0x31] sm:$0xff] %vm286_vm0, %v6955_v35  ;;  %7044 = vst.msk [vmem:[#allocation2 + $0x41] sm:$0xff] %vm286_vm0, %v6956_v40  ;;  %v6965_v22 = vmax.f32 %v6949_v13, 0.0  ;;  %v6966_v27 = vmax.f32 %v6950_v58, 0.0  ;;  %v6967_v3 = vmax.f32 %v6951_v38, 0.0  ;;  %v6968_v43 = vmax.f32 %v6952_v14, 0.0 }
 0xb9e   :  { %7045 = vst.msk [vmem:[#allocation2 + $0x51] sm:$0xff] %vm286_vm0, %v6957_v39  ;;  %7046 = vst.msk [vmem:[#allocation2 + $0x61] sm:$0xff] %vm286_vm0, %v6958_v26  ;;  %v9833_v29 = vpack.c.bf16 %v6984_v49, %v6983_v60  ;;  %v15446_v21 = vpack.c.bf16 %v7034_v7, %v7033_v52  ;;  %v15454_v11 = vpack.c.bf16 %v8179_v28, %v8178_v12 }
 0xb9f   :  { %7047 = vst.msk [vmem:[#allocation2 + $0x71] sm:$0xff] %vm286_vm0, %v6959_v32  ;;  %7048 = vst.msk [vmem:[#allocation2 + $0x81] sm:$0xff] %vm286_vm0, %v6960_v25 }
 0xba0   :  { %7049 = vst.msk [vmem:[#allocation2 + $0xb1] sm:$0xff] %vm286_vm0, %v6961_v18  ;;  %7050 = vst.msk [vmem:[#allocation2 + $0xc1] sm:$0xff] %vm286_vm0, %v6962_v8  ;;  %9834 = vmatpush3.bf16.msra.mxu1 %v9833_v29  ;;  %9884 = vmatprep.subr.bf16.mxu0 %v15454_v11 }
 0xba1   :  { %7051 = vst.msk [vmem:[#allocation2 + $0xd1] sm:$0xff] %vm286_vm0, %v6963_v42  ;;  %7052 = vst.msk [vmem:[#allocation2 + $0xe1] sm:$0xff] %vm286_vm0, %v6964_v46  ;;  %9868 = vmatprep.subr.bf16.mxu1 %v15446_v21  ;;  %v7176_v42 = vld [vmem:[#allocation2 + $0x91] sm:$0xff] }
 0xba2   :  { %7053 = vst.msk [vmem:[#allocation2 + $0xf1] sm:$0xff] %vm286_vm0, %v6965_v22  ;;  %7054 = vst.msk [vmem:[#allocation2 + $0x101] sm:$0xff] %vm286_vm0, %v6966_v27 }
 0xba3   :  { %7055 = vst.msk [vmem:[#allocation2 + $0x111] sm:$0xff] %vm286_vm0, %v6967_v3  ;;  %7056 = vst.msk [vmem:[#allocation2 + $0x121] sm:$0xff] %vm286_vm0, %v6968_v43  ;;  %v15458_v0 = vld [vmem:[#allocation2 + $0x12] sm:$0xff]  ;;  %v15460_v2 = vld [vmem:[#allocation2 + $0x21] sm:$0xff] }
 0xba4   :  { %v15462_v19 = vld [vmem:[#allocation2 + $0x10] sm:$0xff]  ;;  %v10976_v15 = vpack.i.bf16 %v15458_v0, %v15460_v2  ;;  %v15467_v17 = vld [vmem:[#allocation2 + $0x22] sm:$0xff] }
 0xba5   :  { %v10971_v41 = vpack.i.bf16 %v7073_v50, %v15462_v19  ;;  %v15469_v24 = vld [vmem:[#allocation2 + $0x31] sm:$0xff]  ;;  %v15473_v6 = vld [vmem:[#allocation2 + $0x20] sm:$0xff] }
 0xba6   :  { %v15471_v30 = vld [vmem:[#allocation2 + $0x11] sm:$0xff]  ;;  %10977 = vrot.lane.b32.xlu1 %v10976_v15, %s11501_s8  ;;  %v10986_v59 = vpack.i.bf16 %v15467_v17, %v15469_v24  ;;  %v15483_v36 = vld [vmem:[#allocation2 + $0x41] sm:$0xff] }
 0xba7   :  { %10972 = vrot.lane.b32.xlu0 %v10971_v41, %s11501_s8  ;;  %v10981_v61 = vpack.i.bf16 %v15471_v30, %v15473_v6  ;;  %v15481_v55 = vld [vmem:[#allocation2 + $0x32] sm:$0xff]  ;;  %v15493_v56 = vld [vmem:[#allocation2 + $0x42] sm:$0xff] }
 0xba8   :  { %v15485_v53 = vld [vmem:[#allocation2 + $0x30] sm:$0xff]  ;;  %v10996_v20 = vpack.i.bf16 %v15481_v55, %v15483_v36  ;;  %v15497_v57 = vld [vmem:[#allocation2 + $0x40] sm:$0xff] }
 0xba9   :  { %v10991_v47 = vpack.i.bf16 %v15460_v2, %v15485_v53  ;;  %v15495_v5 = vld [vmem:[#allocation2 + $0x51] sm:$0xff]  ;;  %v11001_v58 = vpack.i.bf16 %v15469_v24, %v15497_v57  ;;  %v15507_v14 = vld [vmem:[#allocation2 + $0x61] sm:$0xff] }
 0xbaa   :  { %10987 = vrot.lane.b32.xlu1 %v10986_v59, %s11501_s8  ;;  %v11006_v13 = vpack.i.bf16 %v15493_v56, %v15495_v5  ;;  %v15505_v38 = vld [vmem:[#allocation2 + $0x52] sm:$0xff]  ;;  %v15517_v40 = vld [vmem:[#allocation2 + $0x62] sm:$0xff] }
 0xbab   :  { %10982 = vrot.lane.b32.xlu0 %v10981_v61, %s11501_s8  ;;  %v15509_v48 = vld [vmem:[#allocation2 + $0x50] sm:$0xff]  ;;  %v11016_v37 = vpack.i.bf16 %v15505_v38, %v15507_v14  ;;  %v15521_v49 = vld [vmem:[#allocation2 + $0x60] sm:$0xff] }
 0xbac   :  { %v11011_v35 = vpack.i.bf16 %v15483_v36, %v15509_v48  ;;  %v15519_v60 = vld [vmem:[#allocation2 + $0x71] sm:$0xff]  ;;  %v11021_v26 = vpack.i.bf16 %v15495_v5, %v15521_v49  ;;  %v15531_v25 = vld [vmem:[#allocation2 + $0x81] sm:$0xff] }
 0xbad   :  { %v11026_v39 = vpack.i.bf16 %v15517_v40, %v15519_v60  ;;  %v15529_v32 = vld [vmem:[#allocation2 + $0x72] sm:$0xff]  ;;  %v7144_v8 = vld [vmem:[#allocation2 + $0x82] sm:$0xff] }
 0xbae   :  { %10997 = vrot.lane.b32.xlu1 %v10996_v20, %s11501_s8  ;;  %v15533_v52 = vld [vmem:[#allocation2 + $0x70] sm:$0xff]  ;;  %v11036_v7 = vpack.i.bf16 %v15529_v32, %v15531_v25  ;;  %v15541_v46 = vld [vmem:[#allocation2 + $0x80] sm:$0xff]  ;;  %v11046_v22 = vpack.i.bf16 %v7144_v8, %v7176_v42 }
 0xbaf   :  { %10992 = vrot.lane.b32.xlu0 %v10991_v47, %s11501_s8  ;;  %v11031_v18 = vpack.i.bf16 %v15507_v14, %v15533_v52  ;;  %v11041_v27 = vpack.i.bf16 %v15519_v60, %v15541_v46  ;;  %v7081_v3 = vld [vmem:[#allocation2 + $0xa1] sm:$0xff]  ;;  %v15547_v43 = vld [vmem:[#allocation2 + $0xb2] sm:$0xff] }
 0xbb0   :  { %v15549_v29 = vld [vmem:[#allocation2 + $0xc1] sm:$0xff]  ;;  %v15551_v12 = vld [vmem:[#allocation2 + $0xb0] sm:$0xff] }
 0xbb1   :  { %v11056_v28 = vpack.i.bf16 %v15547_v43, %v15549_v29  ;;  %v11051_v50 = vpack.i.bf16 %v7081_v3, %v15551_v12  ;;  %v15558_v15 = vld [vmem:[#allocation2 + $0xc2] sm:$0xff]  ;;  %v15560_v41 = vld [vmem:[#allocation2 + $0xd1] sm:$0xff] }
 0xbb2   :  { %11007 = vrot.lane.b32.xlu1 %v11006_v13, %s11501_s8  ;;  %v15562_v59 = vld [vmem:[#allocation2 + $0xb1] sm:$0xff]  ;;  %v15564_v61 = vld [vmem:[#allocation2 + $0xc0] sm:$0xff]  ;;  %v11066_v20 = vpack.i.bf16 %v15558_v15, %v15560_v41 }
 0xbb3   :  { %11002 = vrot.lane.b32.xlu0 %v11001_v58, %s11501_s8  ;;  %v11061_v47 = vpack.i.bf16 %v15562_v59, %v15564_v61  ;;  %v15572_v13 = vld [vmem:[#allocation2 + $0xd2] sm:$0xff]  ;;  %v15574_v58 = vld [vmem:[#allocation2 + $0xe1] sm:$0xff] }
 0xbb4   :  { %v15600_v3 = vld [vmem:[#allocation2 + $0xf0] sm:$0xff]  ;;  %v15622_v4 = vld [vmem:[#allocation2 + $0x121] sm:$0xff] }
 0xbb5   :  { %16510 = vst [vmem:[#allocation63_spill] sm:$0xff] %v15622_v4  ;;  %v15624_v16 = vld [vmem:[#allocation2 + $0x110] sm:$0xff]  ;;  %v15632_v62 = vld [vmem:[#allocation2 + $0x122] sm:$0xff] }
 0xbb6   :  { %11017 = vrot.lane.b32.xlu1 %v11016_v37, %s11501_s8  ;;  %v15576_v37 = vld [vmem:[#allocation2 + $0xd0] sm:$0xff]  ;;  %16511 = vst [vmem:[#allocation64_spill] sm:$0xff] %v15632_v62  ;;  %v15634_v63 = vld [vmem:[#allocation2 + $0x120] sm:$0xff]  ;;  %v11126_v54 = vpack.i.bf16 %v15632_v62, %v7184_v23 }
 0xbb7   :  { %11012 = vrot.lane.b32.xlu0 %v11011_v35, %s11501_s8  ;;  %v11076_v35 = vpack.i.bf16 %v15572_v13, %v15574_v58  ;;  %16512 = vst [vmem:[#allocation65_spill] sm:$0xff] %v15634_v63  ;;  %v7037_v62 = vld [vmem:[#allocation23 + $0x220] sm:$0xff] }
 0xbba   :  { %11027 = vrot.lane.b32.xlu1 %v11026_v39, %s11501_s8  ;;  %v11071_v39 = vpack.i.bf16 %v15549_v29, %v15576_v37 }
 0xbbb   :  { %11022 = vrot.lane.b32.xlu0 %v11021_v26, %s11501_s8  ;;  %v15584_v26 = vld [vmem:[#allocation2 + $0xe2] sm:$0xff] }
 0xbbe   :  { %11037 = vrot.lane.b32.xlu1 %v11036_v7, %s11501_s8  ;;  %v15586_v7 = vld [vmem:[#allocation2 + $0xf1] sm:$0xff] }
 0xbbf   :  { %11032 = vrot.lane.b32.xlu0 %v11031_v18, %s11501_s8  ;;  %v15588_v18 = vld [vmem:[#allocation2 + $0xe0] sm:$0xff]  ;;  %v11086_v8 = vpack.i.bf16 %v15584_v26, %v15586_v7 }
 0xbc0   :  { %v11081_v42 = vpack.i.bf16 %v15560_v41, %v15588_v18 }
 0xbc2   :  { %11047 = vrot.lane.b32.xlu1 %v11046_v22, %s11501_s8  ;;  %v15596_v22 = vld [vmem:[#allocation2 + $0xf2] sm:$0xff] }
 0xbc3   :  { %11042 = vrot.lane.b32.xlu0 %v11041_v27, %s11501_s8  ;;  %v15598_v27 = vld [vmem:[#allocation2 + $0x101] sm:$0xff] }
 0xbc6   :  { %11057 = vrot.lane.b32.xlu1 %v11056_v28, %s11501_s8  ;;  %v11096_v28 = vpack.i.bf16 %v15596_v22, %v15598_v27 }
 0xbc7   :  { %11052 = vrot.lane.b32.xlu0 %v11051_v50, %s11501_s8  ;;  %v11091_v50 = vpack.i.bf16 %v15574_v58, %v15600_v3 }
 0xbca   :  { %11067 = vrot.lane.b32.xlu1 %v11066_v20, %s11501_s8  ;;  %v15608_v20 = vld [vmem:[#allocation2 + $0x102] sm:$0xff] }
 0xbcb   :  { %11062 = vrot.lane.b32.xlu0 %v11061_v47, %s11501_s8  ;;  %16507 = vst [vmem:[#allocation60_spill] sm:$0xff] %v15608_v20  ;;  %v15610_v47 = vld [vmem:[#allocation2 + $0x111] sm:$0xff] }
 0xbcc   :  { %16508 = vst [vmem:[#allocation61_spill] sm:$0xff] %v15610_v47 }
 0xbce   :  { %11077 = vrot.lane.b32.xlu1 %v11076_v35, %s11501_s8  ;;  %v15612_v35 = vld [vmem:[#allocation2 + $0x100] sm:$0xff] }
 0xbcf   :  { %11072 = vrot.lane.b32.xlu0 %v11071_v39, %s11501_s8  ;;  %v11106_v39 = vpack.i.bf16 %v15608_v20, %v15610_v47 }
 0xbd2   :  { %11087 = vrot.lane.b32.xlu1 %v11086_v8, %s11501_s8  ;;  %v11101_v8 = vpack.i.bf16 %v15586_v7, %v15612_v35 }
 0xbd3   :  { %11082 = vrot.lane.b32.xlu0 %v11081_v42, %s11501_s8  ;;  %v15620_v42 = vld [vmem:[#allocation2 + $0x112] sm:$0xff] }
 0xbd4   :  { %16509 = vst [vmem:[#allocation62_spill] sm:$0xff] %v15620_v42 }
 0xbd6   :  { %11097 = vrot.lane.b32.xlu1 %v11096_v28, %s11501_s8  ;;  %v11116_v28 = vpack.i.bf16 %v15620_v42, %v15622_v4  ;;  %v7038_v4 = vld [vmem:[#allocation23 + $0x228] sm:$0xff]  ;;  %v8180_v42 = vld [vmem:[%s16506_s30 + $0x10] sm:$0xff] }
 0xbd7   :  { %11092 = vrot.lane.b32.xlu0 %v11091_v50, %s11501_s8  ;;  %v11111_v50 = vpack.i.bf16 %v15598_v27, %v15624_v16 }
 0xbda   :  { %11107 = vrot.lane.b32.xlu1 %v11106_v39, %s11501_s8  ;;  %v11121_v39 = vpack.i.bf16 %v15610_v47, %v15634_v63  ;;  %v8181_v47 = vld [vmem:[%s16506_s30 + $0x18] sm:$0xff] }
 0xbdb   :  { %11102 = vrot.lane.b32.xlu0 %v11101_v8, %s11501_s8  ;;  %v7035_v8 = vld [vmem:[#allocation23 + $0x210] sm:$0xff] }
 0xbdc   :  { %v9871_v23 = vpack.c.bf16 %v7036_v10, %v7035_v8 }
 0xbde   :  { %11117 = vrot.lane.b32.xlu1 %v11116_v28, %s11501_s8 }
 0xbdf   :  { %11112 = vrot.lane.b32.xlu0 %v11111_v50, %s11501_s8 }
 0xbe2   :  { %11127 = vrot.lane.b32.xlu1 %v11126_v54, %s11501_s8 }
 0xbe3   :  { %11122 = vrot.lane.b32.xlu0 %v11121_v39, %s11501_s8 }
 0xc18   :  { %v10978_v51 = vpop.permute.xlu1 %10977 }
 0xc19   :  { %v10973_v31 = vpop.permute.xlu0 %10972  ;;  %v10980_v28 = vunpack.i.h.bf16 %v10978_v51  ;;  %v10979_v34 = vunpack.i.l.bf16 %v10978_v51 }
 0xc1a   :  { %v10975_v50 = vunpack.i.h.bf16 %v10973_v31  ;;  %v10974_v1 = vunpack.i.l.bf16 %v10973_v31 }
 0xc1b   :  { %v7505_v54 = vsel %vm286_vm0, %v15473_v6, %v10979_v34  ;;  %v7489_v45 = vsel %vm286_vm0, %v15471_v30, %v10980_v28  ;;  %v9887_v34 = vpack.c.bf16 %v8181_v47, %v8180_v42 }
 0xc1c   :  { %v7473_v44 = vsel %vm286_vm0, %v7089_v33, %v10974_v1  ;;  %v7457_v39 = vsel %vm286_vm0, %v7057_v9, %v10975_v50  ;;  %v10988_v20 = vpop.permute.xlu1 %10987  ;;  %7778 = vmatprep.mubr.f32.mxu0 %v7505_v54  ;;  %v9875_v1 = vpack.c.bf16 %v7038_v4, %v7037_v62 }
 0xc1d   :  { %7633 = vmatprep.mubr.f32.mxu1 %v7473_v44  ;;  %v10983_v51 = vpop.permute.xlu0 %10982  ;;  %v10990_v31 = vunpack.i.h.bf16 %v10988_v20  ;;  %v10989_v10 = vunpack.i.l.bf16 %v10988_v20  ;;  %7779 = vmatmul.mubr.f32.vlgmr.msra.gmra.mrb[112].mxu0 %v7489_v45  ;;  %v7039_v45 = vld [vmem:[#allocation23 + $0x230] sm:$0xff]  ;;  %v7040_v20 = vld [vmem:[#allocation23 + $0x238] sm:$0xff] }
 0xc1e   :  { %v10985_v8 = vunpack.i.h.bf16 %v10983_v51  ;;  %v10984_v63 = vunpack.i.l.bf16 %v10983_v51  ;;  %7634 = vmatmul.mubr.f32.vlgmr.msra.gmra.mrb[96].mxu1 %v7457_v39  ;;  %9886 = vmatpush3.bf16.msra.mxu0 %v15454_v11 }
 0xc1f   :  { %9870 = vmatpush3.bf16.msra.mxu1 %v15446_v21  ;;  %v7506_v9 = vsel %vm286_vm0, %v15485_v53, %v10989_v10  ;;  %v7490_v30 = vsel %vm286_vm0, %v15460_v2, %v10990_v31  ;;  %9888 = vmatprep.subr.bf16.mxu0 %v9887_v34 }
 0xc20   :  { %v7474_v44 = vsel %vm286_vm0, %v15458_v0, %v10984_v63  ;;  %v7458_v33 = vsel %vm286_vm0, %v15462_v19, %v10985_v8  ;;  %9872 = vmatprep.subr.bf16.mxu1 %v9871_v23  ;;  %v10998_v21 = vpop.permute.xlu1 %10997  ;;  %7783 = vmatprep.mubr.f32.mxu0 %v7506_v9  ;;  %v9879_v63 = vpack.c.bf16 %v7040_v20, %v7039_v45  ;;  %v16513_v45 = vmov 0.0|0.0  }
 0xc21   :  { %v10993_v11 = vpop.permute.xlu0 %10992  ;;  %7638 = vmatprep.mubr.f32.mxu1 %v7474_v44  ;;  %v11000_v62 = vunpack.i.h.bf16 %v10998_v21  ;;  %v10999_v4 = vunpack.i.l.bf16 %v10998_v21  ;;  %7784 = vmatmul.mubr.f32.gmra.mrb[114].mxu0 %v7490_v30 }
 0xc22   :  { %v10995_v47 = vunpack.i.h.bf16 %v10993_v11  ;;  %v10994_v42 = vunpack.i.l.bf16 %v10993_v11  ;;  %7639 = vmatmul.mubr.f32.gmra.mrb[98].mxu1 %v7458_v33  ;;  %9890 = vmatpush3.bf16.msra.mxu0 %v9887_v34 }
 0xc23   :  { %9874 = vmatpush3.bf16.msra.mxu1 %v9871_v23  ;;  %v7507_v0 = vsel %vm286_vm0, %v15497_v57, %v10999_v4  ;;  %v7491_v28 = vsel %vm286_vm0, %v15469_v24, %v11000_v62 }
 0xc24   :  { %v7475_v2 = vsel %vm286_vm0, %v15467_v17, %v10994_v42  ;;  %v7459_v19 = vsel %vm286_vm0, %v15473_v6, %v10995_v47  ;;  %9876 = vmatprep.subr.bf16.mxu1 %v9875_v1  ;;  %v11008_v50 = vpop.permute.xlu1 %11007  ;;  %7788 = vmatprep.mubr.f32.mxu0 %v7507_v0 }
 0xc25   :  { %v11003_v54 = vpop.permute.xlu0 %11002  ;;  %7643 = vmatprep.mubr.f32.mxu1 %v7475_v2  ;;  %v11010_v23 = vunpack.i.h.bf16 %v11008_v50  ;;  %v11009_v39 = vunpack.i.l.bf16 %v11008_v50  ;;  %7789 = vmatmul.mubr.f32.gmra.mrb[116].mxu0 %v7491_v28 }
 0xc26   :  { %v11005_v51 = vunpack.i.h.bf16 %v11003_v54  ;;  %v11004_v31 = vunpack.i.l.bf16 %v11003_v54  ;;  %7644 = vmatmul.mubr.f32.gmra.mrb[100].mxu1 %v7459_v19 }
 0xc27   :  { %9878 = vmatpush3.bf16.msra.mxu1 %v9875_v1  ;;  %v7508_v17 = vsel %vm286_vm0, %v15509_v48, %v11009_v39  ;;  %v7492_v10 = vsel %vm286_vm0, %v15483_v36, %v11010_v23 }
 0xc28   :  { %v7476_v6 = vsel %vm286_vm0, %v15481_v55, %v11004_v31  ;;  %v7460_v24 = vsel %vm286_vm0, %v15485_v53, %v11005_v51  ;;  %9880 = vmatprep.subr.bf16.mxu1 %v9879_v63  ;;  %v11018_v8 = vpop.permute.xlu1 %11017  ;;  %7793 = vmatprep.mubr.f32.mxu0 %v7508_v17  ;;  %v7160_v51 = vld [vmem:[#allocation2 + $0x90] sm:$0xff] }
 0xc29   :  { %v11013_v9 = vpop.permute.xlu0 %11012  ;;  %7648 = vmatprep.mubr.f32.mxu1 %v7476_v6  ;;  %v11020_v44 = vunpack.i.h.bf16 %v11018_v8  ;;  %v11019_v1 = vunpack.i.l.bf16 %v11018_v8  ;;  %7794 = vmatmul.mubr.f32.gmra.mrb[118].mxu0 %v7492_v10 }
 0xc2a   :  { %v11015_v34 = vunpack.i.h.bf16 %v11013_v9  ;;  %v11014_v33 = vunpack.i.l.bf16 %v11013_v9  ;;  %7649 = vmatmul.mubr.f32.gmra.mrb[102].mxu1 %v7460_v24  ;;  %v7097_v9 = vld [vmem:[#allocation2 + $0xa2] sm:$0xff] }
 0xc2b   :  { %9882 = vmatpush3.bf16.msra.mxu1 %v9879_v63  ;;  %v7509_v55 = vsel %vm286_vm0, %v15521_v49, %v11019_v1  ;;  %v7493_v30 = vsel %vm286_vm0, %v15495_v5, %v11020_v44  ;;  %v7065_v44 = vld [vmem:[#allocation2 + $0xa0] sm:$0xff] }
 0xc2c   :  { %v7477_v53 = vsel %vm286_vm0, %v15493_v56, %v11014_v33  ;;  %v7461_v36 = vsel %vm286_vm0, %v15497_v57, %v11015_v34  ;;  %9891 = vmatprep.subr.bf16.mxu1 %v16513_v45  ;;  %v11028_v20 = vpop.permute.xlu1 %11027  ;;  %7798 = vmatprep.mubr.f32.mxu0 %v7509_v55 }
 0xc2d   :  { %v11023_v21 = vpop.permute.xlu0 %11022  ;;  %7653 = vmatprep.mubr.f32.mxu1 %v7477_v53  ;;  %v11030_v11 = vunpack.i.h.bf16 %v11028_v20  ;;  %v11029_v62 = vunpack.i.l.bf16 %v11028_v20  ;;  %7799 = vmatmul.mubr.f32.gmra.mrb[120].mxu0 %v7493_v30 }
 0xc2e   :  { %v11025_v4 = vunpack.i.h.bf16 %v11023_v21  ;;  %v11024_v47 = vunpack.i.l.bf16 %v11023_v21  ;;  %7654 = vmatmul.mubr.f32.gmra.mrb[104].mxu1 %v7461_v36 }
 0xc2f   :  { %v7510_v56 = vsel %vm286_vm0, %v15533_v52, %v11029_v62  ;;  %v7494_v42 = vsel %vm286_vm0, %v15507_v14, %v11030_v11 }
 0xc30   :  { %v7478_v57 = vsel %vm286_vm0, %v15505_v38, %v11024_v47  ;;  %v7462_v5 = vsel %vm286_vm0, %v15509_v48, %v11025_v4  ;;  %v11038_v63 = vpop.permute.xlu1 %11037  ;;  %7803 = vmatprep.mubr.f32.mxu0 %v7510_v56 }
 0xc31   :  { %v11033_v0 = vpop.permute.xlu0 %11032  ;;  %7658 = vmatprep.mubr.f32.mxu1 %v7478_v57  ;;  %v11040_v2 = vunpack.i.h.bf16 %v11038_v63  ;;  %v11039_v19 = vunpack.i.l.bf16 %v11038_v63  ;;  %7804 = vmatmul.mubr.f32.gmra.mrb[122].mxu0 %v7494_v42 }
 0xc32   :  { %v11035_v28 = vunpack.i.h.bf16 %v11033_v0  ;;  %v11034_v50 = vunpack.i.l.bf16 %v11033_v0  ;;  %7659 = vmatmul.mubr.f32.gmra.mrb[106].mxu1 %v7462_v5 }
 0xc33   :  { %v7511_v54 = vsel %vm286_vm0, %v15541_v46, %v11039_v19  ;;  %v7495_v14 = vsel %vm286_vm0, %v15519_v60, %v11040_v2 }
 0xc34   :  { %v7479_v38 = vsel %vm286_vm0, %v15517_v40, %v11034_v50  ;;  %v7463_v48 = vsel %vm286_vm0, %v15521_v49, %v11035_v28  ;;  %v11048_v23 = vpop.permute.xlu1 %11047  ;;  %7808 = vmatprep.mubr.f32.mxu0 %v7511_v54 }
 0xc35   :  { %v11043_v39 = vpop.permute.xlu0 %11042  ;;  %7663 = vmatprep.mubr.f32.mxu1 %v7479_v38  ;;  %v11050_v31 = vunpack.i.h.bf16 %v11048_v23  ;;  %v11049_v17 = vunpack.i.l.bf16 %v11048_v23  ;;  %7809 = vmatmul.mubr.f32.gmra.mrb[124].mxu0 %v7495_v14 }
 0xc36   :  { %v11045_v6 = vunpack.i.h.bf16 %v11043_v39  ;;  %v11044_v24 = vunpack.i.l.bf16 %v11043_v39  ;;  %7664 = vmatmul.mubr.f32.gmra.mrb[108].mxu1 %v7463_v48 }
 0xc37   :  { %v7512_v46 = vsel %vm286_vm0, %v7160_v51, %v11049_v17  ;;  %v7496_v60 = vsel %vm286_vm0, %v15531_v25, %v11050_v31 }
 0xc38   :  { %v7480_v40 = vsel %vm286_vm0, %v15529_v32, %v11044_v24  ;;  %v7464_v49 = vsel %vm286_vm0, %v15533_v52, %v11045_v6  ;;  %v11058_v10 = vpop.permute.xlu1 %11057  ;;  %7813 = vmatprep.mubr.f32.mxu0 %v7512_v46 }
 0xc39   :  { %v11053_v8 = vpop.permute.xlu0 %11052  ;;  %7668 = vmatprep.mubr.f32.mxu1 %v7480_v40  ;;  %v11060_v1 = vunpack.i.h.bf16 %v11058_v10  ;;  %v11059_v34 = vunpack.i.l.bf16 %v11058_v10  ;;  %7814 = vmatmul.mubr.f32.gmra.mrb[126].mxu0 %v7496_v60 }
 0xc3a   :  { %v11055_v33 = vunpack.i.h.bf16 %v11053_v8  ;;  %v11054_v55 = vunpack.i.l.bf16 %v11053_v8  ;;  %7669 = vmatmul.mubr.f32.gmra.mrb[110].mxu1 %v7464_v49 }
 0xc3b   :  { %v7513_v32 = vsel %vm286_vm0, %v15564_v61, %v11059_v34  ;;  %v7497_v25 = vsel %vm286_vm0, %v15562_v59, %v11060_v1 }
 0xc3c   :  { %v7481_v52 = vsel %vm286_vm0, %v7097_v9, %v11054_v55  ;;  %v7465_v53 = vsel %vm286_vm0, %v7065_v44, %v11055_v33  ;;  %v11068_v36 = vpop.permute.xlu1 %11067  ;;  %7818 = vmatprep.mubr.f32.mxu0 %v7513_v32 }
 0xc3d   :  { %v11063_v30 = vpop.permute.xlu0 %11062  ;;  %7673 = vmatprep.mubr.f32.mxu1 %v7481_v52  ;;  %v11070_v20 = vunpack.i.h.bf16 %v11068_v36  ;;  %v11069_v21 = vunpack.i.l.bf16 %v11068_v36  ;;  %7819 = vmatmul.mubr.f32.gmra.mrb[128].mxu0 %v7497_v25  ;;  %v16515_v36 = vld [vmem:[#allocation60_spill] sm:$0xff] }
 0xc3e   :  { %v11065_v11 = vunpack.i.h.bf16 %v11063_v30  ;;  %v11064_v62 = vunpack.i.l.bf16 %v11063_v30  ;;  %7674 = vmatmul.mubr.f32.gmra.mrb[112].mxu1 %v7465_v53  ;;  %v16514_v53 = vld [vmem:[#allocation65_spill] sm:$0xff] }
 0xc3f   :  { %v7514_v4 = vsel %vm286_vm0, %v15576_v37, %v11069_v21  ;;  %v7498_v59 = vsel %vm286_vm0, %v15549_v29, %v11070_v20 }
 0xc40   :  { %v7482_v47 = vsel %vm286_vm0, %v15547_v43, %v11064_v62  ;;  %v7466_v56 = vsel %vm286_vm0, %v15551_v12, %v11065_v11  ;;  %v11078_v57 = vpop.permute.xlu1 %11077  ;;  %7823 = vmatprep.mubr.f32.mxu0 %v7514_v4  ;;  %v7168_v62 = vld [vmem:[#allocation2 + $0x130] sm:$0xff] }
 0xc41   :  { %v11073_v5 = vpop.permute.xlu0 %11072  ;;  %7678 = vmatprep.mubr.f32.mxu1 %v7482_v47  ;;  %v11080_v42 = vunpack.i.h.bf16 %v11078_v57  ;;  %v11079_v63 = vunpack.i.l.bf16 %v11078_v57  ;;  %7824 = vmatmul.mubr.f32.gmra.mrb[130].mxu0 %v7498_v59  ;;  %v16517_v57 = vld [vmem:[#allocation62_spill] sm:$0xff] }
 0xc42   :  { %v11075_v0 = vunpack.i.h.bf16 %v11073_v5  ;;  %v11074_v2 = vunpack.i.l.bf16 %v11073_v5  ;;  %7679 = vmatmul.mubr.f32.gmra.mrb[114].mxu1 %v7466_v56 }
 0xc43   :  { %v7515_v19 = vsel %vm286_vm0, %v15588_v18, %v11079_v63  ;;  %v7499_v29 = vsel %vm286_vm0, %v15560_v41, %v11080_v42  ;;  %v16518_v63 = vld [vmem:[#allocation63_spill] sm:$0xff] }
 0xc44   :  { %v7483_v43 = vsel %vm286_vm0, %v15558_v15, %v11074_v2  ;;  %v7467_v12 = vsel %vm286_vm0, %v15564_v61, %v11075_v0  ;;  %v11088_v28 = vpop.permute.xlu1 %11087  ;;  %7828 = vmatprep.mubr.f32.mxu0 %v7515_v19  ;;  %v7185_v2 = vld [vmem:[#allocation2 + $0x22] sm:$0xff]  ;;  %v16519_v19 = vld [vmem:[#allocation44_spill] sm:$0xff] }
 0xc45   :  { %v11083_v50 = vpop.permute.xlu0 %11082  ;;  %7683 = vmatprep.mubr.f32.mxu1 %v7483_v43  ;;  %v11090_v54 = vunpack.i.h.bf16 %v11088_v28  ;;  %v11089_v38 = vunpack.i.l.bf16 %v11088_v28  ;;  %7829 = vmatmul.mubr.f32.gmra.mrb[132].mxu0 %v7499_v29  ;;  %v16520_v43 = vmax.f32 %v16519_v19, 0.0  ;;  %v16521_v29 = vld [vmem:[#allocation45_spill] sm:$0xff] }
 0xc46   :  { %v11085_v48 = vunpack.i.h.bf16 %v11083_v50  ;;  %v11084_v14 = vunpack.i.l.bf16 %v11083_v50  ;;  %7684 = vmatmul.mubr.f32.gmra.mrb[116].mxu1 %v7467_v12  ;;  %v7186_v12 = vld [vmem:[#allocation2 + $0x32] sm:$0xff]  ;;  %v16522_v28 = vmax.f32 %v16521_v29, 0.0  ;;  %v16523_v50 = vld [vmem:[#allocation46_spill] sm:$0xff] }
 0xc47   :  { %v7516_v23 = vsel %vm286_vm0, %v15600_v3, %v11089_v38  ;;  %v7500_v41 = vsel %vm286_vm0, %v15574_v58, %v11090_v54  ;;  %v16524_v54 = vmax.f32 %v16523_v50, 0.0  ;;  %v7188_v38 = vld [vmem:[#allocation2 + $0x52] sm:$0xff] }
 0xc48   :  { %v7484_v15 = vsel %vm286_vm0, %v15572_v13, %v11084_v14  ;;  %v7468_v61 = vsel %vm286_vm0, %v15576_v37, %v11085_v48  ;;  %v11098_v39 = vpop.permute.xlu1 %11097  ;;  %7833 = vmatprep.mubr.f32.mxu0 %v7516_v23  ;;  %v16525_v48 = vld [vmem:[#allocation47_spill] sm:$0xff]  ;;  %v7189_v23 = vld [vmem:[#allocation2 + $0x62] sm:$0xff] }
 0xc49   :  { %v11093_v51 = vpop.permute.xlu0 %11092  ;;  %7688 = vmatprep.mubr.f32.mxu1 %v7484_v15  ;;  %v11100_v31 = vunpack.i.h.bf16 %v11098_v39  ;;  %v11099_v17 = vunpack.i.l.bf16 %v11098_v39  ;;  %7834 = vmatmul.mubr.f32.gmra.mrb[134].mxu0 %v7500_v41  ;;  %v16526_v14 = vmax.f32 %v16525_v48, 0.0  ;;  %v16527_v15 = vld [vmem:[#allocation48_spill] sm:$0xff]  ;;  %v16529_v39 = vld [vmem:[#allocation49_spill] sm:$0xff] }
 0xc4a   :  { %v11095_v6 = vunpack.i.h.bf16 %v11093_v51  ;;  %v11094_v24 = vunpack.i.l.bf16 %v11093_v51  ;;  %7689 = vmatmul.mubr.f32.gmra.mrb[118].mxu1 %v7468_v61  ;;  %v16528_v61 = vmax.f32 %v16527_v15, 0.0  ;;  %v7190_v41 = vld [vmem:[#allocation2 + $0x72] sm:$0xff]  ;;  %v16530_v51 = vmax.f32 %v16529_v39, 0.0 }
 0xc4b   :  { %v7517_v46 = vsel %vm286_vm0, %v15612_v35, %v11099_v17  ;;  %v7501_v58 = vsel %vm286_vm0, %v15586_v7, %v11100_v31  ;;  %v7191_v31 = vld [vmem:[#allocation2 + $0x82] sm:$0xff] }
 0xc4c   :  { %v7485_v13 = vsel %vm286_vm0, %v15584_v26, %v11094_v24  ;;  %v7469_v37 = vsel %vm286_vm0, %v15588_v18, %v11095_v6  ;;  %v11108_v40 = vpop.permute.xlu1 %11107  ;;  %7838 = vmatprep.mubr.f32.mxu0 %v7517_v46  ;;  %v16531_v17 = vld [vmem:[#allocation50_spill] sm:$0xff]  ;;  %v7192_v24 = vld [vmem:[#allocation2 + $0x92] sm:$0xff] }
 0xc4d   :  { %v11103_v49 = vpop.permute.xlu0 %11102  ;;  %7693 = vmatprep.mubr.f32.mxu1 %v7485_v13  ;;  %v11110_v60 = vunpack.i.h.bf16 %v11108_v40  ;;  %v11109_v10 = vunpack.i.l.bf16 %v11108_v40  ;;  %7839 = vmatmul.mubr.f32.gmra.mrb[136].mxu0 %v7501_v58  ;;  %v16532_v6 = vmax.f32 %v16531_v17, 0.0  ;;  %v16533_v46 = vld [vmem:[#allocation51_spill] sm:$0xff]  ;;  %v16535_v58 = vld [vmem:[#allocation52_spill] sm:$0xff] }
 0xc4e   :  { %v11105_v8 = vunpack.i.h.bf16 %v11103_v49  ;;  %v11104_v9 = vunpack.i.l.bf16 %v11103_v49  ;;  %7694 = vmatmul.mubr.f32.gmra.mrb[120].mxu1 %v7469_v37  ;;  %v16534_v13 = vmax.f32 %v16533_v46, 0.0  ;;  %v7193_v37 = vld [vmem:[#allocation2 + $0xc2] sm:$0xff]  ;;  %v16536_v40 = vmax.f32 %v16535_v58, 0.0  ;;  %v7194_v49 = vld [vmem:[#allocation2 + $0xd2] sm:$0xff] }
 0xc4f   :  { %v7518_v44 = vsel %vm286_vm0, %v15624_v16, %v11109_v10  ;;  %v7502_v7 = vsel %vm286_vm0, %v15598_v27, %v11110_v60  ;;  %v16516_v27 = vld [vmem:[#allocation61_spill] sm:$0xff] }
 0xc50   :  { %v7486_v26 = vsel %vm286_vm0, %v15596_v22, %v11104_v9  ;;  %v7470_v18 = vsel %vm286_vm0, %v15600_v3, %v11105_v8  ;;  %v11118_v1 = vpop.permute.xlu1 %11117  ;;  %7843 = vmatprep.mubr.f32.mxu0 %v7518_v44  ;;  %v16537_v60 = vld [vmem:[#allocation53_spill] sm:$0xff]  ;;  %v16539_v9 = vld [vmem:[#allocation54_spill] sm:$0xff] }
 0xc51   :  { %v11113_v34 = vpop.permute.xlu0 %11112  ;;  %7698 = vmatprep.mubr.f32.mxu1 %v7486_v26  ;;  %v11120_v33 = vunpack.i.h.bf16 %v11118_v1  ;;  %v11119_v55 = vunpack.i.l.bf16 %v11118_v1  ;;  %7844 = vmatmul.mubr.f32.gmra.mrb[138].mxu0 %v7502_v7  ;;  %v16538_v10 = vmax.f32 %v16537_v60, 0.0  ;;  %v7195_v8 = vld [vmem:[#allocation2 + $0xe2] sm:$0xff]  ;;  %v16540_v44 = vmax.f32 %v16539_v9, 0.0  ;;  %v16541_v26 = vld [vmem:[#allocation55_spill] sm:$0xff]  ;;  %v16543_v7 = vld [vmem:[#allocation56_spill] sm:$0xff] }
 0xc52   :  { %v11115_v32 = vunpack.i.h.bf16 %v11113_v34  ;;  %v11114_v52 = vunpack.i.l.bf16 %v11113_v34  ;;  %7699 = vmatmul.mubr.f32.gmra.mrb[122].mxu1 %v7470_v18  ;;  %v16542_v18 = vmax.f32 %v16541_v26, 0.0  ;;  %v16544_v1 = vmax.f32 %v16543_v7, 0.0  ;;  %v16545_v34 = vld [vmem:[#allocation57_spill] sm:$0xff] }
 0xc53   :  { %v7519_v25 = vsel %vm286_vm0, %v16514_v53, %v11119_v55  ;;  %v7503_v20 = vsel %vm286_vm0, %v16516_v27, %v11120_v33  ;;  %v16546_v33 = vmax.f32 %v16545_v34, 0.0  ;;  %v16547_v55 = vld [vmem:[#allocation64_spill] sm:$0xff]  ;;  %v16550_v53 = vld [vmem:[#allocation59_spill] sm:$0xff] }
 0xc54   :  { %v7487_v30 = vsel %vm286_vm0, %v16515_v36, %v11114_v52  ;;  %v7471_v3 = vsel %vm286_vm0, %v15612_v35, %v11115_v32  ;;  %v11128_v21 = vpop.permute.xlu1 %11127  ;;  %7848 = vmatprep.mubr.f32.mxu0 %v7519_v25  ;;  %v7200_v52 = vld [vmem:[#allocation2 + $0x132] sm:$0xff]  ;;  %v16551_v25 = vmax.f32 %v16550_v53, 0.0 }
 0xc55   :  { %v11123_v11 = vpop.permute.xlu0 %11122  ;;  %7703 = vmatprep.mubr.f32.mxu1 %v7487_v30  ;;  %v11130_v4 = vunpack.i.h.bf16 %v11128_v21  ;;  %v11129_v47 = vunpack.i.l.bf16 %v11128_v21  ;;  %7849 = vmatmul.mubr.f32.gmra.mrb[140].mxu0 %v7503_v20 }
 0xc56   :  { %v11125_v56 = vunpack.i.h.bf16 %v11123_v11  ;;  %v11124_v59 = vunpack.i.l.bf16 %v11123_v11  ;;  %7704 = vmatmul.mubr.f32.gmra.mrb[124].mxu1 %v7471_v3 }
 0xc57   :  { %v7520_v42 = vsel %vm286_vm0, %v7168_v62, %v11129_v47  ;;  %v7504_v0 = vsel %vm286_vm0, %v16518_v63, %v11130_v4 }
 0xc58   :  { %v7488_v5 = vsel %vm286_vm0, %v16517_v57, %v11124_v59  ;;  %v7472_v35 = vsel %vm286_vm0, %v15624_v16, %v11125_v56  ;;  %7853 = vmatprep.mubr.f32.mxu0 %v7520_v42  ;;  %v7187_v16 = vld [vmem:[#allocation2 + $0x42] sm:$0xff] }
 0xc59   :  { %7708 = vmatprep.mubr.f32.mxu1 %v7488_v5  ;;  %7854 = vmatmul.mubr.f32.gmra.mrb[142].mxu0 %v7504_v0 }
 0xc5a   :  { %7709 = vmatmul.mubr.f32.gmra.mrb[126].mxu1 %v7472_v35  ;;  %9606 = vmatprep.mubr.msk.f32.mxu0 %vm1078_vm5, %v16520_v43 }
 0xc5b   :  { %9574 = vmatprep.mubr.msk.f32.mxu1 %vm286_vm0, %v7185_v2 }
 0xc5d   :  { %9607 = vmatmul.mubr.msk.f32.vlgmr.msra.gmra.mrb[144].mxu0 %vm1078_vm5, %v16522_v28 }
 0xc5e   :  { %9575 = vmatmul.mubr.msk.f32.vlgmr.msra.gmra.mrb[128].mxu1 %vm286_vm0, %v7186_v12  ;;  %9609 = vmatprep.mubr.msk.f32.mxu0 %vm1078_vm5, %v16524_v54 }
 0xc5f   :  { %9577 = vmatprep.mubr.msk.f32.mxu1 %vm286_vm0, %v7187_v16 }
 0xc61   :  { %9610 = vmatmul.mubr.msk.f32.gmra.mrb[146].mxu0 %vm1078_vm5, %v16526_v14 }
 0xc62   :  { %9578 = vmatmul.mubr.msk.f32.gmra.mrb[130].mxu1 %vm286_vm0, %v7188_v38  ;;  %9612 = vmatprep.mubr.msk.f32.mxu0 %vm1078_vm5, %v16528_v61 }
 0xc63   :  { %9580 = vmatprep.mubr.msk.f32.mxu1 %vm286_vm0, %v7189_v23 }
 0xc65   :  { %9613 = vmatmul.mubr.msk.f32.gmra.mrb[148].mxu0 %vm1078_vm5, %v16530_v51 }
 0xc66   :  { %9581 = vmatmul.mubr.msk.f32.gmra.mrb[132].mxu1 %vm286_vm0, %v7190_v41  ;;  %9615 = vmatprep.mubr.msk.f32.mxu0 %vm1078_vm5, %v16532_v6 }
 0xc67   :  { %9583 = vmatprep.mubr.msk.f32.mxu1 %vm286_vm0, %v7191_v31 }
 0xc69   :  { %9616 = vmatmul.mubr.msk.f32.gmra.mrb[150].mxu0 %vm1078_vm5, %v16534_v13 }
 0xc6a   :  { %9584 = vmatmul.mubr.msk.f32.gmra.mrb[134].mxu1 %vm286_vm0, %v7192_v24  ;;  %9618 = vmatprep.mubr.msk.f32.mxu0 %vm1078_vm5, %v16536_v40 }
 0xc6b   :  { %9586 = vmatprep.mubr.msk.f32.mxu1 %vm286_vm0, %v7193_v37 }
 0xc6d   :  { %9619 = vmatmul.mubr.msk.f32.gmra.mrb[152].mxu0 %vm1078_vm5, %v16538_v10 }
 0xc6e   :  { %9587 = vmatmul.mubr.msk.f32.gmra.mrb[136].mxu1 %vm286_vm0, %v7194_v49  ;;  %9621 = vmatprep.mubr.msk.f32.mxu0 %vm1078_vm5, %v16540_v44 }
 0xc6f   :  { %9589 = vmatprep.mubr.msk.f32.mxu1 %vm286_vm0, %v7195_v8 }
 0xc71   :  { %9622 = vmatmul.mubr.msk.f32.gmra.mrb[154].mxu0 %vm1078_vm5, %v16542_v18 }
 0xc72   :  { %9590 = vmatmul.mubr.msk.f32.gmra.mrb[138].mxu1 %vm286_vm0, %v15596_v22  ;;  %9624 = vmatprep.mubr.msk.f32.mxu0 %vm1078_vm5, %v16544_v1  ;;  %v16548_v22 = vld [vmem:[#allocation58_spill] sm:$0xff] }
 0xc73   :  { %9592 = vmatprep.mubr.msk.f32.mxu1 %vm286_vm0, %v16515_v36  ;;  %v16549_v32 = vmax.f32 %v16548_v22, 0.0 }
 0xc75   :  { %9625 = vmatmul.mubr.msk.f32.gmra.mrb[156].mxu0 %vm1078_vm5, %v16546_v33 }
 0xc76   :  { %9593 = vmatmul.mubr.msk.f32.gmra.mrb[140].mxu1 %vm286_vm0, %v16517_v57  ;;  %9627 = vmatprep.mubr.msk.f32.mxu0 %vm1078_vm5, %v16549_v32 }
 0xc77   :  { %9595 = vmatprep.mubr.msk.f32.mxu1 %vm286_vm0, %v16547_v55 }
 0xc79   :  { %9628 = vmatmul.mubr.msk.f32.gmra.mrb[158].mxu0 %vm1078_vm5, %v16551_v25 }
 0xc7a   :  { %9596 = vmatmul.mubr.msk.f32.gmra.mrb[142].mxu1 %vm286_vm0, %v7200_v52 }
 0xcf0   :  { %v9297_v30 = vpop.f32.mrb[112].mxu0 }
 0xcf1   :  { %v9217_v36 = vpop.f32.mrb[96].mxu1  ;;  %v9298_v27 = vpop.f32.mrb[113].mxu0 }
 0xcf2   :  { %v9218_v3 = vpop.f32.mrb[97].mxu1  ;;  %v9299_v21 = vadd.f32 %v9298_v27, %v9297_v30 }
 0xcf3   :  { %v9219_v20 = vadd.f32 %v9218_v3, %v9217_v36 }
 0xcf4   :  { %v9300_v62 = vpop.f32.mrb[114].mxu0 }
 0xcf5   :  { %v9220_v11 = vpop.f32.mrb[98].mxu1  ;;  %v15838_v4 = vadd.f32 %v9299_v21, %v9219_v20  ;;  %v9301_v56 = vpop.f32.mrb[115].mxu0 }
 0xcf6   :  { %v9221_v47 = vpop.f32.mrb[99].mxu1  ;;  %v9302_v57 = vadd.f32 %v9301_v56, %v9300_v62 }
 0xcf7   :  { %v9222_v59 = vadd.f32 %v9221_v47, %v9220_v11 }
 0xcf8   :  { %v9303_v42 = vpop.f32.mrb[116].mxu0 }
 0xcf9   :  { %v9223_v5 = vpop.f32.mrb[100].mxu1  ;;  %v15840_v35 = vadd.f32 %v9302_v57, %v9222_v59  ;;  %v9304_v0 = vpop.f32.mrb[117].mxu0 }
 0xcfa   :  { %v9224_v63 = vpop.f32.mrb[101].mxu1  ;;  %v9305_v19 = vadd.f32 %v9304_v0, %v9303_v42 }
 0xcfb   :  { %v9225_v2 = vadd.f32 %v9224_v63, %v9223_v5 }
 0xcfc   :  { %v9306_v12 = vpop.f32.mrb[118].mxu0 }
 0xcfd   :  { %v9226_v43 = vpop.f32.mrb[102].mxu1  ;;  %v15842_v29 = vadd.f32 %v9305_v19, %v9225_v2  ;;  %v9307_v16 = vpop.f32.mrb[119].mxu0 }
 0xcfe   :  { %v9227_v28 = vpop.f32.mrb[103].mxu1  ;;  %v9308_v54 = vadd.f32 %v9307_v16, %v9306_v12  ;;  %v8627_v12 = vld [vmem:[%s11655_s27 + $0x8] sm:$0xff] }
 0xcff   :  { %v9228_v50 = vadd.f32 %v9227_v28, %v9226_v43  ;;  %v8626_v43 = vld [vmem:[%s11655_s27] sm:$0xff]  ;;  %v8628_v28 = vld [vmem:[%s11655_s27 + $0x10] sm:$0xff] }
 0xd00   :  { %v9309_v48 = vpop.f32.mrb[120].mxu0 }
 0xd01   :  { %v9229_v38 = vpop.f32.mrb[104].mxu1  ;;  %v15844_v14 = vadd.f32 %v9308_v54, %v9228_v50  ;;  %v9310_v15 = vpop.f32.mrb[121].mxu0  ;;  %v9892_v54 = vpack.c.bf16 %v8627_v12, %v8626_v43 }
 0xd02   :  { %v9230_v23 = vpop.f32.mrb[105].mxu1  ;;  %v9311_v41 = vadd.f32 %v9310_v15, %v9309_v48  ;;  %v16552_v48 = vmov 0.0  }
 0xd03   :  { %v9231_v61 = vadd.f32 %v9230_v23, %v9229_v38  ;;  %v8629_v38 = vld [vmem:[%s11655_s27 + $0x18] sm:$0xff]  ;;  %9646 = vmatprep.mubr.msk.f32.mxu1 %vm11506_vm13, %v16552_v48  ;;  %9893 = vmatpush3.bf16.msra.mxu1 %v9892_v54 }
 0xd04   :  { %v9312_v51 = vpop.f32.mrb[122].mxu0  ;;  %9894 = vmatprep.subr.bf16.mxu1 %v16513_v45 }
 0xd05   :  { %v9232_v39 = vpop.f32.mrb[106].mxu1  ;;  %v15846_v31 = vadd.f32 %v9311_v41, %v9231_v61  ;;  %v9313_v6 = vpop.f32.mrb[123].mxu0  ;;  %v9895_v41 = vpack.c.bf16 %v8629_v38, %v8628_v28 }
 0xd06   :  { %v9233_v17 = vpop.f32.mrb[107].mxu1  ;;  %v9314_v46 = vadd.f32 %v9313_v6, %v9312_v51  ;;  %v8631_v6 = vld [vmem:[%s11655_s27 + $0x28] sm:$0xff] }
 0xd07   :  { %v9234_v24 = vadd.f32 %v9233_v17, %v9232_v39  ;;  %v8630_v17 = vld [vmem:[%s11655_s27 + $0x20] sm:$0xff]  ;;  %9896 = vmatpush3.bf16.msra.mxu1 %v9895_v41 }
 0xd08   :  { %v9315_v37 = vpop.f32.mrb[124].mxu0  ;;  %9897 = vmatprep.subr.bf16.mxu1 %v16513_v45 }
 0xd09   :  { %v9235_v13 = vpop.f32.mrb[108].mxu1  ;;  %v15848_v58 = vadd.f32 %v9314_v46, %v9234_v24  ;;  %v9316_v49 = vpop.f32.mrb[125].mxu0 }
 0xd0a   :  { %v9236_v40 = vpop.f32.mrb[109].mxu1  ;;  %v9317_v10 = vadd.f32 %v9316_v49, %v9315_v37  ;;  %v9898_v49 = vpack.c.bf16 %v8631_v6, %v8630_v17 }
 0xd0b   :  { %v9237_v60 = vadd.f32 %v9236_v40, %v9235_v13 }
 0xd0c   :  { %v9318_v9 = vpop.f32.mrb[126].mxu0  ;;  %9899 = vmatpush3.bf16.msra.mxu1 %v9898_v49 }
 0xd0d   :  { %v9238_v8 = vpop.f32.mrb[110].mxu1  ;;  %v15850_v44 = vadd.f32 %v9317_v10, %v9237_v60  ;;  %v9319_v18 = vpop.f32.mrb[127].mxu0  ;;  %9900 = vmatprep.subr.bf16.mxu1 %v16513_v45 }
 0xd0e   :  { %v9239_v26 = vpop.f32.mrb[111].mxu1  ;;  %v9320_v1 = vadd.f32 %v9319_v18, %v9318_v9  ;;  %v8633_v9 = vld [vmem:[%s11655_s27 + $0x38] sm:$0xff] }
 0xd0f   :  { %v9240_v7 = vadd.f32 %v9239_v26, %v9238_v8  ;;  %v8632_v8 = vld [vmem:[%s11655_s27 + $0x30] sm:$0xff]  ;;  %s16553_s27 = sld [smem:[#allocation40_spill]] }
 0xd10   :  { %v9321_v33 = vpop.f32.mrb[128].mxu0 }
 0xd11   :  { %v9241_v34 = vpop.f32.mrb[112].mxu1  ;;  %v15852_v55 = vadd.f32 %v9320_v1, %v9240_v7  ;;  %v9322_v32 = vpop.f32.mrb[129].mxu0 }
 0xd12   :  { %v9242_v22 = vpop.f32.mrb[113].mxu1  ;;  %v9323_v53 = vadd.f32 %v9322_v32, %v9321_v33  ;;  %v9901_v33 = vpack.c.bf16 %v8633_v9, %v8632_v8 }
 0xd13   :  { %v9243_v52 = vadd.f32 %v9242_v22, %v9241_v34 }
 0xd14   :  { %v9324_v36 = vpop.f32.mrb[130].mxu0  ;;  %9902 = vmatpush3.bf16.msra.mxu1 %v9901_v33 }
 0xd15   :  { %v9244_v25 = vpop.f32.mrb[114].mxu1  ;;  %v15854_v30 = vadd.f32 %v9323_v53, %v9243_v52  ;;  %v9325_v27 = vpop.f32.mrb[131].mxu0 }
 0xd16   :  { %v9245_v3 = vpop.f32.mrb[115].mxu1  ;;  %v9326_v21 = vadd.f32 %v9325_v27, %v9324_v36 }
 0xd17   :  { %v9246_v20 = vadd.f32 %v9245_v3, %v9244_v25 }
 0xd18   :  { %v9327_v62 = vpop.f32.mrb[132].mxu0 }
 0xd19   :  { %v9247_v11 = vpop.f32.mrb[116].mxu1  ;;  %v15856_v47 = vadd.f32 %v9326_v21, %v9246_v20  ;;  %v9328_v59 = vpop.f32.mrb[133].mxu0 }
 0xd1a   :  { %v9248_v56 = vpop.f32.mrb[117].mxu1  ;;  %v9329_v5 = vadd.f32 %v9328_v59, %v9327_v62 }
 0xd1b   :  { %v9249_v57 = vadd.f32 %v9248_v56, %v9247_v11 }
 0xd1c   :  { %v9330_v63 = vpop.f32.mrb[134].mxu0 }
 0xd1d   :  { %v9250_v42 = vpop.f32.mrb[118].mxu1  ;;  %v15858_v0 = vadd.f32 %v9329_v5, %v9249_v57  ;;  %v9331_v19 = vpop.f32.mrb[135].mxu0 }
 0xd1e   :  { %v9251_v2 = vpop.f32.mrb[119].mxu1  ;;  %v9332_v50 = vadd.f32 %v9331_v19, %v9330_v63 }
 0xd1f   :  { %v9252_v16 = vadd.f32 %v9251_v2, %v9250_v42 }
 0xd20   :  { %v9333_v15 = vpop.f32.mrb[136].mxu0 }
 0xd21   :  { %v9253_v23 = vpop.f32.mrb[120].mxu1  ;;  %v15865_v61 = vadd.f32 %v9332_v50, %v9252_v16  ;;  %v9334_v51 = vpop.f32.mrb[137].mxu0 }
 0xd22   :  { %v9254_v39 = vpop.f32.mrb[121].mxu1  ;;  %v9335_v46 = vadd.f32 %v9334_v51, %v9333_v15 }
 0xd23   :  { %v9255_v24 = vadd.f32 %v9254_v39, %v9253_v23 }
 0xd24   :  { %v9336_v37 = vpop.f32.mrb[138].mxu0 }
 0xd25   :  { %v9256_v13 = vpop.f32.mrb[122].mxu1  ;;  %v15870_v40 = vadd.f32 %v9335_v46, %v9255_v24  ;;  %v9337_v10 = vpop.f32.mrb[139].mxu0 }
 0xd26   :  { %v9257_v60 = vpop.f32.mrb[123].mxu1  ;;  %v9338_v18 = vadd.f32 %v9337_v10, %v9336_v37 }
 0xd27   :  { %v9258_v26 = vadd.f32 %v9257_v60, %v9256_v13 }
 0xd28   :  { %v9339_v1 = vpop.f32.mrb[140].mxu0 }
 0xd29   :  { %v9259_v7 = vpop.f32.mrb[124].mxu1  ;;  %v15875_v34 = vadd.f32 %v9338_v18, %v9258_v26  ;;  %v9340_v32 = vpop.f32.mrb[141].mxu0 }
 0xd2a   :  { %v9260_v22 = vpop.f32.mrb[125].mxu1  ;;  %v9341_v53 = vadd.f32 %v9340_v32, %v9339_v1 }
 0xd2b   :  { %v9261_v52 = vadd.f32 %v9260_v22, %v9259_v7 }
 0xd2c   :  { %v9342_v36 = vpop.f32.mrb[142].mxu0 }
 0xd2d   :  { %v9262_v25 = vpop.f32.mrb[126].mxu1  ;;  %v15878_v3 = vadd.f32 %v9341_v53, %v9261_v52  ;;  %v9343_v20 = vpop.f32.mrb[143].mxu0 }
 0xd2e   :  { %v9263_v27 = vpop.f32.mrb[127].mxu1  ;;  %v9344_v11 = vadd.f32 %v9343_v20, %v9342_v36 }
 0xd2f   :  { %v9264_v21 = vadd.f32 %v9263_v27, %v9262_v25 }
 0xd30   :  { %v15880_v56 = vpop.f32.mrb[144].mxu0 }
 0xd31   :  { %v9576_v62 = vpop.f32.mrb[128].mxu1  ;;  %v15882_v59 = vadd.f32 %v9344_v11, %v9264_v21  ;;  %v8378_v45 = vsel %vm286_vm0, %v15880_v56, 0.0  ;;  %v8416_v5 = vmul.f32 %v15880_v56, %v15880_v56  ;;  %v15891_v63 = vpop.f32.mrb[145].mxu0 }
 0xd32   :  { %v15885_v57 = vadd.f32 %v9576_v62, %v15840_v35  ;;  %v7925_v42 = vpop.f32.mrb[129].mxu1  ;;  %v8377_v19 = vsel %vm286_vm0, %v15891_v63, 0.0  ;;  %v8415_v43 = vmul.f32 %v15891_v63, %v15891_v63 }
 0xd33   :  { %v15894_v2 = vadd.f32 %v7925_v42, %v15838_v4  ;;  %v8432_v28 = vsel %vm286_vm0, %v8416_v5, 0.0  ;;  %v8379_v16 = vadd.f32 %v8378_v45, %v8377_v19 }
 0xd34   :  { %v8007_v35 = vsel %vm286_vm0, %v15885_v57, 0.0  ;;  %v8045_v12 = vmul.f32 %v15885_v57, %v15885_v57  ;;  %v8431_v54 = vsel %vm286_vm0, %v8415_v43, 0.0  ;;  %v15910_v48 = vpop.f32.mrb[146].mxu0 }
 0xd35   :  { %v8006_v50 = vsel %vm286_vm0, %v15894_v2, 0.0  ;;  %v8044_v4 = vmul.f32 %v15894_v2, %v15894_v2  ;;  %v9579_v38 = vpop.f32.mrb[130].mxu1  ;;  %v8433_v41 = vadd.f32 %v8432_v28, %v8431_v54  ;;  %v15916_v17 = vpop.f32.mrb[147].mxu0  ;;  %v8418_v37 = vmul.f32 %v15910_v48, %v15910_v48 }
 0xd36   :  { %v8061_v23 = vsel %vm286_vm0, %v8045_v12, 0.0  ;;  %v8008_v15 = vadd.f32 %v8007_v35, %v8006_v50  ;;  %v15914_v39 = vadd.f32 %v9579_v38, %v15844_v14  ;;  %v7935_v51 = vpop.f32.mrb[131].mxu1  ;;  %v8380_v49 = vsel %vm286_vm0, %v15916_v17, 0.0 }
 0xd37   :  { %v8060_v6 = vsel %vm286_vm0, %v8044_v4, 0.0  ;;  %v15920_v24 = vadd.f32 %v7935_v51, %v15842_v29  ;;  %v8381_v10 = vadd.f32 %v8380_v49, %v8379_v16  ;;  %v8417_v26 = vmul.f32 %v15916_v17, %v15916_v17 }
 0xd38   :  { %v8062_v46 = vadd.f32 %v8061_v23, %v8060_v6  ;;  %v8047_v13 = vmul.f32 %v15914_v39, %v15914_v39  ;;  %v15932_v29 = vpop.f32.mrb[148].mxu0  ;;  %v8011_v33 = vsel %vm286_vm0, %v15914_v39, 0.0  ;;  %v8382_v22 = vsel %vm286_vm0, %v15910_v48, 0.0 }
 0xd39   :  { %v8009_v14 = vsel %vm286_vm0, %v15920_v24, 0.0  ;;  %v8046_v60 = vmul.f32 %v15920_v24, %v15920_v24  ;;  %v9582_v8 = vpop.f32.mrb[132].mxu1  ;;  %v15939_v1 = vpop.f32.mrb[149].mxu0  ;;  %v8436_v25 = vsel %vm286_vm0, %v8418_v37, 0.0  ;;  %v8434_v36 = vsel %vm286_vm0, %v8417_v26, 0.0 }
 0xd3a   :  { %v8010_v9 = vadd.f32 %v8009_v14, %v8008_v15  ;;  %v15937_v18 = vadd.f32 %v9582_v8, %v15848_v58  ;;  %v7945_v7 = vpop.f32.mrb[133].mxu1  ;;  %v8065_v53 = vsel %vm286_vm0, %v8047_v13, 0.0  ;;  %v8435_v27 = vadd.f32 %v8434_v36, %v8433_v41 }
 0xd3b   :  { %v8063_v32 = vsel %vm286_vm0, %v8046_v60, 0.0  ;;  %v15947_v52 = vadd.f32 %v7945_v7, %v15846_v31  ;;  %v8386_v20 = vsel %vm286_vm0, %v15932_v29, 0.0  ;;  %v8383_v19 = vadd.f32 %v8382_v22, %v8381_v10 }
 0xd3c   :  { %v8064_v58 = vadd.f32 %v8063_v32, %v8062_v46  ;;  %v8012_v21 = vadd.f32 %v8011_v33, %v8010_v9  ;;  %v15956_v45 = vpop.f32.mrb[150].mxu0  ;;  %v8049_v31 = vmul.f32 %v15937_v18, %v15937_v18  ;;  %v8384_v28 = vsel %vm286_vm0, %v15939_v1, 0.0 }
 0xd3d   :  { %v8013_v11 = vsel %vm286_vm0, %v15947_v52, 0.0  ;;  %v9585_v62 = vpop.f32.mrb[134].mxu1  ;;  %v8048_v5 = vmul.f32 %v15947_v52, %v15947_v52  ;;  %v15962_v35 = vpop.f32.mrb[151].mxu0  ;;  %v8419_v16 = vmul.f32 %v15939_v1, %v15939_v1  ;;  %v8437_v50 = vadd.f32 %v8436_v25, %v8435_v27 }
 0xd3e   :  { %v8066_v42 = vadd.f32 %v8065_v53, %v8064_v58  ;;  %v7955_v43 = vpop.f32.mrb[135].mxu1  ;;  %v8014_v12 = vadd.f32 %v8013_v11, %v8012_v21  ;;  %v8420_v4 = vmul.f32 %v15932_v29, %v15932_v29  ;;  %v8385_v38 = vadd.f32 %v8384_v28, %v8383_v19 }
 0xd3f   :  { %v8067_v54 = vsel %vm286_vm0, %v8048_v5, 0.0  ;;  %v15972_v23 = vadd.f32 %v9585_v62, %v15852_v55  ;;  %v8015_v15 = vsel %vm286_vm0, %v15937_v18, 0.0  ;;  %v8438_v51 = vsel %vm286_vm0, %v8419_v16, 0.0 }
 0xd40   :  { %v8068_v41 = vadd.f32 %v8067_v54, %v8066_v42  ;;  %v15978_v6 = vadd.f32 %v7955_v43, %v15850_v44  ;;  %v15980_v13 = vpop.f32.mrb[152].mxu0  ;;  %v8069_v37 = vsel %vm286_vm0, %v8049_v31, 0.0  ;;  %v8439_v49 = vadd.f32 %v8438_v51, %v8437_v50 }
 0xd41   :  { %v9588_v46 = vpop.f32.mrb[136].mxu1  ;;  %v8422_v14 = vmul.f32 %v15956_v45, %v15956_v45  ;;  %v8016_v55 = vadd.f32 %v8015_v15, %v8014_v12  ;;  %v15985_v10 = vpop.f32.mrb[153].mxu0  ;;  %v8051_v8 = vmul.f32 %v15972_v23, %v15972_v23  ;;  %v8440_v7 = vsel %vm286_vm0, %v8420_v4, 0.0 }
 0xd42   :  { %v7965_v60 = vpop.f32.mrb[137].mxu1  ;;  %v8017_v44 = vsel %vm286_vm0, %v15978_v6, 0.0  ;;  %v8050_v9 = vmul.f32 %v15978_v6, %v15978_v6  ;;  %v8070_v26 = vadd.f32 %v8069_v37, %v8068_v41  ;;  %v8387_v22 = vadd.f32 %v8386_v20, %v8385_v38 }
 0xd43   :  { %v8018_v33 = vadd.f32 %v8017_v44, %v8016_v55  ;;  %v8388_v32 = vsel %vm286_vm0, %v15962_v35, 0.0  ;;  %v8421_v25 = vmul.f32 %v15962_v35, %v15962_v35  ;;  %v8441_v58 = vadd.f32 %v8440_v7, %v8439_v49 }
 0xd44   :  { %v8071_v53 = vsel %vm286_vm0, %v8050_v9, 0.0  ;;  %v16000_v36 = vadd.f32 %v9588_v46, %v15856_v47  ;;  %v16002_v21 = vpop.f32.mrb[154].mxu0  ;;  %v8019_v11 = vsel %vm286_vm0, %v15972_v23, 0.0  ;;  %v8390_v20 = vsel %vm286_vm0, %v15956_v45, 0.0 }
 0xd45   :  { %v9591_v27 = vpop.f32.mrb[138].mxu1  ;;  %v8072_v62 = vadd.f32 %v8071_v53, %v8070_v26  ;;  %v8389_v31 = vadd.f32 %v8388_v32, %v8387_v22  ;;  %v16008_v42 = vpop.f32.mrb[155].mxu0  ;;  %v8073_v19 = vsel %vm286_vm0, %v8051_v8, 0.0  ;;  %v8444_v43 = vsel %vm286_vm0, %v8422_v14, 0.0 }
 0xd46   :  { %v7975_v5 = vpop.f32.mrb[139].mxu1  ;;  %v8442_v47 = vsel %vm286_vm0, %v8421_v25, 0.0  ;;  %v16014_v12 = vadd.f32 %v7965_v60, %v15854_v30  ;;  %v8394_v16 = vsel %vm286_vm0, %v15980_v13, 0.0  ;;  %v8020_v50 = vadd.f32 %v8019_v11, %v8018_v33 }
 0xd47   :  { %v8443_v28 = vadd.f32 %v8442_v47, %v8441_v58  ;;  %v8074_v4 = vadd.f32 %v8073_v19, %v8072_v62  ;;  %v8053_v54 = vmul.f32 %v16000_v36, %v16000_v36  ;;  %v8391_v41 = vadd.f32 %v8390_v20, %v8389_v31 }
 0xd48   :  { %v8021_v38 = vsel %vm286_vm0, %v16014_v12, 0.0  ;;  %v8052_v15 = vmul.f32 %v16014_v12, %v16014_v12  ;;  %v16024_v46 = vpop.f32.mrb[156].mxu0  ;;  %v8392_v37 = vsel %vm286_vm0, %v15985_v10, 0.0  ;;  %v8423_v49 = vmul.f32 %v15985_v10, %v15985_v10 }
 0xd49   :  { %v9594_v51 = vpop.f32.mrb[140].mxu1  ;;  %v8022_v30 = vadd.f32 %v8021_v38, %v8020_v50  ;;  %v8445_v14 = vadd.f32 %v8444_v43, %v8443_v28  ;;  %v16030_v60 = vpop.f32.mrb[157].mxu0  ;;  %v8424_v8 = vmul.f32 %v15980_v13, %v15980_v13  ;;  %v8393_v9 = vadd.f32 %v8392_v37, %v8391_v41 }
 0xd4a   :  { %v7985_v55 = vpop.f32.mrb[141].mxu1  ;;  %v8075_v44 = vsel %vm286_vm0, %v8052_v15, 0.0  ;;  %v16036_v26 = vadd.f32 %v9591_v27, %v15865_v61  ;;  %v8023_v7 = vsel %vm286_vm0, %v16000_v36, 0.0  ;;  %v8446_v22 = vsel %vm286_vm0, %v8423_v49, 0.0 }
 0xd4b   :  { %v8076_v33 = vadd.f32 %v8075_v44, %v8074_v4  ;;  %v16042_v32 = vadd.f32 %v7975_v5, %v15858_v0  ;;  %v8077_v53 = vsel %vm286_vm0, %v8053_v54, 0.0  ;;  %v8447_v25 = vadd.f32 %v8446_v22, %v8445_v14 }
 0xd4c   :  { %v8426_v58 = vmul.f32 %v16002_v21, %v16002_v21  ;;  %v8024_v11 = vadd.f32 %v8023_v7, %v8022_v30  ;;  %v16047_v62 = vpop.f32.mrb[158].mxu0  ;;  %v8055_v61 = vmul.f32 %v16036_v26, %v16036_v26  ;;  %v8448_v43 = vsel %vm286_vm0, %v8424_v8, 0.0 }
 0xd4d   :  { %v9597_v20 = vpop.f32.mrb[142].mxu1  ;;  %v8025_v27 = vsel %vm286_vm0, %v16042_v32, 0.0  ;;  %v8054_v0 = vmul.f32 %v16042_v32, %v16042_v32  ;;  %v8078_v31 = vadd.f32 %v8077_v53, %v8076_v33  ;;  %v16055_v19 = vpop.f32.mrb[159].mxu0  ;;  %v8395_v28 = vadd.f32 %v8394_v16, %v8393_v9 }
 0xd4e   :  { %v7995_v5 = vpop.f32.mrb[143].mxu1  ;;  %v8026_v47 = vadd.f32 %v8025_v27, %v8024_v11  ;;  %v8396_v50 = vsel %vm286_vm0, %v16008_v42, 0.0  ;;  %v8425_v54 = vmul.f32 %v16008_v42, %v16008_v42  ;;  %v8449_v38 = vadd.f32 %v8448_v43, %v8447_v25 }
 0xd4f   :  { %v8079_v4 = vsel %vm286_vm0, %v8054_v0, 0.0  ;;  %v16064_v15 = vadd.f32 %v9594_v51, %v15875_v34  ;;  %v8027_v41 = vsel %vm286_vm0, %v16036_v26, 0.0  ;;  %v8398_v30 = vsel %vm286_vm0, %v16002_v21, 0.0 }
 0xd50   :  { %v8080_v37 = vadd.f32 %v8079_v4, %v8078_v31  ;;  %v8397_v16 = vadd.f32 %v8396_v50, %v8395_v28  ;;  %v8081_v49 = vsel %vm286_vm0, %v8055_v61, 0.0  ;;  %v8452_v14 = vsel %vm286_vm0, %v8426_v58, 0.0 }
 0xd51   :  { %v8450_v8 = vsel %vm286_vm0, %v8425_v54, 0.0  ;;  %v16074_v44 = vadd.f32 %v7985_v55, %v15870_v40  ;;  %v8428_v34 = vmul.f32 %v16024_v46, %v16024_v46  ;;  %v8028_v51 = vadd.f32 %v8027_v41, %v8026_v47 }
 0xd52   :  { %v8451_v9 = vadd.f32 %v8450_v8, %v8449_v38  ;;  %v8082_v7 = vadd.f32 %v8081_v49, %v8080_v37  ;;  %v8057_v33 = vmul.f32 %v16064_v15, %v16064_v15  ;;  %v8399_v25 = vadd.f32 %v8398_v30, %v8397_v16 }
 0xd53   :  { %v8029_v22 = vsel %vm286_vm0, %v16074_v44, 0.0  ;;  %v8056_v53 = vmul.f32 %v16074_v44, %v16074_v44  ;;  %v8400_v40 = vsel %vm286_vm0, %v16030_v60, 0.0  ;;  %v8427_v55 = vmul.f32 %v16030_v60, %v16030_v60 }
 0xd54   :  { %v8030_v58 = vadd.f32 %v8029_v22, %v8028_v51  ;;  %v8453_v11 = vadd.f32 %v8452_v14, %v8451_v9  ;;  %v8402_v61 = vsel %vm286_vm0, %v16024_v46, 0.0  ;;  %v8401_v0 = vadd.f32 %v8400_v40, %v8399_v25 }
 0xd55   :  { %v8083_v27 = vsel %vm286_vm0, %v8056_v53, 0.0  ;;  %v16092_v31 = vadd.f32 %v9597_v20, %v15882_v59  ;;  %v8031_v43 = vsel %vm286_vm0, %v16064_v15, 0.0  ;;  %v8454_v28 = vsel %vm286_vm0, %v8427_v55, 0.0 }
 0xd56   :  { %v8084_v47 = vadd.f32 %v8083_v27, %v8082_v7  ;;  %v16098_v50 = vadd.f32 %v7995_v5, %v15878_v3  ;;  %v8085_v4 = vsel %vm286_vm0, %v8057_v33, 0.0  ;;  %v8456_v54 = vsel %vm286_vm0, %v8428_v34, 0.0 }
 0xd57   :  { %v8455_v38 = vadd.f32 %v8454_v28, %v8453_v11  ;;  %v8032_v41 = vadd.f32 %v8031_v43, %v8030_v58  ;;  %v8059_v30 = vmul.f32 %v16092_v31, %v16092_v31  ;;  %v8430_v3 = vmul.f32 %v16047_v62, %v16047_v62 }
 0xd58   :  { %v8033_v59 = vsel %vm286_vm0, %v16098_v50, 0.0  ;;  %v8058_v20 = vmul.f32 %v16098_v50, %v16098_v50  ;;  %v8086_v37 = vadd.f32 %v8085_v4, %v8084_v47  ;;  %v8403_v16 = vadd.f32 %v8402_v61, %v8401_v0 }
 0xd59   :  { %v8034_v5 = vadd.f32 %v8033_v59, %v8032_v41  ;;  %v8404_v49 = vsel %vm286_vm0, %v16055_v19, 0.0  ;;  %v8035_v14 = vsel %vm286_vm0, %v16092_v31, 0.0  ;;  %v8429_v9 = vmul.f32 %v16055_v19, %v16055_v19 }
 0xd5a   :  { %v8087_v8 = vsel %vm286_vm0, %v8058_v20, 0.0  ;;  %v8457_v34 = vadd.f32 %v8456_v54, %v8455_v38  ;;  %v8405_v33 = vadd.f32 %v8404_v49, %v8403_v16  ;;  %v8089_v22 = vsel %vm286_vm0, %v8059_v30, 0.0 }
 0xd5b   :  { %v8036_v51 = vadd.f32 %v8035_v14, %v8034_v5  ;;  %v8088_v7 = vadd.f32 %v8087_v8, %v8086_v37  ;;  %v8406_v53 = vsel %vm286_vm0, %v16047_v62, 0.0  ;;  %v8458_v25 = vsel %vm286_vm0, %v8429_v9, 0.0 }
 0xd5c   :  { %v8407_v55 = vadd.f32 %v8406_v53, %v8405_v33  ;;  %v8459_v11 = vadd.f32 %v8458_v25, %v8457_v34  ;;  %v8460_v61 = vsel %vm286_vm0, %v8430_v3, 0.0 }
 0xd5d   :  { %v8037_v58 = vrot.slane %v8036_v51, 4  ;;  %v8090_v40 = vadd.f32 %v8089_v22, %v8088_v7 }
 0xd5e   :  { %v8408_v43 = vrot.slane %v8407_v55, 4  ;;  %v8461_v47 = vadd.f32 %v8460_v61, %v8459_v11 }
 0xd5f   :  { %v8038_v27 = vadd.f32 %v8037_v58, %v8036_v51  ;;  %v8091_v0 = vrot.slane %v8090_v40, 4 }
 0xd60   :  { %v8409_v54 = vadd.f32 %v8408_v43, %v8407_v55  ;;  %v8462_v38 = vrot.slane %v8461_v47, 4 }
 0xd61   :  { %v8039_v28 = vrot.slane %v8038_v27, 2  ;;  %v8092_v4 = vadd.f32 %v8091_v0, %v8090_v40 }
 0xd62   :  { %v8410_v59 = vrot.slane %v8409_v54, 2  ;;  %v8463_v20 = vadd.f32 %v8462_v38, %v8461_v47 }
 0xd63   :  { %v8040_v41 = vadd.f32 %v8039_v28, %v8038_v27  ;;  %v8093_v30 = vrot.slane %v8092_v4, 2 }
 0xd64   :  { %v8411_v16 = vadd.f32 %v8410_v59, %v8409_v54  ;;  %v8464_v49 = vrot.slane %v8463_v20, 2 }
 0xd65   :  { %v8041_v37 = vrot.slane %v8040_v41, 1  ;;  %v8094_v5 = vadd.f32 %v8093_v30, %v8092_v4 }
 0xd66   :  { %v8412_v9 = vrot.slane %v8411_v16, 1  ;;  %v8465_v3 = vadd.f32 %v8464_v49, %v8463_v20 }
 0xd67   :  { %v8042_v14 = vadd.f32 %v8041_v37, %v8040_v41  ;;  %v8095_v8 = vrot.slane %v8094_v5, 1 }
 0xd68   :  { %v8413_v7 = vadd.f32 %v8412_v9, %v8411_v16  ;;  %v8466_v33 = vrot.slane %v8465_v3, 1 }
 0xd69   :  { %v16122_v34 = vmul.f32 0.0078125, %v8042_v14  ;;  %v8096_v51 = vadd.f32 %v8095_v8, %v8094_v5  ;;  %v16236_v8 = vld [vmem:[%s11650_s13] ss:$0 sm:$0xff] }
 0xd6a   :  { %v8467_v43 = vadd.f32 %v8466_v33, %v8465_v3  ;;  %v16197_v3 = vld [vmem:[%s16553_s27] ss:$0 sm:$0xff] }
 0xd6b   :  { %v8097_v22 = vmul.f32 0.0078125, %v8096_v51  ;;  %v8098_v53 = vmul.f32 %v16122_v34, %v16122_v34  ;;  %v8114_v25 = vsub.f32 %v16098_v50, %v16122_v34  ;;  %v8108_v58 = vsub.f32 %v16014_v12, %v16122_v34 }
 0xd6c   :  { %v8109_v40 = vsub.f32 %v16000_v36, %v16122_v34  ;;  %v8110_v55 = vsub.f32 %v16042_v32, %v16122_v34  ;;  %v8111_v11 = vsub.f32 %v16036_v26, %v16122_v34  ;;  %v8112_v61 = vsub.f32 %v16074_v44, %v16122_v34 }
 0xd6d   :  { %v8099_v27 = vsub.f32 %v8097_v22, %v8098_v53  ;;  %v8113_v0 = vsub.f32 %v16064_v15, %v16122_v34  ;;  %v8115_v50 = vsub.f32 %v16092_v31, %v16122_v34  ;;  %v16142_v12 = vmul.f32 0.0078125, %v8413_v7  ;;  %v16204_v53 = vld [vmem:[%s16554_s11] ss:$0 sm:$0xff] }
 0xd6e   :  { %v8100_v36 = vsub.f32 %v15894_v2, %v16122_v34  ;;  %v8101_v32 = vsub.f32 %v15885_v57, %v16122_v34  ;;  %v8102_v26 = vsub.f32 %v15920_v24, %v16122_v34  ;;  %v8468_v28 = vmul.f32 0.0078125, %v8467_v43 }
 0xd6f   :  { %v8116_v44 = vadd.f32 1e-05, %v8099_v27  ;;  %v8469_v47 = vmul.f32 %v16142_v12, %v16142_v12  ;;  %v8479_v15 = vsub.f32 %v15985_v10, %v16142_v12  ;;  %v8480_v31 = vsub.f32 %v15980_v13, %v16142_v12 }
 0xd70   :  { %v8481_v4 = vsub.f32 %v16008_v42, %v16142_v12  ;;  %v8482_v54 = vsub.f32 %v16002_v21, %v16142_v12  ;;  %v8483_v38 = vsub.f32 %v16030_v60, %v16142_v12  ;;  %v8484_v41 = vsub.f32 %v16024_v46, %v16142_v12 }
 0xd71   :  { %11145 = vrsqrt.f32 %v8116_v44  ;;  %v8485_v10 = vsub.f32 %v16055_v19, %v16142_v12  ;;  %v8486_v13 = vsub.f32 %v16047_v62, %v16142_v12  ;;  %v8470_v30 = vsub.f32 %v8468_v28, %v8469_v47 }
 0xd72   :  { %v8103_v42 = vsub.f32 %v15914_v39, %v16122_v34  ;;  %v8104_v21 = vsub.f32 %v15947_v52, %v16122_v34  ;;  %v8105_v60 = vsub.f32 %v15937_v18, %v16122_v34  ;;  %v16556_v24 = vsub.f32 %v15978_v6, %v16122_v34 }
 0xd73   :  { %v8487_v20 = vadd.f32 1e-05, %v8470_v30  ;;  %v16557_v39 = vsub.f32 %v15972_v23, %v16122_v34 }
 0xd75   :  { %11147 = vrsqrt.f32 %v8487_v20 }
 0xd7b   :  { %v16194_v9 = vpop.eup %11145 }
 0xd7c   :  { %v8132_v51 = vmul.f32 %v16194_v9, %v8114_v25  ;;  %v8126_v7 = vmul.f32 %v16194_v9, %v8108_v58  ;;  %v8127_v33 = vmul.f32 %v16194_v9, %v8109_v40  ;;  %v8128_v22 = vmul.f32 %v16194_v9, %v8110_v55 }
 0xd7d   :  { %v8129_v27 = vmul.f32 %v16194_v9, %v8111_v11  ;;  %v8130_v43 = vmul.f32 %v16194_v9, %v8112_v61  ;;  %v8131_v44 = vmul.f32 %v16194_v9, %v8113_v0  ;;  %v8133_v47 = vmul.f32 %v16194_v9, %v8115_v50 }
 0xd7e   :  { %v8154_v28 = vmul.f32 %v16197_v3, %v8132_v51  ;;  %v8148_v25 = vmul.f32 %v16197_v3, %v8126_v7  ;;  %v8149_v58 = vmul.f32 %v16197_v3, %v8127_v33  ;;  %v8150_v40 = vmul.f32 %v16197_v3, %v8128_v22 }
 0xd7f   :  { %v8151_v55 = vmul.f32 %v16197_v3, %v8129_v27  ;;  %v8152_v30 = vmul.f32 %v16197_v3, %v8130_v43  ;;  %v8153_v11 = vmul.f32 %v16197_v3, %v8131_v44  ;;  %v8155_v61 = vmul.f32 %v16197_v3, %v8133_v47  ;;  %v16218_v0 = vpop.eup %11147  ;;  %v16229_v44 = vld [vmem:[%s16555_s15] ss:$0 sm:$0xff] }
 0xd80   :  { %v8176_v50 = vadd.f32 %v16204_v53, %v8154_v28  ;;  %v8170_v20 = vadd.f32 %v16204_v53, %v8148_v25  ;;  %v8171_v51 = vadd.f32 %v16204_v53, %v8149_v58  ;;  %v8172_v7 = vadd.f32 %v16204_v53, %v8150_v40 }
 0xd81   :  { %v8173_v33 = vadd.f32 %v16204_v53, %v8151_v55  ;;  %v8174_v22 = vadd.f32 %v16204_v53, %v8152_v30  ;;  %v8175_v27 = vadd.f32 %v16204_v53, %v8153_v11  ;;  %v8177_v43 = vadd.f32 %v16204_v53, %v8155_v61 }
 0xd82   :  { %v8497_v47 = vmul.f32 %v16218_v0, %v8479_v15  ;;  %v8498_v28 = vmul.f32 %v16218_v0, %v8480_v31  ;;  %v8499_v25 = vmul.f32 %v16218_v0, %v8481_v4  ;;  %v8500_v58 = vmul.f32 %v16218_v0, %v8482_v54 }
 0xd83   :  { %v8501_v40 = vmul.f32 %v16218_v0, %v8483_v38  ;;  %v8502_v55 = vmul.f32 %v16218_v0, %v8484_v41  ;;  %v8503_v30 = vmul.f32 %v16218_v0, %v8485_v10  ;;  %v8504_v11 = vmul.f32 %v16218_v0, %v8486_v13 }
 0xd84   :  { %v8519_v61 = vmul.f32 %v16229_v44, %v8497_v47  ;;  %v8520_v15 = vmul.f32 %v16229_v44, %v8498_v28  ;;  %v8521_v31 = vmul.f32 %v16229_v44, %v8499_v25  ;;  %v8522_v4 = vmul.f32 %v16229_v44, %v8500_v58 }
 0xd85   :  { %v8523_v54 = vmul.f32 %v16229_v44, %v8501_v40  ;;  %v8524_v14 = vmul.f32 %v16229_v44, %v8502_v55  ;;  %v8525_v38 = vmul.f32 %v16229_v44, %v8503_v30  ;;  %v8526_v41 = vmul.f32 %v16229_v44, %v8504_v11 }
 0xd86   :  { %v8541_v10 = vadd.f32 %v16236_v8, %v8519_v61  ;;  %v8542_v13 = vadd.f32 %v16236_v8, %v8520_v15  ;;  %v8543_v47 = vadd.f32 %v16236_v8, %v8521_v31  ;;  %v8544_v28 = vadd.f32 %v16236_v8, %v8522_v4 }
 0xd87   :  { %v8545_v25 = vadd.f32 %v16236_v8, %v8523_v54  ;;  %v8546_v58 = vadd.f32 %v16236_v8, %v8524_v14  ;;  %v8547_v40 = vadd.f32 %v16236_v8, %v8525_v38  ;;  %v8548_v55 = vadd.f32 %v16236_v8, %v8526_v41 }
 0xd88   :  { %v8557_v49 = vadd.f32 %v8541_v10, %v8170_v20  ;;  %v8558_v30 = vadd.f32 %v8542_v13, %v8171_v51  ;;  %v8559_v16 = vadd.f32 %v8543_v47, %v8172_v7  ;;  %v8560_v11 = vadd.f32 %v8544_v28, %v8173_v33 }
 0xd89   :  { %v8561_v5 = vadd.f32 %v8545_v25, %v8174_v22  ;;  %v8562_v61 = vadd.f32 %v8546_v58, %v8175_v27  ;;  %v8563_v37 = vadd.f32 %v8547_v40, %v8176_v50  ;;  %v8564_v15 = vadd.f32 %v8548_v55, %v8177_v43 }
 0xd8a   :  { %v8573_v59 = vmax.f32 %v8557_v49, 0.0  ;;  %v8574_v31 = vmax.f32 %v8558_v30, 0.0  ;;  %v8575_v62 = vmax.f32 %v8559_v16, 0.0  ;;  %v8576_v4 = vmax.f32 %v8560_v11, 0.0 }
 0xd8b   :  { %v8577_v19 = vmax.f32 %v8561_v5, 0.0  ;;  %v8578_v54 = vmax.f32 %v8562_v61, 0.0  ;;  %v8579_v46 = vmax.f32 %v8563_v37, 0.0  ;;  %v8580_v14 = vmax.f32 %v8564_v15, 0.0 }
 0xd8c   :  { %v8602_v38 = vsel %vm286_vm0, %v8573_v59, 0.0  ;;  %v8603_v41 = vsel %vm286_vm0, %v8574_v31, 0.0  ;;  %v8605_v20 = vsel %vm286_vm0, %v8575_v62, 0.0  ;;  %v8607_v7 = vsel %vm286_vm0, %v8576_v4, 0.0 }
 0xd8d   :  { %v8604_v51 = vadd.f32 %v8603_v41, %v8602_v38  ;;  %v8609_v50 = vsel %vm286_vm0, %v8577_v19, 0.0  ;;  %v8611_v49 = vsel %vm286_vm0, %v8578_v54, 0.0  ;;  %v8613_v16 = vsel %vm286_vm0, %v8579_v46, 0.0 }
 0xd8e   :  { %v8118_v37 = vmul.f32 %v16194_v9, %v8100_v36  ;;  %v8119_v59 = vmul.f32 %v16194_v9, %v8101_v32  ;;  %v8120_v62 = vmul.f32 %v16194_v9, %v8102_v26  ;;  %v8121_v46 = vmul.f32 %v16194_v9, %v8103_v42 }
 0xd8f   :  { %v8606_v19 = vadd.f32 %v8605_v20, %v8604_v51  ;;  %v8122_v2 = vmul.f32 %v16194_v9, %v8104_v21  ;;  %v8123_v57 = vmul.f32 %v16194_v9, %v8105_v60  ;;  %v8124_v36 = vmul.f32 %v16194_v9, %v16556_v24 }
 0xd90   :  { %v8125_v32 = vmul.f32 %v16194_v9, %v16557_v39  ;;  %v8140_v26 = vmul.f32 %v16197_v3, %v8118_v37  ;;  %v8141_v52 = vmul.f32 %v16197_v3, %v8119_v59  ;;  %v8142_v21 = vmul.f32 %v16197_v3, %v8120_v62 }
 0xd91   :  { %v8608_v42 = vadd.f32 %v8607_v7, %v8606_v19  ;;  %v8143_v18 = vmul.f32 %v16197_v3, %v8121_v46  ;;  %v8144_v60 = vmul.f32 %v16197_v3, %v8122_v2  ;;  %v8615_v6 = vsel %vm286_vm0, %v8580_v14, 0.0 }
 0xd92   :  { %v8145_v5 = vmul.f32 %v16197_v3, %v8123_v57  ;;  %v8146_v33 = vmul.f32 %v16197_v3, %v8124_v36  ;;  %v8147_v23 = vmul.f32 %v16197_v3, %v8125_v32  ;;  %v8162_v9 = vadd.f32 %v16204_v53, %v8140_v26 }
 0xd93   :  { %v8610_v34 = vadd.f32 %v8609_v50, %v8608_v42  ;;  %v8163_v22 = vadd.f32 %v16204_v53, %v8141_v52  ;;  %v8164_v27 = vadd.f32 %v16204_v53, %v8142_v21  ;;  %v8165_v43 = vadd.f32 %v16204_v53, %v8143_v18 }
 0xd94   :  { %v8166_v10 = vadd.f32 %v16204_v53, %v8144_v60  ;;  %v8167_v13 = vadd.f32 %v16204_v53, %v8145_v5  ;;  %v8168_v47 = vadd.f32 %v16204_v53, %v8146_v33  ;;  %v16558_v25 = vsub.f32 %v15891_v63, %v16142_v12 }
 0xd95   :  { %v8612_v28 = vadd.f32 %v8611_v49, %v8610_v34  ;;  %v16559_v58 = vsub.f32 %v15880_v56, %v16142_v12  ;;  %v16560_v55 = vsub.f32 %v15916_v17, %v16142_v12  ;;  %v16561_v11 = vsub.f32 %v15910_v48, %v16142_v12 }
 0xd96   :  { %v8489_v3 = vmul.f32 %v16218_v0, %v16558_v25  ;;  %v16562_v63 = vsub.f32 %v15939_v1, %v16142_v12  ;;  %v16563_v56 = vsub.f32 %v15932_v29, %v16142_v12  ;;  %v16564_v17 = vsub.f32 %v15962_v35, %v16142_v12 }
 0xd97   :  { %v8490_v40 = vmul.f32 %v16218_v0, %v16559_v58  ;;  %v8491_v30 = vmul.f32 %v16218_v0, %v16560_v55  ;;  %v8492_v61 = vmul.f32 %v16218_v0, %v16561_v11  ;;  %v8614_v54 = vadd.f32 %v8613_v16, %v8612_v28 }
 0xd98   :  { %v8493_v15 = vmul.f32 %v16218_v0, %v16562_v63  ;;  %v8494_v31 = vmul.f32 %v16218_v0, %v16563_v56  ;;  %v8495_v4 = vmul.f32 %v16218_v0, %v16564_v17  ;;  %v16565_v48 = vsub.f32 %v15956_v45, %v16142_v12 }
 0xd99   :  { %v8511_v1 = vmul.f32 %v16229_v44, %v8489_v3  ;;  %v8512_v38 = vmul.f32 %v16229_v44, %v8490_v40  ;;  %v8513_v41 = vmul.f32 %v16229_v44, %v8491_v30  ;;  %v8514_v29 = vmul.f32 %v16229_v44, %v8492_v61 }
 0xd9a   :  { %v8496_v14 = vmul.f32 %v16218_v0, %v16565_v48  ;;  %v8515_v20 = vmul.f32 %v16229_v44, %v8493_v15  ;;  %v8516_v35 = vmul.f32 %v16229_v44, %v8494_v31  ;;  %v8616_v51 = vadd.f32 %v8615_v6, %v8614_v54 }
 0xd9b   :  { %v8169_v7 = vadd.f32 %v16204_v53, %v8147_v23  ;;  %v8517_v50 = vmul.f32 %v16229_v44, %v8495_v4  ;;  %v8533_v12 = vadd.f32 %v16236_v8, %v8511_v1  ;;  %v8534_v0 = vadd.f32 %v16236_v8, %v8512_v38  ;;  %v8923_v1 = vld [vmem:[#allocation3] ss:$0 sm:$0xff] }
 0xd9c   :  { %v8518_v45 = vmul.f32 %v16229_v44, %v8496_v14  ;;  %v8535_v49 = vadd.f32 %v16236_v8, %v8513_v41  ;;  %v8536_v16 = vadd.f32 %v16236_v8, %v8514_v29  ;;  %v8537_v37 = vadd.f32 %v16236_v8, %v8515_v20 }
 0xd9d   :  { %v8538_v59 = vadd.f32 %v16236_v8, %v8516_v35  ;;  %v8539_v62 = vadd.f32 %v16236_v8, %v8517_v50  ;;  %v8549_v19 = vadd.f32 %v8533_v12, %v8162_v9  ;;  %v8550_v46 = vadd.f32 %v8534_v0, %v8163_v22 }
 0xd9e   :  { %v8540_v53 = vadd.f32 %v16236_v8, %v8518_v45  ;;  %v8551_v2 = vadd.f32 %v8535_v49, %v8164_v27  ;;  %v8552_v44 = vadd.f32 %v8536_v16, %v8165_v43  ;;  %v8553_v57 = vadd.f32 %v8537_v37, %v8166_v10 }
 0xd9f   :  { %v8554_v24 = vadd.f32 %v8538_v59, %v8167_v13  ;;  %v8555_v36 = vadd.f32 %v8539_v62, %v8168_v47  ;;  %v8565_v32 = vmax.f32 %v8549_v19, 0.0  ;;  %v8566_v26 = vmax.f32 %v8550_v46, 0.0 }
 0xda0   :  { %v8556_v39 = vadd.f32 %v8540_v53, %v8169_v7  ;;  %v8567_v52 = vmax.f32 %v8551_v2, 0.0  ;;  %v8568_v42 = vmax.f32 %v8552_v44, 0.0  ;;  %v8617_v60 = vrot.slane %v8616_v51, 4 }
 0xda1   :  { %v8581_v21 = vsel %vm286_vm0, %v8565_v32, 0.0  ;;  %v8582_v18 = vsel %vm286_vm0, %v8566_v26, 0.0  ;;  %v8569_v5 = vmax.f32 %v8553_v57, 0.0  ;;  %v8570_v23 = vmax.f32 %v8554_v24, 0.0 }
 0xda2   :  { %v8583_v6 = vadd.f32 %v8582_v18, %v8581_v21  ;;  %v8584_v8 = vsel %vm286_vm0, %v8567_v52, 0.0  ;;  %v8586_v34 = vsel %vm286_vm0, %v8568_v42, 0.0  ;;  %v8618_v9 = vadd.f32 %v8617_v60, %v8616_v51 }
 0xda3   :  { %v8571_v27 = vmax.f32 %v8555_v36, 0.0  ;;  %v8588_v43 = vsel %vm286_vm0, %v8569_v5, 0.0  ;;  %v8572_v13 = vmax.f32 %v8556_v39, 0.0  ;;  %v8590_v47 = vsel %vm286_vm0, %v8570_v23, 0.0 }
 0xda4   :  { %v8585_v33 = vadd.f32 %v8584_v8, %v8583_v6  ;;  %v8619_v25 = vrot.slane %v8618_v9, 2 }
 0xda5   :  { %v8592_v3 = vsel %vm286_vm0, %v8571_v27, 0.0  ;;  %v8594_v40 = vsel %vm286_vm0, %v8572_v13, 0.0 }
 0xda6   :  { %v8587_v22 = vadd.f32 %v8586_v34, %v8585_v33  ;;  %v8620_v30 = vadd.f32 %v8619_v25, %v8618_v9 }
 0xda8   :  { %v8589_v10 = vadd.f32 %v8588_v43, %v8587_v22  ;;  %v8621_v63 = vrot.slane %v8620_v30, 1 }
 0xdaa   :  { %v8591_v28 = vadd.f32 %v8590_v47, %v8589_v10  ;;  %v8622_v31 = vadd.f32 %v8621_v63, %v8620_v30 }
 0xdac   :  { %v8593_v58 = vadd.f32 %v8592_v3, %v8591_v28  ;;  %v8625_v54 = vmul.f32 0.015625, %v8622_v31 }
 0xdae   :  { %v8595_v55 = vadd.f32 %v8594_v40, %v8593_v58 }
 0xdb0   :  { %v8596_v11 = vrot.slane %v8595_v55, 4 }
 0xdb2   :  { %v8597_v61 = vadd.f32 %v8596_v11, %v8595_v55 }
 0xdb4   :  { %v8598_v15 = vrot.slane %v8597_v61, 2 }
 0xdb6   :  { %v8599_v56 = vadd.f32 %v8598_v15, %v8597_v61 }
 0xdb8   :  { %v8600_v17 = vrot.slane %v8599_v56, 1 }
 0xdba   :  { %v8601_v4 = vadd.f32 %v8600_v17, %v8599_v56 }
 0xdbc   :  { %v8624_v48 = vmul.f32 0.015625, %v8601_v4 }
 0xdbe   :  { %v8644_v14 = vsel %vm8643_vm14, %v8625_v54, %v8624_v48 }
 0xdbf   :  { %9647 = vmatmul.mubr.msk.f32.vlgmr.msra.gmra.mrb[144].mxu1 %vm286_vm0, %v8644_v14 }
 0xe92   :  { %v8713_v38 = vpop.f32.mrb[144].mxu1 }
 0xe93   :  { %v8714_v41 = vadd.f32 %v8923_v1, %v8713_v38  ;;  %v9648_v29 = vpop.f32.mrb[145].mxu1 }
 0xe95   :  { %v8717_v20 = vmax.f32 %v8714_v41, 0.0 }
 0xe97   :  { %8719 = vst.msk [vmem:[%s11663_s9] sm:$0x3] %vm8718_vm15, %v8717_v20 }
 0xe98   :  { %8724 = vsyncpa [#allocation5], 1 }
 0xe99   :  { %8725 = vsyncpa [#allocation7], 1 }
 0xe9a   :  { %8726 = vsyncpa [#allocation10], 1 }
 0xe9b   :  { %8727 = vsyncpa [#allocation13], 1 }
 0xe9c   :  { %8728 = vsyncpa [#allocation16], 1 }
 0xe9d   :  { %8729 = vsyncpa [#allocation19], 1 }
 0xe9e   :  { %8730 = vsyncpa [#allocation22], 1 }

</bundles_post_ra>
